<compile_context>
chip_gen: v5e
topology: v5e:2x2
jax: 0.10.0
libtpu: 0.0.40
codegen_flags: <defaults>
</compile_context>

<pallas_src>
import functools

import jax
import jax.numpy as jnp
from jax import lax
from jax.experimental import pallas as pl
from jax.experimental.pallas import tpu as pltpu

LEAKY_SLOPE = 0.2
BN_EPS = 1e-5


# ----------------------------- Pallas kernels ------------------------------

def _apply_act(y, act):
    # f32 epilogue (v5e has no bf16 VPU/EUP); cast to the storage dtype only at
    # the final store.
    if act == "leaky":
        return jnp.where(y >= 0, y, LEAKY_SLOPE * y)
    if act == "sigmoid":
        return 1.0 / (1.0 + jnp.exp(-y))
    return y


def _conv_act_kernel(x_ref, w_ref, b_ref, o_ref, *, act):
    # bf16 x bf16 -> f32 on the MXU; bias + activation in f32 on the VPU/EUP.
    y = jnp.dot(x_ref[...], w_ref[...], preferred_element_type=jnp.float32)
    y = y + b_ref[...]
    o_ref[...] = _apply_act(y, act).astype(o_ref.dtype)


def _conv_bn_act_kernel(x_ref, w_ref, b_ref, g_ref, bt_ref, o_ref, acc_ref, *, act):
    # K-tiled accumulation into an f32 VMEM scratch; BN + activation epilogue
    # only at the last K step.  The full M rows stay resident so BatchNorm
    # statistics are exact (batch x spatial reduction, biased variance).
    k = pl.program_id(0)

    @pl.when(k == 0)
    def _():
        acc_ref[...] = jnp.zeros_like(acc_ref)

    acc_ref[...] += jnp.dot(x_ref[...], w_ref[...],
                            preferred_element_type=jnp.float32)

    @pl.when(k == pl.num_programs(0) - 1)
    def _():
        y = acc_ref[...] + b_ref[...]
        mean = jnp.mean(y, axis=0, keepdims=True)
        var = jnp.mean(y * y, axis=0, keepdims=True) - mean * mean
        yn = (y - mean) * lax.rsqrt(var + BN_EPS)
        yn = yn * g_ref[...] + bt_ref[...]
        o_ref[...] = _apply_act(yn, act).astype(o_ref.dtype)


# ----------------------------- pallas_call wrappers -------------------------

def _compiler_params(block_bytes, scratch_bytes=0, dims=None):
    # Double-buffered input/output blocks + scratch + headroom, clamped to
    # sane limits for v5e/v6e (128 MiB VMEM) and v7x (64 MiB VMEM).
    need = 2 * int(block_bytes) + int(scratch_bytes) + (8 << 20)
    limit = int(min(max(need, 16 << 20), 56 << 20))
    return pltpu.CompilerParams(dimension_semantics=dims,
                                vmem_limit_bytes=limit)


def fused_conv_act(patches, w, b, *, act, tm, out_dtype=jnp.bfloat16):
    """M-tiled (parallel grid) matmul + bias + activation."""
    m, k = patches.shape
    cout = w.shape[1]
    tm = min(tm, m)
    b2 = b.reshape(1, cout).astype(jnp.float32)
    kern = functools.partial(_conv_act_kernel, act=act)
    blk = (tm * k * patches.dtype.itemsize + k * cout * w.dtype.itemsize
           + cout * 4 + tm * cout * jnp.dtype(out_dtype).itemsize)
    return pl.pallas_call(
        kern,
        out_shape=jax.ShapeDtypeStruct((m, cout), out_dtype),
        grid_spec=pltpu.PrefetchScalarGridSpec(
            num_scalar_prefetch=0,
            grid=(pl.cdiv(m, tm),),
            in_specs=[pl.BlockSpec((tm, k), lambda i: (i, 0)),
                      pl.BlockSpec((k, cout), lambda i: (0, 0)),
                      pl.BlockSpec((1, cout), lambda i: (0, 0))],
            out_specs=pl.BlockSpec((tm, cout), lambda i: (i, 0))),
        compiler_params=_compiler_params(blk, dims=("parallel",)),
    )(patches, w, b2)


def _pick_tk(k, target=512):
    # Largest divisor of K that is <= target and a multiple of 128 (lane-dense
    # weight tiles); falls back to the full K for small problems.
    tk = min(target, k)
    while tk > 128 and (k % tk != 0 or tk % 128 != 0):
        tk -= 128
    return tk if k % tk == 0 else k


def fused_conv_bn_act(patches, w, b, gamma, beta, *, act, tk=None,
                      out_dtype=jnp.bfloat16):
    """K-tiled (arbitrary grid, f32 accumulator) matmul + bias + BN + activation."""
    m, k = patches.shape
    cout = w.shape[1]
    tk = _pick_tk(k) if tk is None else tk
    assert k % tk == 0, (k, tk)
    b2 = b.reshape(1, cout).astype(jnp.float32)
    g2 = gamma.reshape(1, cout).astype(jnp.float32)
    bt2 = beta.reshape(1, cout).astype(jnp.float32)
    kern = functools.partial(_conv_bn_act_kernel, act=act)
    blk = (m * tk * patches.dtype.itemsize + tk * cout * w.dtype.itemsize
           + 3 * cout * 4 + m * cout * jnp.dtype(out_dtype).itemsize)
    scratch = m * cout * 4
    return pl.pallas_call(
        kern,
        out_shape=jax.ShapeDtypeStruct((m, cout), out_dtype),
        grid_spec=pltpu.PrefetchScalarGridSpec(
            num_scalar_prefetch=0,
            grid=(k // tk,),
            in_specs=[pl.BlockSpec((m, tk), lambda i: (0, i)),
                      pl.BlockSpec((tk, cout), lambda i: (i, 0)),
                      pl.BlockSpec((1, cout), lambda i: (0, 0)),
                      pl.BlockSpec((1, cout), lambda i: (0, 0)),
                      pl.BlockSpec((1, cout), lambda i: (0, 0))],
            out_specs=pl.BlockSpec((m, cout), lambda i: (0, 0)),
            scratch_shapes=[pltpu.VMEM((m, cout), jnp.float32)]),
        compiler_params=_compiler_params(blk, scratch_bytes=scratch,
                                         dims=("arbitrary",)),
    )(patches, w, b2, g2, bt2)


def fused_conv_whole(patches, w, b, *, act, out_dtype=jnp.float32):
    """Whole-array matmul + bias + activation (final 1x1-spatial conv, M = batch)."""
    m, k = patches.shape
    cout = w.shape[1]
    b2 = b.reshape(1, cout).astype(jnp.float32)
    kern = functools.partial(_conv_act_kernel, act=act)
    vspec = pl.BlockSpec(memory_space=pltpu.MemorySpace.VMEM)
    blk = (m * k * patches.dtype.itemsize + k * cout * w.dtype.itemsize
           + cout * 4 + m * cout * jnp.dtype(out_dtype).itemsize)
    return pl.pallas_call(
        kern,
        out_shape=jax.ShapeDtypeStruct((m, cout), out_dtype),
        in_specs=[vspec, vspec, vspec],
        out_specs=vspec,
        compiler_params=_compiler_params(blk),
    )(patches, w, b2)


# ------------------------------- JAX glue ----------------------------------

def im2col(x_nhwc, k, s, p):
    """Extract (kh, kw, cin)-ordered patches -> (N*Ho*Wo, k*k*C). Keeps dtype."""
    n, h, w, c = x_nhwc.shape
    xp = jnp.pad(x_nhwc, ((0, 0), (p, p), (p, p), (0, 0)))
    ho = (h + 2 * p - k) // s + 1
    wo = (w + 2 * p - k) // s + 1
    cols = []
    for kh in range(k):
        for kw in range(k):
            cols.append(xp[:, kh:kh + s * ho:s, kw:kw + s * wo:s, :])
    patches = jnp.stack(cols, axis=3)               # (n, ho, wo, k*k, c)
    return patches.reshape(n * ho * wo, k * k * c), ho, wo


def w_to_mat(w_oihw):
    """PyTorch (Cout, Cin, KH, KW) -> (KH*KW*Cin, Cout), matching im2col order."""
    cout, cin, kh, kw = w_oihw.shape
    return jnp.transpose(w_oihw, (2, 3, 1, 0)).reshape(kh * kw * cin, cout)


def init_params(key):
    keys = jax.random.split(key, 15)

    def normal(k, shape, scale=0.05):
        return (scale * jax.random.normal(k, shape)).astype(jnp.float32)

    p = {}
    p["embed"] = normal(keys[0], (10, 10), 1.0)          # nn.Embedding(10, 10)
    p["w1_img"] = normal(keys[1], (64, 1, 4, 4))         # Conv2d(1, 64, 4, 2, 1)
    p["b1_img"] = normal(keys[2], (64,))
    p["w1_c"] = normal(keys[3], (64, 10, 4, 4))          # Conv2d(10, 64, 4, 2, 1)
    p["b1_c"] = normal(keys[4], (64,))
    p["w2"] = normal(keys[5], (256, 128, 4, 4))          # Conv2d(128, 256, 4, 2, 1)
    p["b2"] = normal(keys[6], (256,))
    p["g2"] = 1.0 + normal(keys[7], (256,))              # BatchNorm2d(256)
    p["beta2"] = normal(keys[8], (256,))
    p["w3"] = normal(keys[9], (512, 256, 4, 4))          # Conv2d(256, 512, 4, 2, 1)
    p["b3"] = normal(keys[10], (512,))
    p["g3"] = 1.0 + normal(keys[11], (512,))             # BatchNorm2d(512)
    p["beta3"] = normal(keys[12], (512,))
    p["w4"] = normal(keys[13], (1, 512, 4, 4))           # Conv2d(512, 1, 4, 1, 0)
    p["b4"] = normal(keys[14], (1,))
    return p


def discriminator_forward(params, img_nchw, labels):
    n = img_nchw.shape[0]
    img = jnp.transpose(img_nchw, (0, 2, 3, 1)).astype(jnp.bfloat16)   # (N,32,32,1)

    # label_embed + unsqueeze + expand(., ., 32, 32)  -> NHWC (N, 32, 32, 10)
    c = params["embed"][labels].astype(jnp.bfloat16)
    c = jnp.broadcast_to(c[:, None, None, :], (n, 32, 32, 10))

    # --- Fused layer 1: convin_img (1->64) + convin_c (10->64) + LeakyReLU ---
    # Both convs share the same output grid; concatenate their im2col patches
    # along K and use a block-diagonal weight so the result is the already
    # channel-concatenated lane-dense (M, 128) tensor.  K padded 176 -> 256.
    ip, ho, wo = im2col(img, 4, 2, 1)        # (M, 16)
    cp, _, _ = im2col(c, 4, 2, 1)            # (M, 160)
    m1 = ip.shape[0]
    k1, k1p = 176, 256
    p1 = jnp.concatenate(
        [ip, cp, jnp.zeros((m1, k1p - k1), jnp.bfloat16)], axis=1)     # (M, 256)

    w_img = w_to_mat(params["w1_img"])       # (16, 64)
    w_c = w_to_mat(params["w1_c"])           # (160, 64)
    w1 = jnp.zeros((k1p, 128), jnp.float32)
    w1 = w1.at[:16, :64].set(w_img)
    w1 = w1.at[16:176, 64:].set(w_c)
    w1 = w1.astype(jnp.bfloat16)
    b1 = jnp.concatenate([params["b1_img"], params["b1_c"]])

    h = fused_conv_act(p1, w1, b1, act="leaky", tm=256)                # (M, 128)
    h = h.reshape(n, ho, wo, 128)                                      # (N,16,16,128)

    # --- convout block 1: Conv(128->256, 4, 2, 1) + BN + LeakyReLU (K=2048) ---
    hp, ho, wo = im2col(h, 4, 2, 1)
    h = fused_conv_bn_act(hp, w_to_mat(params["w2"]).astype(jnp.bfloat16),
                          params["b2"], params["g2"], params["beta2"],
                          act="leaky")
    h = h.reshape(n, ho, wo, 256)                                      # (N,8,8,256)

    # --- convout block 2: Conv(256->512, 4, 2, 1) + BN + LeakyReLU (K=4096) ---
    hp, ho, wo = im2col(h, 4, 2, 1)
    h = fused_conv_bn_act(hp, w_to_mat(params["w3"]).astype(jnp.bfloat16),
                          params["b3"], params["g3"], params["beta3"],
                          act="leaky")
    h = h.reshape(n, ho, wo, 512)                                      # (N,4,4,512)

    # --- final Conv(512->1, 4, 1, 0) + Sigmoid; pad Cout 1 -> 128 for a
    # lane-dense store, slice back afterwards (padded columns carry zero weights).
    hp, ho, wo = im2col(h, 4, 1, 0)                                    # (N, 8192)
    w4 = jnp.pad(w_to_mat(params["w4"]), ((0, 0), (0, 127))).astype(jnp.bfloat16)
    b4 = jnp.pad(params["b4"], (0, 127))
    v = fused_conv_whole(hp, w4, b4, act="sigmoid", out_dtype=jnp.float32)

    validity = v[:, :1]                                                # (N, 1)
    return validity


if __name__ == "__main__":
    key = jax.random.PRNGKey(0)
    pkey, ikey, lkey = jax.random.split(key, 3)
    params = init_params(pkey)

    # PyTorch-style inputs: img NCHW (N,1,32,32); labels int in [0, 10).
    img = jax.random.normal(ikey, (2, 1, 32, 32), dtype=jnp.float32)
    labels = jax.random.randint(lkey, (2,), 0, 10)

    fwd = jax.jit(discriminator_forward)
    out = fwd(params, img, labels)
    out = jax.block_until_ready(out)
    assert out.shape == (2, 1)
    assert bool(jnp.all(jnp.isfinite(out)))
    assert bool(jnp.all((out >= 0.0) & (out <= 1.0)))
    print("KERNEL_OK")
</pallas_src>

<mosaic_0001>
module attributes {stable_mosaic.version = 11 : i64} {
  func.func @_conv_act_kernel(%arg0: i32, %arg1: memref<256x256xbf16, #tpu.memory_space<vmem>>, %arg2: memref<256x128xbf16, #tpu.memory_space<vmem>>, %arg3: memref<1x128xf32, #tpu.memory_space<vmem>>, %arg4: memref<256x128xbf16, #tpu.memory_space<vmem>>) attributes {dimension_semantics = [#tpu.dimension_semantics<parallel>], iteration_bounds = array<i64: 2>, scalar_prefetch = 0 : i64, scratch_operands = 0 : i64, tpu.core_type = #tpu.core_type<tc>, window_params = [{transform_indices = @transform_0, window_bounds = array<i64: 256, 256>}, {pipeline_mode = #tpu.pipeline_mode<synchronous>, transform_indices = @transform_1, window_bounds = array<i64: 256, 128>}, {pipeline_mode = #tpu.pipeline_mode<synchronous>, transform_indices = @transform_2, window_bounds = array<i64: 1, 128>}, {transform_indices = @transform_3, window_bounds = array<i64: 256, 128>}]} {
    %c0 = arith.constant 0 : index
    %c0_0 = arith.constant 0 : index
    %0 = vector.load %arg1[%c0, %c0_0] : memref<256x256xbf16, #tpu.memory_space<vmem>>, vector<256x256xbf16>
    %c0_1 = arith.constant 0 : index
    %c0_2 = arith.constant 0 : index
    %1 = vector.load %arg2[%c0_1, %c0_2] : memref<256x128xbf16, #tpu.memory_space<vmem>>, vector<256x128xbf16>
    %cst = arith.constant dense<0.000000e+00> : vector<256x128xf32>
    %2 = tpu.matmul %0, %1, %cst {dimension_numbers = #tpu.dot_dimension_numbers<[1], [0], [0], [1], [0, 0, 1, 1], [], []>} : vector<256x256xbf16>, vector<256x128xbf16>, vector<256x128xf32> -> vector<256x128xf32>
    %c0_3 = arith.constant 0 : index
    %c0_4 = arith.constant 0 : index
    %3 = vector.load %arg3[%c0_3, %c0_4] : memref<1x128xf32, #tpu.memory_space<vmem>>, vector<1x128xf32>
    %4 = vector.broadcast %3 : vector<1x128xf32> to vector<256x128xf32>
    %5 = arith.addf %2, %4 : vector<256x128xf32>
    %cst_5 = arith.constant 0.000000e+00 : f32
    %6 = vector.broadcast %cst_5 : f32 to vector<256x128xf32>
    %7 = arith.cmpf oge, %5, %6 : vector<256x128xf32>
    %cst_6 = arith.constant 2.000000e-01 : f32
    %8 = vector.broadcast %cst_6 : f32 to vector<256x128xf32>
    %9 = arith.mulf %8, %5 : vector<256x128xf32>
    %10 = arith.select %7, %5, %9 : vector<256x128xi1>, vector<256x128xf32>
    %11 = arith.truncf %10 : vector<256x128xf32> to vector<256x128xbf16>
    %c0_7 = arith.constant 0 : index
    %c0_8 = arith.constant 0 : index
    %12 = vector.load %arg4[%c0_7, %c0_8] : memref<256x128xbf16, #tpu.memory_space<vmem>>, vector<256x128xbf16>
    tpu.vector_store %arg4[%c0_7, %c0_8], %11 {strides = array<i32>} : memref<256x128xbf16, #tpu.memory_space<vmem>>, vector<256x128xbf16>,
    return
  }
  func.func @transform_0(%arg0: i32) -> (i32, i32) {
    %c0_i32 = arith.constant 0 : i32
    %c0_i32_0 = arith.constant 0 : i32
    return %arg0, %c0_i32 : i32, i32
  }
  func.func @transform_1(%arg0: i32) -> (i32, i32) {
    %c0_i32 = arith.constant 0 : i32
    %c0_i32_0 = arith.constant 0 : i32
    %c0_i32_1 = arith.constant 0 : i32
    return %c0_i32, %c0_i32_0 : i32, i32
  }
  func.func @transform_2(%arg0: i32) -> (i32, i32) {
    %c0_i32 = arith.constant 0 : i32
    %c0_i32_0 = arith.constant 0 : i32
    %c0_i32_1 = arith.constant 0 : i32
    return %c0_i32, %c0_i32_0 : i32, i32
  }
  func.func @transform_3(%arg0: i32) -> (i32, i32) {
    %c0_i32 = arith.constant 0 : i32
    %c0_i32_0 = arith.constant 0 : i32
    return %arg0, %c0_i32 : i32, i32
  }
}

module attributes {stable_mosaic.version = 11 : i64} {
  func.func @_conv_bn_act_kernel(%arg0: i32, %arg1: memref<128x512xbf16, #tpu.memory_space<vmem>>, %arg2: memref<512x256xbf16, #tpu.memory_space<vmem>>, %arg3: memref<1x256xf32, #tpu.memory_space<vmem>>, %arg4: memref<1x256xf32, #tpu.memory_space<vmem>>, %arg5: memref<1x256xf32, #tpu.memory_space<vmem>>, %arg6: memref<128x256xbf16, #tpu.memory_space<vmem>>, %arg7: memref<128x256xf32, #tpu.memory_space<vmem>>) attributes {dimension_semantics = [#tpu.dimension_semantics<arbitrary>], iteration_bounds = array<i64: 4>, scalar_prefetch = 0 : i64, scratch_operands = 1 : i64, tpu.core_type = #tpu.core_type<tc>, window_params = [{transform_indices = @transform_0, window_bounds = array<i64: 128, 512>}, {transform_indices = @transform_1, window_bounds = array<i64: 512, 256>}, {pipeline_mode = #tpu.pipeline_mode<synchronous>, transform_indices = @transform_2, window_bounds = array<i64: 1, 256>}, {pipeline_mode = #tpu.pipeline_mode<synchronous>, transform_indices = @transform_3, window_bounds = array<i64: 1, 256>}, {pipeline_mode = #tpu.pipeline_mode<synchronous>, transform_indices = @transform_4, window_bounds = array<i64: 1, 256>}, {pipeline_mode = #tpu.pipeline_mode<synchronous>, transform_indices = @transform_5, window_bounds = array<i64: 128, 256>}]} {
    %c0_i32 = arith.constant 0 : i32
    %0 = arith.cmpi eq, %arg0, %c0_i32 : i32
    %1 = arith.extui %0 : i1 to i32
    %c0_i32_0 = arith.constant 0 : i32
    %2 = arith.cmpi ne, %1, %c0_i32_0 : i32
    scf.if %2 {
      %cst_9 = arith.constant 0.000000e+00 : f32
      %12 = vector.broadcast %cst_9 : f32 to vector<128x256xf32>
      %c0_10 = arith.constant 0 : index
      %c0_11 = arith.constant 0 : index
      %13 = vector.load %arg7[%c0_10, %c0_11] : memref<128x256xf32, #tpu.memory_space<vmem>>, vector<128x256xf32>
      tpu.vector_store %arg7[%c0_10, %c0_11], %12 {strides = array<i32>} : memref<128x256xf32, #tpu.memory_space<vmem>>, vector<128x256xf32>,
    } else {
    }
    %c0 = arith.constant 0 : index
    %c0_1 = arith.constant 0 : index
    %3 = vector.load %arg7[%c0, %c0_1] : memref<128x256xf32, #tpu.memory_space<vmem>>, vector<128x256xf32>
    %c0_2 = arith.constant 0 : index
    %c0_3 = arith.constant 0 : index
    %4 = vector.load %arg1[%c0_2, %c0_3] : memref<128x512xbf16, #tpu.memory_space<vmem>>, vector<128x512xbf16>
    %c0_4 = arith.constant 0 : index
    %c0_5 = arith.constant 0 : index
    %5 = vector.load %arg2[%c0_4, %c0_5] : memref<512x256xbf16, #tpu.memory_space<vmem>>, vector<512x256xbf16>
    %cst = arith.constant dense<0.000000e+00> : vector<128x256xf32>
    %6 = tpu.matmul %4, %5, %cst {dimension_numbers = #tpu.dot_dimension_numbers<[1], [0], [0], [1], [0, 0, 1, 1], [], []>} : vector<128x512xbf16>, vector<512x256xbf16>, vector<128x256xf32> -> vector<128x256xf32>
    %7 = arith.addf %3, %6 : vector<128x256xf32>
    %c0_6 = arith.constant 0 : index
    %c0_7 = arith.constant 0 : index
    %8 = vector.load %arg7[%c0_6, %c0_7] : memref<128x256xf32, #tpu.memory_space<vmem>>, vector<128x256xf32>
    tpu.vector_store %arg7[%c0_6, %c0_7], %7 {strides = array<i32>} : memref<128x256xf32, #tpu.memory_space<vmem>>, vector<128x256xf32>,
    %c3_i32 = arith.constant 3 : i32
    %9 = arith.cmpi eq, %arg0, %c3_i32 : i32
    %10 = arith.extui %9 : i1 to i32
    %c0_i32_8 = arith.constant 0 : i32
    %11 = arith.cmpi ne, %10, %c0_i32_8 : i32
    scf.if %11 {
      %c0_9 = arith.constant 0 : index
      %c0_10 = arith.constant 0 : index
      %12 = vector.load %arg7[%c0_9, %c0_10] : memref<128x256xf32, #tpu.memory_space<vmem>>, vector<128x256xf32>
      %c0_11 = arith.constant 0 : index
      %c0_12 = arith.constant 0 : index
      %13 = vector.load %arg3[%c0_11, %c0_12] : memref<1x256xf32, #tpu.memory_space<vmem>>, vector<1x256xf32>
      %14 = vector.broadcast %13 : vector<1x256xf32> to vector<128x256xf32>
      %15 = arith.addf %12, %14 : vector<128x256xf32>
      %cst_13 = arith.constant dense<0.000000e+00> : vector<256xf32>
      %16 = vector.multi_reduction <add>, %15, %cst_13 [0] : vector<128x256xf32> to vector<256xf32>
      %17 = vector.shape_cast %16 : vector<256xf32> to vector<1x256xf32>
      %cst_14 = arith.constant 1.280000e+02 : f32
      %18 = vector.broadcast %cst_14 : f32 to vector<1x256xf32>
      %19 = arith.divf %17, %18 : vector<1x256xf32>
      %20 = arith.mulf %15, %15 : vector<128x256xf32>
      %cst_15 = arith.constant dense<0.000000e+00> : vector<256xf32>
      %21 = vector.multi_reduction <add>, %20, %cst_15 [0] : vector<128x256xf32> to vector<256xf32>
      %22 = vector.shape_cast %21 : vector<256xf32> to vector<1x256xf32>
      %cst_16 = arith.constant 1.280000e+02 : f32
      %23 = vector.broadcast %cst_16 : f32 to vector<1x256xf32>
      %24 = arith.divf %22, %23 : vector<1x256xf32>
      %25 = arith.mulf %19, %19 : vector<1x256xf32>
      %26 = arith.subf %24, %25 : vector<1x256xf32>
      %27 = vector.broadcast %19 : vector<1x256xf32> to vector<128x256xf32>
      %28 = arith.subf %15, %27 : vector<128x256xf32>
      %cst_17 = arith.constant 9.99999974E-6 : f32
      %29 = vector.broadcast %cst_17 : f32 to vector<1x256xf32>
      %30 = arith.addf %26, %29 : vector<1x256xf32>
      %31 = math.rsqrt %30 : vector<1x256xf32>
      %32 = vector.broadcast %31 : vector<1x256xf32> to vector<128x256xf32>
      %33 = arith.mulf %28, %32 : vector<128x256xf32>
      %c0_18 = arith.constant 0 : index
      %c0_19 = arith.constant 0 : index
      %34 = vector.load %arg4[%c0_18, %c0_19] : memref<1x256xf32, #tpu.memory_space<vmem>>, vector<1x256xf32>
      %35 = vector.broadcast %34 : vector<1x256xf32> to vector<128x256xf32>
      %36 = arith.mulf %33, %35 : vector<128x256xf32>
      %c0_20 = arith.constant 0 : index
      %c0_21 = arith.constant 0 : index
      %37 = vector.load %arg5[%c0_20, %c0_21] : memref<1x256xf32, #tpu.memory_space<vmem>>, vector<1x256xf32>
      %38 = vector.broadcast %37 : vector<1x256xf32> to vector<128x256xf32>
      %39 = arith.addf %36, %38 : vector<128x256xf32>
      %cst_22 = arith.constant 0.000000e+00 : f32
      %40 = vector.broadcast %cst_22 : f32 to vector<128x256xf32>
      %41 = arith.cmpf oge, %39, %40 : vector<128x256xf32>
      %cst_23 = arith.constant 2.000000e-01 : f32
      %42 = vector.broadcast %cst_23 : f32 to vector<128x256xf32>
      %43 = arith.mulf %42, %39 : vector<128x256xf32>
      %44 = arith.select %41, %39, %43 : vector<128x256xi1>, vector<128x256xf32>
      %45 = arith.truncf %44 : vector<128x256xf32> to vector<128x256xbf16>
      %c0_24 = arith.constant 0 : index
      %c0_25 = arith.constant 0 : index
      %46 = vector.load %arg6[%c0_24, %c0_25] : memref<128x256xbf16, #tpu.memory_space<vmem>>, vector<128x256xbf16>
      tpu.vector_store %arg6[%c0_24, %c0_25], %45 {strides = array<i32>} : memref<128x256xbf16, #tpu.memory_space<vmem>>, vector<128x256xbf16>,
    } else {
    }
    return
  }
  func.func @transform_0(%arg0: i32) -> (i32, i32) {
    %c0_i32 = arith.constant 0 : i32
    %c0_i32_0 = arith.constant 0 : i32
    return %c0_i32, %arg0 : i32, i32
  }
  func.func @transform_1(%arg0: i32) -> (i32, i32) {
    %c0_i32 = arith.constant 0 : i32
    %c0_i32_0 = arith.constant 0 : i32
    return %arg0, %c0_i32 : i32, i32
  }
  func.func @transform_2(%arg0: i32) -> (i32, i32) {
    %c0_i32 = arith.constant 0 : i32
    %c0_i32_0 = arith.constant 0 : i32
    %c0_i32_1 = arith.constant 0 : i32
    return %c0_i32, %c0_i32_0 : i32, i32
  }
  func.func @transform_3(%arg0: i32) -> (i32, i32) {
    %c0_i32 = arith.constant 0 : i32
    %c0_i32_0 = arith.constant 0 : i32
    %c0_i32_1 = arith.constant 0 : i32
    return %c0_i32, %c0_i32_0 : i32, i32
  }
  func.func @transform_4(%arg0: i32) -> (i32, i32) {
    %c0_i32 = arith.constant 0 : i32
    %c0_i32_0 = arith.constant 0 : i32
    %c0_i32_1 = arith.constant 0 : i32
    return %c0_i32, %c0_i32_0 : i32, i32
  }
  func.func @transform_5(%arg0: i32) -> (i32, i32) {
    %c0_i32 = arith.constant 0 : i32
    %c0_i32_0 = arith.constant 0 : i32
    %c0_i32_1 = arith.constant 0 : i32
    return %c0_i32, %c0_i32_0 : i32, i32
  }
}

module attributes {stable_mosaic.version = 11 : i64} {
  func.func @_conv_bn_act_kernel(%arg0: i32, %arg1: memref<32x512xbf16, #tpu.memory_space<vmem>>, %arg2: memref<512x512xbf16, #tpu.memory_space<vmem>>, %arg3: memref<1x512xf32, #tpu.memory_space<vmem>>, %arg4: memref<1x512xf32, #tpu.memory_space<vmem>>, %arg5: memref<1x512xf32, #tpu.memory_space<vmem>>, %arg6: memref<32x512xbf16, #tpu.memory_space<vmem>>, %arg7: memref<32x512xf32, #tpu.memory_space<vmem>>) attributes {dimension_semantics = [#tpu.dimension_semantics<arbitrary>], iteration_bounds = array<i64: 8>, scalar_prefetch = 0 : i64, scratch_operands = 1 : i64, tpu.core_type = #tpu.core_type<tc>, window_params = [{transform_indices = @transform_0, window_bounds = array<i64: 32, 512>}, {transform_indices = @transform_1, window_bounds = array<i64: 512, 512>}, {pipeline_mode = #tpu.pipeline_mode<synchronous>, transform_indices = @transform_2, window_bounds = array<i64: 1, 512>}, {pipeline_mode = #tpu.pipeline_mode<synchronous>, transform_indices = @transform_3, window_bounds = array<i64: 1, 512>}, {pipeline_mode = #tpu.pipeline_mode<synchronous>, transform_indices = @transform_4, window_bounds = array<i64: 1, 512>}, {pipeline_mode = #tpu.pipeline_mode<synchronous>, transform_indices = @transform_5, window_bounds = array<i64: 32, 512>}]} {
    %c0_i32 = arith.constant 0 : i32
    %0 = arith.cmpi eq, %arg0, %c0_i32 : i32
    %1 = arith.extui %0 : i1 to i32
    %c0_i32_0 = arith.constant 0 : i32
    %2 = arith.cmpi ne, %1, %c0_i32_0 : i32
    scf.if %2 {
      %cst_9 = arith.constant 0.000000e+00 : f32
      %12 = vector.broadcast %cst_9 : f32 to vector<32x512xf32>
      %c0_10 = arith.constant 0 : index
      %c0_11 = arith.constant 0 : index
      %13 = vector.load %arg7[%c0_10, %c0_11] : memref<32x512xf32, #tpu.memory_space<vmem>>, vector<32x512xf32>
      tpu.vector_store %arg7[%c0_10, %c0_11], %12 {strides = array<i32>} : memref<32x512xf32, #tpu.memory_space<vmem>>, vector<32x512xf32>,
    } else {
    }
    %c0 = arith.constant 0 : index
    %c0_1 = arith.constant 0 : index
    %3 = vector.load %arg7[%c0, %c0_1] : memref<32x512xf32, #tpu.memory_space<vmem>>, vector<32x512xf32>
    %c0_2 = arith.constant 0 : index
    %c0_3 = arith.constant 0 : index
    %4 = vector.load %arg1[%c0_2, %c0_3] : memref<32x512xbf16, #tpu.memory_space<vmem>>, vector<32x512xbf16>
    %c0_4 = arith.constant 0 : index
    %c0_5 = arith.constant 0 : index
    %5 = vector.load %arg2[%c0_4, %c0_5] : memref<512x512xbf16, #tpu.memory_space<vmem>>, vector<512x512xbf16>
    %cst = arith.constant dense<0.000000e+00> : vector<32x512xf32>
    %6 = tpu.matmul %4, %5, %cst {dimension_numbers = #tpu.dot_dimension_numbers<[1], [0], [0], [1], [0, 0, 1, 1], [], []>} : vector<32x512xbf16>, vector<512x512xbf16>, vector<32x512xf32> -> vector<32x512xf32>
    %7 = arith.addf %3, %6 : vector<32x512xf32>
    %c0_6 = arith.constant 0 : index
    %c0_7 = arith.constant 0 : index
    %8 = vector.load %arg7[%c0_6, %c0_7] : memref<32x512xf32, #tpu.memory_space<vmem>>, vector<32x512xf32>
    tpu.vector_store %arg7[%c0_6, %c0_7], %7 {strides = array<i32>} : memref<32x512xf32, #tpu.memory_space<vmem>>, vector<32x512xf32>,
    %c7_i32 = arith.constant 7 : i32
    %9 = arith.cmpi eq, %arg0, %c7_i32 : i32
    %10 = arith.extui %9 : i1 to i32
    %c0_i32_8 = arith.constant 0 : i32
    %11 = arith.cmpi ne, %10, %c0_i32_8 : i32
    scf.if %11 {
      %c0_9 = arith.constant 0 : index
      %c0_10 = arith.constant 0 : index
      %12 = vector.load %arg7[%c0_9, %c0_10] : memref<32x512xf32, #tpu.memory_space<vmem>>, vector<32x512xf32>
      %c0_11 = arith.constant 0 : index
      %c0_12 = arith.constant 0 : index
      %13 = vector.load %arg3[%c0_11, %c0_12] : memref<1x512xf32, #tpu.memory_space<vmem>>, vector<1x512xf32>
      %14 = vector.broadcast %13 : vector<1x512xf32> to vector<32x512xf32>
      %15 = arith.addf %12, %14 : vector<32x512xf32>
      %cst_13 = arith.constant dense<0.000000e+00> : vector<512xf32>
      %16 = vector.multi_reduction <add>, %15, %cst_13 [0] : vector<32x512xf32> to vector<512xf32>
      %17 = vector.shape_cast %16 : vector<512xf32> to vector<1x512xf32>
      %cst_14 = arith.constant 3.200000e+01 : f32
      %18 = vector.broadcast %cst_14 : f32 to vector<1x512xf32>
      %19 = arith.divf %17, %18 : vector<1x512xf32>
      %20 = arith.mulf %15, %15 : vector<32x512xf32>
      %cst_15 = arith.constant dense<0.000000e+00> : vector<512xf32>
      %21 = vector.multi_reduction <add>, %20, %cst_15 [0] : vector<32x512xf32> to vector<512xf32>
      %22 = vector.shape_cast %21 : vector<512xf32> to vector<1x512xf32>
      %cst_16 = arith.constant 3.200000e+01 : f32
      %23 = vector.broadcast %cst_16 : f32 to vector<1x512xf32>
      %24 = arith.divf %22, %23 : vector<1x512xf32>
      %25 = arith.mulf %19, %19 : vector<1x512xf32>
      %26 = arith.subf %24, %25 : vector<1x512xf32>
      %27 = vector.broadcast %19 : vector<1x512xf32> to vector<32x512xf32>
      %28 = arith.subf %15, %27 : vector<32x512xf32>
      %cst_17 = arith.constant 9.99999974E-6 : f32
      %29 = vector.broadcast %cst_17 : f32 to vector<1x512xf32>
      %30 = arith.addf %26, %29 : vector<1x512xf32>
      %31 = math.rsqrt %30 : vector<1x512xf32>
      %32 = vector.broadcast %31 : vector<1x512xf32> to vector<32x512xf32>
      %33 = arith.mulf %28, %32 : vector<32x512xf32>
      %c0_18 = arith.constant 0 : index
      %c0_19 = arith.constant 0 : index
      %34 = vector.load %arg4[%c0_18, %c0_19] : memref<1x512xf32, #tpu.memory_space<vmem>>, vector<1x512xf32>
      %35 = vector.broadcast %34 : vector<1x512xf32> to vector<32x512xf32>
      %36 = arith.mulf %33, %35 : vector<32x512xf32>
      %c0_20 = arith.constant 0 : index
      %c0_21 = arith.constant 0 : index
      %37 = vector.load %arg5[%c0_20, %c0_21] : memref<1x512xf32, #tpu.memory_space<vmem>>, vector<1x512xf32>
      %38 = vector.broadcast %37 : vector<1x512xf32> to vector<32x512xf32>
      %39 = arith.addf %36, %38 : vector<32x512xf32>
      %cst_22 = arith.constant 0.000000e+00 : f32
      %40 = vector.broadcast %cst_22 : f32 to vector<32x512xf32>
      %41 = arith.cmpf oge, %39, %40 : vector<32x512xf32>
      %cst_23 = arith.constant 2.000000e-01 : f32
      %42 = vector.broadcast %cst_23 : f32 to vector<32x512xf32>
      %43 = arith.mulf %42, %39 : vector<32x512xf32>
      %44 = arith.select %41, %39, %43 : vector<32x512xi1>, vector<32x512xf32>
      %45 = arith.truncf %44 : vector<32x512xf32> to vector<32x512xbf16>
      %c0_24 = arith.constant 0 : index
      %c0_25 = arith.constant 0 : index
      %46 = vector.load %arg6[%c0_24, %c0_25] : memref<32x512xbf16, #tpu.memory_space<vmem>>, vector<32x512xbf16>
      tpu.vector_store %arg6[%c0_24, %c0_25], %45 {strides = array<i32>} : memref<32x512xbf16, #tpu.memory_space<vmem>>, vector<32x512xbf16>,
    } else {
    }
    return
  }
  func.func @transform_0(%arg0: i32) -> (i32, i32) {
    %c0_i32 = arith.constant 0 : i32
    %c0_i32_0 = arith.constant 0 : i32
    return %c0_i32, %arg0 : i32, i32
  }
  func.func @transform_1(%arg0: i32) -> (i32, i32) {
    %c0_i32 = arith.constant 0 : i32
    %c0_i32_0 = arith.constant 0 : i32
    return %arg0, %c0_i32 : i32, i32
  }
  func.func @transform_2(%arg0: i32) -> (i32, i32) {
    %c0_i32 = arith.constant 0 : i32
    %c0_i32_0 = arith.constant 0 : i32
    %c0_i32_1 = arith.constant 0 : i32
    return %c0_i32, %c0_i32_0 : i32, i32
  }
  func.func @transform_3(%arg0: i32) -> (i32, i32) {
    %c0_i32 = arith.constant 0 : i32
    %c0_i32_0 = arith.constant 0 : i32
    %c0_i32_1 = arith.constant 0 : i32
    return %c0_i32, %c0_i32_0 : i32, i32
  }
  func.func @transform_4(%arg0: i32) -> (i32, i32) {
    %c0_i32 = arith.constant 0 : i32
    %c0_i32_0 = arith.constant 0 : i32
    %c0_i32_1 = arith.constant 0 : i32
    return %c0_i32, %c0_i32_0 : i32, i32
  }
  func.func @transform_5(%arg0: i32) -> (i32, i32) {
    %c0_i32 = arith.constant 0 : i32
    %c0_i32_0 = arith.constant 0 : i32
    %c0_i32_1 = arith.constant 0 : i32
    return %c0_i32, %c0_i32_0 : i32, i32
  }
}

module attributes {stable_mosaic.version = 11 : i64} {
  func.func @_conv_act_kernel(%arg0: memref<2x8192xbf16, #tpu.memory_space<vmem>>, %arg1: memref<8192x128xbf16, #tpu.memory_space<vmem>>, %arg2: memref<1x128xf32, #tpu.memory_space<vmem>>, %arg3: memref<2x128xf32, #tpu.memory_space<vmem>>) attributes {dimension_semantics = [], scalar_prefetch = 0 : i64, scratch_operands = 0 : i64, tpu.core_type = #tpu.core_type<tc>} {
    %c0 = arith.constant 0 : index
    %c0_0 = arith.constant 0 : index
    %0 = vector.load %arg0[%c0, %c0_0] : memref<2x8192xbf16, #tpu.memory_space<vmem>>, vector<2x8192xbf16>
    %c0_1 = arith.constant 0 : index
    %c0_2 = arith.constant 0 : index
    %1 = vector.load %arg1[%c0_1, %c0_2] : memref<8192x128xbf16, #tpu.memory_space<vmem>>, vector<8192x128xbf16>
    %cst = arith.constant dense<0.000000e+00> : vector<2x128xf32>
    %2 = tpu.matmul %0, %1, %cst {dimension_numbers = #tpu.dot_dimension_numbers<[1], [0], [0], [1], [0, 0, 1, 1], [], []>} : vector<2x8192xbf16>, vector<8192x128xbf16>, vector<2x128xf32> -> vector<2x128xf32>
    %c0_3 = arith.constant 0 : index
    %c0_4 = arith.constant 0 : index
    %3 = vector.load %arg2[%c0_3, %c0_4] : memref<1x128xf32, #tpu.memory_space<vmem>>, vector<1x128xf32>
    %4 = vector.broadcast %3 : vector<1x128xf32> to vector<2x128xf32>
    %5 = arith.addf %2, %4 : vector<2x128xf32>
    %cst_5 = arith.constant 0.000000e+00 : f32
    %6 = vector.broadcast %cst_5 : f32 to vector<2x128xf32>
    %7 = arith.subf %6, %5 : vector<2x128xf32>
    %8 = math.exp %7 : vector<2x128xf32>
    %cst_6 = arith.constant 1.000000e+00 : f32
    %9 = vector.broadcast %cst_6 : f32 to vector<2x128xf32>
    %10 = arith.addf %9, %8 : vector<2x128xf32>
    %cst_7 = arith.constant 1.000000e+00 : f32
    %11 = vector.broadcast %cst_7 : f32 to vector<2x128xf32>
    %12 = arith.divf %11, %10 : vector<2x128xf32>
    %c0_8 = arith.constant 0 : index
    %c0_9 = arith.constant 0 : index
    %13 = vector.load %arg3[%c0_8, %c0_9] : memref<2x128xf32, #tpu.memory_space<vmem>>, vector<2x128xf32>
    tpu.vector_store %arg3[%c0_8, %c0_9], %12 {strides = array<i32>} : memref<2x128xf32, #tpu.memory_space<vmem>>, vector<2x128xf32>,
    return
  }
}

</mosaic_0001>

<bundles_post_ra>
// kernel: discriminator_forward.4
= control target key start
LH: loop header
LB: loop body
LE: loop exit
PB: predicated region body
PF: predicated region fallthrough
CT: control target
= control target key end

     0   :  { %s1296_s12 = smov 0   ;;  %s1486_s0 = inlined_call_operand.vmem [shape: bf16[512,256], index: 0, kind: input, shape index: {}]   ;;  %s1487_s1 = inlined_call_operand.vmem [shape: bf16[256,128], index: 1, kind: input, shape index: {}]   ;;  %s1488_s2 = inlined_call_operand.vmem [shape: f32[1,128], index: 2, kind: input, shape index: {}]   ;;  %s1489_s3 = inlined_call_operand.vmem [shape: bf16[512,128], index: 3, kind: output, shape index: {}]  }
   0x1 LB: > { %s895_s13 = sadd.s32 4294967295, %s1274_s12   ;;  %p899_p0 = scmp.ge.s32.totalorder %s1274_s12, 1  ;;  %s1274_s12 = sphi %s1296_s12, %s13_s12  }
   0x2   : > { %p139_p1 = scmp.lt.s32.totalorder %s1274_s12, 3 }
   0x4   : > { %p140_p2 = pnand %p899_p0, %p139_p1 }
   0x5   : > { %s900_s26 = sshll.u32 (!%p140_p2), %s895_s13, 5 }
   0x6   : > { %143 = sbr.rel (%p140_p2) target bundleno = 305 (0x131), region = 32  ;;  %p165_p3 = scmp.lt.s32.totalorder (!%p140_p2), %s900_s26, 63 }
   0xb   : > { %v1139_v0 = vld [vmem:[%s1487_s1 + $0x38] sm:$0xff]  ;;  %v1138_v2 = vld [vmem:[%s1487_s1 + $0x30] sm:$0xff]  ;;  %v1137_v4 = vld [vmem:[%s1487_s1 + $0x28] sm:$0xff]  ;;  %s1491_s26 = smov (!%p165_p3, %s900_s26), 63 }
   0xc   : > { %v1147_v1 = vld [vmem:[%s1487_s1 + $0x78] sm:$0xff]  ;;  %501 = vmatpush.bf16.msra.mxu0 %v1139_v0  ;;  %1243 = vmatpush.bf16.msra.mxu2 %v1139_v0  ;;  %v1146_v3 = vld [vmem:[%s1487_s1 + $0x70] sm:$0xff]  ;;  %v1145_v5 = vld [vmem:[%s1487_s1 + $0x68] sm:$0xff]  ;;  %s1099_s13 = sshll.u32 %s1491_s26, 3  ;;  %s904_s28 = sshll.u32 %s1491_s26, 2 }
   0xd   : > { %590 = vmatpush.bf16.msra.mxu1 %v1147_v1  ;;  %1251 = vmatpush.bf16.msra.mxu3 %v1147_v1  ;;  %v1136_v6 = vld [vmem:[%s1487_s1 + $0x20] sm:$0xff]  ;;  %v1135_v8 = vld [vmem:[%s1487_s1 + $0x18] sm:$0xff]  ;;  %v1134_v10 = vld [vmem:[%s1487_s1 + $0x10] sm:$0xff]  ;;  %s1349_s18 = scalar_lea.vmem %s1486_s0, %s1099_s13  ;;  %s1436_s4 = scalar_lea.vmem %s1489_s3, %s904_s28 }
   0xe   : > { %v1144_v7 = vld [vmem:[%s1487_s1 + $0x60] sm:$0xff]  ;;  %v1143_v9 = vld [vmem:[%s1487_s1 + $0x58] sm:$0xff]  ;;  %v1142_v11 = vld [vmem:[%s1487_s1 + $0x50] sm:$0xff] }
   0xf   : > { %v1133_v12 = vld [vmem:[%s1487_s1 + $0x8] sm:$0xff]  ;;  %v1132_v14 = vld [vmem:[%s1487_s1] sm:$0xff]  ;;  %v915_v28 = vld [vmem:[%s1349_s18 + $0x10] sm:$0xf] }
  0x10   : > { %502 = vmatpush.bf16.msra.mxu0 %v1138_v2  ;;  %1244 = vmatpush.bf16.msra.mxu2 %v1138_v2  ;;  %v1141_v13 = vld [vmem:[%s1487_s1 + $0x48] sm:$0xff]  ;;  %v1140_v15 = vld [vmem:[%s1487_s1 + $0x40] sm:$0xff]  ;;  %v1103_v29 = vld [vmem:[%s1349_s18 + $0x14] sm:$0xf0] }
  0x11   : > { %591 = vmatpush.bf16.msra.mxu1 %v1146_v3  ;;  %1252 = vmatpush.bf16.msra.mxu3 %v1146_v3  ;;  %v907_v16 = vld [vmem:[%s1349_s18] sm:$0xf]  ;;  %v1101_v17 = vld [vmem:[%s1349_s18 + $0x4] sm:$0xf0]  ;;  %v1100_v20 = vld [vmem:[%s1349_s18 + $0x4] sm:$0xf]  ;;  %v916_v36 = vor.u32 %v1103_v29, %v915_v28 }
  0x12   : > { %v971_v18 = vld [vmem:[%s1349_s18 + $0x80] sm:$0xf]  ;;  %v1117_v19 = vld [vmem:[%s1349_s18 + $0x84] sm:$0xf0]  ;;  %v909_v21 = vld [vmem:[%s1349_s18 + $0x8] sm:$0xf0]  ;;  %v908_v24 = vor.u32 %v1101_v17, %v907_v16 }
  0x13   : > { %v1116_v22 = vld [vmem:[%s1349_s18 + $0x84] sm:$0xf]  ;;  %v973_v23 = vld [vmem:[%s1349_s18 + $0x88] sm:$0xf0]  ;;  %v972_v25 = vor.u32 %v1117_v19, %v971_v18  ;;  %v912_v26 = vor.u32 %v1100_v20, %v909_v21  ;;  %v979_v30 = vld [vmem:[%s1349_s18 + $0x90] sm:$0xf] }
  0x14   : > { %503 = vmatpush.bf16.msra.mxu0 %v1137_v4  ;;  %1245 = vmatpush.bf16.msra.mxu2 %v1137_v4  ;;  %v976_v27 = vor.u32 %v1116_v22, %v973_v23  ;;  %v1119_v31 = vld [vmem:[%s1349_s18 + $0x94] sm:$0xf0]  ;;  %v1102_v32 = vld [vmem:[%s1349_s18 + $0x14] sm:$0xf]  ;;  %v917_v33 = vld [vmem:[%s1349_s18 + $0x18] sm:$0xf0] }
  0x15   : > { %592 = vmatpush.bf16.msra.mxu1 %v1145_v5  ;;  %1253 = vmatpush.bf16.msra.mxu3 %v1145_v5  ;;  %v1118_v34 = vld [vmem:[%s1349_s18 + $0x94] sm:$0xf]  ;;  %v981_v35 = vld [vmem:[%s1349_s18 + $0x98] sm:$0xf0]  ;;  %v980_v37 = vor.u32 %v1119_v31, %v979_v30  ;;  %v920_v38 = vor.u32 %v1102_v32, %v917_v33  ;;  %v923_v40 = vld [vmem:[%s1349_s18 + $0x20] sm:$0xf] }
  0x16   : > { %v984_v39 = vor.u32 %v1118_v34, %v981_v35  ;;  %v1105_v41 = vld [vmem:[%s1349_s18 + $0x24] sm:$0xf0]  ;;  %v987_v42 = vld [vmem:[%s1349_s18 + $0xa0] sm:$0xf]  ;;  %v1104_v44 = vld [vmem:[%s1349_s18 + $0x24] sm:$0xf] }
  0x17   : > { %v1121_v43 = vld [vmem:[%s1349_s18 + $0xa4] sm:$0xf0]  ;;  %v925_v45 = vld [vmem:[%s1349_s18 + $0x28] sm:$0xf0]  ;;  %v1120_v46 = vld [vmem:[%s1349_s18 + $0xa4] sm:$0xf]  ;;  %v924_v48 = vor.u32 %v1105_v41, %v923_v40 }
  0x18   : > { %504 = vmatpush.bf16.msra.mxu0 %v1136_v6  ;;  %1246 = vmatpush.bf16.msra.mxu2 %v1136_v6  ;;  %v989_v47 = vld [vmem:[%s1349_s18 + $0xa8] sm:$0xf0]  ;;  %v988_v49 = vor.u32 %v1121_v43, %v987_v42  ;;  %v928_v50 = vor.u32 %v1104_v44, %v925_v45  ;;  %v931_v52 = vld [vmem:[%s1349_s18 + $0x30] sm:$0xf]  ;;  %v1107_v53 = vld [vmem:[%s1349_s18 + $0x34] sm:$0xf0] }
  0x19   : > { %593 = vmatpush.bf16.msra.mxu1 %v1144_v7  ;;  %1254 = vmatpush.bf16.msra.mxu3 %v1144_v7  ;;  %v992_v51 = vor.u32 %v1120_v46, %v989_v47  ;;  %v995_v54 = vld [vmem:[%s1349_s18 + $0xb0] sm:$0xf]  ;;  %v1123_v55 = vld [vmem:[%s1349_s18 + $0xb4] sm:$0xf0]  ;;  %v1106_v56 = vld [vmem:[%s1349_s18 + $0x34] sm:$0xf]  ;;  %v932_v60 = vor.u32 %v1107_v53, %v931_v52 }
  0x1a   : > { %v933_v57 = vld [vmem:[%s1349_s18 + $0x38] sm:$0xf0]  ;;  %v1122_v58 = vld [vmem:[%s1349_s18 + $0xb4] sm:$0xf]  ;;  %v996_v61 = vor.u32 %v1123_v55, %v995_v54  ;;  %v939_v0 = vld [vmem:[%s1349_s18 + $0x40] sm:$0xf] }
  0x1b   : > { %v997_v59 = vld [vmem:[%s1349_s18 + $0xb8] sm:$0xf0]  ;;  %v936_v62 = vor.u32 %v1106_v56, %v933_v57  ;;  %v1109_v1 = vld [vmem:[%s1349_s18 + $0x44] sm:$0xf0]  ;;  %v1003_v2 = vld [vmem:[%s1349_s18 + $0xc0] sm:$0xf] }
  0x1c   : > { %505 = vmatpush.bf16.msra.mxu0 %v1135_v8  ;;  %1247 = vmatpush.bf16.msra.mxu2 %v1135_v8  ;;  %v1000_v63 = vor.u32 %v1122_v58, %v997_v59  ;;  %v1125_v3 = vld [vmem:[%s1349_s18 + $0xc4] sm:$0xf0]  ;;  %v1108_v4 = vld [vmem:[%s1349_s18 + $0x44] sm:$0xf]  ;;  %v941_v5 = vld [vmem:[%s1349_s18 + $0x48] sm:$0xf0]  ;;  %v940_v8 = vor.u32 %v1109_v1, %v939_v0 }
  0x1d   : > { %594 = vmatpush.bf16.msra.mxu1 %v1143_v9  ;;  %1255 = vmatpush.bf16.msra.mxu3 %v1143_v9  ;;  %v1124_v6 = vld [vmem:[%s1349_s18 + $0xc4] sm:$0xf]  ;;  %v1005_v7 = vld [vmem:[%s1349_s18 + $0xc8] sm:$0xf0]  ;;  %v1004_v9 = vor.u32 %v1125_v3, %v1003_v2  ;;  %v1110_v16 = vld [vmem:[%s1349_s18 + $0x54] sm:$0xf] }
  0x1e   : > { %v949_v17 = vld [vmem:[%s1349_s18 + $0x58] sm:$0xf0]  ;;  %v1126_v18 = vld [vmem:[%s1349_s18 + $0xd4] sm:$0xf]  ;;  %v1112_v28 = vld [vmem:[%s1349_s18 + $0x64] sm:$0xf] }
  0x1f   : > { %v1013_v19 = vld [vmem:[%s1349_s18 + $0xd8] sm:$0xf0]  ;;  %v952_v22 = vor.u32 %v1110_v16, %v949_v17  ;;  %v957_v29 = vld [vmem:[%s1349_s18 + $0x68] sm:$0xf0]  ;;  %v1128_v30 = vld [vmem:[%s1349_s18 + $0xe4] sm:$0xf] }
  0x20   : > { %506 = vmatpush.bf16.msra.mxu0 %v1134_v10  ;;  %1248 = vmatpush.bf16.msra.mxu2 %v1134_v10  ;;  %v944_v10 = vor.u32 %v1108_v4, %v941_v5  ;;  %v1016_v23 = vor.u32 %v1126_v18, %v1013_v19  ;;  %v1021_v31 = vld [vmem:[%s1349_s18 + $0xe8] sm:$0xf0]  ;;  %v960_v34 = vor.u32 %v1112_v28, %v957_v29  ;;  %v1114_v40 = vld [vmem:[%s1349_s18 + $0x74] sm:$0xf]  ;;  %v965_v41 = vld [vmem:[%s1349_s18 + $0x78] sm:$0xf0] }
  0x21   : > { %595 = vmatpush.bf16.msra.mxu1 %v1142_v11  ;;  %1256 = vmatpush.bf16.msra.mxu3 %v1142_v11  ;;  %v1008_v11 = vor.u32 %v1124_v6, %v1005_v7  ;;  %v1024_v35 = vor.u32 %v1128_v30, %v1021_v31  ;;  %v1130_v42 = vld [vmem:[%s1349_s18 + $0xf4] sm:$0xf]  ;;  %v1029_v43 = vld [vmem:[%s1349_s18 + $0xf8] sm:$0xf0]  ;;  %v968_v46 = vor.u32 %v1114_v40, %v965_v41 }
  0x22   : > { %v1032_v47 = vor.u32 %v1130_v42, %v1029_v43 }
  0x24   : > { %507 = vmatpush.bf16.msra.mxu0 %v1133_v12  ;;  %1249 = vmatpush.bf16.msra.mxu2 %v1133_v12  ;;  %v947_v12 = vld [vmem:[%s1349_s18 + $0x50] sm:$0xf] }
  0x25   : > { %596 = vmatpush.bf16.msra.mxu1 %v1141_v13  ;;  %1257 = vmatpush.bf16.msra.mxu3 %v1141_v13  ;;  %v1111_v13 = vld [vmem:[%s1349_s18 + $0x54] sm:$0xf0] }
  0x26   : > { %v948_v20 = vor.u32 %v1111_v13, %v947_v12 }
  0x28   : > { %508 = vmatpush.bf16.msra.mxu0 %v1132_v14  ;;  %1250 = vmatpush.bf16.msra.mxu2 %v1132_v14  ;;  %v1011_v14 = vld [vmem:[%s1349_s18 + $0xd0] sm:$0xf] }
  0x29   : > { %597 = vmatpush.bf16.msra.mxu1 %v1140_v15  ;;  %1258 = vmatpush.bf16.msra.mxu3 %v1140_v15  ;;  %v1127_v15 = vld [vmem:[%s1349_s18 + $0xd4] sm:$0xf0] }
  0x2a   : > { %v1012_v21 = vor.u32 %v1127_v15, %v1011_v14 }
  0x2b   : > { %509 = vmatmul.bf16.vlgmr.msra.gmra.mxu0 %v908_v24  ;;  %549 = vmatmul.bf16.vlgmr.msra.gmra.mxu2 %v972_v25  ;;  %v955_v24 = vld [vmem:[%s1349_s18 + $0x60] sm:$0xf]  ;;  %v1113_v25 = vld [vmem:[%s1349_s18 + $0x64] sm:$0xf0] }
  0x2c   : > { %598 = vmatmul.bf16.vlgmr.msra.gmra.mxu1 %v912_v26  ;;  %638 = vmatmul.bf16.vlgmr.msra.gmra.mxu3 %v976_v27  ;;  %v1019_v26 = vld [vmem:[%s1349_s18 + $0xe0] sm:$0xf]  ;;  %v1129_v27 = vld [vmem:[%s1349_s18 + $0xe4] sm:$0xf0]  ;;  %v956_v32 = vor.u32 %v1113_v25, %v955_v24 }
  0x2d   : > { %v1020_v33 = vor.u32 %v1129_v27, %v1019_v26 }
  0x3b   : > { %514 = vmatmul.bf16.gmra.mxu0 %v916_v36  ;;  %554 = vmatmul.bf16.gmra.mxu2 %v980_v37  ;;  %v963_v36 = vld [vmem:[%s1349_s18 + $0x70] sm:$0xf]  ;;  %v1115_v37 = vld [vmem:[%s1349_s18 + $0x74] sm:$0xf0] }
  0x3c   : > { %603 = vmatmul.bf16.gmra.mxu1 %v920_v38  ;;  %643 = vmatmul.bf16.gmra.mxu3 %v984_v39  ;;  %v1027_v38 = vld [vmem:[%s1349_s18 + $0xf0] sm:$0xf]  ;;  %v1131_v39 = vld [vmem:[%s1349_s18 + $0xf4] sm:$0xf0]  ;;  %v964_v44 = vor.u32 %v1115_v37, %v963_v36 }
  0x3d   : > { %v1028_v45 = vor.u32 %v1131_v39, %v1027_v38 }
  0x4b   : > { %519 = vmatmul.bf16.gmra.mxu0 %v924_v48  ;;  %559 = vmatmul.bf16.gmra.mxu2 %v988_v49  ;;  %v1427_v48 = vld [vmem:[%s1488_s2] ss:$0 sm:$0xff] }
  0x4c   : > { %608 = vmatmul.bf16.gmra.mxu1 %v928_v50  ;;  %648 = vmatmul.bf16.gmra.mxu3 %v992_v51 }
  0x5b   : > { %524 = vmatmul.bf16.gmra.mxu0 %v932_v60  ;;  %564 = vmatmul.bf16.gmra.mxu2 %v996_v61 }
  0x5c   : > { %613 = vmatmul.bf16.gmra.mxu1 %v936_v62  ;;  %653 = vmatmul.bf16.gmra.mxu3 %v1000_v63 }
  0x6b   : > { %529 = vmatmul.bf16.gmra.mxu0 %v940_v8  ;;  %569 = vmatmul.bf16.gmra.mxu2 %v1004_v9 }
  0x6c   : > { %618 = vmatmul.bf16.gmra.mxu1 %v944_v10  ;;  %658 = vmatmul.bf16.gmra.mxu3 %v1008_v11 }
  0x7b   : > { %534 = vmatmul.bf16.gmra.mxu0 %v948_v20  ;;  %574 = vmatmul.bf16.gmra.mxu2 %v1012_v21 }
  0x7c   : > { %623 = vmatmul.bf16.gmra.mxu1 %v952_v22  ;;  %663 = vmatmul.bf16.gmra.mxu3 %v1016_v23 }
  0x8b   : > { %539 = vmatmul.bf16.gmra.mxu0 %v956_v32  ;;  %579 = vmatmul.bf16.gmra.mxu2 %v1020_v33 }
  0x8c   : > { %628 = vmatmul.bf16.gmra.mxu1 %v960_v34  ;;  %668 = vmatmul.bf16.gmra.mxu3 %v1024_v35 }
  0x9b   : > { %544 = vmatmul.bf16.gmra.mxu0 %v964_v44  ;;  %584 = vmatmul.bf16.gmra.mxu2 %v1028_v45 }
  0x9c   : > { %633 = vmatmul.bf16.gmra.mxu1 %v968_v46  ;;  %673 = vmatmul.bf16.gmra.mxu3 %v1032_v47 }
  0xa8   : > { %v510_v49 = vpop.f32.mrf.mxu0 }
  0xa9   : > { %v599_v50 = vpop.f32.mrf.mxu1  ;;  %v511_v51 = vadd.f32 %v1427_v48, %v510_v49 }
  0xab   : > { %v600_v53 = vadd.f32 %v599_v50, %v511_v51 }
  0xad   : > { %v711_v59 = vmul.f32 0.2, %v600_v53  ;;  %vm679_vm0 = vcmp.ge.f32.partialorder %v600_v53, 0.0 }
  0xae   : > { %v550_v52 = vpop.f32.mrf.mxu2 }
  0xaf   : > { %v639_v54 = vpop.f32.mrf.mxu3  ;;  %v551_v56 = vadd.f32 %v1427_v48, %v550_v52  ;;  %v743_v0 = vsel %vm679_vm0, %v600_v53, %v711_v59 }
  0xb0   : > { %v512_v55 = vpop.f32.mrf.mxu0 }
  0xb1   : > { %v513_v57 = vadd.f32 %v1427_v48, %v512_v55  ;;  %v601_v58 = vpop.f32.mrf.mxu1  ;;  %v640_v61 = vadd.f32 %v639_v54, %v551_v56 }
  0xb3   : > { %v602_v60 = vadd.f32 %v601_v58, %v513_v57  ;;  %v727_v6 = vmul.f32 0.2, %v640_v61  ;;  %vm695_vm2 = vcmp.ge.f32.partialorder %v640_v61, 0.0 }
  0xb5   : > { %vm680_vm1 = vcmp.ge.f32.partialorder %v602_v60, 0.0  ;;  %v712_v62 = vmul.f32 0.2, %v602_v60  ;;  %v759_v11 = vsel %vm695_vm2, %v640_v61, %v727_v6 }
  0xb6   : > { %v552_v63 = vpop.f32.mrf.mxu2 }
  0xb7   : > { %v744_v1 = vsel %vm680_vm1, %v602_v60, %v712_v62  ;;  %v553_v2 = vadd.f32 %v1427_v48, %v552_v63  ;;  %v641_v3 = vpop.f32.mrf.mxu3 }
  0xb8   : > { %v1151_v4 = vpack.c.bf16 %v744_v1, %v743_v0  ;;  %v515_v5 = vpop.f32.mrf.mxu0 }
  0xb9   : > { %v642_v7 = vadd.f32 %v641_v3, %v553_v2  ;;  %v604_v8 = vpop.f32.mrf.mxu1  ;;  %v516_v10 = vadd.f32 %v1427_v48, %v515_v5 }
  0xba   : > { %1152 = vst [vmem:[%s1436_s4] sm:$0xff] %v1151_v4  }
  0xbb   : > { %vm696_vm3 = vcmp.ge.f32.partialorder %v642_v7, 0.0  ;;  %v728_v9 = vmul.f32 0.2, %v642_v7  ;;  %v605_v15 = vadd.f32 %v604_v8, %v516_v10 }
  0xbd   : > { %v760_v12 = vsel %vm696_vm3, %v642_v7, %v728_v9  ;;  %v713_v21 = vmul.f32 0.2, %v605_v15  ;;  %vm681_vm4 = vcmp.ge.f32.partialorder %v605_v15, 0.0 }
  0xbe   : > { %v1191_v13 = vpack.c.bf16 %v760_v12, %v759_v11  ;;  %v555_v14 = vpop.f32.mrf.mxu2 }
  0xbf   : > { %v644_v16 = vpop.f32.mrf.mxu3  ;;  %v556_v18 = vadd.f32 %v1427_v48, %v555_v14  ;;  %v745_v26 = vsel %vm681_vm4, %v605_v15, %v713_v21 }
  0xc0   : > { %1235 = vst [vmem:[%s1436_s4 + $0x40] sm:$0xff] %v1191_v13   ;;  %v517_v17 = vpop.f32.mrf.mxu0 }
  0xc1   : > { %v518_v19 = vadd.f32 %v1427_v48, %v517_v17  ;;  %v606_v20 = vpop.f32.mrf.mxu1  ;;  %v645_v23 = vadd.f32 %v644_v16, %v556_v18 }
  0xc3   : > { %v607_v22 = vadd.f32 %v606_v20, %v518_v19  ;;  %v729_v32 = vmul.f32 0.2, %v645_v23  ;;  %vm697_vm6 = vcmp.ge.f32.partialorder %v645_v23, 0.0 }
  0xc5   : > { %vm682_vm5 = vcmp.ge.f32.partialorder %v607_v22, 0.0  ;;  %v714_v24 = vmul.f32 0.2, %v607_v22  ;;  %v761_v37 = vsel %vm697_vm6, %v645_v23, %v729_v32 }
  0xc6   : > { %v557_v25 = vpop.f32.mrf.mxu2 }
  0xc7   : > { %v746_v27 = vsel %vm682_vm5, %v607_v22, %v714_v24  ;;  %v558_v28 = vadd.f32 %v1427_v48, %v557_v25  ;;  %v646_v29 = vpop.f32.mrf.mxu3 }
  0xc8   : > { %v1156_v30 = vpack.c.bf16 %v746_v27, %v745_v26  ;;  %v520_v31 = vpop.f32.mrf.mxu0 }
  0xc9   : > { %v647_v33 = vadd.f32 %v646_v29, %v558_v28  ;;  %v609_v34 = vpop.f32.mrf.mxu1  ;;  %v521_v36 = vadd.f32 %v1427_v48, %v520_v31 }
  0xca   : > { %1228 = vst [vmem:[%s1436_s4 + $0x8] sm:$0xff] %v1156_v30  }
  0xcb   : > { %vm698_vm7 = vcmp.ge.f32.partialorder %v647_v33, 0.0  ;;  %v730_v35 = vmul.f32 0.2, %v647_v33  ;;  %v610_v41 = vadd.f32 %v609_v34, %v521_v36 }
  0xcd   : > { %v762_v38 = vsel %vm698_vm7, %v647_v33, %v730_v35  ;;  %v715_v47 = vmul.f32 0.2, %v610_v41  ;;  %vm683_vm8 = vcmp.ge.f32.partialorder %v610_v41, 0.0 }
  0xce   : > { %v1196_v39 = vpack.c.bf16 %v762_v38, %v761_v37  ;;  %v560_v40 = vpop.f32.mrf.mxu2 }
  0xcf   : > { %v649_v42 = vpop.f32.mrf.mxu3  ;;  %v561_v44 = vadd.f32 %v1427_v48, %v560_v40  ;;  %v747_v53 = vsel %vm683_vm8, %v610_v41, %v715_v47 }
  0xd0   : > { %1236 = vst [vmem:[%s1436_s4 + $0x48] sm:$0xff] %v1196_v39   ;;  %v522_v43 = vpop.f32.mrf.mxu0 }
  0xd1   : > { %v523_v45 = vadd.f32 %v1427_v48, %v522_v43  ;;  %v611_v46 = vpop.f32.mrf.mxu1  ;;  %v650_v50 = vadd.f32 %v649_v42, %v561_v44 }
  0xd3   : > { %v612_v49 = vadd.f32 %v611_v46, %v523_v45  ;;  %v731_v59 = vmul.f32 0.2, %v650_v50  ;;  %vm699_vm10 = vcmp.ge.f32.partialorder %v650_v50, 0.0 }
  0xd5   : > { %vm684_vm9 = vcmp.ge.f32.partialorder %v612_v49, 0.0  ;;  %v716_v51 = vmul.f32 0.2, %v612_v49  ;;  %v763_v0 = vsel %vm699_vm10, %v650_v50, %v731_v59 }
  0xd6   : > { %v562_v52 = vpop.f32.mrf.mxu2 }
  0xd7   : > { %v748_v54 = vsel %vm684_vm9, %v612_v49, %v716_v51  ;;  %v563_v55 = vadd.f32 %v1427_v48, %v562_v52  ;;  %v651_v56 = vpop.f32.mrf.mxu3 }
  0xd8   : > { %v1161_v57 = vpack.c.bf16 %v748_v54, %v747_v53  ;;  %v525_v58 = vpop.f32.mrf.mxu0 }
  0xd9   : > { %v652_v60 = vadd.f32 %v651_v56, %v563_v55  ;;  %v614_v61 = vpop.f32.mrf.mxu1  ;;  %v526_v63 = vadd.f32 %v1427_v48, %v525_v58 }
  0xda   : > { %1229 = vst [vmem:[%s1436_s4 + $0x10] sm:$0xff] %v1161_v57  }
  0xdb   : > { %vm700_vm11 = vcmp.ge.f32.partialorder %v652_v60, 0.0  ;;  %v732_v62 = vmul.f32 0.2, %v652_v60  ;;  %v615_v4 = vadd.f32 %v614_v61, %v526_v63 }
  0xdd   : > { %v764_v1 = vsel %vm700_vm11, %v652_v60, %v732_v62  ;;  %v717_v10 = vmul.f32 0.2, %v615_v4  ;;  %vm685_vm12 = vcmp.ge.f32.partialorder %v615_v4, 0.0 }
  0xde   : > { %v1201_v2 = vpack.c.bf16 %v764_v1, %v763_v0  ;;  %v565_v3 = vpop.f32.mrf.mxu2 }
  0xdf   : > { %v654_v5 = vpop.f32.mrf.mxu3  ;;  %v566_v7 = vadd.f32 %v1427_v48, %v565_v3  ;;  %v749_v15 = vsel %vm685_vm12, %v615_v4, %v717_v10 }
  0xe0   : > { %1237 = vst [vmem:[%s1436_s4 + $0x50] sm:$0xff] %v1201_v2   ;;  %v527_v6 = vpop.f32.mrf.mxu0 }
  0xe1   : > { %v528_v8 = vadd.f32 %v1427_v48, %v527_v6  ;;  %v616_v9 = vpop.f32.mrf.mxu1  ;;  %v655_v12 = vadd.f32 %v654_v5, %v566_v7 }
  0xe3   : > { %v617_v11 = vadd.f32 %v616_v9, %v528_v8  ;;  %v733_v21 = vmul.f32 0.2, %v655_v12  ;;  %vm701_vm14 = vcmp.ge.f32.partialorder %v655_v12, 0.0 }
  0xe5   : > { %vm686_vm13 = vcmp.ge.f32.partialorder %v617_v11, 0.0  ;;  %v718_v13 = vmul.f32 0.2, %v617_v11  ;;  %v765_v26 = vsel %vm701_vm14, %v655_v12, %v733_v21 }
  0xe6   : > { %v567_v14 = vpop.f32.mrf.mxu2 }
  0xe7   : > { %v750_v16 = vsel %vm686_vm13, %v617_v11, %v718_v13  ;;  %v568_v17 = vadd.f32 %v1427_v48, %v567_v14  ;;  %v656_v18 = vpop.f32.mrf.mxu3 }
  0xe8   : > { %v1166_v19 = vpack.c.bf16 %v750_v16, %v749_v15  ;;  %v530_v20 = vpop.f32.mrf.mxu0 }
  0xe9   : > { %v657_v22 = vadd.f32 %v656_v18, %v568_v17  ;;  %v619_v23 = vpop.f32.mrf.mxu1  ;;  %v531_v25 = vadd.f32 %v1427_v48, %v530_v20 }
  0xea   : > { %1230 = vst [vmem:[%s1436_s4 + $0x18] sm:$0xff] %v1166_v19  }
  0xeb   : > { %vm702_vm15 = vcmp.ge.f32.partialorder %v657_v22, 0.0  ;;  %v734_v24 = vmul.f32 0.2, %v657_v22  ;;  %v620_v30 = vadd.f32 %v619_v23, %v531_v25 }
  0xed   : > { %v766_v27 = vsel %vm702_vm15, %v657_v22, %v734_v24  ;;  %v719_v36 = vmul.f32 0.2, %v620_v30  ;;  %vm687_vm0 = vcmp.ge.f32.partialorder %v620_v30, 0.0 }
  0xee   : > { %v1206_v28 = vpack.c.bf16 %v766_v27, %v765_v26  ;;  %v570_v29 = vpop.f32.mrf.mxu2 }
  0xef   : > { %v659_v31 = vpop.f32.mrf.mxu3  ;;  %v571_v33 = vadd.f32 %v1427_v48, %v570_v29  ;;  %v751_v41 = vsel %vm687_vm0, %v620_v30, %v719_v36 }
  0xf0   : > { %1238 = vst [vmem:[%s1436_s4 + $0x58] sm:$0xff] %v1206_v28   ;;  %v532_v32 = vpop.f32.mrf.mxu0 }
  0xf1   : > { %v533_v34 = vadd.f32 %v1427_v48, %v532_v32  ;;  %v621_v35 = vpop.f32.mrf.mxu1  ;;  %v660_v38 = vadd.f32 %v659_v31, %v571_v33 }
  0xf3   : > { %v622_v37 = vadd.f32 %v621_v35, %v533_v34  ;;  %v735_v47 = vmul.f32 0.2, %v660_v38  ;;  %vm703_vm2 = vcmp.ge.f32.partialorder %v660_v38, 0.0 }
  0xf5   : > { %vm688_vm1 = vcmp.ge.f32.partialorder %v622_v37, 0.0  ;;  %v720_v39 = vmul.f32 0.2, %v622_v37  ;;  %v767_v53 = vsel %vm703_vm2, %v660_v38, %v735_v47 }
  0xf6   : > { %v572_v40 = vpop.f32.mrf.mxu2 }
  0xf7   : > { %v752_v42 = vsel %vm688_vm1, %v622_v37, %v720_v39  ;;  %v573_v43 = vadd.f32 %v1427_v48, %v572_v40  ;;  %v661_v44 = vpop.f32.mrf.mxu3 }
  0xf8   : > { %v1171_v45 = vpack.c.bf16 %v752_v42, %v751_v41  ;;  %v535_v46 = vpop.f32.mrf.mxu0 }
  0xf9   : > { %v662_v49 = vadd.f32 %v661_v44, %v573_v43  ;;  %v624_v50 = vpop.f32.mrf.mxu1  ;;  %v536_v52 = vadd.f32 %v1427_v48, %v535_v46 }
  0xfa   : > { %1231 = vst [vmem:[%s1436_s4 + $0x20] sm:$0xff] %v1171_v45  }
  0xfb   : > { %vm704_vm3 = vcmp.ge.f32.partialorder %v662_v49, 0.0  ;;  %v736_v51 = vmul.f32 0.2, %v662_v49  ;;  %v625_v57 = vadd.f32 %v624_v50, %v536_v52 }
  0xfd   : > { %v768_v54 = vsel %vm704_vm3, %v662_v49, %v736_v51  ;;  %v721_v63 = vmul.f32 0.2, %v625_v57  ;;  %vm689_vm4 = vcmp.ge.f32.partialorder %v625_v57, 0.0 }
  0xfe   : > { %v1211_v55 = vpack.c.bf16 %v768_v54, %v767_v53  ;;  %v575_v56 = vpop.f32.mrf.mxu2 }
  0xff   : > { %v664_v58 = vpop.f32.mrf.mxu3  ;;  %v576_v60 = vadd.f32 %v1427_v48, %v575_v56  ;;  %v753_v4 = vsel %vm689_vm4, %v625_v57, %v721_v63 }
 0x100   : > { %1239 = vst [vmem:[%s1436_s4 + $0x60] sm:$0xff] %v1211_v55   ;;  %v537_v59 = vpop.f32.mrf.mxu0 }
 0x101   : > { %v538_v61 = vadd.f32 %v1427_v48, %v537_v59  ;;  %v626_v62 = vpop.f32.mrf.mxu1  ;;  %v665_v1 = vadd.f32 %v664_v58, %v576_v60 }
 0x103   : > { %v627_v0 = vadd.f32 %v626_v62, %v538_v61  ;;  %v737_v10 = vmul.f32 0.2, %v665_v1  ;;  %vm705_vm6 = vcmp.ge.f32.partialorder %v665_v1, 0.0 }
 0x105   : > { %vm690_vm5 = vcmp.ge.f32.partialorder %v627_v0, 0.0  ;;  %v722_v2 = vmul.f32 0.2, %v627_v0  ;;  %v769_v15 = vsel %vm705_vm6, %v665_v1, %v737_v10 }
 0x106   : > { %v577_v3 = vpop.f32.mrf.mxu2 }
 0x107   : > { %v754_v5 = vsel %vm690_vm5, %v627_v0, %v722_v2  ;;  %v578_v6 = vadd.f32 %v1427_v48, %v577_v3  ;;  %v666_v7 = vpop.f32.mrf.mxu3 }
 0x108   : > { %v1176_v8 = vpack.c.bf16 %v754_v5, %v753_v4  ;;  %v540_v9 = vpop.f32.mrf.mxu0 }
 0x109   : > { %v667_v11 = vadd.f32 %v666_v7, %v578_v6  ;;  %v629_v12 = vpop.f32.mrf.mxu1  ;;  %v541_v14 = vadd.f32 %v1427_v48, %v540_v9 }
 0x10a   : > { %1232 = vst [vmem:[%s1436_s4 + $0x28] sm:$0xff] %v1176_v8  }
 0x10b   : > { %vm706_vm7 = vcmp.ge.f32.partialorder %v667_v11, 0.0  ;;  %v738_v13 = vmul.f32 0.2, %v667_v11  ;;  %v630_v19 = vadd.f32 %v629_v12, %v541_v14 }
 0x10d   : > { %v770_v16 = vsel %vm706_vm7, %v667_v11, %v738_v13  ;;  %v723_v25 = vmul.f32 0.2, %v630_v19  ;;  %vm691_vm8 = vcmp.ge.f32.partialorder %v630_v19, 0.0 }
 0x10e   : > { %v1216_v17 = vpack.c.bf16 %v770_v16, %v769_v15  ;;  %v580_v18 = vpop.f32.mrf.mxu2 }
 0x10f   : > { %v669_v20 = vpop.f32.mrf.mxu3  ;;  %v581_v22 = vadd.f32 %v1427_v48, %v580_v18  ;;  %v755_v30 = vsel %vm691_vm8, %v630_v19, %v723_v25 }
 0x110   : > { %1240 = vst [vmem:[%s1436_s4 + $0x68] sm:$0xff] %v1216_v17   ;;  %v542_v21 = vpop.f32.mrf.mxu0 }
 0x111   : > { %v543_v23 = vadd.f32 %v1427_v48, %v542_v21  ;;  %v631_v24 = vpop.f32.mrf.mxu1  ;;  %v670_v27 = vadd.f32 %v669_v20, %v581_v22 }
 0x113   : > { %v632_v26 = vadd.f32 %v631_v24, %v543_v23  ;;  %v739_v36 = vmul.f32 0.2, %v670_v27  ;;  %vm707_vm10 = vcmp.ge.f32.partialorder %v670_v27, 0.0 }
 0x115   : > { %vm692_vm9 = vcmp.ge.f32.partialorder %v632_v26, 0.0  ;;  %v724_v28 = vmul.f32 0.2, %v632_v26  ;;  %v771_v41 = vsel %vm707_vm10, %v670_v27, %v739_v36 }
 0x116   : > { %v582_v29 = vpop.f32.mrf.mxu2 }
 0x117   : > { %v756_v31 = vsel %vm692_vm9, %v632_v26, %v724_v28  ;;  %v583_v32 = vadd.f32 %v1427_v48, %v582_v29  ;;  %v671_v33 = vpop.f32.mrf.mxu3 }
 0x118   : > { %v1181_v34 = vpack.c.bf16 %v756_v31, %v755_v30  ;;  %v545_v35 = vpop.f32.mrf.mxu0 }
 0x119   : > { %v672_v37 = vadd.f32 %v671_v33, %v583_v32  ;;  %v634_v38 = vpop.f32.mrf.mxu1  ;;  %v546_v40 = vadd.f32 %v1427_v48, %v545_v35 }
 0x11a   : > { %1233 = vst [vmem:[%s1436_s4 + $0x30] sm:$0xff] %v1181_v34  }
 0x11b   : > { %vm708_vm11 = vcmp.ge.f32.partialorder %v672_v37, 0.0  ;;  %v740_v39 = vmul.f32 0.2, %v672_v37  ;;  %v635_v45 = vadd.f32 %v634_v38, %v546_v40 }
 0x11d   : > { %v772_v42 = vsel %vm708_vm11, %v672_v37, %v740_v39  ;;  %v725_v52 = vmul.f32 0.2, %v635_v45  ;;  %vm693_vm12 = vcmp.ge.f32.partialorder %v635_v45, 0.0 }
 0x11e   : > { %v1221_v43 = vpack.c.bf16 %v772_v42, %v771_v41  ;;  %v585_v44 = vpop.f32.mrf.mxu2 }
 0x11f   : > { %v674_v46 = vpop.f32.mrf.mxu3  ;;  %v586_v49 = vadd.f32 %v1427_v48, %v585_v44  ;;  %v757_v57 = vsel %vm693_vm12, %v635_v45, %v725_v52 }
 0x120   : > { %1241 = vst [vmem:[%s1436_s4 + $0x70] sm:$0xff] %v1221_v43   ;;  %v547_v47 = vpop.f32.mrf.mxu0 }
 0x121   : > { %v548_v50 = vadd.f32 %v1427_v48, %v547_v47  ;;  %v636_v51 = vpop.f32.mrf.mxu1  ;;  %v675_v54 = vadd.f32 %v674_v46, %v586_v49 }
 0x123   : > { %v637_v53 = vadd.f32 %v636_v51, %v548_v50  ;;  %v741_v62 = vmul.f32 0.2, %v675_v54  ;;  %vm709_vm14 = vcmp.ge.f32.partialorder %v675_v54, 0.0 }
 0x125   : > { %vm694_vm13 = vcmp.ge.f32.partialorder %v637_v53, 0.0  ;;  %v726_v55 = vmul.f32 0.2, %v637_v53  ;;  %v773_v1 = vsel %vm709_vm14, %v675_v54, %v741_v62 }
 0x126   : > { %v587_v56 = vpop.f32.mrf.mxu2 }
 0x127   : > { %v758_v58 = vsel %vm694_vm13, %v637_v53, %v726_v55  ;;  %v588_v59 = vadd.f32 %v1427_v48, %v587_v56  ;;  %v676_v61 = vpop.f32.mrf.mxu3 }
 0x128   : > { %v1186_v60 = vpack.c.bf16 %v758_v58, %v757_v57 }
 0x129   : > { %v677_v63 = vadd.f32 %v676_v61, %v588_v59 }
 0x12a   : > { %1234 = vst [vmem:[%s1436_s4 + $0x38] sm:$0xff] %v1186_v60  }
 0x12b   : > { %vm710_vm15 = vcmp.ge.f32.partialorder %v677_v63, 0.0  ;;  %v742_v0 = vmul.f32 0.2, %v677_v63 }
 0x12d   : > { %v774_v2 = vsel %vm710_vm15, %v677_v63, %v742_v0 }
 0x12e   : > { %v1226_v3 = vpack.c.bf16 %v774_v2, %v773_v1 }
 0x130   : > { %1242 = vst [vmem:[%s1436_s4 + $0x78] sm:$0xff] %v1226_v3  }
 0x131 PF: > { %s13_s12 = sadd.s32 1, %s1274_s12  }
 0x132   : > { %p10_p4 = scmp.ge.s32.totalorder %s13_s12, 4  }
 0x134   :  { %12 = sbr.rel (!%p10_p4) target bundleno = 1 (0x1), region = 62 }

// kernel: discriminator_forward.5
= control target key start
LH: loop header
LB: loop body
LE: loop exit
PB: predicated region body
PF: predicated region fallthrough
CT: control target
= control target key end

     0   :  { %s2544_s18 = smov 0   ;;  %s2546_s19 = smov 0   ;;  %s3472_s0 = inlined_call_operand.vmem [shape: bf16[128,2048], index: 0, kind: input, shape index: {}]   ;;  %s3473_s1 = inlined_call_operand.vmem [shape: bf16[2048,256], index: 1, kind: input, shape index: {}]   ;;  %s3474_s2 = inlined_call_operand.vmem [shape: f32[1,256], index: 2, kind: input, shape index: {}]   ;;  %s3475_s3 = inlined_call_operand.vmem [shape: f32[1,256], index: 3, kind: input, shape index: {}]   ;;  %s3476_s4 = inlined_call_operand.vmem [shape: f32[1,256], index: 4, kind: input, shape index: {}]   ;;  %s3477_s5 = inlined_call_operand.vmem [shape: bf16[128,256], index: 5, kind: output, shape index: {}]  }
   0x1   :  { %s2548_s20 = smov 0  }
   0x2 LB: > { %s2560_s21 = sadd.s32 4294967295, %s2510_s20   ;;  %s2563_s22 = sadd.s32 1, %s2510_s20   ;;  %s2510_s20 = sphi %s2548_s20, %s3490_s20   ;;  %s2506_s19 = sphi %s2546_s19, %s3489_s19   ;;  %s2502_s18 = sphi %s2544_s18, %s3488_s18  }
   0x3   : > { %s19_s23 = ssub.s32 %s2510_s20, %s2563_s22  ;;  %s22_s24 = sadd.s32 1, %s2506_s19 }
   0x4   : > { %p20_p0 = scmp.eq.s32.totalorder %s19_s23, 0  ;;  %p29_p1 = scmp.ne.s32.totalorder %s2506_s19, %s2502_s18 }
   0x5   : > { %p30_p2 = scmp.eq.s32.totalorder %s2510_s20, 0  ;;  %p1961_p4 = scmp.ge.s32.totalorder %s2510_s20, 4 }
   0x6   : > { %s2572_s25 = scalar_select %p20_p0, %s2506_s19, %s22_s24  }
   0x7   : > { %p31_p3 = por %p30_p2, %p29_p1  ;;  %174 = sbr.rel (%p1961_p4) target bundleno = 48 (0x30), region = 28 }
   0xc   : > { %177 = sbr.rel (!%p31_p3) target bundleno = 48 (0x30), region = 32  ;;  %s179_s26 = sand.u32 (%p31_p3), 1, %s2506_s19  }
   0xd   : > { %s2358_s27 = sshll.u32 (%p31_p3), %s2510_s20, 4  ;;  %s1962_s28 = sshll.u32 (%p31_p3), %s179_s26, 8 }
   0xe   : > { %s2580_s6 = scalar_lea.vmem (%p31_p3), %s3472_s0, %s2358_s27  ;;  %s2585_s7 = scalar_lea.vmem (%p31_p3), [#allocation3], %s1962_s28 }
   0xf   : > { %v197_v0 = vld [vmem:[%s2580_s6] sm:$0xff] (%p31_p3)  ;;  %v199_v1 = vld [vmem:[%s2580_s6 + $0x8] sm:$0xff] (%p31_p3) }
  0x10   : > { %v201_v2 = vld [vmem:[%s2580_s6 + $0x40] sm:$0xff] (%p31_p3)  ;;  %198 = vst [vmem:[%s2585_s7] sm:$0xff] (%p31_p3), %v197_v0  ;;  %v203_v3 = vld [vmem:[%s2580_s6 + $0x48] sm:$0xff] (%p31_p3) }
  0x11   : > { %200 = vst [vmem:[%s2585_s7 + $0x8] sm:$0xff] %v199_v1  ;;  %v205_v4 = vld [vmem:[%s2580_s6 + $0x80] sm:$0xff]  ;;  %v207_v5 = vld [vmem:[%s2580_s6 + $0x88] sm:$0xff] }
  0x12   : > { %202 = vst [vmem:[%s2585_s7 + $0x10] sm:$0xff] %v201_v2  ;;  %v209_v6 = vld [vmem:[%s2580_s6 + $0xc0] sm:$0xff]  ;;  %v211_v7 = vld [vmem:[%s2580_s6 + $0xc8] sm:$0xff] }
  0x13   : > { %204 = vst [vmem:[%s2585_s7 + $0x18] sm:$0xff] %v203_v3  ;;  %v213_v8 = vld [vmem:[%s2580_s6 + $0x100] sm:$0xff]  ;;  %v215_v9 = vld [vmem:[%s2580_s6 + $0x108] sm:$0xff] }
  0x14   : > { %206 = vst [vmem:[%s2585_s7 + $0x20] sm:$0xff] %v205_v4  ;;  %v217_v10 = vld [vmem:[%s2580_s6 + $0x140] sm:$0xff]  ;;  %v219_v11 = vld [vmem:[%s2580_s6 + $0x148] sm:$0xff] }
  0x15   : > { %208 = vst [vmem:[%s2585_s7 + $0x28] sm:$0xff] %v207_v5  ;;  %v221_v12 = vld [vmem:[%s2580_s6 + $0x180] sm:$0xff]  ;;  %v223_v13 = vld [vmem:[%s2580_s6 + $0x188] sm:$0xff] }
  0x16   : > { %210 = vst [vmem:[%s2585_s7 + $0x30] sm:$0xff] %v209_v6  ;;  %v225_v14 = vld [vmem:[%s2580_s6 + $0x1c0] sm:$0xff]  ;;  %v227_v15 = vld [vmem:[%s2580_s6 + $0x1c8] sm:$0xff] }
  0x17   : > { %212 = vst [vmem:[%s2585_s7 + $0x38] sm:$0xff] %v211_v7  ;;  %v229_v16 = vld [vmem:[%s2580_s6 + $0x200] sm:$0xff]  ;;  %v231_v17 = vld [vmem:[%s2580_s6 + $0x208] sm:$0xff] }
  0x18   : > { %214 = vst [vmem:[%s2585_s7 + $0x40] sm:$0xff] %v213_v8  ;;  %v233_v18 = vld [vmem:[%s2580_s6 + $0x240] sm:$0xff]  ;;  %v235_v19 = vld [vmem:[%s2580_s6 + $0x248] sm:$0xff] }
  0x19   : > { %216 = vst [vmem:[%s2585_s7 + $0x48] sm:$0xff] %v215_v9  ;;  %v237_v20 = vld [vmem:[%s2580_s6 + $0x280] sm:$0xff]  ;;  %v239_v21 = vld [vmem:[%s2580_s6 + $0x288] sm:$0xff] }
  0x1a   : > { %218 = vst [vmem:[%s2585_s7 + $0x50] sm:$0xff] %v217_v10  ;;  %v241_v22 = vld [vmem:[%s2580_s6 + $0x2c0] sm:$0xff]  ;;  %v243_v23 = vld [vmem:[%s2580_s6 + $0x2c8] sm:$0xff] }
  0x1b   : > { %220 = vst [vmem:[%s2585_s7 + $0x58] sm:$0xff] %v219_v11  ;;  %v245_v24 = vld [vmem:[%s2580_s6 + $0x300] sm:$0xff]  ;;  %v247_v25 = vld [vmem:[%s2580_s6 + $0x308] sm:$0xff] }
  0x1c   : > { %222 = vst [vmem:[%s2585_s7 + $0x60] sm:$0xff] %v221_v12  ;;  %v249_v26 = vld [vmem:[%s2580_s6 + $0x340] sm:$0xff]  ;;  %v251_v27 = vld [vmem:[%s2580_s6 + $0x348] sm:$0xff] }
  0x1d   : > { %224 = vst [vmem:[%s2585_s7 + $0x68] sm:$0xff] %v223_v13  ;;  %v253_v28 = vld [vmem:[%s2580_s6 + $0x380] sm:$0xff]  ;;  %v255_v29 = vld [vmem:[%s2580_s6 + $0x388] sm:$0xff] }
  0x1e   : > { %226 = vst [vmem:[%s2585_s7 + $0x70] sm:$0xff] %v225_v14  ;;  %v257_v30 = vld [vmem:[%s2580_s6 + $0x3c0] sm:$0xff]  ;;  %v259_v31 = vld [vmem:[%s2580_s6 + $0x3c8] sm:$0xff] }
  0x1f   : > { %228 = vst [vmem:[%s2585_s7 + $0x78] sm:$0xff] %v227_v15 }
  0x20   : > { %230 = vst [vmem:[%s2585_s7 + $0x80] sm:$0xff] %v229_v16 }
  0x21   : > { %232 = vst [vmem:[%s2585_s7 + $0x88] sm:$0xff] %v231_v17 }
  0x22   : > { %234 = vst [vmem:[%s2585_s7 + $0x90] sm:$0xff] %v233_v18 }
  0x23   : > { %236 = vst [vmem:[%s2585_s7 + $0x98] sm:$0xff] %v235_v19 }
  0x24   : > { %238 = vst [vmem:[%s2585_s7 + $0xa0] sm:$0xff] %v237_v20 }
  0x25   : > { %240 = vst [vmem:[%s2585_s7 + $0xa8] sm:$0xff] %v239_v21 }
  0x26   : > { %242 = vst [vmem:[%s2585_s7 + $0xb0] sm:$0xff] %v241_v22 }
  0x27   : > { %244 = vst [vmem:[%s2585_s7 + $0xb8] sm:$0xff] %v243_v23 }
  0x28   : > { %246 = vst [vmem:[%s2585_s7 + $0xc0] sm:$0xff] %v245_v24 }
  0x29   : > { %248 = vst [vmem:[%s2585_s7 + $0xc8] sm:$0xff] %v247_v25 }
  0x2a   : > { %250 = vst [vmem:[%s2585_s7 + $0xd0] sm:$0xff] %v249_v26 }
  0x2b   : > { %252 = vst [vmem:[%s2585_s7 + $0xd8] sm:$0xff] %v251_v27 }
  0x2c   : > { %254 = vst [vmem:[%s2585_s7 + $0xe0] sm:$0xff] %v253_v28 }
  0x2d   : > { %256 = vst [vmem:[%s2585_s7 + $0xe8] sm:$0xff] %v255_v29 }
  0x2e   : > { %258 = vst [vmem:[%s2585_s7 + $0xf0] sm:$0xff] %v257_v30 }
  0x2f   : > { %260 = vst [vmem:[%s2585_s7 + $0xf8] sm:$0xff] %v259_v31 }
  0x30 PF: > { %p1965_p5 = scmp.ge.s32.totalorder %s2510_s20, 1  ;;  %p275_p6 = scmp.lt.s32.totalorder %s2510_s20, 5 }
  0x32   : > { %p276_p7 = pnand %p1965_p5, %p275_p6 }
  0x33   : > { %s282_s8 = sand.u32 (!%p276_p7), 1, %s2502_s18   ;;  %s1967_s9 = sshll.u32 (!%p276_p7), %s2560_s21, 6 }
  0x34   : > { %279 = sbr.rel (%p276_p7) target bundleno = 659 (0x293), region = 59  ;;  %s1966_s10 = sshll.u32 (!%p276_p7), %s282_s8, 8 }
  0x35   : > { %p312_p8 = scmp.lt.s32.totalorder (!%p276_p7), %s1967_s9, 255  ;;  %s2657_s15 = scalar_lea.vmem (!%p276_p7), [#allocation3], %s1966_s10 }
  0x36   : > { %p1970_p9 = scmp.ne.s32.totalorder (!%p276_p7), %s2560_s21, 0 }
  0x39   : > { %s3492_s9 = smov (!%p312_p8, %s1967_s9), 255  ;;  %321 = sbr.rel (%p1970_p9) target bundleno = 95 (0x5f), region = 67 }
  0x3a   : > { %s2359_s11 = sshll.u32 %s3492_s9, 3 }
  0x3b   : > { %s2655_s14 = scalar_lea.vmem %s3473_s1, %s2359_s11 }
  0x3e   : > { %v2512_v32 = vmov 0.0  }
  0x3f   : > { %322 = vst [vmem:[#allocation2 + $0xb0] sm:$0xff] %v2512_v32 }
  0x40   : > { %323 = vst [vmem:[#allocation2] sm:$0xff] %v2512_v32 }
  0x41   : > { %324 = vst [vmem:[#allocation2 + $0xd8] sm:$0xff] %v2512_v32 }
  0x42   : > { %325 = vst [vmem:[#allocation2 + $0x18] sm:$0xff] %v2512_v32 }
  0x43   : > { %326 = vst [vmem:[#allocation2 + $0x50] sm:$0xff] %v2512_v32 }
  0x44   : > { %327 = vst [vmem:[#allocation2 + $0x68] sm:$0xff] %v2512_v32 }
  0x45   : > { %328 = vst [vmem:[#allocation2 + $0x30] sm:$0xff] %v2512_v32 }
  0x46   : > { %329 = vst [vmem:[#allocation2 + $0x48] sm:$0xff] %v2512_v32 }
  0x47   : > { %330 = vst [vmem:[#allocation2 + $0x80] sm:$0xff] %v2512_v32 }
  0x48   : > { %331 = vst [vmem:[#allocation2 + $0x88] sm:$0xff] %v2512_v32 }
  0x49   : > { %332 = vst [vmem:[#allocation2 + $0xe8] sm:$0xff] %v2512_v32 }
  0x4a   : > { %333 = vst [vmem:[#allocation2 + $0xb8] sm:$0xff] %v2512_v32 }
  0x4b   : > { %334 = vst [vmem:[#allocation2 + $0x60] sm:$0xff] %v2512_v32 }
  0x4c   : > { %335 = vst [vmem:[#allocation2 + $0xf0] sm:$0xff] %v2512_v32 }
  0x4d   : > { %336 = vst [vmem:[#allocation2 + $0x8] sm:$0xff] %v2512_v32 }
  0x4e   : > { %337 = vst [vmem:[#allocation2 + $0x78] sm:$0xff] %v2512_v32 }
  0x4f   : > { %338 = vst [vmem:[#allocation2 + $0x38] sm:$0xff] %v2512_v32 }
  0x50   : > { %339 = vst [vmem:[#allocation2 + $0x58] sm:$0xff] %v2512_v32 }
  0x51   : > { %340 = vst [vmem:[#allocation2 + $0x40] sm:$0xff] %v2512_v32 }
  0x52   : > { %341 = vst [vmem:[#allocation2 + $0xc8] sm:$0xff] %v2512_v32 }
  0x53   : > { %342 = vst [vmem:[#allocation2 + $0xe0] sm:$0xff] %v2512_v32 }
  0x54   : > { %343 = vst [vmem:[#allocation2 + $0x90] sm:$0xff] %v2512_v32 }
  0x55   : > { %344 = vst [vmem:[#allocation2 + $0x70] sm:$0xff] %v2512_v32 }
  0x56   : > { %345 = vst [vmem:[#allocation2 + $0xc0] sm:$0xff] %v2512_v32 }
  0x57   : > { %346 = vst [vmem:[#allocation2 + $0xa8] sm:$0xff] %v2512_v32 }
  0x58   : > { %347 = vst [vmem:[#allocation2 + $0xd0] sm:$0xff] %v2512_v32 }
  0x59   : > { %348 = vst [vmem:[#allocation2 + $0x10] sm:$0xff] %v2512_v32 }
  0x5a   : > { %349 = vst [vmem:[#allocation2 + $0x28] sm:$0xff] %v2512_v32 }
  0x5b   : > { %350 = vst [vmem:[#allocation2 + $0xa0] sm:$0xff] %v2512_v32 }
  0x5c   : > { %351 = vst [vmem:[#allocation2 + $0xf8] sm:$0xff] %v2512_v32 }
  0x5d   : > { %352 = vst [vmem:[#allocation2 + $0x20] sm:$0xff] %v2512_v32 }
  0x5e   : > { %353 = vst [vmem:[#allocation2 + $0x98] sm:$0xff] %v2512_v32 }
  0x5f PF: > { %v2157_v33 = vld [vmem:[%s2655_s14 + $0x70] sm:$0xf]  ;;  %v2407_v34 = vld [vmem:[%s2655_s14 + $0x74] sm:$0xf0]  ;;  %v2149_v44 = vld [vmem:[%s2655_s14 + $0x60] sm:$0xf] }
  0x60   : > { %v2221_v35 = vld [vmem:[%s2655_s14 + $0xf0] sm:$0xf]  ;;  %v2158_v36 = vor.u32 %v2407_v34, %v2157_v33  ;;  %v2423_v37 = vld [vmem:[%s2655_s14 + $0xf4] sm:$0xf0]  ;;  %v2405_v46 = vld [vmem:[%s2655_s14 + $0x64] sm:$0xf0] }
  0x61   : > { %v2285_v38 = vld [vmem:[%s2655_s14 + $0x170] sm:$0xf]  ;;  %v2439_v39 = vld [vmem:[%s2655_s14 + $0x174] sm:$0xf0]  ;;  %v2222_v40 = vor.u32 %v2423_v37, %v2221_v35  ;;  %v2213_v47 = vld [vmem:[%s2655_s14 + $0xe0] sm:$0xf]  ;;  %v2150_v49 = vor.u32 %v2405_v46, %v2149_v44 }
  0x62   : > { %v2286_v41 = vor.u32 %v2439_v39, %v2285_v38  ;;  %v2349_v42 = vld [vmem:[%s2655_s14 + $0x1f0] sm:$0xf]  ;;  %v2455_v43 = vld [vmem:[%s2655_s14 + $0x1f4] sm:$0xf0]  ;;  %962 = vmatpush.bf16.msra.mxu0 %v2158_v36  ;;  %v2421_v48 = vld [vmem:[%s2655_s14 + $0xe4] sm:$0xf0] }
  0x63   : > { %v2350_v45 = vor.u32 %v2455_v43, %v2349_v42  ;;  %1011 = vmatpush.bf16.msra.mxu1 %v2222_v40  ;;  %v2214_v50 = vor.u32 %v2421_v48, %v2213_v47  ;;  %v2277_v51 = vld [vmem:[%s2655_s14 + $0x160] sm:$0xf]  ;;  %v2437_v52 = vld [vmem:[%s2655_s14 + $0x164] sm:$0xf0]  ;;  %v2141_v56 = vld [vmem:[%s2655_s14 + $0x50] sm:$0xf] }
  0x64   : > { %1060 = vmatpush.bf16.msra.mxu2 %v2286_v41  ;;  %v2341_v53 = vld [vmem:[%s2655_s14 + $0x1e0] sm:$0xf]  ;;  %v2278_v54 = vor.u32 %v2437_v52, %v2277_v51  ;;  %v2453_v55 = vld [vmem:[%s2655_s14 + $0x1e4] sm:$0xf0]  ;;  %v2403_v57 = vld [vmem:[%s2655_s14 + $0x54] sm:$0xf0] }
  0x65   : > { %1109 = vmatpush.bf16.msra.mxu3 %v2350_v45  ;;  %v2342_v58 = vor.u32 %v2453_v55, %v2341_v53  ;;  %v2205_v59 = vld [vmem:[%s2655_s14 + $0xd0] sm:$0xf]  ;;  %v2419_v60 = vld [vmem:[%s2655_s14 + $0xd4] sm:$0xf0]  ;;  %v2142_v62 = vor.u32 %v2403_v57, %v2141_v56  ;;  %v2133_v4 = vld [vmem:[%s2655_s14 + $0x40] sm:$0xf] }
  0x66   : > { %v2269_v61 = vld [vmem:[%s2655_s14 + $0x150] sm:$0xf]  ;;  %963 = vmatpush.bf16.msra.mxu0 %v2150_v49  ;;  %v2435_v63 = vld [vmem:[%s2655_s14 + $0x154] sm:$0xf0]  ;;  %v2206_v2 = vor.u32 %v2419_v60, %v2205_v59  ;;  %v2401_v5 = vld [vmem:[%s2655_s14 + $0x44] sm:$0xf0] }
  0x67   : > { %v2333_v0 = vld [vmem:[%s2655_s14 + $0x1d0] sm:$0xf]  ;;  %v2451_v1 = vld [vmem:[%s2655_s14 + $0x1d4] sm:$0xf0]  ;;  %1012 = vmatpush.bf16.msra.mxu1 %v2214_v50  ;;  %v2270_v3 = vor.u32 %v2435_v63, %v2269_v61  ;;  %v2197_v6 = vld [vmem:[%s2655_s14 + $0xc0] sm:$0xf]  ;;  %v2134_v13 = vor.u32 %v2401_v5, %v2133_v4 }
  0x68   : > { %1061 = vmatpush.bf16.msra.mxu2 %v2278_v54  ;;  %v2334_v7 = vor.u32 %v2451_v1, %v2333_v0  ;;  %v2417_v8 = vld [vmem:[%s2655_s14 + $0xc4] sm:$0xf0]  ;;  %v2261_v9 = vld [vmem:[%s2655_s14 + $0x140] sm:$0xf]  ;;  %v2125_v16 = vld [vmem:[%s2655_s14 + $0x30] sm:$0xf] }
  0x69   : > { %1110 = vmatpush.bf16.msra.mxu3 %v2342_v58  ;;  %v2433_v10 = vld [vmem:[%s2655_s14 + $0x144] sm:$0xf0]  ;;  %v2325_v11 = vld [vmem:[%s2655_s14 + $0x1c0] sm:$0xf]  ;;  %v2198_v14 = vor.u32 %v2417_v8, %v2197_v6  ;;  %v2399_v17 = vld [vmem:[%s2655_s14 + $0x34] sm:$0xf0] }
  0x6a   : > { %v2449_v12 = vld [vmem:[%s2655_s14 + $0x1c4] sm:$0xf0]  ;;  %964 = vmatpush.bf16.msra.mxu0 %v2142_v62  ;;  %v2262_v15 = vor.u32 %v2433_v10, %v2261_v9  ;;  %v2189_v18 = vld [vmem:[%s2655_s14 + $0xb0] sm:$0xf]  ;;  %v2415_v20 = vld [vmem:[%s2655_s14 + $0xb4] sm:$0xf0]  ;;  %v2126_v25 = vor.u32 %v2399_v17, %v2125_v16 }
  0x6b   : > { %1013 = vmatpush.bf16.msra.mxu1 %v2206_v2  ;;  %v2326_v19 = vor.u32 %v2449_v12, %v2325_v11  ;;  %v2253_v21 = vld [vmem:[%s2655_s14 + $0x130] sm:$0xf]  ;;  %v2431_v22 = vld [vmem:[%s2655_s14 + $0x134] sm:$0xf0]  ;;  %v2190_v26 = vor.u32 %v2415_v20, %v2189_v18  ;;  %v2117_v28 = vld [vmem:[%s2655_s14 + $0x20] sm:$0xf] }
  0x6c   : > { %1062 = vmatpush.bf16.msra.mxu2 %v2270_v3  ;;  %v2317_v23 = vld [vmem:[%s2655_s14 + $0x1b0] sm:$0xf]  ;;  %v2447_v24 = vld [vmem:[%s2655_s14 + $0x1b4] sm:$0xf0]  ;;  %v2254_v27 = vor.u32 %v2431_v22, %v2253_v21  ;;  %v2397_v29 = vld [vmem:[%s2655_s14 + $0x24] sm:$0xf0] }
  0x6d   : > { %1111 = vmatpush.bf16.msra.mxu3 %v2334_v7  ;;  %v2181_v30 = vld [vmem:[%s2655_s14 + $0xa0] sm:$0xf]  ;;  %v2318_v31 = vor.u32 %v2447_v24, %v2317_v23  ;;  %v2413_v32 = vld [vmem:[%s2655_s14 + $0xa4] sm:$0xf0]  ;;  %v2118_v37 = vor.u32 %v2397_v29, %v2117_v28  ;;  %v2109_v40 = vld [vmem:[%s2655_s14 + $0x10] sm:$0xf] }
  0x6e   : > { %965 = vmatpush.bf16.msra.mxu0 %v2134_v13  ;;  %v2245_v33 = vld [vmem:[%s2655_s14 + $0x120] sm:$0xf]  ;;  %v2429_v34 = vld [vmem:[%s2655_s14 + $0x124] sm:$0xf0]  ;;  %v2182_v38 = vor.u32 %v2413_v32, %v2181_v30  ;;  %v2395_v41 = vld [vmem:[%s2655_s14 + $0x14] sm:$0xf0] }
  0x6f   : > { %1014 = vmatpush.bf16.msra.mxu1 %v2198_v14  ;;  %v2309_v35 = vld [vmem:[%s2655_s14 + $0x1a0] sm:$0xf]  ;;  %v2445_v36 = vld [vmem:[%s2655_s14 + $0x1a4] sm:$0xf0]  ;;  %v2246_v39 = vor.u32 %v2429_v34, %v2245_v33  ;;  %v2173_v42 = vld [vmem:[%s2655_s14 + $0x90] sm:$0xf]  ;;  %v2110_v50 = vor.u32 %v2395_v41, %v2109_v40 }
  0x70   : > { %1063 = vmatpush.bf16.msra.mxu2 %v2262_v15  ;;  %v2310_v43 = vor.u32 %v2445_v36, %v2309_v35  ;;  %v2411_v44 = vld [vmem:[%s2655_s14 + $0x94] sm:$0xf0]  ;;  %v2237_v45 = vld [vmem:[%s2655_s14 + $0x110] sm:$0xf]  ;;  %v2101_v49 = vld [vmem:[%s2655_s14] sm:$0xf] }
  0x71   : > { %1112 = vmatpush.bf16.msra.mxu3 %v2326_v19  ;;  %v2427_v46 = vld [vmem:[%s2655_s14 + $0x114] sm:$0xf0]  ;;  %v2301_v47 = vld [vmem:[%s2655_s14 + $0x190] sm:$0xf]  ;;  %v2393_v51 = vld [vmem:[%s2655_s14 + $0x4] sm:$0xf0]  ;;  %v2174_v54 = vor.u32 %v2411_v44, %v2173_v42 }
  0x72   : > { %966 = vmatpush.bf16.msra.mxu0 %v2126_v25  ;;  %v2443_v48 = vld [vmem:[%s2655_s14 + $0x194] sm:$0xf0]  ;;  %v2165_v52 = vld [vmem:[%s2655_s14 + $0x80] sm:$0xf]  ;;  %v2409_v53 = vld [vmem:[%s2655_s14 + $0x84] sm:$0xf0]  ;;  %v2238_v55 = vor.u32 %v2427_v46, %v2237_v45  ;;  %v2102_v3 = vor.u32 %v2393_v51, %v2101_v49 }
  0x73   : > { %1015 = vmatpush.bf16.msra.mxu1 %v2190_v26  ;;  %v2229_v56 = vld [vmem:[%s2655_s14 + $0x100] sm:$0xf]  ;;  %v2425_v57 = vld [vmem:[%s2655_s14 + $0x104] sm:$0xf0]  ;;  %v2302_v59 = vor.u32 %v2443_v48, %v2301_v47  ;;  %v2362_v62 = vld [vmem:[%s2657_s15 + $0xc] sm:$0xf0]  ;;  %v2166_v7 = vor.u32 %v2409_v53, %v2165_v52 }
  0x74   : > { %1064 = vmatpush.bf16.msra.mxu2 %v2254_v27  ;;  %v2293_v58 = vld [vmem:[%s2655_s14 + $0x180] sm:$0xf]  ;;  %v2441_v60 = vld [vmem:[%s2655_s14 + $0x184] sm:$0xf0]  ;;  %v2360_v63 = vld [vmem:[%s2657_s15 + $0x4] sm:$0xf]  ;;  %v2230_v8 = vor.u32 %v2425_v57, %v2229_v56 }
  0x75   : > { %1113 = vmatpush.bf16.msra.mxu3 %v2318_v31  ;;  %v1973_v61 = vld [vmem:[%s2657_s15] sm:$0xf]  ;;  %v1975_v0 = vld [vmem:[%s2657_s15 + $0x10] sm:$0xf0]  ;;  %v2287_v2 = vld [vmem:[%s2655_s14 + $0x178] sm:$0xf0]  ;;  %v2294_v12 = vor.u32 %v2441_v60, %v2293_v58 }
  0x76   : > { %967 = vmatpush.bf16.msra.mxu0 %v2118_v37  ;;  %v2438_v1 = vld [vmem:[%s2655_s14 + $0x174] sm:$0xf]  ;;  %v1981_v4 = vld [vmem:[%s2657_s15 + $0x8] sm:$0xf]  ;;  %v2351_v6 = vld [vmem:[%s2655_s14 + $0x1f8] sm:$0xf0]  ;;  %v2739_v17 = vor.u32 %v2362_v62, %v1973_v61  ;;  %v2744_v22 = vor.u32 %v2360_v63, %v1975_v0 }
  0x77   : > { %1016 = vmatpush.bf16.msra.mxu1 %v2182_v38  ;;  %v2454_v5 = vld [vmem:[%s2655_s14 + $0x1f4] sm:$0xf]  ;;  %v2363_v9 = vld [vmem:[%s2657_s15 + $0x14] sm:$0xf0]  ;;  %v2361_v10 = vld [vmem:[%s2657_s15 + $0xc] sm:$0xf]  ;;  %v2290_v13 = vor.u32 %v2438_v1, %v2287_v2 }
  0x78   : > { %1065 = vmatpush.bf16.msra.mxu2 %v2246_v39  ;;  %v1983_v11 = vld [vmem:[%s2657_s15 + $0x18] sm:$0xf0]  ;;  %v2406_v14 = vld [vmem:[%s2655_s14 + $0x74] sm:$0xf]  ;;  %v2354_v18 = vor.u32 %v2454_v5, %v2351_v6  ;;  %v2436_v20 = vld [vmem:[%s2655_s14 + $0x164] sm:$0xf]  ;;  %v2746_v23 = vor.u32 %v2363_v9, %v1981_v4 }
  0x79   : > { %1114 = vmatpush.bf16.msra.mxu3 %v2310_v43  ;;  %v2159_v15 = vld [vmem:[%s2655_s14 + $0x78] sm:$0xf0]  ;;  %v2422_v16 = vld [vmem:[%s2655_s14 + $0xf4] sm:$0xf]  ;;  %v2279_v21 = vld [vmem:[%s2655_s14 + $0x168] sm:$0xf0]  ;;  %v2750_v26 = vor.u32 %v2361_v10, %v1983_v11 }
  0x7a   : > { %968 = vmatpush.bf16.msra.mxu0 %v2110_v50  ;;  %v2223_v19 = vld [vmem:[%s2655_s14 + $0xf8] sm:$0xf0]  ;;  %v2452_v24 = vld [vmem:[%s2655_s14 + $0x1e4] sm:$0xf]  ;;  %v2343_v25 = vld [vmem:[%s2655_s14 + $0x1e8] sm:$0xf0]  ;;  %v2162_v27 = vor.u32 %v2406_v14, %v2159_v15  ;;  %v2282_v29 = vor.u32 %v2436_v20, %v2279_v21 }
  0x7b   : > { %1017 = vmatpush.bf16.msra.mxu1 %v2174_v54  ;;  %v2226_v28 = vor.u32 %v2422_v16, %v2223_v19  ;;  %v2404_v30 = vld [vmem:[%s2655_s14 + $0x64] sm:$0xf]  ;;  %v2151_v31 = vld [vmem:[%s2655_s14 + $0x68] sm:$0xf0]  ;;  %v2346_v32 = vor.u32 %v2452_v24, %v2343_v25  ;;  %v2434_v36 = vld [vmem:[%s2655_s14 + $0x154] sm:$0xf] }
  0x7c   : > { %1066 = vmatpush.bf16.msra.mxu2 %v2238_v55  ;;  %v2420_v33 = vld [vmem:[%s2655_s14 + $0xe4] sm:$0xf]  ;;  %v2215_v34 = vld [vmem:[%s2655_s14 + $0xe8] sm:$0xf0]  ;;  %v2154_v35 = vor.u32 %v2404_v30, %v2151_v31  ;;  %v2271_v37 = vld [vmem:[%s2655_s14 + $0x158] sm:$0xf0] }
  0x7d   : > { %1115 = vmatpush.bf16.msra.mxu3 %v2302_v59  ;;  %v2450_v38 = vld [vmem:[%s2655_s14 + $0x1d4] sm:$0xf]  ;;  %v2218_v39 = vor.u32 %v2420_v33, %v2215_v34  ;;  %v2274_v40 = vor.u32 %v2434_v36, %v2271_v37  ;;  %v2335_v41 = vld [vmem:[%s2655_s14 + $0x1d8] sm:$0xf0]  ;;  %v1989_v49 = vld [vmem:[%s2657_s15 + $0x20] sm:$0xf] }
  0x7e   : > { %969 = vmatpush.bf16.msra.mxu0 %v2102_v3  ;;  %v2402_v42 = vld [vmem:[%s2655_s14 + $0x54] sm:$0xf]  ;;  %v2143_v43 = vld [vmem:[%s2655_s14 + $0x58] sm:$0xf0]  ;;  %v2338_v44 = vor.u32 %v2450_v38, %v2335_v41  ;;  %v2366_v50 = vld [vmem:[%s2657_s15 + $0x2c] sm:$0xf0] }
  0x7f   : > { %1018 = vmatpush.bf16.msra.mxu1 %v2166_v7  ;;  %v2418_v45 = vld [vmem:[%s2655_s14 + $0xd4] sm:$0xf]  ;;  %v2207_v46 = vld [vmem:[%s2655_s14 + $0xd8] sm:$0xf0]  ;;  %v2146_v47 = vor.u32 %v2402_v42, %v2143_v43  ;;  %v2364_v51 = vld [vmem:[%s2657_s15 + $0x24] sm:$0xf]  ;;  %v2776_v57 = vor.u32 %v2366_v50, %v1989_v49 }
  0x80   : > { %1067 = vmatpush.bf16.msra.mxu2 %v2230_v8  ;;  %v2210_v48 = vor.u32 %v2418_v45, %v2207_v46  ;;  %v1991_v52 = vld [vmem:[%s2657_s15 + $0x30] sm:$0xf0]  ;;  %v1997_v53 = vld [vmem:[%s2657_s15 + $0x28] sm:$0xf]  ;;  %v2367_v54 = vld [vmem:[%s2657_s15 + $0x34] sm:$0xf0] }
  0x81   : > { %1116 = vmatpush.bf16.msra.mxu3 %v2294_v12  ;;  %970 = vmatmul.bf16.vlgmr.msra.gmra.mxu0 %v2739_v17  ;;  %v2365_v55 = vld [vmem:[%s2657_s15 + $0x2c] sm:$0xf]  ;;  %v1999_v56 = vld [vmem:[%s2657_s15 + $0x38] sm:$0xf0]  ;;  %v2778_v58 = vor.u32 %v2364_v51, %v1991_v52  ;;  %v2780_v59 = vor.u32 %v2367_v54, %v1997_v53  ;;  %v2432_v61 = vld [vmem:[%s2655_s14 + $0x144] sm:$0xf] }
  0x82   : > { %1019 = vmatmul.bf16.vlgmr.msra.gmra.mxu1 %v2744_v22  ;;  %1158 = vmatpush.bf16.msrb.mxu0 %v2162_v27  ;;  %v2782_v60 = vor.u32 %v2365_v55, %v1999_v56  ;;  %v2263_v62 = vld [vmem:[%s2655_s14 + $0x148] sm:$0xf0]  ;;  %v2448_v63 = vld [vmem:[%s2655_s14 + $0x1c4] sm:$0xf]  ;;  %v2005_v9 = vld [vmem:[%s2657_s15 + $0x40] sm:$0xf] }
  0x83   : > { %1068 = vmatmul.bf16.vlgmr.msra.gmra.mxu2 %v2746_v23  ;;  %1207 = vmatpush.bf16.msrb.mxu1 %v2226_v28  ;;  %v2266_v0 = vor.u32 %v2432_v61, %v2263_v62  ;;  %v2327_v1 = vld [vmem:[%s2655_s14 + $0x1c8] sm:$0xf0]  ;;  %v2400_v2 = vld [vmem:[%s2655_s14 + $0x44] sm:$0xf]  ;;  %v2370_v10 = vld [vmem:[%s2657_s15 + $0x4c] sm:$0xf0] }
  0x84   : > { %1256 = vmatpush.bf16.msrb.mxu2 %v2290_v13  ;;  %1117 = vmatmul.bf16.vlgmr.msra.gmra.mxu3 %v2750_v26  ;;  %v2135_v3 = vld [vmem:[%s2655_s14 + $0x48] sm:$0xf0]  ;;  %v2330_v4 = vor.u32 %v2448_v63, %v2327_v1  ;;  %v2416_v6 = vld [vmem:[%s2655_s14 + $0xc4] sm:$0xf]  ;;  %v2007_v12 = vld [vmem:[%s2657_s15 + $0x50] sm:$0xf0] }
  0x85   : > { %1305 = vmatpush.bf16.msrb.mxu3 %v2354_v18  ;;  %v2138_v5 = vor.u32 %v2400_v2, %v2135_v3  ;;  %v2199_v7 = vld [vmem:[%s2655_s14 + $0xc8] sm:$0xf0]  ;;  %v2368_v11 = vld [vmem:[%s2657_s15 + $0x44] sm:$0xf]  ;;  %v2013_v13 = vld [vmem:[%s2657_s15 + $0x48] sm:$0xf]  ;;  %v2804_v18 = vor.u32 %v2370_v10, %v2005_v9 }
  0x86   : > { %1159 = vmatpush.bf16.msrb.mxu0 %v2154_v35  ;;  %v2202_v8 = vor.u32 %v2416_v6, %v2199_v7  ;;  %v2371_v14 = vld [vmem:[%s2657_s15 + $0x54] sm:$0xf0]  ;;  %v2369_v15 = vld [vmem:[%s2657_s15 + $0x4c] sm:$0xf]  ;;  %v2015_v16 = vld [vmem:[%s2657_s15 + $0x58] sm:$0xf0]  ;;  %v2806_v19 = vor.u32 %v2368_v11, %v2007_v12 }
  0x87   : > { %1208 = vmatpush.bf16.msrb.mxu1 %v2218_v39  ;;  %v2808_v20 = vor.u32 %v2371_v14, %v2013_v13  ;;  %v2810_v21 = vor.u32 %v2369_v15, %v2015_v16  ;;  %v2430_v24 = vld [vmem:[%s2655_s14 + $0x134] sm:$0xf]  ;;  %v2255_v25 = vld [vmem:[%s2655_s14 + $0x138] sm:$0xf0]  ;;  %v2021_v37 = vld [vmem:[%s2657_s15 + $0x60] sm:$0xf] }
  0x88   : > { %1257 = vmatpush.bf16.msrb.mxu2 %v2282_v29  ;;  %v2446_v27 = vld [vmem:[%s2655_s14 + $0x1b4] sm:$0xf]  ;;  %v2258_v28 = vor.u32 %v2430_v24, %v2255_v25  ;;  %v2319_v29 = vld [vmem:[%s2655_s14 + $0x1b8] sm:$0xf0]  ;;  %v2374_v38 = vld [vmem:[%s2657_s15 + $0x6c] sm:$0xf0] }
  0x89   : > { %1306 = vmatpush.bf16.msrb.mxu3 %v2346_v32  ;;  %v2398_v30 = vld [vmem:[%s2655_s14 + $0x34] sm:$0xf]  ;;  %v2127_v31 = vld [vmem:[%s2655_s14 + $0x38] sm:$0xf0]  ;;  %v2322_v32 = vor.u32 %v2446_v27, %v2319_v29  ;;  %v2372_v39 = vld [vmem:[%s2657_s15 + $0x64] sm:$0xf]  ;;  %v2832_v45 = vor.u32 %v2374_v38, %v2021_v37 }
  0x8a   : > { %1160 = vmatpush.bf16.msrb.mxu0 %v2146_v47  ;;  %v2130_v33 = vor.u32 %v2398_v30, %v2127_v31  ;;  %v2414_v34 = vld [vmem:[%s2655_s14 + $0xb4] sm:$0xf]  ;;  %v2191_v35 = vld [vmem:[%s2655_s14 + $0xb8] sm:$0xf0]  ;;  %v2029_v41 = vld [vmem:[%s2657_s15 + $0x68] sm:$0xf] }
  0x8b   : > { %1209 = vmatpush.bf16.msrb.mxu1 %v2210_v48  ;;  %v2194_v36 = vor.u32 %v2414_v34, %v2191_v35  ;;  %v2375_v42 = vld [vmem:[%s2657_s15 + $0x74] sm:$0xf0]  ;;  %v2373_v43 = vld [vmem:[%s2657_s15 + $0x6c] sm:$0xf]  ;;  %v2428_v49 = vld [vmem:[%s2655_s14 + $0x124] sm:$0xf] }
  0x8c   : > { %1258 = vmatpush.bf16.msrb.mxu2 %v2274_v40  ;;  %v2023_v40 = vld [vmem:[%s2657_s15 + $0x70] sm:$0xf0]  ;;  %v2836_v47 = vor.u32 %v2375_v42, %v2029_v41  ;;  %v2247_v50 = vld [vmem:[%s2655_s14 + $0x128] sm:$0xf0]  ;;  %v2444_v51 = vld [vmem:[%s2655_s14 + $0x1a4] sm:$0xf] }
  0x8d   : > { %1307 = vmatpush.bf16.msrb.mxu3 %v2338_v44  ;;  %v2031_v44 = vld [vmem:[%s2657_s15 + $0x78] sm:$0xf0]  ;;  %v2834_v46 = vor.u32 %v2372_v39, %v2023_v40  ;;  %v2250_v52 = vor.u32 %v2428_v49, %v2247_v50  ;;  %v2311_v53 = vld [vmem:[%s2655_s14 + $0x1a8] sm:$0xf0]  ;;  %v2396_v54 = vld [vmem:[%s2655_s14 + $0x24] sm:$0xf] }
  0x8e   : > { %1161 = vmatpush.bf16.msrb.mxu0 %v2138_v5  ;;  %v2838_v48 = vor.u32 %v2373_v43, %v2031_v44  ;;  %v2119_v55 = vld [vmem:[%s2655_s14 + $0x28] sm:$0xf0]  ;;  %v2314_v56 = vor.u32 %v2444_v51, %v2311_v53  ;;  %v2412_v62 = vld [vmem:[%s2655_s14 + $0xa4] sm:$0xf]  ;;  %v2037_v1 = vld [vmem:[%s2657_s15 + $0x80] sm:$0xf] }
  0x8f   : > { %1210 = vmatpush.bf16.msrb.mxu1 %v2202_v8  ;;  %v2122_v61 = vor.u32 %v2396_v54, %v2119_v55  ;;  %v2183_v63 = vld [vmem:[%s2655_s14 + $0xa8] sm:$0xf0]  ;;  %v2378_v2 = vld [vmem:[%s2657_s15 + $0x8c] sm:$0xf0]  ;;  %v2376_v3 = vld [vmem:[%s2657_s15 + $0x84] sm:$0xf] }
  0x90   : > { %1259 = vmatpush.bf16.msrb.mxu2 %v2266_v0  ;;  %v2186_v0 = vor.u32 %v2412_v62, %v2183_v63  ;;  %v2045_v5 = vld [vmem:[%s2657_s15 + $0x88] sm:$0xf]  ;;  %v2379_v6 = vld [vmem:[%s2657_s15 + $0x94] sm:$0xf0]  ;;  %v2377_v7 = vld [vmem:[%s2657_s15 + $0x8c] sm:$0xf]  ;;  %v2860_v9 = vor.u32 %v2378_v2, %v2037_v1 }
  0x91   : > { %975 = vmatmul.bf16.gmra.mxu0 %v2776_v57  ;;  %1308 = vmatpush.bf16.msrb.mxu3 %v2330_v4  ;;  %v2039_v4 = vld [vmem:[%s2657_s15 + $0x90] sm:$0xf0]  ;;  %v2047_v8 = vld [vmem:[%s2657_s15 + $0x98] sm:$0xf0]  ;;  %v2864_v11 = vor.u32 %v2379_v6, %v2045_v5  ;;  %v2382_v34 = vld [vmem:[%s2657_s15 + $0xac] sm:$0xf0] }
  0x92   : > { %1024 = vmatmul.bf16.gmra.mxu1 %v2778_v58  ;;  %1162 = vmatpush.bf16.msrb.mxu0 %v2130_v33  ;;  %v2862_v10 = vor.u32 %v2376_v3, %v2039_v4  ;;  %v2866_v12 = vor.u32 %v2377_v7, %v2047_v8  ;;  %v2426_v13 = vld [vmem:[%s2655_s14 + $0x114] sm:$0xf]  ;;  %v2239_v14 = vld [vmem:[%s2655_s14 + $0x118] sm:$0xf0]  ;;  %v2053_v33 = vld [vmem:[%s2657_s15 + $0xa0] sm:$0xf] }
  0x93   : > { %1073 = vmatmul.bf16.gmra.mxu2 %v2780_v59  ;;  %1211 = vmatpush.bf16.msrb.mxu1 %v2194_v36  ;;  %v2442_v15 = vld [vmem:[%s2655_s14 + $0x194] sm:$0xf]  ;;  %v2242_v16 = vor.u32 %v2426_v13, %v2239_v14  ;;  %v2303_v24 = vld [vmem:[%s2655_s14 + $0x198] sm:$0xf0]  ;;  %v2380_v35 = vld [vmem:[%s2657_s15 + $0xa4] sm:$0xf]  ;;  %v2888_v41 = vor.u32 %v2382_v34, %v2053_v33 }
  0x94   : > { %1122 = vmatmul.bf16.gmra.mxu3 %v2782_v60  ;;  %1260 = vmatpush.bf16.msrb.mxu2 %v2258_v28  ;;  %v2394_v25 = vld [vmem:[%s2655_s14 + $0x14] sm:$0xf]  ;;  %v2111_v27 = vld [vmem:[%s2655_s14 + $0x18] sm:$0xf0]  ;;  %v2306_v28 = vor.u32 %v2442_v15, %v2303_v24  ;;  %v2061_v37 = vld [vmem:[%s2657_s15 + $0xa8] sm:$0xf] }
  0x95   : > { %1309 = vmatpush.bf16.msrb.mxu3 %v2322_v32  ;;  %v2114_v29 = vor.u32 %v2394_v25, %v2111_v27  ;;  %v2410_v30 = vld [vmem:[%s2655_s14 + $0x94] sm:$0xf]  ;;  %v2175_v31 = vld [vmem:[%s2655_s14 + $0x98] sm:$0xf0]  ;;  %v2383_v38 = vld [vmem:[%s2657_s15 + $0xb4] sm:$0xf0] }
  0x96   : > { %1163 = vmatpush.bf16.msrb.mxu0 %v2122_v61  ;;  %v2178_v32 = vor.u32 %v2410_v30, %v2175_v31  ;;  %v2055_v36 = vld [vmem:[%s2657_s15 + $0xb0] sm:$0xf0]  ;;  %v2381_v39 = vld [vmem:[%s2657_s15 + $0xac] sm:$0xf]  ;;  %v2063_v40 = vld [vmem:[%s2657_s15 + $0xb8] sm:$0xf0]  ;;  %v2892_v43 = vor.u32 %v2383_v38, %v2061_v37 }
  0x97   : > { %1212 = vmatpush.bf16.msrb.mxu1 %v2186_v0  ;;  %v2890_v42 = vor.u32 %v2380_v35, %v2055_v36  ;;  %v2894_v44 = vor.u32 %v2381_v39, %v2063_v40  ;;  %v2424_v49 = vld [vmem:[%s2655_s14 + $0x104] sm:$0xf]  ;;  %v2231_v50 = vld [vmem:[%s2655_s14 + $0x108] sm:$0xf0]  ;;  %v2069_v1 = vld [vmem:[%s2657_s15 + $0xc0] sm:$0xf] }
  0x98   : > { %1261 = vmatpush.bf16.msrb.mxu2 %v2250_v52  ;;  %v2440_v51 = vld [vmem:[%s2655_s14 + $0x184] sm:$0xf]  ;;  %v2234_v52 = vor.u32 %v2424_v49, %v2231_v50  ;;  %v2295_v53 = vld [vmem:[%s2655_s14 + $0x188] sm:$0xf0]  ;;  %v2386_v2 = vld [vmem:[%s2657_s15 + $0xcc] sm:$0xf0] }
  0x99   : > { %1310 = vmatpush.bf16.msrb.mxu3 %v2314_v56  ;;  %v2392_v54 = vld [vmem:[%s2655_s14 + $0x4] sm:$0xf]  ;;  %v2103_v55 = vld [vmem:[%s2655_s14 + $0x8] sm:$0xf0]  ;;  %v2298_v56 = vor.u32 %v2440_v51, %v2295_v53  ;;  %v2071_v4 = vld [vmem:[%s2657_s15 + $0xd0] sm:$0xf0]  ;;  %v2916_v13 = vor.u32 %v2386_v2, %v2069_v1 }
  0x9a   : > { %1164 = vmatpush.bf16.msrb.mxu0 %v2114_v29  ;;  %v2106_v61 = vor.u32 %v2392_v54, %v2103_v55  ;;  %v2408_v62 = vld [vmem:[%s2655_s14 + $0x84] sm:$0xf]  ;;  %v2167_v63 = vld [vmem:[%s2655_s14 + $0x88] sm:$0xf0]  ;;  %v2077_v5 = vld [vmem:[%s2657_s15 + $0xc8] sm:$0xf] }
  0x9b   : > { %1213 = vmatpush.bf16.msrb.mxu1 %v2178_v32  ;;  %v2170_v0 = vor.u32 %v2408_v62, %v2167_v63  ;;  %v2384_v3 = vld [vmem:[%s2657_s15 + $0xc4] sm:$0xf]  ;;  %v2387_v6 = vld [vmem:[%s2657_s15 + $0xd4] sm:$0xf0]  ;;  %v2385_v7 = vld [vmem:[%s2657_s15 + $0xcc] sm:$0xf] }
  0x9c   : > { %1262 = vmatpush.bf16.msrb.mxu2 %v2242_v16  ;;  %v2079_v8 = vld [vmem:[%s2657_s15 + $0xd8] sm:$0xf0]  ;;  %v2918_v14 = vor.u32 %v2384_v3, %v2071_v4  ;;  %v2920_v15 = vor.u32 %v2387_v6, %v2077_v5  ;;  %v2085_v24 = vld [vmem:[%s2657_s15 + $0xe0] sm:$0xf]  ;;  %v2390_v25 = vld [vmem:[%s2657_s15 + $0xec] sm:$0xf0] }
  0x9d   : > { %1311 = vmatpush.bf16.msrb.mxu3 %v2306_v28  ;;  %v2922_v16 = vor.u32 %v2385_v7, %v2079_v8  ;;  %v2388_v27 = vld [vmem:[%s2657_s15 + $0xe4] sm:$0xf]  ;;  %v2087_v28 = vld [vmem:[%s2657_s15 + $0xf0] sm:$0xf0]  ;;  %v2093_v29 = vld [vmem:[%s2657_s15 + $0xe8] sm:$0xf]  ;;  %v2936_v33 = vor.u32 %v2390_v25, %v2085_v24 }
  0x9e   : > { %1165 = vmatpush.bf16.msrb.mxu0 %v2106_v61  ;;  %v2391_v30 = vld [vmem:[%s2657_s15 + $0xf4] sm:$0xf0]  ;;  %v2389_v31 = vld [vmem:[%s2657_s15 + $0xec] sm:$0xf]  ;;  %v2095_v32 = vld [vmem:[%s2657_s15 + $0xf8] sm:$0xf0]  ;;  %v2938_v34 = vor.u32 %v2388_v27, %v2087_v28 }
  0x9f   : > { %1214 = vmatpush.bf16.msrb.mxu1 %v2170_v0  ;;  %v2940_v35 = vor.u32 %v2391_v30, %v2093_v29  ;;  %v2942_v36 = vor.u32 %v2389_v31, %v2095_v32  ;;  %v356_v0 = vld [vmem:[#allocation2 + $0xd8] sm:$0xff]  ;;  %v358_v6 = vld [vmem:[#allocation2 + $0x50] sm:$0xff]  ;;  %p2355_p10 = scmp.ne.s32.totalorder %s2560_s21, 3 }
  0xa0   : > { %1263 = vmatpush.bf16.msrb.mxu2 %v2234_v52  ;;  %v354_v52 = vld [vmem:[#allocation2 + $0xb0] sm:$0xff] }
  0xa1   : > { %980 = vmatmul.bf16.gmra.mxu0 %v2804_v18  ;;  %1312 = vmatpush.bf16.msrb.mxu3 %v2298_v56 }
  0xa2   : > { %1029 = vmatmul.bf16.gmra.mxu1 %v2806_v19 }
  0xa3   : > { %1078 = vmatmul.bf16.gmra.mxu2 %v2808_v20 }
  0xa4   : > { %1127 = vmatmul.bf16.gmra.mxu3 %v2810_v21 }
  0xb1   : > { %985 = vmatmul.bf16.gmra.mxu0 %v2832_v45 }
  0xb2   : > { %1034 = vmatmul.bf16.gmra.mxu1 %v2834_v46 }
  0xb3   : > { %1083 = vmatmul.bf16.gmra.mxu2 %v2836_v47 }
  0xb4   : > { %1132 = vmatmul.bf16.gmra.mxu3 %v2838_v48 }
  0xc1   : > { %990 = vmatmul.bf16.gmra.mxu0 %v2860_v9 }
  0xc2   : > { %1039 = vmatmul.bf16.gmra.mxu1 %v2862_v10 }
  0xc3   : > { %1088 = vmatmul.bf16.gmra.mxu2 %v2864_v11 }
  0xc4   : > { %1137 = vmatmul.bf16.gmra.mxu3 %v2866_v12 }
  0xd1   : > { %995 = vmatmul.bf16.gmra.mxu0 %v2888_v41 }
  0xd2   : > { %1044 = vmatmul.bf16.gmra.mxu1 %v2890_v42 }
  0xd3   : > { %1093 = vmatmul.bf16.gmra.mxu2 %v2892_v43 }
  0xd4   : > { %1142 = vmatmul.bf16.gmra.mxu3 %v2894_v44 }
  0xe1   : > { %1000 = vmatmul.bf16.gmra.mxu0 %v2916_v13 }
  0xe2   : > { %1049 = vmatmul.bf16.gmra.mxu1 %v2918_v14 }
  0xe3   : > { %1098 = vmatmul.bf16.gmra.mxu2 %v2920_v15 }
  0xe4   : > { %1147 = vmatmul.bf16.gmra.mxu3 %v2922_v16 }
  0xf1   : > { %1005 = vmatmul.bf16.gmra.mxu0 %v2936_v33 }
  0xf2   : > { %1054 = vmatmul.bf16.gmra.mxu1 %v2938_v34 }
  0xf3   : > { %1103 = vmatmul.bf16.gmra.mxu2 %v2940_v35 }
  0xf4   : > { %1152 = vmatmul.bf16.gmra.mxu3 %v2942_v36 }
  0xfe   : > { %v971_v37 = vpop.f32.mrf.mxu0 }
  0xff   : > { %v1020_v38 = vpop.f32.mrf.mxu1 }
 0x100   : > { %v1021_v39 = vadd.f32 %v1020_v38, %v971_v37 }
 0x101   : > { %1166 = vmatmul.bf16.vlgmr.msrb.gmra.mxu0 %v2739_v17 }
 0x102   : > { %1215 = vmatmul.bf16.vlgmr.msrb.gmra.mxu1 %v2744_v22 }
 0x103   : > { %1264 = vmatmul.bf16.vlgmr.msrb.gmra.mxu2 %v2746_v23 }
 0x104   : > { %1313 = vmatmul.bf16.vlgmr.msrb.gmra.mxu3 %v2750_v26 }
 0x106   : > { %v1069_v40 = vpop.f32.mrf.mxu2  ;;  %v973_v51 = vpop.f32.mrf.mxu0 }
 0x107   : > { %v1070_v49 = vadd.f32 %v1069_v40, %v1021_v39  ;;  %v1118_v50 = vpop.f32.mrf.mxu3  ;;  %v1022_v53 = vpop.f32.mrf.mxu1  ;;  %v362_v40 = vld [vmem:[#allocation2 + $0x80] sm:$0xff] }
 0x108   : > { %v1023_v56 = vadd.f32 %v1022_v53, %v973_v51 }
 0x109   : > { %v1119_v54 = vadd.f32 %v1118_v50, %v1070_v49 }
 0x10b   : > { %v1354_v55 = vadd.f32 %v1119_v54, %v354_v52 }
 0x10d   : > { %1386 = vst [vmem:[#allocation2 + $0xb0] sm:$0xff] %v1354_v55 }
 0x10e   : > { %v1071_v61 = vpop.f32.mrf.mxu2  ;;  %v976_v63 = vpop.f32.mrf.mxu0 }
 0x10f   : > { %v1072_v62 = vadd.f32 %v1071_v61, %v1023_v56  ;;  %v1120_v17 = vpop.f32.mrf.mxu3  ;;  %v1025_v22 = vpop.f32.mrf.mxu1 }
 0x110   : > { %v1026_v26 = vadd.f32 %v1025_v22, %v976_v63  ;;  %v366_v22 = vld [vmem:[#allocation2 + $0x60] sm:$0xff] }
 0x111   : > { %v1121_v1 = vadd.f32 %v1120_v17, %v1072_v62  ;;  %1171 = vmatmul.bf16.gmra.mxu0 %v2776_v57 }
 0x112   : > { %1220 = vmatmul.bf16.gmra.mxu1 %v2778_v58  ;;  %v360_v58 = vld [vmem:[#allocation2 + $0x30] sm:$0xff] }
 0x113   : > { %v1356_v23 = vadd.f32 %v1121_v1, %v356_v0  ;;  %1269 = vmatmul.bf16.gmra.mxu2 %v2780_v59 }
 0x114   : > { %1318 = vmatmul.bf16.gmra.mxu3 %v2782_v60 }
 0x115   : > { %1388 = vst [vmem:[#allocation2 + $0xd8] sm:$0xff] %v1356_v23 }
 0x116   : > { %v1074_v2 = vpop.f32.mrf.mxu2  ;;  %v978_v5 = vpop.f32.mrf.mxu0 }
 0x117   : > { %v1075_v3 = vadd.f32 %v1074_v2, %v1026_v26  ;;  %v1123_v4 = vpop.f32.mrf.mxu3  ;;  %v1027_v7 = vpop.f32.mrf.mxu1 }
 0x118   : > { %v1028_v25 = vadd.f32 %v1027_v7, %v978_v5 }
 0x119   : > { %v1124_v8 = vadd.f32 %v1123_v4, %v1075_v3 }
 0x11b   : > { %v1358_v24 = vadd.f32 %v1124_v8, %v358_v6 }
 0x11d   : > { %1390 = vst [vmem:[#allocation2 + $0x50] sm:$0xff] %v1358_v24 }
 0x11e   : > { %v1076_v57 = vpop.f32.mrf.mxu2  ;;  %v981_v29 = vpop.f32.mrf.mxu0 }
 0x11f   : > { %v1077_v27 = vadd.f32 %v1076_v57, %v1028_v25  ;;  %v1125_v28 = vpop.f32.mrf.mxu3  ;;  %v1030_v30 = vpop.f32.mrf.mxu1 }
 0x120   : > { %v1031_v31 = vadd.f32 %v1030_v30, %v981_v29 }
 0x121   : > { %v1126_v59 = vadd.f32 %v1125_v28, %v1077_v27  ;;  %1176 = vmatmul.bf16.gmra.mxu0 %v2804_v18  ;;  %v370_v27 = vld [vmem:[#allocation2 + $0x38] sm:$0xff] }
 0x122   : > { %1225 = vmatmul.bf16.gmra.mxu1 %v2806_v19  ;;  %v364_v19 = vld [vmem:[#allocation2 + $0xe8] sm:$0xff] }
 0x123   : > { %v1360_v60 = vadd.f32 %v1126_v59, %v360_v58  ;;  %1274 = vmatmul.bf16.gmra.mxu2 %v2808_v20 }
 0x124   : > { %1323 = vmatmul.bf16.gmra.mxu3 %v2810_v21 }
 0x125   : > { %1392 = vst [vmem:[#allocation2 + $0x30] sm:$0xff] %v1360_v60 }
 0x126   : > { %v1079_v32 = vpop.f32.mrf.mxu2  ;;  %v983_v39 = vpop.f32.mrf.mxu0 }
 0x127   : > { %v1080_v37 = vadd.f32 %v1079_v32, %v1031_v31  ;;  %v1128_v38 = vpop.f32.mrf.mxu3  ;;  %v1032_v49 = vpop.f32.mrf.mxu1 }
 0x128   : > { %v1033_v52 = vadd.f32 %v1032_v49, %v983_v39 }
 0x129   : > { %v1129_v50 = vadd.f32 %v1128_v38, %v1080_v37 }
 0x12b   : > { %v1362_v51 = vadd.f32 %v1129_v50, %v362_v40  ;;  %v374_v50 = vld [vmem:[#allocation2 + $0xe0] sm:$0xff] }
 0x12d   : > { %1394 = vst [vmem:[#allocation2 + $0x80] sm:$0xff] %v1362_v51 }
 0x12e   : > { %v1081_v18 = vpop.f32.mrf.mxu2  ;;  %v986_v55 = vpop.f32.mrf.mxu0 }
 0x12f   : > { %v1082_v53 = vadd.f32 %v1081_v18, %v1033_v52  ;;  %v1130_v54 = vpop.f32.mrf.mxu3  ;;  %v1035_v56 = vpop.f32.mrf.mxu1 }
 0x130   : > { %v1036_v61 = vadd.f32 %v1035_v56, %v986_v55 }
 0x131   : > { %v1131_v20 = vadd.f32 %v1130_v54, %v1082_v53  ;;  %1181 = vmatmul.bf16.gmra.mxu0 %v2832_v45 }
 0x132   : > { %1230 = vmatmul.bf16.gmra.mxu1 %v2834_v46  ;;  %v368_v46 = vld [vmem:[#allocation2 + $0x8] sm:$0xff] }
 0x133   : > { %v1364_v21 = vadd.f32 %v1131_v20, %v364_v19  ;;  %1279 = vmatmul.bf16.gmra.mxu2 %v2836_v47 }
 0x134   : > { %1328 = vmatmul.bf16.gmra.mxu3 %v2838_v48 }
 0x135   : > { %1396 = vst [vmem:[#allocation2 + $0xe8] sm:$0xff] %v1364_v21 }
 0x136   : > { %v1084_v62 = vpop.f32.mrf.mxu2  ;;  %v988_v0 = vpop.f32.mrf.mxu0 }
 0x137   : > { %v1085_v17 = vadd.f32 %v1084_v62, %v1036_v61  ;;  %v1133_v63 = vpop.f32.mrf.mxu3  ;;  %v1037_v1 = vpop.f32.mrf.mxu1 }
 0x138   : > { %v1038_v2 = vadd.f32 %v1037_v1, %v988_v0 }
 0x139   : > { %v1134_v23 = vadd.f32 %v1133_v63, %v1085_v17  ;;  %v378_v63 = vld [vmem:[#allocation2 + $0xa8] sm:$0xff] }
 0x13b   : > { %v1366_v26 = vadd.f32 %v1134_v23, %v366_v22 }
 0x13d   : > { %1398 = vst [vmem:[#allocation2 + $0x60] sm:$0xff] %v1366_v26 }
 0x13e   : > { %v1086_v45 = vpop.f32.mrf.mxu2  ;;  %v991_v5 = vpop.f32.mrf.mxu0 }
 0x13f   : > { %v1087_v3 = vadd.f32 %v1086_v45, %v1038_v2  ;;  %v1135_v4 = vpop.f32.mrf.mxu3  ;;  %v1040_v6 = vpop.f32.mrf.mxu1 }
 0x140   : > { %v1041_v7 = vadd.f32 %v1040_v6, %v991_v5 }
 0x141   : > { %v1136_v47 = vadd.f32 %v1135_v4, %v1087_v3  ;;  %1186 = vmatmul.bf16.gmra.mxu0 %v2860_v9 }
 0x142   : > { %1235 = vmatmul.bf16.gmra.mxu1 %v2862_v10  ;;  %v372_v10 = vld [vmem:[#allocation2 + $0x40] sm:$0xff] }
 0x143   : > { %v1368_v48 = vadd.f32 %v1136_v47, %v368_v46  ;;  %1284 = vmatmul.bf16.gmra.mxu2 %v2864_v11 }
 0x144   : > { %1333 = vmatmul.bf16.gmra.mxu3 %v2866_v12 }
 0x145   : > { %1400 = vst [vmem:[#allocation2 + $0x8] sm:$0xff] %v1368_v48  ;;  %v382_v48 = vld [vmem:[#allocation2 + $0xa0] sm:$0xff] }
 0x146   : > { %v1089_v8 = vpop.f32.mrf.mxu2  ;;  %v993_v57 = vpop.f32.mrf.mxu0 }
 0x147   : > { %v1090_v24 = vadd.f32 %v1089_v8, %v1041_v7  ;;  %v1138_v25 = vpop.f32.mrf.mxu3  ;;  %v1042_v28 = vpop.f32.mrf.mxu1 }
 0x148   : > { %v1043_v30 = vadd.f32 %v1042_v28, %v993_v57 }
 0x149   : > { %v1139_v29 = vadd.f32 %v1138_v25, %v1090_v24 }
 0x14b   : > { %v1370_v58 = vadd.f32 %v1139_v29, %v370_v27 }
 0x14d   : > { %1402 = vst [vmem:[#allocation2 + $0x38] sm:$0xff] %v1370_v58 }
 0x14e   : > { %v1091_v9 = vpop.f32.mrf.mxu2  ;;  %v996_v31 = vpop.f32.mrf.mxu0 }
 0x14f   : > { %v1092_v59 = vadd.f32 %v1091_v9, %v1043_v30  ;;  %v1140_v60 = vpop.f32.mrf.mxu3  ;;  %v1045_v32 = vpop.f32.mrf.mxu1 }
 0x150   : > { %v1046_v37 = vadd.f32 %v1045_v32, %v996_v31  ;;  %v355_v31 = vld [vmem:[#allocation2] sm:$0xff] }
 0x151   : > { %v1141_v11 = vadd.f32 %v1140_v60, %v1092_v59  ;;  %1191 = vmatmul.bf16.gmra.mxu0 %v2888_v41 }
 0x152   : > { %1240 = vmatmul.bf16.gmra.mxu1 %v2890_v42  ;;  %v376_v42 = vld [vmem:[#allocation2 + $0x70] sm:$0xff] }
 0x153   : > { %v1372_v12 = vadd.f32 %v1141_v11, %v372_v10  ;;  %1289 = vmatmul.bf16.gmra.mxu2 %v2892_v43 }
 0x154   : > { %1338 = vmatmul.bf16.gmra.mxu3 %v2894_v44 }
 0x155   : > { %1404 = vst [vmem:[#allocation2 + $0x40] sm:$0xff] %v1372_v12 }
 0x156   : > { %v1094_v38 = vpop.f32.mrf.mxu2  ;;  %v998_v49 = vpop.f32.mrf.mxu0 }
 0x157   : > { %v1095_v39 = vadd.f32 %v1094_v38, %v1046_v37  ;;  %v1143_v40 = vpop.f32.mrf.mxu3  ;;  %v1047_v51 = vpop.f32.mrf.mxu1 }
 0x158   : > { %v1048_v53 = vadd.f32 %v1047_v51, %v998_v49  ;;  %v357_v49 = vld [vmem:[#allocation2 + $0x18] sm:$0xff] }
 0x159   : > { %v1144_v52 = vadd.f32 %v1143_v40, %v1095_v39 }
 0x15b   : > { %v1374_v18 = vadd.f32 %v1144_v52, %v374_v50 }
 0x15d   : > { %1406 = vst [vmem:[#allocation2 + $0xe0] sm:$0xff] %v1374_v18 }
 0x15e   : > { %v1096_v41 = vpop.f32.mrf.mxu2  ;;  %v1001_v19 = vpop.f32.mrf.mxu0 }
 0x15f   : > { %v1097_v54 = vadd.f32 %v1096_v41, %v1048_v53  ;;  %v1145_v55 = vpop.f32.mrf.mxu3  ;;  %v1050_v56 = vpop.f32.mrf.mxu1 }
 0x160   : > { %v1051_v20 = vadd.f32 %v1050_v56, %v1001_v19  ;;  %v359_v19 = vld [vmem:[#allocation2 + $0x68] sm:$0xff] }
 0x161   : > { %v1146_v43 = vadd.f32 %v1145_v55, %v1097_v54  ;;  %1196 = vmatmul.bf16.gmra.mxu0 %v2916_v13 }
 0x162   : > { %1245 = vmatmul.bf16.gmra.mxu1 %v2918_v14  ;;  %v380_v14 = vld [vmem:[#allocation2 + $0x10] sm:$0xff] }
 0x163   : > { %v1376_v44 = vadd.f32 %v1146_v43, %v376_v42  ;;  %1294 = vmatmul.bf16.gmra.mxu2 %v2920_v15 }
 0x164   : > { %1343 = vmatmul.bf16.gmra.mxu3 %v2922_v16 }
 0x165   : > { %1408 = vst [vmem:[#allocation2 + $0x70] sm:$0xff] %v1376_v44 }
 0x166   : > { %v1099_v21 = vpop.f32.mrf.mxu2  ;;  %v1003_v17 = vpop.f32.mrf.mxu0 }
 0x167   : > { %v1100_v61 = vadd.f32 %v1099_v21, %v1051_v20  ;;  %v1148_v62 = vpop.f32.mrf.mxu3  ;;  %v1052_v0 = vpop.f32.mrf.mxu1 }
 0x168   : > { %v1053_v23 = vadd.f32 %v1052_v0, %v1003_v17  ;;  %v361_v17 = vld [vmem:[#allocation2 + $0x48] sm:$0xff] }
 0x169   : > { %v1149_v22 = vadd.f32 %v1148_v62, %v1100_v61 }
 0x16b   : > { %v1378_v1 = vadd.f32 %v1149_v22, %v378_v63 }
 0x16d   : > { %1410 = vst [vmem:[#allocation2 + $0xa8] sm:$0xff] %v1378_v1 }
 0x16e   : > { %v1101_v13 = vpop.f32.mrf.mxu2  ;;  %v1006_v45 = vpop.f32.mrf.mxu0 }
 0x16f   : > { %v1102_v26 = vadd.f32 %v1101_v13, %v1053_v23  ;;  %v1150_v2 = vpop.f32.mrf.mxu3  ;;  %v1055_v3 = vpop.f32.mrf.mxu1 }
 0x170   : > { %v1056_v4 = vadd.f32 %v1055_v3, %v1006_v45  ;;  %v363_v45 = vld [vmem:[#allocation2 + $0x88] sm:$0xff] }
 0x171   : > { %v1151_v15 = vadd.f32 %v1150_v2, %v1102_v26  ;;  %1201 = vmatmul.bf16.gmra.mxu0 %v2936_v33 }
 0x172   : > { %1250 = vmatmul.bf16.gmra.mxu1 %v2938_v34  ;;  %v384_v34 = vld [vmem:[#allocation2 + $0x20] sm:$0xff] }
 0x173   : > { %v1380_v16 = vadd.f32 %v1151_v15, %v380_v14  ;;  %1299 = vmatmul.bf16.gmra.mxu2 %v2940_v35 }
 0x174   : > { %1348 = vmatmul.bf16.gmra.mxu3 %v2942_v36 }
 0x175   : > { %1412 = vst [vmem:[#allocation2 + $0x10] sm:$0xff] %v1380_v16 }
 0x176   : > { %v1104_v5 = vpop.f32.mrf.mxu2  ;;  %v1008_v47 = vpop.f32.mrf.mxu0 }
 0x177   : > { %v1105_v46 = vadd.f32 %v1104_v5, %v1056_v4  ;;  %v1153_v6 = vpop.f32.mrf.mxu3  ;;  %v1057_v7 = vpop.f32.mrf.mxu1 }
 0x178   : > { %v1058_v25 = vadd.f32 %v1057_v7, %v1008_v47  ;;  %v365_v47 = vld [vmem:[#allocation2 + $0xb8] sm:$0xff] }
 0x179   : > { %v1154_v8 = vadd.f32 %v1153_v6, %v1105_v46 }
 0x17b   : > { %v1382_v24 = vadd.f32 %v1154_v8, %v382_v48 }
 0x17d   : > { %1414 = vst [vmem:[#allocation2 + $0xa0] sm:$0xff] %v1382_v24 }
 0x17e   : > { %v1106_v33 = vpop.f32.mrf.mxu2  ;;  %v1167_v28 = vpop.f32.mrf.mxu0 }
 0x17f   : > { %v1107_v57 = vadd.f32 %v1106_v33, %v1058_v25  ;;  %v1155_v27 = vpop.f32.mrf.mxu3  ;;  %v1216_v29 = vpop.f32.mrf.mxu1 }
 0x180   : > { %v1217_v36 = vadd.f32 %v1216_v29, %v1167_v28  ;;  %v367_v28 = vld [vmem:[#allocation2 + $0xf0] sm:$0xff] }
 0x181   : > { %v1156_v35 = vadd.f32 %v1155_v27, %v1107_v57 }
 0x183   : > { %v1384_v58 = vadd.f32 %v1156_v35, %v384_v34 }
 0x185   : > { %1416 = vst [vmem:[#allocation2 + $0x20] sm:$0xff] %v1384_v58 }
 0x186   : > { %v1265_v30 = vpop.f32.mrf.mxu2  ;;  %v1169_v60 = vpop.f32.mrf.mxu0 }
 0x187   : > { %v1266_v9 = vadd.f32 %v1265_v30, %v1217_v36  ;;  %v1314_v59 = vpop.f32.mrf.mxu3  ;;  %v1218_v10 = vpop.f32.mrf.mxu1 }
 0x188   : > { %v1219_v12 = vadd.f32 %v1218_v10, %v1169_v60  ;;  %v369_v60 = vld [vmem:[#allocation2 + $0x78] sm:$0xff] }
 0x189   : > { %v1315_v32 = vadd.f32 %v1314_v59, %v1266_v9 }
 0x18b   : > { %v1355_v11 = vadd.f32 %v1315_v32, %v355_v31 }
 0x18d   : > { %1387 = vst [vmem:[#allocation2] sm:$0xff] %v1355_v11 }
 0x18e   : > { %v1267_v37 = vpop.f32.mrf.mxu2  ;;  %v1172_v40 = vpop.f32.mrf.mxu0 }
 0x18f   : > { %v1268_v38 = vadd.f32 %v1267_v37, %v1219_v12  ;;  %v1316_v39 = vpop.f32.mrf.mxu3  ;;  %v1221_v50 = vpop.f32.mrf.mxu1 }
 0x190   : > { %v1222_v18 = vadd.f32 %v1221_v50, %v1172_v40  ;;  %v371_v40 = vld [vmem:[#allocation2 + $0x58] sm:$0xff] }
 0x191   : > { %v1317_v51 = vadd.f32 %v1316_v39, %v1268_v38 }
 0x193   : > { %v1357_v52 = vadd.f32 %v1317_v51, %v357_v49 }
 0x195   : > { %1389 = vst [vmem:[#allocation2 + $0x18] sm:$0xff] %v1357_v52 }
 0x196   : > { %v1270_v53 = vpop.f32.mrf.mxu2  ;;  %v1174_v55 = vpop.f32.mrf.mxu0 }
 0x197   : > { %v1271_v41 = vadd.f32 %v1270_v53, %v1222_v18  ;;  %v1319_v54 = vpop.f32.mrf.mxu3  ;;  %v1223_v42 = vpop.f32.mrf.mxu1 }
 0x198   : > { %v1224_v44 = vadd.f32 %v1223_v42, %v1174_v55  ;;  %v373_v55 = vld [vmem:[#allocation2 + $0xc8] sm:$0xff] }
 0x199   : > { %v1320_v56 = vadd.f32 %v1319_v54, %v1271_v41 }
 0x19b   : > { %v1359_v43 = vadd.f32 %v1320_v56, %v359_v19 }
 0x19d   : > { %1391 = vst [vmem:[#allocation2 + $0x68] sm:$0xff] %v1359_v43 }
 0x19e   : > { %v1272_v20 = vpop.f32.mrf.mxu2  ;;  %v1177_v62 = vpop.f32.mrf.mxu0 }
 0x19f   : > { %v1273_v21 = vadd.f32 %v1272_v20, %v1224_v44  ;;  %v1321_v61 = vpop.f32.mrf.mxu3  ;;  %v1226_v63 = vpop.f32.mrf.mxu1 }
 0x1a0   : > { %v1227_v1 = vadd.f32 %v1226_v63, %v1177_v62  ;;  %v375_v62 = vld [vmem:[#allocation2 + $0x90] sm:$0xff] }
 0x1a1   : > { %v1322_v0 = vadd.f32 %v1321_v61, %v1273_v21 }
 0x1a3   : > { %v1361_v22 = vadd.f32 %v1322_v0, %v361_v17 }
 0x1a5   : > { %1393 = vst [vmem:[#allocation2 + $0x48] sm:$0xff] %v1361_v22 }
 0x1a6   : > { %v1275_v23 = vpop.f32.mrf.mxu2  ;;  %v1179_v2 = vpop.f32.mrf.mxu0 }
 0x1a7   : > { %v1276_v13 = vadd.f32 %v1275_v23, %v1227_v1  ;;  %v1324_v26 = vpop.f32.mrf.mxu3  ;;  %v1228_v14 = vpop.f32.mrf.mxu1 }
 0x1a8   : > { %v1229_v16 = vadd.f32 %v1228_v14, %v1179_v2  ;;  %v377_v2 = vld [vmem:[#allocation2 + $0xc0] sm:$0xff] }
 0x1a9   : > { %v1325_v3 = vadd.f32 %v1324_v26, %v1276_v13 }
 0x1ab   : > { %v1363_v15 = vadd.f32 %v1325_v3, %v363_v45 }
 0x1ad   : > { %1395 = vst [vmem:[#allocation2 + $0x88] sm:$0xff] %v1363_v15 }
 0x1ae   : > { %v1277_v4 = vpop.f32.mrf.mxu2  ;;  %v1182_v6 = vpop.f32.mrf.mxu0 }
 0x1af   : > { %v1278_v5 = vadd.f32 %v1277_v4, %v1229_v16  ;;  %v1326_v46 = vpop.f32.mrf.mxu3  ;;  %v1231_v48 = vpop.f32.mrf.mxu1 }
 0x1b0   : > { %v1232_v24 = vadd.f32 %v1231_v48, %v1182_v6  ;;  %v379_v6 = vld [vmem:[#allocation2 + $0xd0] sm:$0xff] }
 0x1b1   : > { %v1327_v7 = vadd.f32 %v1326_v46, %v1278_v5 }
 0x1b3   : > { %v1365_v8 = vadd.f32 %v1327_v7, %v365_v47 }
 0x1b5   : > { %1397 = vst [vmem:[#allocation2 + $0xb8] sm:$0xff] %v1365_v8 }
 0x1b6   : > { %v1280_v25 = vpop.f32.mrf.mxu2  ;;  %v1184_v27 = vpop.f32.mrf.mxu0 }
 0x1b7   : > { %v1281_v33 = vadd.f32 %v1280_v25, %v1232_v24  ;;  %v1329_v57 = vpop.f32.mrf.mxu3  ;;  %v1233_v34 = vpop.f32.mrf.mxu1 }
 0x1b8   : > { %v1234_v58 = vadd.f32 %v1233_v34, %v1184_v27 }
 0x1b9   : > { %v1330_v29 = vadd.f32 %v1329_v57, %v1281_v33  ;;  %v381_v57 = vld [vmem:[#allocation2 + $0x28] sm:$0xff] }
 0x1bb   : > { %v1367_v35 = vadd.f32 %v1330_v29, %v367_v28 }
 0x1bd   : > { %1399 = vst [vmem:[#allocation2 + $0xf0] sm:$0xff] %v1367_v35 }
 0x1be   : > { %v1282_v36 = vpop.f32.mrf.mxu2  ;;  %v1187_v59 = vpop.f32.mrf.mxu0 }
 0x1bf   : > { %v1283_v30 = vadd.f32 %v1282_v36, %v1234_v58  ;;  %v1331_v9 = vpop.f32.mrf.mxu3  ;;  %v1236_v31 = vpop.f32.mrf.mxu1 }
 0x1c0   : > { %v1237_v11 = vadd.f32 %v1236_v31, %v1187_v59 }
 0x1c1   : > { %v1332_v10 = vadd.f32 %v1331_v9, %v1283_v30  ;;  %v383_v9 = vld [vmem:[#allocation2 + $0xf8] sm:$0xff] }
 0x1c3   : > { %v1369_v32 = vadd.f32 %v1332_v10, %v369_v60 }
 0x1c5   : > { %1401 = vst [vmem:[#allocation2 + $0x78] sm:$0xff] %v1369_v32 }
 0x1c6   : > { %v1285_v12 = vpop.f32.mrf.mxu2  ;;  %v1189_v39 = vpop.f32.mrf.mxu0 }
 0x1c7   : > { %v1286_v37 = vadd.f32 %v1285_v12, %v1237_v11  ;;  %v1334_v38 = vpop.f32.mrf.mxu3  ;;  %v1238_v49 = vpop.f32.mrf.mxu1 }
 0x1c8   : > { %v1239_v52 = vadd.f32 %v1238_v49, %v1189_v39 }
 0x1c9   : > { %v1335_v50 = vadd.f32 %v1334_v38, %v1286_v37  ;;  %v385_v37 = vld [vmem:[#allocation2 + $0x98] sm:$0xff] }
 0x1cb   : > { %v1371_v51 = vadd.f32 %v1335_v50, %v371_v40 }
 0x1cd   : > { %1403 = vst [vmem:[#allocation2 + $0x58] sm:$0xff] %v1371_v51 }
 0x1ce   : > { %v1287_v18 = vpop.f32.mrf.mxu2  ;;  %v1192_v54 = vpop.f32.mrf.mxu0 }
 0x1cf   : > { %v1288_v53 = vadd.f32 %v1287_v18, %v1239_v52  ;;  %v1336_v41 = vpop.f32.mrf.mxu3  ;;  %v1241_v19 = vpop.f32.mrf.mxu1 }
 0x1d0   : > { %v1242_v43 = vadd.f32 %v1241_v19, %v1192_v54 }
 0x1d1   : > { %v1337_v42 = vadd.f32 %v1336_v41, %v1288_v53 }
 0x1d3   : > { %v1373_v56 = vadd.f32 %v1337_v42, %v373_v55 }
 0x1d5   : > { %1405 = vst [vmem:[#allocation2 + $0xc8] sm:$0xff] %v1373_v56 }
 0x1d6   : > { %v1290_v44 = vpop.f32.mrf.mxu2  ;;  %v1194_v61 = vpop.f32.mrf.mxu0 }
 0x1d7   : > { %v1291_v20 = vadd.f32 %v1290_v44, %v1242_v43  ;;  %v1339_v21 = vpop.f32.mrf.mxu3  ;;  %v1243_v17 = vpop.f32.mrf.mxu1 }
 0x1d8   : > { %v1244_v22 = vadd.f32 %v1243_v17, %v1194_v61 }
 0x1d9   : > { %v1340_v63 = vadd.f32 %v1339_v21, %v1291_v20 }
 0x1db   : > { %v1375_v0 = vadd.f32 %v1340_v63, %v375_v62 }
 0x1dd   : > { %1407 = vst [vmem:[#allocation2 + $0x90] sm:$0xff] %v1375_v0 }
 0x1de   : > { %v1292_v1 = vpop.f32.mrf.mxu2  ;;  %v1197_v26 = vpop.f32.mrf.mxu0 }
 0x1df   : > { %v1293_v23 = vadd.f32 %v1292_v1, %v1244_v22  ;;  %v1341_v13 = vpop.f32.mrf.mxu3  ;;  %v1246_v45 = vpop.f32.mrf.mxu1 }
 0x1e0   : > { %v1247_v15 = vadd.f32 %v1246_v45, %v1197_v26 }
 0x1e1   : > { %v1342_v14 = vadd.f32 %v1341_v13, %v1293_v23 }
 0x1e3   : > { %v1377_v3 = vadd.f32 %v1342_v14, %v377_v2 }
 0x1e5   : > { %1409 = vst [vmem:[#allocation2 + $0xc0] sm:$0xff] %v1377_v3 }
 0x1e6   : > { %v1295_v16 = vpop.f32.mrf.mxu2  ;;  %v1199_v46 = vpop.f32.mrf.mxu0 }
 0x1e7   : > { %v1296_v4 = vadd.f32 %v1295_v16, %v1247_v15  ;;  %v1344_v5 = vpop.f32.mrf.mxu3  ;;  %v1248_v47 = vpop.f32.mrf.mxu1 }
 0x1e8   : > { %v1249_v8 = vadd.f32 %v1248_v47, %v1199_v46 }
 0x1e9   : > { %v1345_v48 = vadd.f32 %v1344_v5, %v1296_v4 }
 0x1eb   : > { %v1379_v7 = vadd.f32 %v1345_v48, %v379_v6 }
 0x1ed   : > { %1411 = vst [vmem:[#allocation2 + $0xd0] sm:$0xff] %v1379_v7 }
 0x1ee   : > { %v1297_v24 = vpop.f32.mrf.mxu2  ;;  %v1202_v27 = vpop.f32.mrf.mxu0 }
 0x1ef   : > { %v1298_v25 = vadd.f32 %v1297_v24, %v1249_v8  ;;  %v1346_v33 = vpop.f32.mrf.mxu3  ;;  %v1251_v28 = vpop.f32.mrf.mxu1 }
 0x1f0   : > { %v1252_v35 = vadd.f32 %v1251_v28, %v1202_v27 }
 0x1f1   : > { %v1347_v34 = vadd.f32 %v1346_v33, %v1298_v25 }
 0x1f3   : > { %v1381_v29 = vadd.f32 %v1347_v34, %v381_v57 }
 0x1f5   : > { %1413 = vst [vmem:[#allocation2 + $0x28] sm:$0xff] %v1381_v29 }
 0x1f6   : > { %v1300_v58 = vpop.f32.mrf.mxu2  ;;  %v1204_v60 = vpop.f32.mrf.mxu0 }
 0x1f7   : > { %v1301_v36 = vadd.f32 %v1300_v58, %v1252_v35  ;;  %v1349_v30 = vpop.f32.mrf.mxu3  ;;  %v1253_v31 = vpop.f32.mrf.mxu1 }
 0x1f8   : > { %v1254_v32 = vadd.f32 %v1253_v31, %v1204_v60 }
 0x1f9   : > { %v1350_v59 = vadd.f32 %v1349_v30, %v1301_v36 }
 0x1fb   : > { %v1383_v10 = vadd.f32 %v1350_v59, %v383_v9 }
 0x1fd   : > { %1415 = vst [vmem:[#allocation2 + $0xf8] sm:$0xff] %v1383_v10 }
 0x1fe   : > { %v1302_v11 = vpop.f32.mrf.mxu2 }
 0x1ff   : > { %v1303_v12 = vadd.f32 %v1302_v11, %v1254_v32  ;;  %v1351_v38 = vpop.f32.mrf.mxu3 }
 0x201   : > { %v1352_v39 = vadd.f32 %v1351_v38, %v1303_v12  ;;  %1421 = sbr.rel (%p2355_p10) target bundleno = 659 (0x293), region = 71 }
 0x203   : > { %v1385_v40 = vadd.f32 %v1352_v39, %v385_v37 }
 0x205   : > { %1417 = vst [vmem:[#allocation2 + $0x98] sm:$0xff] %v1385_v40 }
 0x206   : > { %v1454_v49 = vld [vmem:[%s3474_s2] sm:$0x3]  ;;  %v1422_v50 = vld [vmem:[#allocation2 + $0xb0] sm:$0xff]  ;;  %v1424_v53 = vld [vmem:[#allocation2 + $0xd8] sm:$0xff] }
 0x207   : > { %v2984_v51 = vperm.slane %v1454_v49, 0  ;;  %v2986_v52 = vperm.slane %v1454_v49, 1  ;;  %v1423_v18 = vld [vmem:[#allocation2] sm:$0xff]  ;;  %v1425_v41 = vld [vmem:[#allocation2 + $0x18] sm:$0xff]  ;;  %v1426_v54 = vld [vmem:[#allocation2 + $0x50] sm:$0xff] }
 0x208   : > { %v1427_v55 = vld [vmem:[#allocation2 + $0x68] sm:$0xff]  ;;  %v1428_v44 = vld [vmem:[#allocation2 + $0x30] sm:$0xff]  ;;  %v1430_v62 = vld [vmem:[#allocation2 + $0x80] sm:$0xff] }
 0x209   : > { %v2989_v19 = vadd.f32 %v2984_v51, %v1422_v50  ;;  %v2992_v42 = vadd.f32 %v2986_v52, %v1423_v18  ;;  %v2995_v56 = vadd.f32 %v2984_v51, %v1424_v53  ;;  %v2998_v43 = vadd.f32 %v2986_v52, %v1425_v41  ;;  %v1429_v20 = vld [vmem:[#allocation2 + $0x48] sm:$0xff]  ;;  %v1433_v13 = vld [vmem:[#allocation2 + $0xb8] sm:$0xff]  ;;  %v1434_v3 = vld [vmem:[#allocation2 + $0x60] sm:$0xff] }
 0x20a   : > { %v3001_v21 = vadd.f32 %v2984_v51, %v1426_v54  ;;  %v3004_v61 = vadd.f32 %v2986_v52, %v1427_v55  ;;  %v1431_v17 = vld [vmem:[#allocation2 + $0x88] sm:$0xff]  ;;  %v3007_v63 = vadd.f32 %v2984_v51, %v1428_v44  ;;  %v3010_v0 = vadd.f32 %v2986_v52, %v1429_v20  ;;  %v1435_v15 = vld [vmem:[#allocation2 + $0xf0] sm:$0xff]  ;;  %v1437_v47 = vld [vmem:[#allocation2 + $0x78] sm:$0xff] }
 0x20b   : > { %v1492_v22 = vadd.f32 %v2995_v56, %v2989_v19  ;;  %v1513_v1 = vadd.f32 %v2998_v43, %v2992_v42  ;;  %v1432_v23 = vld [vmem:[#allocation2 + $0xe8] sm:$0xff]  ;;  %v3017_v26 = vadd.f32 %v2984_v51, %v1430_v62  ;;  %v3020_v2 = vadd.f32 %v2986_v52, %v1431_v17  ;;  %v1438_v25 = vld [vmem:[#allocation2 + $0x38] sm:$0xff]  ;;  %v1440_v57 = vld [vmem:[#allocation2 + $0x40] sm:$0xff] }
 0x20c   : > { %v3025_v16 = vadd.f32 %v2984_v51, %v1432_v23  ;;  %v3028_v4 = vadd.f32 %v2986_v52, %v1433_v13  ;;  %v1436_v6 = vld [vmem:[#allocation2 + $0x8] sm:$0xff]  ;;  %v3033_v48 = vadd.f32 %v2984_v51, %v1434_v3  ;;  %v3036_v7 = vadd.f32 %v2986_v52, %v1435_v15  ;;  %v1439_v33 = vld [vmem:[#allocation2 + $0x58] sm:$0xff]  ;;  %v1442_v58 = vld [vmem:[#allocation2 + $0xe0] sm:$0xff] }
 0x20d   : > { %v1493_v45 = vadd.f32 %v1492_v22, %v3001_v21  ;;  %v1514_v14 = vadd.f32 %v1513_v1, %v3004_v61  ;;  %v1441_v27 = vld [vmem:[#allocation2 + $0xc8] sm:$0xff]  ;;  %v3041_v28 = vadd.f32 %v2984_v51, %v1436_v6  ;;  %v3044_v34 = vadd.f32 %v2986_v52, %v1437_v47  ;;  %v1443_v36 = vld [vmem:[#allocation2 + $0x90] sm:$0xff]  ;;  %v1445_v37 = vld [vmem:[#allocation2 + $0xc0] sm:$0xff] }
 0x20e   : > { %v1543_v30 = vmul.f32 %v2989_v19, %v2989_v19  ;;  %v1544_v9 = vmul.f32 %v2992_v42, %v2992_v42  ;;  %v1545_v59 = vmul.f32 %v2995_v56, %v2995_v56  ;;  %v1546_v60 = vmul.f32 %v2998_v43, %v2998_v43  ;;  %v1444_v12 = vld [vmem:[#allocation2 + $0x70] sm:$0xff]  ;;  %v1446_v54 = vld [vmem:[#allocation2 + $0xa8] sm:$0xff] }
 0x20f   : > { %v1494_v5 = vadd.f32 %v1493_v45, %v3007_v63  ;;  %v1515_v46 = vadd.f32 %v1514_v14, %v3010_v0  ;;  %v3057_v31 = vadd.f32 %v2984_v51, %v1438_v25  ;;  %v3060_v10 = vadd.f32 %v2986_v52, %v1439_v33  ;;  %v1447_v13 = vld [vmem:[#allocation2 + $0xd0] sm:$0xff] }
 0x210   : > { %v3065_v38 = vadd.f32 %v2984_v51, %v1440_v57  ;;  %v3068_v39 = vadd.f32 %v2986_v52, %v1441_v27  ;;  %v1547_v40 = vmul.f32 %v3001_v21, %v3001_v21  ;;  %v1548_v49 = vmul.f32 %v3004_v61, %v3004_v61  ;;  %v1448_v45 = vld [vmem:[#allocation2 + $0x10] sm:$0xff] }
 0x211   : > { %v1495_v8 = vadd.f32 %v1494_v5, %v3017_v26  ;;  %v1516_v24 = vadd.f32 %v1515_v46, %v3020_v2  ;;  %v3075_v50 = vadd.f32 %v2984_v51, %v1442_v58  ;;  %v3078_v18 = vadd.f32 %v2986_v52, %v1443_v36  ;;  %v1450_v36 = vld [vmem:[#allocation2 + $0xa0] sm:$0xff] }
 0x212   : > { %v1549_v55 = vmul.f32 %v3007_v63, %v3007_v63  ;;  %v1550_v44 = vmul.f32 %v3010_v0, %v3010_v0  ;;  %v1575_v20 = vadd.f32 %v1545_v59, %v1543_v30  ;;  %v1596_v62 = vadd.f32 %v1546_v60, %v1544_v9  ;;  %v1451_v30 = vld [vmem:[#allocation2 + $0xf8] sm:$0xff] }
 0x213   : > { %v1496_v29 = vadd.f32 %v1495_v8, %v3025_v16  ;;  %v1517_v35 = vadd.f32 %v1516_v24, %v3028_v4  ;;  %v3087_v17 = vadd.f32 %v2984_v51, %v1444_v12  ;;  %v3090_v22 = vadd.f32 %v2986_v52, %v1445_v37  ;;  %v1449_v8 = vld [vmem:[#allocation2 + $0x28] sm:$0xff] }
 0x214   : > { %v1551_v14 = vmul.f32 %v3017_v26, %v3017_v26  ;;  %v1552_v3 = vmul.f32 %v3020_v2, %v3020_v2  ;;  %v1576_v15 = vadd.f32 %v1575_v20, %v1547_v40  ;;  %v1597_v5 = vadd.f32 %v1596_v62, %v1548_v49  ;;  %v1452_v49 = vld [vmem:[#allocation2 + $0x20] sm:$0xff] }
 0x215   : > { %v1497_v32 = vadd.f32 %v1496_v29, %v3033_v48  ;;  %v1518_v11 = vadd.f32 %v1517_v35, %v3036_v7  ;;  %v3099_v46 = vadd.f32 %v2984_v51, %v1446_v54  ;;  %v1553_v24 = vmul.f32 %v3025_v16, %v3025_v16 }
 0x216   : > { %v1554_v25 = vmul.f32 %v3028_v4, %v3028_v4  ;;  %v1577_v33 = vadd.f32 %v1576_v15, %v1549_v55  ;;  %v1598_v57 = vadd.f32 %v1597_v5, %v1550_v44  ;;  %v3108_v27 = vadd.f32 %v2986_v52, %v1447_v13 }
 0x217   : > { %v1498_v53 = vadd.f32 %v1497_v32, %v3041_v28  ;;  %v1519_v41 = vadd.f32 %v1518_v11, %v3044_v34  ;;  %v3111_v29 = vadd.f32 %v2984_v51, %v1448_v45  ;;  %v1555_v9 = vmul.f32 %v3033_v48, %v3033_v48 }
 0x218   : > { %v1556_v59 = vmul.f32 %v3036_v7, %v3036_v7  ;;  %v1578_v60 = vadd.f32 %v1577_v33, %v1551_v14  ;;  %v1599_v32 = vadd.f32 %v1598_v57, %v1552_v3  ;;  %v3120_v11 = vadd.f32 %v2986_v52, %v1449_v8 }
 0x219   : > { %v1499_v1 = vadd.f32 %v1498_v53, %v3057_v31  ;;  %v1520_v23 = vadd.f32 %v1519_v41, %v3060_v10  ;;  %v2513_v40 = vmov 128.0   ;;  %v1453_v53 = vld [vmem:[#allocation2 + $0x98] sm:$0xff]  ;;  %v1557_v41 = vmul.f32 %v3041_v28, %v3041_v28 }
 0x21a   : > { %2482 = vrcp.f32 %v2513_v40  ;;  %v1558_v54 = vmul.f32 %v3044_v34, %v3044_v34  ;;  %v1579_v55 = vadd.f32 %v1578_v60, %v1553_v24  ;;  %v1600_v44 = vadd.f32 %v1599_v32, %v1554_v25 }
 0x21b   : > { %v1500_v6 = vadd.f32 %v1499_v1, %v3065_v38  ;;  %v1521_v47 = vadd.f32 %v1520_v23, %v3068_v39  ;;  %v3129_v20 = vadd.f32 %v2984_v51, %v1450_v36  ;;  %v3132_v62 = vadd.f32 %v2986_v52, %v1451_v30 }
 0x21c   : > { %v1559_v13 = vmul.f32 %v3057_v31, %v3057_v31  ;;  %v1560_v45 = vmul.f32 %v3060_v10, %v3060_v10  ;;  %v1580_v14 = vadd.f32 %v1579_v55, %v1555_v9  ;;  %v1601_v3 = vadd.f32 %v1600_v44, %v1556_v59 }
 0x21d   : > { %v1501_v35 = vadd.f32 %v1500_v6, %v3075_v50  ;;  %v1522_v58 = vadd.f32 %v1521_v47, %v3078_v18  ;;  %v3141_v15 = vadd.f32 %v2984_v51, %v1452_v49  ;;  %v3144_v5 = vadd.f32 %v2986_v52, %v1453_v53 }
 0x21e   : > { %v1561_v8 = vmul.f32 %v3065_v38, %v3065_v38  ;;  %v1562_v24 = vmul.f32 %v3068_v39, %v3068_v39  ;;  %v1581_v25 = vadd.f32 %v1580_v14, %v1557_v41  ;;  %v1602_v33 = vadd.f32 %v1601_v3, %v1558_v54 }
 0x21f   : > { %v1502_v12 = vadd.f32 %v1501_v35, %v3087_v17  ;;  %v1523_v37 = vadd.f32 %v1522_v58, %v3090_v22  ;;  %3479 = vst [vmem:[#allocation4_spill] sm:$0xff] %v3144_v5  ;;  %v1563_v52 = vmul.f32 %v3075_v50, %v3075_v50  ;;  %v1564_v58 = vmul.f32 %v3078_v18, %v3078_v18 }
 0x220   : > { %v2483_v57 = vpop.eup %2482  ;;  %v1582_v36 = vadd.f32 %v1581_v25, %v1559_v13  ;;  %v1603_v30 = vadd.f32 %v1602_v33, %v1560_v45  ;;  %v1565_v60 = vmul.f32 %v3087_v17, %v3087_v17  ;;  %v1566_v32 = vmul.f32 %v3090_v22, %v3090_v22 }
 0x221   : > { %v1503_v1 = vadd.f32 %v1502_v12, %v3099_v46  ;;  %v1524_v23 = vadd.f32 %v1523_v37, %v3108_v27  ;;  %v1535_v53 = vmul.f32 128.0, %v2483_v57  ;;  %v1567_v41 = vmul.f32 %v3099_v46, %v3099_v46 }
 0x222   : > { %v1583_v12 = vadd.f32 %v1582_v36, %v1561_v8  ;;  %v1604_v37 = vadd.f32 %v1603_v30, %v1562_v24  ;;  %v1568_v54 = vmul.f32 %v3108_v27, %v3108_v27  ;;  %v1569_v13 = vmul.f32 %v3111_v29, %v3111_v29 }
 0x223   : > { %v1504_v6 = vadd.f32 %v1503_v1, %v3111_v29  ;;  %v1525_v47 = vadd.f32 %v1524_v23, %v3120_v11  ;;  %v1570_v45 = vmul.f32 %v3120_v11, %v3120_v11  ;;  %v1536_v8 = vsub.f32 1.0, %v1535_v53 }
 0x224   : > { %v1584_v55 = vadd.f32 %v1583_v12, %v1563_v52  ;;  %v1605_v44 = vadd.f32 %v1604_v37, %v1564_v58  ;;  %v1571_v24 = vmul.f32 %v3129_v20, %v3129_v20  ;;  %v1572_v25 = vmul.f32 %v3132_v62, %v3132_v62 }
 0x225   : > { %v1505_v35 = vadd.f32 %v1504_v6, %v3129_v20  ;;  %v1526_v51 = vadd.f32 %v1525_v47, %v3132_v62  ;;  %v1574_v52 = vmul.f32 %v3144_v5, %v3144_v5  ;;  %vm1539_vm0 = vweird.f32 %v2483_v57 }
 0x226   : > { %v1585_v14 = vadd.f32 %v1584_v55, %v1565_v60  ;;  %v1606_v3 = vadd.f32 %v1605_v44, %v1566_v32 }
 0x227   : > { %v1506_v9 = vadd.f32 %v1505_v35, %v3141_v15  ;;  %v1527_v59 = vadd.f32 %v1526_v51, %v3144_v5  ;;  %v1573_v51 = vmul.f32 %v3141_v15, %v3141_v15 }
 0x228   : > { %v1586_v33 = vadd.f32 %v1585_v14, %v1567_v41  ;;  %v1607_v35 = vadd.f32 %v1606_v3, %v1568_v54 }
 0x229   : > { %v1507_v40 = vrot.slane %v1506_v9, 4  ;;  %v1528_v49 = vrot.slane %v1527_v59, 4 }
 0x22a   : > { %v1587_v30 = vadd.f32 %v1586_v33, %v1569_v13 }
 0x22b   : > { %v1508_v1 = vadd.f32 %v1507_v40, %v1506_v9  ;;  %v1529_v23 = vadd.f32 %v1528_v49, %v1527_v59  ;;  %v1608_v9 = vadd.f32 %v1607_v35, %v1570_v45  ;;  %v1537_v59 = vmul.f32 %v2483_v57, %v1536_v8 }
 0x22c   : > { %v1588_v60 = vadd.f32 %v1587_v30, %v1571_v24 }
 0x22d   : > { %v1509_v6 = vrot.slane %v1508_v1, 2  ;;  %v1530_v47 = vrot.slane %v1529_v23, 2  ;;  %v1609_v32 = vadd.f32 %v1608_v9, %v1572_v25  ;;  %v1538_v53 = vadd.f32 %v2483_v57, %v1537_v59 }
 0x22e   : > { %v1589_v40 = vadd.f32 %v1588_v60, %v1573_v51  ;;  %v1709_v60 = vld [vmem:[%s3475_s3] sm:$0x3] }
 0x22f   : > { %v1510_v58 = vadd.f32 %v1509_v6, %v1508_v1  ;;  %v1531_v36 = vadd.f32 %v1530_v47, %v1529_v23  ;;  %v1610_v49 = vadd.f32 %v1609_v32, %v1574_v52  ;;  %v1540_v5 = vsel %vm1539_vm0, %v2483_v57, %v1538_v53 }
 0x230   : > { %v1590_v41 = vrot.slane %v1589_v40, 4 }
 0x231   : > { %v1511_v12 = vrot.slane %v1510_v58, 1  ;;  %v1532_v37 = vrot.slane %v1531_v36, 1  ;;  %v1611_v54 = vrot.slane %v1610_v49, 4 }
 0x232   : > { %v1591_v14 = vadd.f32 %v1590_v41, %v1589_v40 }
 0x233   : > { %v1512_v55 = vadd.f32 %v1511_v12, %v1510_v58  ;;  %v1533_v44 = vadd.f32 %v1532_v37, %v1531_v36  ;;  %v1612_v3 = vadd.f32 %v1611_v54, %v1610_v49 }
 0x234   : > { %v1592_v1 = vrot.slane %v1591_v14, 2 }
 0x235   : > { %v1613_v23 = vrot.slane %v1612_v3, 2  ;;  %v3180_v13 = vmul.f32 %v1540_v5, %v1512_v55  ;;  %v3182_v45 = vmul.f32 %v1540_v5, %v1533_v44  ;;  %v3206_v44 = vperm.slane %v1709_v60, 1 }
 0x236   : > { %v1593_v6 = vadd.f32 %v1592_v1, %v1591_v14 }
 0x237   : > { %v1614_v47 = vadd.f32 %v1613_v23, %v1612_v3  ;;  %v1619_v35 = vmul.f32 %v3180_v13, %v3180_v13  ;;  %v1620_v51 = vmul.f32 %v3182_v45, %v3182_v45  ;;  %v1623_v12 = vsub.f32 %v2989_v19, %v3180_v13 }
 0x238   : > { %v1594_v8 = vrot.slane %v1593_v6, 1  ;;  %v1624_v37 = vsub.f32 %v2992_v42, %v3182_v45  ;;  %v1625_v53 = vsub.f32 %v2995_v56, %v3180_v13  ;;  %v1626_v41 = vsub.f32 %v2998_v43, %v3182_v45 }
 0x239   : > { %v1615_v24 = vrot.slane %v1614_v47, 1  ;;  %v1627_v54 = vsub.f32 %v3001_v21, %v3180_v13  ;;  %v3204_v19 = vperm.slane %v1709_v60, 0  ;;  %v1628_v42 = vsub.f32 %v3004_v61, %v3182_v45 }
 0x23a   : > { %v1595_v25 = vadd.f32 %v1594_v8, %v1593_v6  ;;  %v1629_v56 = vsub.f32 %v3007_v63, %v3180_v13  ;;  %v1630_v43 = vsub.f32 %v3010_v0, %v3182_v45  ;;  %v1631_v61 = vsub.f32 %v3017_v26, %v3180_v13 }
 0x23b   : > { %v1616_v33 = vadd.f32 %v1615_v24, %v1614_v47  ;;  %v1632_v47 = vsub.f32 %v3020_v2, %v3182_v45  ;;  %v1633_v63 = vsub.f32 %v3025_v16, %v3180_v13  ;;  %v1634_v0 = vsub.f32 %v3028_v4, %v3182_v45 }
 0x23c   : > { %v1617_v52 = vmul.f32 %v1595_v25, %v1540_v5  ;;  %v1635_v24 = vsub.f32 %v3033_v48, %v3180_v13  ;;  %v1636_v25 = vsub.f32 %v3036_v7, %v3182_v45 }
 0x23d   : > { %v1618_v57 = vmul.f32 %v1616_v33, %v1540_v5  ;;  %v1747_v5 = vld [vmem:[%s3476_s4] sm:$0x3]  ;;  %v1637_v33 = vsub.f32 %v3041_v28, %v3180_v13 }
 0x23e   : > { %v1621_v58 = vsub.f32 %v1617_v52, %v1619_v35  ;;  %v3210_v3 = vperm.slane %v1747_v5, 0  ;;  %v3216_v21 = vperm.slane %v1747_v5, 1  ;;  %v1639_v52 = vsub.f32 %v3057_v31, %v3180_v13 }
 0x23f   : > { %v1622_v36 = vsub.f32 %v1618_v57, %v1620_v51  ;;  %v1638_v51 = vsub.f32 %v3044_v34, %v3182_v45 }
 0x240   : > { %v1655_v30 = vadd.f32 1e-05, %v1621_v58 }
 0x241   : > { %v1656_v9 = vadd.f32 1e-05, %v1622_v36 }
 0x242   : > { %2484 = vrsqrt.f32 %v1655_v30  ;;  %vm1663_vm1 = vweird.f32 %v1655_v30 }
 0x243   : > { %2486 = vrsqrt.f32 %v1656_v9  ;;  %vm1673_vm3 = vweird.f32 %v1656_v9 }
 0x248   : > { %v2485_v59 = vpop.eup %2484 }
 0x249   : > { %v2487_v32 = vpop.eup %2486  ;;  %v1658_v40 = vmul.f32 %v2485_v59, %v1655_v30  ;;  %vm1664_vm2 = vweird.f32 %v2485_v59 }
 0x24a   : > { %v1668_v49 = vmul.f32 %v2487_v32, %v1656_v9  ;;  %vm1674_vm4 = vweird.f32 %v2487_v32  ;;  %vm1665_vm5 = vmor %vm1663_vm1, %vm1664_vm2 }
 0x24b   : > { %v1659_v55 = vmul.f32 %v2485_v59, %v1658_v40  ;;  %vm1675_vm6 = vmor %vm1673_vm3, %vm1674_vm4 }
 0x24c   : > { %v1669_v14 = vmul.f32 %v2487_v32, %v1668_v49 }
 0x24d   : > { %v1660_v1 = vmul.f32 0.5, %v1659_v55 }
 0x24e   : > { %v1670_v23 = vmul.f32 0.5, %v1669_v14 }
 0x24f   : > { %v1661_v6 = vsub.f32 1.5, %v1660_v1 }
 0x250   : > { %v1671_v8 = vsub.f32 1.5, %v1670_v23 }
 0x251   : > { %v1662_v35 = vmul.f32 %v2485_v59, %v1661_v6 }
 0x252   : > { %v1672_v58 = vmul.f32 %v2487_v32, %v1671_v8 }
 0x253   : > { %v3244_v60 = vsel %vm1665_vm5, %v2485_v59, %v1662_v35 }
 0x254   : > { %v3252_v55 = vsel %vm1675_vm6, %v2487_v32, %v1672_v58  ;;  %v1677_v14 = vmul.f32 %v3244_v60, %v1623_v12  ;;  %v1679_v1 = vmul.f32 %v3244_v60, %v1625_v53  ;;  %v1681_v23 = vmul.f32 %v3244_v60, %v1627_v54 }
 0x255   : > { %v1678_v59 = vmul.f32 %v3252_v55, %v1624_v37  ;;  %v1680_v6 = vmul.f32 %v3252_v55, %v1626_v41  ;;  %v1682_v8 = vmul.f32 %v3252_v55, %v1628_v42  ;;  %v1683_v35 = vmul.f32 %v3244_v60, %v1629_v56 }
 0x256   : > { %v1715_v5 = vmul.f32 %v3204_v19, %v1677_v14  ;;  %v1717_v49 = vmul.f32 %v3204_v19, %v1679_v1  ;;  %v1719_v32 = vmul.f32 %v3204_v19, %v1681_v23  ;;  %v1684_v12 = vmul.f32 %v3252_v55, %v1630_v43 }
 0x257   : > { %v1716_v53 = vmul.f32 %v3206_v44, %v1678_v59  ;;  %v1718_v54 = vmul.f32 %v3206_v44, %v1680_v6  ;;  %v1720_v37 = vmul.f32 %v3206_v44, %v1682_v8  ;;  %v1721_v41 = vmul.f32 %v3204_v19, %v1683_v35 }
 0x258   : > { %v1753_v42 = vadd.f32 %v3210_v3, %v1715_v5  ;;  %v1755_v56 = vadd.f32 %v3210_v3, %v1717_v49  ;;  %v1757_v58 = vadd.f32 %v3210_v3, %v1719_v32  ;;  %v1722_v14 = vmul.f32 %v3206_v44, %v1684_v12 }
 0x259   : > { %v1754_v1 = vadd.f32 %v3216_v21, %v1716_v53  ;;  %v1756_v43 = vadd.f32 %v3216_v21, %v1718_v54  ;;  %v1758_v23 = vadd.f32 %v3216_v21, %v1720_v37  ;;  %v1759_v59 = vadd.f32 %v3210_v3, %v1721_v41 }
 0x25a   : > { %vm1785_vm7 = vcmp.ge.f32.partialorder %v1753_v42, 0.0  ;;  %v1817_v6 = vmul.f32 0.2, %v1753_v42  ;;  %vm1787_vm8 = vcmp.ge.f32.partialorder %v1755_v56, 0.0  ;;  %v1819_v8 = vmul.f32 0.2, %v1755_v56 }
 0x25b   : > { %vm1786_vm9 = vcmp.ge.f32.partialorder %v1754_v1, 0.0  ;;  %v1818_v5 = vmul.f32 0.2, %v1754_v1  ;;  %vm1788_vm10 = vcmp.ge.f32.partialorder %v1756_v43, 0.0  ;;  %v1820_v49 = vmul.f32 0.2, %v1756_v43 }
 0x25c   : > { %v1849_v35 = vsel %vm1785_vm7, %v1753_v42, %v1817_v6  ;;  %v1851_v32 = vsel %vm1787_vm8, %v1755_v56, %v1819_v8  ;;  %vm1789_vm11 = vcmp.ge.f32.partialorder %v1757_v58, 0.0  ;;  %vm1790_vm12 = vcmp.ge.f32.partialorder %v1758_v23, 0.0 }
 0x25d   : > { %v1850_v12 = vsel %vm1786_vm9, %v1754_v1, %v1818_v5  ;;  %v1852_v53 = vsel %vm1788_vm10, %v1756_v43, %v1820_v49  ;;  %v1821_v40 = vmul.f32 0.2, %v1757_v58  ;;  %v1822_v54 = vmul.f32 0.2, %v1758_v23 }
 0x25e   : > { %v1881_v9 = vpack.c.bf16 %v1850_v12, %v1849_v35  ;;  %v1882_v37 = vpack.c.bf16 %v1852_v53, %v1851_v32  ;;  %v1760_v41 = vadd.f32 %v3216_v21, %v1722_v14  ;;  %vm1791_vm13 = vcmp.ge.f32.partialorder %v1759_v59, 0.0 }
 0x25f   : > { %v1853_v30 = vsel %vm1789_vm11, %v1757_v58, %v1821_v40  ;;  %v1854_v36 = vsel %vm1790_vm12, %v1758_v23, %v1822_v54  ;;  %v1823_v57 = vmul.f32 0.2, %v1759_v59  ;;  %v1685_v42 = vmul.f32 %v3244_v60, %v1631_v61 }
 0x260   : > { %1897 = vst [vmem:[%s3477_s5] sm:$0xff] %v1881_v9  ;;  %v1883_v56 = vpack.c.bf16 %v1854_v36, %v1853_v30  ;;  %vm1792_vm14 = vcmp.ge.f32.partialorder %v1760_v41, 0.0  ;;  %v1824_v1 = vmul.f32 0.2, %v1760_v41  ;;  %v1686_v14 = vmul.f32 %v3252_v55, %v1632_v47 }
 0x261   : > { %1898 = vst [vmem:[%s3477_s5 + $0x8] sm:$0xff] %v1882_v37  ;;  %v1855_v40 = vsel %vm1791_vm13, %v1759_v59, %v1823_v57  ;;  %v1723_v26 = vmul.f32 %v3204_v19, %v1685_v42  ;;  %v1687_v61 = vmul.f32 %v3244_v60, %v1633_v63  ;;  %v1688_v36 = vmul.f32 %v3252_v55, %v1634_v0 }
 0x262   : > { %1899 = vst [vmem:[%s3477_s5 + $0x10] sm:$0xff] %v1883_v56  ;;  %v1856_v2 = vsel %vm1792_vm14, %v1760_v41, %v1824_v1  ;;  %v1724_v47 = vmul.f32 %v3206_v44, %v1686_v14  ;;  %v1689_v57 = vmul.f32 %v3244_v60, %v1635_v24  ;;  %v1690_v16 = vmul.f32 %v3252_v55, %v1636_v25 }
 0x263   : > { %v1884_v4 = vpack.c.bf16 %v1856_v2, %v1855_v40  ;;  %v1761_v63 = vadd.f32 %v3210_v3, %v1723_v26  ;;  %v1725_v0 = vmul.f32 %v3204_v19, %v1687_v61  ;;  %v1726_v30 = vmul.f32 %v3206_v44, %v1688_v36 }
 0x264   : > { %v1762_v9 = vadd.f32 %v3216_v21, %v1724_v47  ;;  %v1727_v58 = vmul.f32 %v3204_v19, %v1689_v57  ;;  %v1728_v48 = vmul.f32 %v3206_v44, %v1690_v16  ;;  %v1691_v7 = vmul.f32 %v3244_v60, %v1637_v33 }
 0x265   : > { %1900 = vst [vmem:[%s3477_s5 + $0x18] sm:$0xff] %v1884_v4  ;;  %vm1793_vm15 = vcmp.ge.f32.partialorder %v1761_v63, 0.0  ;;  %v1825_v24 = vmul.f32 0.2, %v1761_v63  ;;  %v1763_v25 = vadd.f32 %v3210_v3, %v1725_v0  ;;  %v1764_v43 = vadd.f32 %v3216_v21, %v1726_v30 }
 0x266   : > { %vm1794_vm0 = vcmp.ge.f32.partialorder %v1762_v9, 0.0  ;;  %v1826_v23 = vmul.f32 0.2, %v1762_v9  ;;  %v1765_v59 = vadd.f32 %v3210_v3, %v1727_v58  ;;  %v1766_v6 = vadd.f32 %v3216_v21, %v1728_v48 }
 0x267   : > { %v1857_v8 = vsel %vm1793_vm15, %v1761_v63, %v1825_v24  ;;  %vm1795_vm1 = vcmp.ge.f32.partialorder %v1763_v25, 0.0  ;;  %vm1796_vm2 = vcmp.ge.f32.partialorder %v1764_v43, 0.0  ;;  %v1827_v28 = vmul.f32 0.2, %v1763_v25 }
 0x268   : > { %v1858_v33 = vsel %vm1794_vm0, %v1762_v9, %v1826_v23  ;;  %v1828_v5 = vmul.f32 0.2, %v1764_v43  ;;  %vm1797_vm3 = vcmp.ge.f32.partialorder %v1765_v59, 0.0  ;;  %vm1798_vm4 = vcmp.ge.f32.partialorder %v1766_v6, 0.0 }
 0x269   : > { %v1885_v49 = vpack.c.bf16 %v1858_v33, %v1857_v8  ;;  %v1859_v35 = vsel %vm1795_vm1, %v1763_v25, %v1827_v28  ;;  %v1829_v32 = vmul.f32 0.2, %v1765_v59  ;;  %v1830_v12 = vmul.f32 0.2, %v1766_v6 }
 0x26a   : > { %v1860_v53 = vsel %vm1796_vm2, %v1764_v43, %v1828_v5  ;;  %v1692_v54 = vmul.f32 %v3252_v55, %v1638_v51  ;;  %v1729_v37 = vmul.f32 %v3204_v19, %v1691_v7  ;;  %v1693_v41 = vmul.f32 %v3244_v60, %v1639_v52 }
 0x26b   : > { %1901 = vst [vmem:[%s3477_s5 + $0x20] sm:$0xff] %v1885_v49  ;;  %v1886_v42 = vpack.c.bf16 %v1860_v53, %v1859_v35  ;;  %v1861_v56 = vsel %vm1797_vm3, %v1765_v59, %v1829_v32  ;;  %v1862_v1 = vsel %vm1798_vm4, %v1766_v6, %v1830_v12  ;;  %v3480_v14 = vsub.f32 %v3060_v10, %v3182_v45 }
 0x26c   : > { %v1887_v51 = vpack.c.bf16 %v1862_v1, %v1861_v56  ;;  %v1730_v40 = vmul.f32 %v3206_v44, %v1692_v54  ;;  %v1767_v26 = vadd.f32 %v3210_v3, %v1729_v37  ;;  %v1731_v31 = vmul.f32 %v3204_v19, %v1693_v41 }
 0x26d   : > { %v1694_v34 = vmul.f32 %v3252_v55, %v3480_v14  ;;  %1902 = vst [vmem:[%s3477_s5 + $0x28] sm:$0xff] %v1886_v42  ;;  %v3481_v61 = vsub.f32 %v3065_v38, %v3180_v13  ;;  %v3482_v36 = vsub.f32 %v3068_v39, %v3182_v45  ;;  %v3483_v47 = vsub.f32 %v3075_v50, %v3180_v13 }
 0x26e   : > { %1903 = vst [vmem:[%s3477_s5 + $0x30] sm:$0xff] %v1887_v51  ;;  %v1768_v16 = vadd.f32 %v3216_v21, %v1730_v40  ;;  %vm1799_vm5 = vcmp.ge.f32.partialorder %v1767_v26, 0.0  ;;  %v1831_v38 = vmul.f32 0.2, %v1767_v26  ;;  %v1769_v4 = vadd.f32 %v3210_v3, %v1731_v31 }
 0x26f   : > { %v1732_v52 = vmul.f32 %v3206_v44, %v1694_v34  ;;  %v1695_v10 = vmul.f32 %v3244_v60, %v3481_v61  ;;  %v1696_v2 = vmul.f32 %v3252_v55, %v3482_v36  ;;  %v1697_v57 = vmul.f32 %v3244_v60, %v3483_v47 }
 0x270   : > { %v3484_v50 = vsub.f32 %v3078_v18, %v3182_v45  ;;  %vm1800_vm6 = vcmp.ge.f32.partialorder %v1768_v16, 0.0  ;;  %v1832_v9 = vmul.f32 0.2, %v1768_v16  ;;  %v1863_v58 = vsel %vm1799_vm5, %v1767_v26, %v1831_v38 }
 0x271   : > { %v1770_v63 = vadd.f32 %v3216_v21, %v1732_v52  ;;  %v1733_v39 = vmul.f32 %v3204_v19, %v1695_v10  ;;  %v1734_v0 = vmul.f32 %v3206_v44, %v1696_v2  ;;  %vm1801_vm7 = vcmp.ge.f32.partialorder %v1769_v4, 0.0 }
 0x272   : > { %v1698_v30 = vmul.f32 %v3252_v55, %v3484_v50  ;;  %v1833_v48 = vmul.f32 0.2, %v1769_v4  ;;  %v1864_v25 = vsel %vm1800_vm6, %v1768_v16, %v1832_v9  ;;  %v1735_v23 = vmul.f32 %v3204_v19, %v1697_v57 }
 0x273   : > { %vm1802_vm8 = vcmp.ge.f32.partialorder %v1770_v63, 0.0  ;;  %v1834_v7 = vmul.f32 0.2, %v1770_v63  ;;  %v1771_v24 = vadd.f32 %v3210_v3, %v1733_v39  ;;  %v1772_v43 = vadd.f32 %v3216_v21, %v1734_v0 }
 0x274   : > { %v1736_v59 = vmul.f32 %v3206_v44, %v1698_v30  ;;  %v1888_v6 = vpack.c.bf16 %v1864_v25, %v1863_v58  ;;  %v1865_v18 = vsel %vm1801_vm7, %v1769_v4, %v1833_v48  ;;  %v1773_v49 = vadd.f32 %v3210_v3, %v1735_v23  ;;  %v3487_v23 = vld [vmem:[#allocation4_spill] sm:$0xff] }
 0x275   : > { %v1866_v8 = vsel %vm1802_vm8, %v1770_v63, %v1834_v7  ;;  %vm1803_vm9 = vcmp.ge.f32.partialorder %v1771_v24, 0.0  ;;  %vm1804_vm10 = vcmp.ge.f32.partialorder %v1772_v43, 0.0  ;;  %v1835_v33 = vmul.f32 0.2, %v1771_v24 }
 0x276   : > { %v1889_v28 = vpack.c.bf16 %v1866_v8, %v1865_v18  ;;  %v1836_v5 = vmul.f32 0.2, %v1772_v43  ;;  %1904 = vst [vmem:[%s3477_s5 + $0x38] sm:$0xff] %v1888_v6  ;;  %v1774_v35 = vadd.f32 %v3216_v21, %v1736_v59  ;;  %v3485_v32 = vsub.f32 %v3087_v17, %v3180_v13 }
 0x277   : > { %v3486_v53 = vsub.f32 %v3090_v22, %v3182_v45  ;;  %v1867_v37 = vsel %vm1803_vm9, %v1771_v24, %v1835_v33  ;;  %v1647_v42 = vsub.f32 %v3099_v46, %v3180_v13  ;;  %v1648_v56 = vsub.f32 %v3108_v27, %v3182_v45 }
 0x278   : > { %v1699_v12 = vmul.f32 %v3244_v60, %v3485_v32  ;;  %1905 = vst [vmem:[%s3477_s5 + $0x40] sm:$0xff] %v1889_v28  ;;  %v1868_v41 = vsel %vm1804_vm10, %v1772_v43, %v1836_v5  ;;  %vm1805_vm11 = vcmp.ge.f32.partialorder %v1773_v49, 0.0  ;;  %vm1806_vm12 = vcmp.ge.f32.partialorder %v1774_v35, 0.0 }
 0x279   : > { %v1700_v54 = vmul.f32 %v3252_v55, %v3486_v53  ;;  %v1890_v17 = vpack.c.bf16 %v1868_v41, %v1867_v37  ;;  %v1837_v1 = vmul.f32 0.2, %v1773_v49  ;;  %v1838_v14 = vmul.f32 0.2, %v1774_v35 }
 0x27a   : > { %v1737_v22 = vmul.f32 %v3204_v19, %v1699_v12  ;;  %v1701_v51 = vmul.f32 %v3244_v60, %v1647_v42  ;;  %v1702_v46 = vmul.f32 %v3252_v55, %v1648_v56  ;;  %v1649_v27 = vsub.f32 %v3111_v29, %v3180_v13 }
 0x27b   : > { %v1738_v34 = vmul.f32 %v3206_v44, %v1700_v54  ;;  %1906 = vst [vmem:[%s3477_s5 + $0x48] sm:$0xff] %v1890_v17  ;;  %v1869_v40 = vsel %vm1805_vm11, %v1773_v49, %v1837_v1  ;;  %v1650_v26 = vsub.f32 %v3120_v11, %v3182_v45  ;;  %v1870_v31 = vsel %vm1806_vm12, %v1774_v35, %v1838_v14 }
 0x27c   : > { %v1775_v52 = vadd.f32 %v3210_v3, %v1737_v22  ;;  %v1739_v10 = vmul.f32 %v3204_v19, %v1701_v51  ;;  %v1891_v36 = vpack.c.bf16 %v1870_v31, %v1869_v40  ;;  %v1740_v2 = vmul.f32 %v3206_v44, %v1702_v46 }
 0x27d   : > { %v1776_v61 = vadd.f32 %v3216_v21, %v1738_v34  ;;  %v1703_v47 = vmul.f32 %v3244_v60, %v1649_v27  ;;  %v1704_v57 = vmul.f32 %v3252_v55, %v1650_v26  ;;  %v1651_v50 = vsub.f32 %v3129_v20, %v3180_v13 }
 0x27e   : > { %vm1807_vm13 = vcmp.ge.f32.partialorder %v1775_v52, 0.0  ;;  %v1839_v29 = vmul.f32 0.2, %v1775_v52  ;;  %1907 = vst [vmem:[%s3477_s5 + $0x50] sm:$0xff] %v1891_v36  ;;  %v1777_v11 = vadd.f32 %v3210_v3, %v1739_v10  ;;  %v1778_v38 = vadd.f32 %v3216_v21, %v1740_v2 }
 0x27f   : > { %vm1808_vm14 = vcmp.ge.f32.partialorder %v1776_v61, 0.0  ;;  %v1840_v16 = vmul.f32 0.2, %v1776_v61  ;;  %v1741_v4 = vmul.f32 %v3204_v19, %v1703_v47  ;;  %v1742_v63 = vmul.f32 %v3206_v44, %v1704_v57 }
 0x280   : > { %v1871_v39 = vsel %vm1807_vm13, %v1775_v52, %v1839_v29  ;;  %v1652_v30 = vsub.f32 %v3132_v62, %v3182_v45  ;;  %vm1809_vm15 = vcmp.ge.f32.partialorder %v1777_v11, 0.0  ;;  %vm1810_vm0 = vcmp.ge.f32.partialorder %v1778_v38, 0.0 }
 0x281   : > { %v1872_v0 = vsel %vm1808_vm14, %v1776_v61, %v1840_v16  ;;  %v1841_v58 = vmul.f32 0.2, %v1777_v11  ;;  %v1842_v48 = vmul.f32 0.2, %v1778_v38  ;;  %v1779_v7 = vadd.f32 %v3210_v3, %v1741_v4 }
 0x282   : > { %v1892_v9 = vpack.c.bf16 %v1872_v0, %v1871_v39  ;;  %v1780_v24 = vadd.f32 %v3216_v21, %v1742_v63  ;;  %v1705_v25 = vmul.f32 %v3244_v60, %v1651_v50  ;;  %v1706_v20 = vmul.f32 %v3252_v55, %v1652_v30 }
 0x283   : > { %v1873_v43 = vsel %vm1809_vm15, %v1777_v11, %v1841_v58  ;;  %v1653_v62 = vsub.f32 %v3141_v15, %v3180_v13  ;;  %v1654_v59 = vsub.f32 %v3487_v23, %v3182_v45  ;;  %v1874_v6 = vsel %vm1810_vm0, %v1778_v38, %v1842_v48 }
 0x284   : > { %1908 = vst [vmem:[%s3477_s5 + $0x58] sm:$0xff] %v1892_v9  ;;  %vm1811_vm1 = vcmp.ge.f32.partialorder %v1779_v7, 0.0  ;;  %vm1812_vm2 = vcmp.ge.f32.partialorder %v1780_v24, 0.0  ;;  %v1843_v18 = vmul.f32 0.2, %v1779_v7  ;;  %v1893_v8 = vpack.c.bf16 %v1874_v6, %v1873_v43 }
 0x285   : > { %v1844_v28 = vmul.f32 0.2, %v1780_v24  ;;  %v1743_v33 = vmul.f32 %v3204_v19, %v1705_v25  ;;  %v1744_v5 = vmul.f32 %v3206_v44, %v1706_v20  ;;  %v1707_v35 = vmul.f32 %v3244_v60, %v1653_v62 }
 0x286   : > { %v1875_v49 = vsel %vm1811_vm1, %v1779_v7, %v1843_v18  ;;  %v1708_v32 = vmul.f32 %v3252_v55, %v1654_v59  ;;  %1909 = vst [vmem:[%s3477_s5 + $0x60] sm:$0xff] %v1893_v8 }
 0x287   : > { %v1876_v15 = vsel %vm1812_vm2, %v1780_v24, %v1844_v28  ;;  %v1781_v13 = vadd.f32 %v3210_v3, %v1743_v33  ;;  %v1782_v45 = vadd.f32 %v3216_v21, %v1744_v5  ;;  %v1745_v53 = vmul.f32 %v3204_v19, %v1707_v35 }
 0x288   : > { %v1894_v12 = vpack.c.bf16 %v1876_v15, %v1875_v49  ;;  %v1746_v54 = vmul.f32 %v3206_v44, %v1708_v32 }
 0x289   : > { %vm1813_vm3 = vcmp.ge.f32.partialorder %v1781_v13, 0.0  ;;  %vm1814_vm4 = vcmp.ge.f32.partialorder %v1782_v45, 0.0  ;;  %v1845_v37 = vmul.f32 0.2, %v1781_v13  ;;  %v1846_v60 = vmul.f32 0.2, %v1782_v45 }
 0x28a   : > { %1910 = vst [vmem:[%s3477_s5 + $0x68] sm:$0xff] %v1894_v12  ;;  %v1783_v55 = vadd.f32 %v3210_v3, %v1745_v53  ;;  %v1784_v41 = vadd.f32 %v3216_v21, %v1746_v54 }
 0x28b   : > { %v1877_v42 = vsel %vm1813_vm3, %v1781_v13, %v1845_v37  ;;  %v1878_v56 = vsel %vm1814_vm4, %v1782_v45, %v1846_v60 }
 0x28c   : > { %v1895_v17 = vpack.c.bf16 %v1878_v56, %v1877_v42  ;;  %vm1815_vm5 = vcmp.ge.f32.partialorder %v1783_v55, 0.0  ;;  %vm1816_vm6 = vcmp.ge.f32.partialorder %v1784_v41, 0.0  ;;  %v1847_v19 = vmul.f32 0.2, %v1783_v55 }
 0x28d   : > { %v1848_v1 = vmul.f32 0.2, %v1784_v41 }
 0x28e   : > { %1911 = vst [vmem:[%s3477_s5 + $0x70] sm:$0xff] %v1895_v17  ;;  %v1879_v44 = vsel %vm1815_vm5, %v1783_v55, %v1847_v19 }
 0x28f   : > { %v1880_v14 = vsel %vm1816_vm6, %v1784_v41, %v1848_v1 }
 0x290   : > { %v1896_v22 = vpack.c.bf16 %v1880_v14, %v1879_v44 }
 0x292   : > { %1912 = vst [vmem:[%s3477_s5 + $0x78] sm:$0xff] %v1896_v22 }
 0x293 PF: > { %p12_p11 = scmp.ge.s32.totalorder %s2563_s22, 6   ;;  %s3488_s18 = smov %s2506_s19 }
 0x294   : > { %s3489_s19 = smov %s2572_s25  ;;  %s3490_s20 = smov %s2563_s22 }
 0x295   :  { %14 = sbr.rel (!%p12_p11) target bundleno = 2 (0x2), region = 105 }

// kernel: discriminator_forward.6
= control target key start
LH: loop header
LB: loop body
LE: loop exit
PB: predicated region body
PF: predicated region fallthrough
CT: control target
= control target key end

     0   :  { %s2642_s18 = smov 0   ;;  %s2644_s19 = smov 0   ;;  %s3272_s0 = inlined_call_operand.vmem [shape: bf16[32,4096], index: 0, kind: input, shape index: {}]   ;;  %s3273_s1 = inlined_call_operand.vmem [shape: bf16[4096,512], index: 1, kind: input, shape index: {}]   ;;  %s3274_s2 = inlined_call_operand.vmem [shape: f32[1,512], index: 2, kind: input, shape index: {}]   ;;  %s3275_s3 = inlined_call_operand.vmem [shape: f32[1,512], index: 3, kind: input, shape index: {}]   ;;  %s3276_s4 = inlined_call_operand.vmem [shape: f32[1,512], index: 4, kind: input, shape index: {}]   ;;  %s3277_s5 = inlined_call_operand.vmem [shape: bf16[32,512], index: 5, kind: output, shape index: {}]  }
   0x1   :  { %s2646_s20 = smov 0  }
   0x2 LB: > { %s2658_s21 = sadd.s32 4294967295, %s2608_s20   ;;  %s2661_s22 = sadd.s32 1, %s2608_s20   ;;  %s2608_s20 = sphi %s2646_s20, %s3280_s20   ;;  %s2604_s19 = sphi %s2644_s19, %s3279_s19   ;;  %s2600_s18 = sphi %s2642_s18, %s3278_s18  }
   0x3   : > { %s19_s23 = ssub.s32 %s2608_s20, %s2661_s22  ;;  %s22_s24 = sadd.s32 1, %s2604_s19 }
   0x4   : > { %p20_p0 = scmp.eq.s32.totalorder %s19_s23, 0  ;;  %p29_p1 = scmp.ne.s32.totalorder %s2604_s19, %s2600_s18 }
   0x5   : > { %p30_p2 = scmp.eq.s32.totalorder %s2608_s20, 0  ;;  %p1855_p4 = scmp.ge.s32.totalorder %s2608_s20, 8 }
   0x6   : > { %s2670_s25 = scalar_select %p20_p0, %s2604_s19, %s22_s24  }
   0x7   : > { %p31_p3 = por %p30_p2, %p29_p1  ;;  %174 = sbr.rel (%p1855_p4) target bundleno = 24 (0x18), region = 28 }
   0xc   : > { %177 = sbr.rel (!%p31_p3) target bundleno = 24 (0x18), region = 32  ;;  %s179_s26 = sand.u32 (%p31_p3), 1, %s2604_s19  }
   0xd   : > { %s2412_s27 = sshll.u32 (%p31_p3), %s2608_s20, 4  ;;  %s1856_s28 = sshll.u32 (%p31_p3), %s179_s26, 6 }
   0xe   : > { %s184_s6 = scalar_lea.vmem (%p31_p3), %s3272_s0, %s2412_s27  ;;  %s181_s7 = scalar_lea.vmem (%p31_p3), [#allocation3], %s1856_s28 }
   0xf   : > { %v197_v0 = vld [vmem:[%s184_s6] sm:$0xff] (%p31_p3)  ;;  %v199_v1 = vld [vmem:[%s184_s6 + $0x8] sm:$0xff] (%p31_p3) }
  0x10   : > { %v201_v2 = vld [vmem:[%s184_s6 + $0x80] sm:$0xff] (%p31_p3)  ;;  %198 = vst [vmem:[%s181_s7] sm:$0xff] (%p31_p3), %v197_v0  ;;  %v203_v3 = vld [vmem:[%s184_s6 + $0x88] sm:$0xff] (%p31_p3) }
  0x11   : > { %200 = vst [vmem:[%s181_s7 + $0x8] sm:$0xff] %v199_v1  ;;  %v205_v4 = vld [vmem:[%s184_s6 + $0x100] sm:$0xff]  ;;  %v207_v5 = vld [vmem:[%s184_s6 + $0x108] sm:$0xff] }
  0x12   : > { %202 = vst [vmem:[%s181_s7 + $0x10] sm:$0xff] %v201_v2  ;;  %v209_v6 = vld [vmem:[%s184_s6 + $0x180] sm:$0xff]  ;;  %v211_v7 = vld [vmem:[%s184_s6 + $0x188] sm:$0xff] }
  0x13   : > { %204 = vst [vmem:[%s181_s7 + $0x18] sm:$0xff] %v203_v3 }
  0x14   : > { %206 = vst [vmem:[%s181_s7 + $0x20] sm:$0xff] %v205_v4 }
  0x15   : > { %208 = vst [vmem:[%s181_s7 + $0x28] sm:$0xff] %v207_v5 }
  0x16   : > { %210 = vst [vmem:[%s181_s7 + $0x30] sm:$0xff] %v209_v6 }
  0x17   : > { %212 = vst [vmem:[%s181_s7 + $0x38] sm:$0xff] %v211_v7 }
  0x18 PF: > { %p1859_p5 = scmp.ge.s32.totalorder %s2608_s20, 1  ;;  %p227_p6 = scmp.lt.s32.totalorder %s2608_s20, 9 }
  0x1a   : > { %p228_p7 = pnand %p1859_p5, %p227_p6 }
  0x1b   : > { %s234_s8 = sand.u32 (!%p228_p7), 1, %s2600_s18   ;;  %s1861_s9 = sshll.u32 (!%p228_p7), %s2658_s21, 6 }
  0x1c   : > { %231 = sbr.rel (%p228_p7) target bundleno = 439 (0x1b7), region = 59  ;;  %s1860_s10 = sshll.u32 (!%p228_p7), %s234_s8, 6 }
  0x1d   : > { %p264_p8 = scmp.lt.s32.totalorder (!%p228_p7), %s1861_s9, 511  ;;  %s2687_s15 = scalar_lea.vmem (!%p228_p7), [#allocation3], %s1860_s10 }
  0x1e   : > { %p1864_p9 = scmp.ne.s32.totalorder (!%p228_p7), %s2658_s21, 0 }
  0x21   : > { %s3282_s9 = smov (!%p264_p8, %s1861_s9), 511  ;;  %273 = sbr.rel (%p1864_p9) target bundleno = 55 (0x37), region = 67 }
  0x22   : > { %s2413_s11 = sshll.u32 %s3282_s9, 4 }
  0x23   : > { %s2685_s14 = scalar_lea.vmem %s3273_s1, %s2413_s11 }
  0x26   : > { %v2610_v8 = vmov 0.0  }
  0x27   : > { %274 = vst [vmem:[#allocation2 + $0x30] sm:$0xff] %v2610_v8 }
  0x28   : > { %275 = vst [vmem:[#allocation2] sm:$0xff] %v2610_v8 }
  0x29   : > { %276 = vst [vmem:[#allocation2 + $0x58] sm:$0xff] %v2610_v8 }
  0x2a   : > { %277 = vst [vmem:[#allocation2 + $0x18] sm:$0xff] %v2610_v8 }
  0x2b   : > { %278 = vst [vmem:[#allocation2 + $0x50] sm:$0xff] %v2610_v8 }
  0x2c   : > { %279 = vst [vmem:[#allocation2 + $0x68] sm:$0xff] %v2610_v8 }
  0x2d   : > { %280 = vst [vmem:[#allocation2 + $0x8] sm:$0xff] %v2610_v8 }
  0x2e   : > { %281 = vst [vmem:[#allocation2 + $0x48] sm:$0xff] %v2610_v8 }
  0x2f   : > { %282 = vst [vmem:[#allocation2 + $0x40] sm:$0xff] %v2610_v8 }
  0x30   : > { %283 = vst [vmem:[#allocation2 + $0x20] sm:$0xff] %v2610_v8 }
  0x31   : > { %284 = vst [vmem:[#allocation2 + $0x10] sm:$0xff] %v2610_v8 }
  0x32   : > { %285 = vst [vmem:[#allocation2 + $0x38] sm:$0xff] %v2610_v8 }
  0x33   : > { %286 = vst [vmem:[#allocation2 + $0x60] sm:$0xff] %v2610_v8 }
  0x34   : > { %287 = vst [vmem:[#allocation2 + $0x70] sm:$0xff] %v2610_v8 }
  0x35   : > { %288 = vst [vmem:[#allocation2 + $0x78] sm:$0xff] %v2610_v8 }
  0x36   : > { %289 = vst [vmem:[#allocation2 + $0x28] sm:$0xff] %v2610_v8 }
  0x37 PF: > { %v2011_v9 = vld [vmem:[%s2685_s14 + $0xe0] sm:$0xf]  ;;  %v2452_v10 = vld [vmem:[%s2685_s14 + $0xec] sm:$0xf0]  ;;  %p2409_p10 = scmp.ne.s32.totalorder %s2658_s21, 7 }
  0x38   : > { %v2139_v11 = vld [vmem:[%s2685_s14 + $0x1e0] sm:$0xf]  ;;  %v2012_v12 = vor.u32 %v2452_v10, %v2011_v9  ;;  %v2484_v13 = vld [vmem:[%s2685_s14 + $0x1ec] sm:$0xf0] }
  0x39   : > { %v2267_v14 = vld [vmem:[%s2685_s14 + $0x2e0] sm:$0xf]  ;;  %v2516_v15 = vld [vmem:[%s2685_s14 + $0x2ec] sm:$0xf0]  ;;  %v2140_v16 = vor.u32 %v2484_v13, %v2139_v11 }
  0x3a   : > { %v2268_v17 = vor.u32 %v2516_v15, %v2267_v14  ;;  %v2395_v18 = vld [vmem:[%s2685_s14 + $0x3e0] sm:$0xf]  ;;  %v2548_v19 = vld [vmem:[%s2685_s14 + $0x3ec] sm:$0xf0]  ;;  %1122 = vmatpush.bf16.msra.mxu0 %v2012_v12 }
  0x3b   : > { %v1995_v20 = vld [vmem:[%s2685_s14 + $0xc0] sm:$0xf]  ;;  %v2396_v21 = vor.u32 %v2548_v19, %v2395_v18  ;;  %v2448_v22 = vld [vmem:[%s2685_s14 + $0xcc] sm:$0xf0]  ;;  %1141 = vmatpush.bf16.msra.mxu1 %v2140_v16 }
  0x3c   : > { %v2123_v23 = vld [vmem:[%s2685_s14 + $0x1c0] sm:$0xf]  ;;  %v2480_v24 = vld [vmem:[%s2685_s14 + $0x1cc] sm:$0xf0]  ;;  %1160 = vmatpush.bf16.msra.mxu2 %v2268_v17  ;;  %v1996_v25 = vor.u32 %v2448_v22, %v1995_v20 }
  0x3d   : > { %v2124_v26 = vor.u32 %v2480_v24, %v2123_v23  ;;  %v2251_v27 = vld [vmem:[%s2685_s14 + $0x2c0] sm:$0xf]  ;;  %v2512_v28 = vld [vmem:[%s2685_s14 + $0x2cc] sm:$0xf0]  ;;  %1179 = vmatpush.bf16.msra.mxu3 %v2396_v21 }
  0x3e   : > { %v2379_v29 = vld [vmem:[%s2685_s14 + $0x3c0] sm:$0xf]  ;;  %v2252_v30 = vor.u32 %v2512_v28, %v2251_v27  ;;  %v2544_v31 = vld [vmem:[%s2685_s14 + $0x3cc] sm:$0xf0]  ;;  %1123 = vmatpush.bf16.msra.mxu0 %v1996_v25 }
  0x3f   : > { %v1979_v32 = vld [vmem:[%s2685_s14 + $0xa0] sm:$0xf]  ;;  %v2444_v33 = vld [vmem:[%s2685_s14 + $0xac] sm:$0xf0]  ;;  %v2380_v34 = vor.u32 %v2544_v31, %v2379_v29  ;;  %1142 = vmatpush.bf16.msra.mxu1 %v2124_v26 }
  0x40   : > { %v2107_v35 = vld [vmem:[%s2685_s14 + $0x1a0] sm:$0xf]  ;;  %v2476_v36 = vld [vmem:[%s2685_s14 + $0x1ac] sm:$0xf0]  ;;  %v1980_v38 = vor.u32 %v2444_v33, %v1979_v32  ;;  %1161 = vmatpush.bf16.msra.mxu2 %v2252_v30 }
  0x41   : > { %v2235_v37 = vld [vmem:[%s2685_s14 + $0x2a0] sm:$0xf]  ;;  %v2508_v39 = vld [vmem:[%s2685_s14 + $0x2ac] sm:$0xf0]  ;;  %v2108_v42 = vor.u32 %v2476_v36, %v2107_v35  ;;  %1180 = vmatpush.bf16.msra.mxu3 %v2380_v34 }
  0x42   : > { %v2363_v40 = vld [vmem:[%s2685_s14 + $0x3a0] sm:$0xf]  ;;  %v2540_v41 = vld [vmem:[%s2685_s14 + $0x3ac] sm:$0xf0]  ;;  %v2236_v43 = vor.u32 %v2508_v39, %v2235_v37  ;;  %1124 = vmatpush.bf16.msra.mxu0 %v1980_v38  ;;  %v2414_v39 = vld [vmem:[%s2687_s15 + $0x4] sm:$0xf] }
  0x43   : > { %v1963_v44 = vld [vmem:[%s2685_s14 + $0x80] sm:$0xf]  ;;  %v2440_v45 = vld [vmem:[%s2685_s14 + $0x8c] sm:$0xf0]  ;;  %v2364_v47 = vor.u32 %v2540_v41, %v2363_v40  ;;  %1143 = vmatpush.bf16.msra.mxu1 %v2108_v42  ;;  %v1869_v40 = vld [vmem:[%s2687_s15 + $0x10] sm:$0xf0] }
  0x44   : > { %v2091_v46 = vld [vmem:[%s2685_s14 + $0x180] sm:$0xf]  ;;  %v2472_v48 = vld [vmem:[%s2685_s14 + $0x18c] sm:$0xf0]  ;;  %v1964_v53 = vor.u32 %v2440_v45, %v1963_v44  ;;  %1162 = vmatpush.bf16.msra.mxu2 %v2236_v43  ;;  %v2514_v41 = vld [vmem:[%s2685_s14 + $0x2e4] sm:$0xf] }
  0x45   : > { %v2219_v49 = vld [vmem:[%s2685_s14 + $0x280] sm:$0xf]  ;;  %v2504_v50 = vld [vmem:[%s2685_s14 + $0x28c] sm:$0xf0]  ;;  %v2092_v54 = vor.u32 %v2472_v48, %v2091_v46  ;;  %1181 = vmatpush.bf16.msra.mxu3 %v2364_v47  ;;  %v2269_v42 = vld [vmem:[%s2685_s14 + $0x2f0] sm:$0xf0] }
  0x46   : > { %v2347_v51 = vld [vmem:[%s2685_s14 + $0x380] sm:$0xf]  ;;  %v2536_v52 = vld [vmem:[%s2685_s14 + $0x38c] sm:$0xf0]  ;;  %v2220_v55 = vor.u32 %v2504_v50, %v2219_v49  ;;  %1125 = vmatpush.bf16.msra.mxu0 %v1964_v53  ;;  %v1875_v44 = vld [vmem:[%s2687_s15 + $0x8] sm:$0xf]  ;;  %v2272_v53 = vor.u32 %v2514_v41, %v2269_v42 }
  0x47   : > { %v1947_v56 = vld [vmem:[%s2685_s14 + $0x60] sm:$0xf]  ;;  %v2436_v57 = vld [vmem:[%s2685_s14 + $0x6c] sm:$0xf0]  ;;  %v2348_v59 = vor.u32 %v2536_v52, %v2347_v51  ;;  %1144 = vmatpush.bf16.msra.mxu1 %v2092_v54  ;;  %v2482_v45 = vld [vmem:[%s2685_s14 + $0x1e4] sm:$0xf] }
  0x48   : > { %v2075_v58 = vld [vmem:[%s2685_s14 + $0x160] sm:$0xf]  ;;  %v2468_v60 = vld [vmem:[%s2685_s14 + $0x16c] sm:$0xf0]  ;;  %v1948_v1 = vor.u32 %v2436_v57, %v1947_v56  ;;  %1163 = vmatpush.bf16.msra.mxu2 %v2220_v55  ;;  %v2141_v46 = vld [vmem:[%s2685_s14 + $0x1f0] sm:$0xf0] }
  0x49   : > { %v2203_v61 = vld [vmem:[%s2685_s14 + $0x260] sm:$0xf]  ;;  %v2500_v62 = vld [vmem:[%s2685_s14 + $0x26c] sm:$0xf0]  ;;  %v2076_v2 = vor.u32 %v2468_v60, %v2075_v58  ;;  %1182 = vmatpush.bf16.msra.mxu3 %v2348_v59  ;;  %v2417_v49 = vld [vmem:[%s2687_s15 + $0x14] sm:$0xf0]  ;;  %v2144_v58 = vor.u32 %v2482_v45, %v2141_v46 }
  0x4a   : > { %v2331_v63 = vld [vmem:[%s2685_s14 + $0x360] sm:$0xf]  ;;  %v2532_v0 = vld [vmem:[%s2685_s14 + $0x36c] sm:$0xf0]  ;;  %v2204_v3 = vor.u32 %v2500_v62, %v2203_v61  ;;  %1126 = vmatpush.bf16.msra.mxu0 %v1948_v1  ;;  %v2415_v50 = vld [vmem:[%s2687_s15 + $0xc] sm:$0xf]  ;;  %v2774_v62 = vor.u32 %v2414_v39, %v1869_v40 }
  0x4b   : > { %v1931_v4 = vld [vmem:[%s2685_s14 + $0x40] sm:$0xf]  ;;  %v2432_v5 = vld [vmem:[%s2685_s14 + $0x4c] sm:$0xf0]  ;;  %v2332_v7 = vor.u32 %v2532_v0, %v2331_v63  ;;  %1145 = vmatpush.bf16.msra.mxu1 %v2076_v2  ;;  %v1877_v51 = vld [vmem:[%s2687_s15 + $0x18] sm:$0xf0]  ;;  %v2776_v63 = vor.u32 %v2417_v49, %v1875_v44 }
  0x4c   : > { %v2059_v6 = vld [vmem:[%s2685_s14 + $0x140] sm:$0xf]  ;;  %v2464_v8 = vld [vmem:[%s2685_s14 + $0x14c] sm:$0xf0]  ;;  %v1932_v13 = vor.u32 %v2432_v5, %v1931_v4  ;;  %1164 = vmatpush.bf16.msra.mxu2 %v2204_v3  ;;  %v2450_v54 = vld [vmem:[%s2685_s14 + $0xe4] sm:$0xf]  ;;  %v2780_v2 = vor.u32 %v2415_v50, %v1877_v51 }
  0x4d   : > { %v2187_v9 = vld [vmem:[%s2685_s14 + $0x240] sm:$0xf]  ;;  %v2496_v10 = vld [vmem:[%s2685_s14 + $0x24c] sm:$0xf0]  ;;  %v2060_v14 = vor.u32 %v2464_v8, %v2059_v6  ;;  %1183 = vmatpush.bf16.msra.mxu3 %v2332_v7  ;;  %v2013_v55 = vld [vmem:[%s2685_s14 + $0xf0] sm:$0xf0] }
  0x4e   : > { %v2315_v11 = vld [vmem:[%s2685_s14 + $0x340] sm:$0xf]  ;;  %v2528_v12 = vld [vmem:[%s2685_s14 + $0x34c] sm:$0xf0]  ;;  %v2188_v15 = vor.u32 %v2496_v10, %v2187_v9  ;;  %1127 = vmatpush.bf16.msra.mxu0 %v1932_v13  ;;  %v2546_v56 = vld [vmem:[%s2685_s14 + $0x3e4] sm:$0xf]  ;;  %v2016_v3 = vor.u32 %v2450_v54, %v2013_v55 }
  0x4f   : > { %v1915_v16 = vld [vmem:[%s2685_s14 + $0x20] sm:$0xf]  ;;  %v2428_v17 = vld [vmem:[%s2685_s14 + $0x2c] sm:$0xf0]  ;;  %v2316_v19 = vor.u32 %v2528_v12, %v2315_v11  ;;  %1146 = vmatpush.bf16.msra.mxu1 %v2060_v14  ;;  %v2397_v59 = vld [vmem:[%s2685_s14 + $0x3f0] sm:$0xf0] }
  0x50   : > { %v2043_v18 = vld [vmem:[%s2685_s14 + $0x120] sm:$0xf]  ;;  %v2460_v20 = vld [vmem:[%s2685_s14 + $0x12c] sm:$0xf0]  ;;  %v1916_v26 = vor.u32 %v2428_v17, %v1915_v16  ;;  %1165 = vmatpush.bf16.msra.mxu2 %v2188_v15  ;;  %v2510_v60 = vld [vmem:[%s2685_s14 + $0x2c4] sm:$0xf]  ;;  %v2400_v4 = vor.u32 %v2546_v56, %v2397_v59 }
  0x51   : > { %v2171_v21 = vld [vmem:[%s2685_s14 + $0x220] sm:$0xf]  ;;  %v2492_v22 = vld [vmem:[%s2685_s14 + $0x22c] sm:$0xf0]  ;;  %v2044_v30 = vor.u32 %v2460_v20, %v2043_v18  ;;  %1184 = vmatpush.bf16.msra.mxu3 %v2316_v19  ;;  %v2253_v61 = vld [vmem:[%s2685_s14 + $0x2d0] sm:$0xf0] }
  0x52   : > { %v2299_v23 = vld [vmem:[%s2685_s14 + $0x320] sm:$0xf]  ;;  %v2524_v24 = vld [vmem:[%s2685_s14 + $0x32c] sm:$0xf0]  ;;  %v2172_v31 = vor.u32 %v2492_v22, %v2171_v21  ;;  %1128 = vmatpush.bf16.msra.mxu0 %v1916_v26  ;;  %v2478_v0 = vld [vmem:[%s2685_s14 + $0x1c4] sm:$0xf]  ;;  %v2256_v5 = vor.u32 %v2510_v60, %v2253_v61 }
  0x53   : > { %v1899_v25 = vld [vmem:[%s2685_s14] sm:$0xf]  ;;  %v2424_v27 = vld [vmem:[%s2685_s14 + $0xc] sm:$0xf0]  ;;  %v2300_v35 = vor.u32 %v2524_v24, %v2299_v23  ;;  %1147 = vmatpush.bf16.msra.mxu1 %v2044_v30  ;;  %v2125_v1 = vld [vmem:[%s2685_s14 + $0x1d0] sm:$0xf0] }
  0x54   : > { %v2027_v28 = vld [vmem:[%s2685_s14 + $0x100] sm:$0xf]  ;;  %v2456_v29 = vld [vmem:[%s2685_s14 + $0x10c] sm:$0xf0]  ;;  %v1900_v43 = vor.u32 %v2424_v27, %v1899_v25  ;;  %1166 = vmatpush.bf16.msra.mxu2 %v2172_v31  ;;  %v2446_v6 = vld [vmem:[%s2685_s14 + $0xc4] sm:$0xf]  ;;  %v2128_v9 = vor.u32 %v2478_v0, %v2125_v1 }
  0x55   : > { %v2155_v32 = vld [vmem:[%s2685_s14 + $0x200] sm:$0xf]  ;;  %v2488_v33 = vld [vmem:[%s2685_s14 + $0x20c] sm:$0xf0]  ;;  %v2028_v47 = vor.u32 %v2456_v29, %v2027_v28  ;;  %1185 = vmatpush.bf16.msra.mxu3 %v2300_v35  ;;  %v1997_v7 = vld [vmem:[%s2685_s14 + $0xd0] sm:$0xf0] }
  0x56   : > { %v2283_v34 = vld [vmem:[%s2685_s14 + $0x300] sm:$0xf]  ;;  %v2520_v36 = vld [vmem:[%s2685_s14 + $0x30c] sm:$0xf0]  ;;  %v2156_v48 = vor.u32 %v2488_v33, %v2155_v32  ;;  %1129 = vmatpush.bf16.msra.mxu0 %v1900_v43  ;;  %v2542_v8 = vld [vmem:[%s2685_s14 + $0x3c4] sm:$0xf]  ;;  %v2000_v15 = vor.u32 %v2446_v6, %v1997_v7 }
  0x57   : > { %v1867_v37 = vld [vmem:[%s2687_s15] sm:$0xf]  ;;  %v2416_v38 = vld [vmem:[%s2687_s15 + $0xc] sm:$0xf0]  ;;  %v2284_v52 = vor.u32 %v2520_v36, %v2283_v34  ;;  %1148 = vmatpush.bf16.msra.mxu1 %v2028_v47  ;;  %v2381_v10 = vld [vmem:[%s2685_s14 + $0x3d0] sm:$0xf0] }
  0x58   : > { %v2769_v57 = vor.u32 %v2416_v38, %v1867_v37  ;;  %1167 = vmatpush.bf16.msra.mxu2 %v2156_v48  ;;  %v2506_v11 = vld [vmem:[%s2685_s14 + $0x2a4] sm:$0xf]  ;;  %v2237_v12 = vld [vmem:[%s2685_s14 + $0x2b0] sm:$0xf0]  ;;  %v2384_v16 = vor.u32 %v2542_v8, %v2381_v10  ;;  %v1883_v34 = vld [vmem:[%s2687_s15 + $0x20] sm:$0xf] }
  0x59   : > { %1186 = vmatpush.bf16.msra.mxu3 %v2284_v52  ;;  %v2474_v13 = vld [vmem:[%s2685_s14 + $0x1a4] sm:$0xf]  ;;  %v2109_v14 = vld [vmem:[%s2685_s14 + $0x1b0] sm:$0xf0]  ;;  %v2240_v17 = vor.u32 %v2506_v11, %v2237_v12  ;;  %v2420_v35 = vld [vmem:[%s2687_s15 + $0x2c] sm:$0xf0] }
  0x5a   : > { %1130 = vmatmul.bf16.vlgmr.msra.gmra.mxu0 %v2769_v57  ;;  %1149 = vmatmul.bf16.vlgmr.msra.gmra.mxu1 %v2774_v62  ;;  %v2442_v18 = vld [vmem:[%s2685_s14 + $0xa4] sm:$0xf]  ;;  %v1981_v19 = vld [vmem:[%s2685_s14 + $0xb0] sm:$0xf0]  ;;  %v2112_v21 = vor.u32 %v2474_v13, %v2109_v14  ;;  %v1891_v41 = vld [vmem:[%s2687_s15 + $0x28] sm:$0xf] }
  0x5b   : > { %1217 = vmatpush.bf16.msrb.mxu1 %v2144_v58  ;;  %1168 = vmatmul.bf16.vlgmr.msra.gmra.mxu2 %v2776_v63  ;;  %v2538_v20 = vld [vmem:[%s2685_s14 + $0x3a4] sm:$0xf]  ;;  %v2365_v22 = vld [vmem:[%s2685_s14 + $0x3b0] sm:$0xf0]  ;;  %v1984_v27 = vor.u32 %v2442_v18, %v1981_v19  ;;  %v2421_v45 = vld [vmem:[%s2687_s15 + $0x34] sm:$0xf0] }
  0x5c   : > { %1236 = vmatpush.bf16.msrb.mxu2 %v2272_v53  ;;  %1187 = vmatmul.bf16.vlgmr.msra.gmra.mxu3 %v2780_v2  ;;  %v2502_v23 = vld [vmem:[%s2685_s14 + $0x284] sm:$0xf]  ;;  %v2221_v24 = vld [vmem:[%s2685_s14 + $0x290] sm:$0xf0]  ;;  %v2368_v31 = vor.u32 %v2538_v20, %v2365_v22  ;;  %v2419_v46 = vld [vmem:[%s2687_s15 + $0x2c] sm:$0xf]  ;;  %v2821_v53 = vor.u32 %v2420_v35, %v1883_v34  ;;  %v2828_v60 = vor.u32 %v2421_v45, %v1891_v41 }
  0x5d   : > { %1198 = vmatpush.bf16.msrb.mxu0 %v2016_v3  ;;  %1255 = vmatpush.bf16.msrb.mxu3 %v2400_v4  ;;  %v2470_v25 = vld [vmem:[%s2685_s14 + $0x184] sm:$0xf]  ;;  %v2093_v26 = vld [vmem:[%s2685_s14 + $0x190] sm:$0xf0]  ;;  %v2224_v32 = vor.u32 %v2502_v23, %v2221_v24  ;;  %v1893_v47 = vld [vmem:[%s2687_s15 + $0x38] sm:$0xf0] }
  0x5e   : > { %v2438_v28 = vld [vmem:[%s2685_s14 + $0x84] sm:$0xf]  ;;  %v1965_v29 = vld [vmem:[%s2685_s14 + $0x90] sm:$0xf0]  ;;  %v2096_v36 = vor.u32 %v2470_v25, %v2093_v26  ;;  %v2832_v1 = vor.u32 %v2419_v46, %v1893_v47  ;;  %v2453_v41 = vld [vmem:[%s2685_s14 + $0xf4] sm:$0xf0] }
  0x5f   : > { %1218 = vmatpush.bf16.msrb.mxu1 %v2128_v9  ;;  %v2534_v30 = vld [vmem:[%s2685_s14 + $0x384] sm:$0xf]  ;;  %v2349_v33 = vld [vmem:[%s2685_s14 + $0x390] sm:$0xf0]  ;;  %v1968_v44 = vor.u32 %v2438_v28, %v1965_v29  ;;  %v2517_v28 = vld [vmem:[%s2685_s14 + $0x2f4] sm:$0xf0] }
  0x60   : > { %1237 = vmatpush.bf16.msrb.mxu2 %v2256_v5  ;;  %v2418_v37 = vld [vmem:[%s2687_s15 + $0x24] sm:$0xf]  ;;  %v1885_v38 = vld [vmem:[%s2687_s15 + $0x30] sm:$0xf0]  ;;  %v2352_v48 = vor.u32 %v2534_v30, %v2349_v33  ;;  %v2259_v45 = vld [vmem:[%s2685_s14 + $0x2c8] sm:$0xf] }
  0x61   : > { %1199 = vmatpush.bf16.msrb.mxu0 %v2000_v15  ;;  %1256 = vmatpush.bf16.msrb.mxu3 %v2384_v16  ;;  %v2498_v39 = vld [vmem:[%s2685_s14 + $0x264] sm:$0xf]  ;;  %v2205_v40 = vld [vmem:[%s2685_s14 + $0x270] sm:$0xf0]  ;;  %v2826_v59 = vor.u32 %v2418_v37, %v1885_v38  ;;  %v2513_v46 = vld [vmem:[%s2685_s14 + $0x2d4] sm:$0xf0] }
  0x62   : > { %v2466_v42 = vld [vmem:[%s2685_s14 + $0x164] sm:$0xf]  ;;  %v2077_v43 = vld [vmem:[%s2685_s14 + $0x170] sm:$0xf0]  ;;  %v2208_v49 = vor.u32 %v2498_v39, %v2205_v40  ;;  %v2019_v40 = vld [vmem:[%s2685_s14 + $0xe8] sm:$0xf] }
  0x63   : > { %1219 = vmatpush.bf16.msrb.mxu1 %v2112_v21  ;;  %v2434_v50 = vld [vmem:[%s2685_s14 + $0x64] sm:$0xf]  ;;  %v1949_v51 = vld [vmem:[%s2685_s14 + $0x70] sm:$0xf0]  ;;  %v2080_v54 = vor.u32 %v2466_v42, %v2077_v43  ;;  %v2403_v42 = vld [vmem:[%s2685_s14 + $0x3e8] sm:$0xf] }
  0x64   : > { %1238 = vmatpush.bf16.msrb.mxu2 %v2240_v17  ;;  %v2530_v52 = vld [vmem:[%s2685_s14 + $0x364] sm:$0xf]  ;;  %v2333_v55 = vld [vmem:[%s2685_s14 + $0x370] sm:$0xf0]  ;;  %v1952_v3 = vor.u32 %v2434_v50, %v1949_v51  ;;  %v2003_v50 = vld [vmem:[%s2685_s14 + $0xc8] sm:$0xf] }
  0x65   : > { %1200 = vmatpush.bf16.msrb.mxu0 %v1984_v27  ;;  %1257 = vmatpush.bf16.msrb.mxu3 %v2368_v31  ;;  %v2494_v56 = vld [vmem:[%s2685_s14 + $0x244] sm:$0xf]  ;;  %v2189_v58 = vld [vmem:[%s2685_s14 + $0x250] sm:$0xf0]  ;;  %v2336_v4 = vor.u32 %v2530_v52, %v2333_v55  ;;  %v2275_v27 = vld [vmem:[%s2685_s14 + $0x2e8] sm:$0xf] }
  0x66   : > { %v2462_v61 = vld [vmem:[%s2685_s14 + $0x144] sm:$0xf]  ;;  %v2061_v0 = vld [vmem:[%s2685_s14 + $0x150] sm:$0xf0]  ;;  %v2192_v5 = vor.u32 %v2494_v56, %v2189_v58  ;;  %v2147_v31 = vld [vmem:[%s2685_s14 + $0x1e8] sm:$0xf]  ;;  %v2276_v39 = vor.u32 %v2517_v28, %v2275_v27 }
  0x67   : > { %1220 = vmatpush.bf16.msrb.mxu1 %v2096_v36  ;;  %v2430_v6 = vld [vmem:[%s2685_s14 + $0x44] sm:$0xf]  ;;  %v1933_v7 = vld [vmem:[%s2685_s14 + $0x50] sm:$0xf0]  ;;  %v2064_v9 = vor.u32 %v2462_v61, %v2061_v0  ;;  %v2449_v51 = vld [vmem:[%s2685_s14 + $0xd4] sm:$0xf0] }
  0x68   : > { %1239 = vmatpush.bf16.msrb.mxu2 %v2224_v32  ;;  %v2526_v8 = vld [vmem:[%s2685_s14 + $0x344] sm:$0xf]  ;;  %v2317_v10 = vld [vmem:[%s2685_s14 + $0x350] sm:$0xf0]  ;;  %v1936_v15 = vor.u32 %v2430_v6, %v1933_v7  ;;  %v2485_v32 = vld [vmem:[%s2685_s14 + $0x1f4] sm:$0xf0] }
  0x69   : > { %1201 = vmatpush.bf16.msrb.mxu0 %v1968_v44  ;;  %1258 = vmatpush.bf16.msrb.mxu3 %v2352_v48  ;;  %v2490_v11 = vld [vmem:[%s2685_s14 + $0x224] sm:$0xf]  ;;  %v2173_v12 = vld [vmem:[%s2685_s14 + $0x230] sm:$0xf0]  ;;  %v2320_v17 = vor.u32 %v2526_v8, %v2317_v10  ;;  %v2148_v43 = vor.u32 %v2485_v32, %v2147_v31  ;;  %v2549_v44 = vld [vmem:[%s2685_s14 + $0x3f4] sm:$0xf0] }
  0x6a   : > { %1135 = vmatmul.bf16.gmra.mxu0 %v2821_v53  ;;  %1154 = vmatmul.bf16.gmra.mxu1 %v2826_v59  ;;  %v2458_v13 = vld [vmem:[%s2685_s14 + $0x124] sm:$0xf]  ;;  %v2045_v14 = vld [vmem:[%s2685_s14 + $0x130] sm:$0xf0]  ;;  %v2176_v18 = vor.u32 %v2490_v11, %v2173_v12  ;;  %v2404_v52 = vor.u32 %v2549_v44, %v2403_v42  ;;  %v2131_v55 = vld [vmem:[%s2685_s14 + $0x1c8] sm:$0xf] }
  0x6b   : > { %1221 = vmatpush.bf16.msrb.mxu1 %v2080_v54  ;;  %1173 = vmatmul.bf16.gmra.mxu2 %v2828_v60  ;;  %v2426_v16 = vld [vmem:[%s2685_s14 + $0x24] sm:$0xf]  ;;  %v1917_v19 = vld [vmem:[%s2685_s14 + $0x30] sm:$0xf0]  ;;  %v2048_v22 = vor.u32 %v2458_v13, %v2045_v14  ;;  %v2260_v54 = vor.u32 %v2513_v46, %v2259_v45  ;;  %v2481_v56 = vld [vmem:[%s2685_s14 + $0x1d4] sm:$0xf0] }
  0x6c   : > { %1240 = vmatpush.bf16.msrb.mxu2 %v2208_v49  ;;  %1192 = vmatmul.bf16.gmra.mxu3 %v2832_v1  ;;  %v2522_v20 = vld [vmem:[%s2685_s14 + $0x324] sm:$0xf]  ;;  %v2301_v21 = vld [vmem:[%s2685_s14 + $0x330] sm:$0xf0]  ;;  %v1920_v29 = vor.u32 %v2426_v16, %v1917_v19  ;;  %v2020_v49 = vor.u32 %v2453_v41, %v2019_v40  ;;  %v2387_v58 = vld [vmem:[%s2685_s14 + $0x3c8] sm:$0xf] }
  0x6d   : > { %1202 = vmatpush.bf16.msrb.mxu0 %v1952_v3  ;;  %1259 = vmatpush.bf16.msrb.mxu3 %v2336_v4  ;;  %v2486_v23 = vld [vmem:[%s2685_s14 + $0x204] sm:$0xf]  ;;  %v2157_v24 = vld [vmem:[%s2685_s14 + $0x210] sm:$0xf0]  ;;  %v2304_v33 = vor.u32 %v2522_v20, %v2301_v21  ;;  %v2545_v61 = vld [vmem:[%s2685_s14 + $0x3d4] sm:$0xf0]  ;;  %v2004_v4 = vor.u32 %v2449_v51, %v2003_v50 }
  0x6e   : > { %v2454_v25 = vld [vmem:[%s2685_s14 + $0x104] sm:$0xf]  ;;  %v2029_v26 = vld [vmem:[%s2685_s14 + $0x110] sm:$0xf0]  ;;  %v2160_v34 = vor.u32 %v2486_v23, %v2157_v24  ;;  %v2243_v0 = vld [vmem:[%s2685_s14 + $0x2a8] sm:$0xf]  ;;  %v2388_v8 = vor.u32 %v2545_v61, %v2387_v58 }
  0x6f   : > { %1222 = vmatpush.bf16.msrb.mxu1 %v2064_v9  ;;  %v2422_v30 = vld [vmem:[%s2685_s14 + $0x4] sm:$0xf]  ;;  %v1901_v35 = vld [vmem:[%s2685_s14 + $0x10] sm:$0xf0]  ;;  %v2032_v38 = vor.u32 %v2454_v25, %v2029_v26  ;;  %v2509_v3 = vld [vmem:[%s2685_s14 + $0x2b4] sm:$0xf0] }
  0x70   : > { %1241 = vmatpush.bf16.msrb.mxu2 %v2192_v5  ;;  %v2518_v36 = vld [vmem:[%s2685_s14 + $0x304] sm:$0xf]  ;;  %v2285_v37 = vld [vmem:[%s2685_s14 + $0x310] sm:$0xf0]  ;;  %v1904_v47 = vor.u32 %v2422_v30, %v1901_v35  ;;  %v2132_v5 = vor.u32 %v2481_v56, %v2131_v55  ;;  %v1987_v6 = vld [vmem:[%s2685_s14 + $0xa8] sm:$0xf]  ;;  %v2244_v9 = vor.u32 %v2509_v3, %v2243_v0 }
  0x71   : > { %1203 = vmatpush.bf16.msrb.mxu0 %v1936_v15  ;;  %1260 = vmatpush.bf16.msrb.mxu3 %v2320_v17  ;;  %v2288_v48 = vor.u32 %v2518_v36, %v2285_v37  ;;  %v2445_v7 = vld [vmem:[%s2685_s14 + $0xb4] sm:$0xf0]  ;;  %v2115_v10 = vld [vmem:[%s2685_s14 + $0x1a8] sm:$0xf] }
  0x72   : > { %v2477_v11 = vld [vmem:[%s2685_s14 + $0x1b4] sm:$0xf0]  ;;  %v2371_v12 = vld [vmem:[%s2685_s14 + $0x3a8] sm:$0xf]  ;;  %v1988_v16 = vor.u32 %v2445_v7, %v1987_v6 }
  0x73   : > { %1223 = vmatpush.bf16.msrb.mxu1 %v2048_v22  ;;  %v2541_v13 = vld [vmem:[%s2685_s14 + $0x3b4] sm:$0xf0]  ;;  %v2227_v14 = vld [vmem:[%s2685_s14 + $0x288] sm:$0xf]  ;;  %v2116_v17 = vor.u32 %v2477_v11, %v2115_v10 }
  0x74   : > { %1242 = vmatpush.bf16.msrb.mxu2 %v2176_v18  ;;  %v2505_v15 = vld [vmem:[%s2685_s14 + $0x294] sm:$0xf0]  ;;  %v1971_v18 = vld [vmem:[%s2685_s14 + $0x88] sm:$0xf]  ;;  %v2372_v20 = vor.u32 %v2541_v13, %v2371_v12 }
  0x75   : > { %1204 = vmatpush.bf16.msrb.mxu0 %v1920_v29  ;;  %1261 = vmatpush.bf16.msrb.mxu3 %v2304_v33  ;;  %v2441_v19 = vld [vmem:[%s2685_s14 + $0x94] sm:$0xf0]  ;;  %v2228_v21 = vor.u32 %v2505_v15, %v2227_v14  ;;  %v2099_v22 = vld [vmem:[%s2685_s14 + $0x188] sm:$0xf] }
  0x76   : > { %v2473_v23 = vld [vmem:[%s2685_s14 + $0x194] sm:$0xf0]  ;;  %v2355_v24 = vld [vmem:[%s2685_s14 + $0x388] sm:$0xf]  ;;  %v1972_v28 = vor.u32 %v2441_v19, %v1971_v18 }
  0x77   : > { %1224 = vmatpush.bf16.msrb.mxu1 %v2032_v38  ;;  %v2537_v25 = vld [vmem:[%s2685_s14 + $0x394] sm:$0xf0]  ;;  %v2211_v26 = vld [vmem:[%s2685_s14 + $0x268] sm:$0xf]  ;;  %v2100_v29 = vor.u32 %v2473_v23, %v2099_v22  ;;  %v2021_v22 = vld [vmem:[%s2685_s14 + $0xf8] sm:$0xf0] }
  0x78   : > { %1243 = vmatpush.bf16.msrb.mxu2 %v2160_v34  ;;  %v2501_v27 = vld [vmem:[%s2685_s14 + $0x274] sm:$0xf0]  ;;  %v1955_v30 = vld [vmem:[%s2685_s14 + $0x68] sm:$0xf]  ;;  %v2356_v32 = vor.u32 %v2537_v25, %v2355_v24  ;;  %v2483_v23 = vld [vmem:[%s2685_s14 + $0x1ec] sm:$0xf] }
  0x79   : > { %1205 = vmatpush.bf16.msrb.mxu0 %v1904_v47  ;;  %1262 = vmatpush.bf16.msrb.mxu3 %v2288_v48  ;;  %v2437_v31 = vld [vmem:[%s2685_s14 + $0x74] sm:$0xf0]  ;;  %v2212_v33 = vor.u32 %v2501_v27, %v2211_v26  ;;  %v2083_v34 = vld [vmem:[%s2685_s14 + $0x168] sm:$0xf]  ;;  %v2149_v24 = vld [vmem:[%s2685_s14 + $0x1f8] sm:$0xf0] }
  0x7a   : > { %1225 = vmatmul.bf16.vlgmr.msrb.gmra.mxu1 %v2774_v62  ;;  %v2469_v35 = vld [vmem:[%s2685_s14 + $0x174] sm:$0xf0]  ;;  %v2339_v36 = vld [vmem:[%s2685_s14 + $0x368] sm:$0xf]  ;;  %v1956_v40 = vor.u32 %v2437_v31, %v1955_v30  ;;  %v2547_v25 = vld [vmem:[%s2685_s14 + $0x3ec] sm:$0xf] }
  0x7b   : > { %1293 = vmatpush.bf16.msra.mxu1 %v2148_v43  ;;  %1244 = vmatmul.bf16.vlgmr.msrb.gmra.mxu2 %v2776_v63  ;;  %v2533_v37 = vld [vmem:[%s2685_s14 + $0x374] sm:$0xf0]  ;;  %v2195_v38 = vld [vmem:[%s2685_s14 + $0x248] sm:$0xf]  ;;  %v2084_v41 = vor.u32 %v2469_v35, %v2083_v34  ;;  %v2405_v26 = vld [vmem:[%s2685_s14 + $0x3f8] sm:$0xf0] }
  0x7c   : > { %1312 = vmatpush.bf16.msra.mxu2 %v2276_v39  ;;  %1206 = vmatmul.bf16.vlgmr.msrb.gmra.mxu0 %v2769_v57  ;;  %v2497_v39 = vld [vmem:[%s2685_s14 + $0x254] sm:$0xf0]  ;;  %v1939_v42 = vld [vmem:[%s2685_s14 + $0x48] sm:$0xf]  ;;  %v2340_v44 = vor.u32 %v2533_v37, %v2339_v36  ;;  %v2261_v30 = vld [vmem:[%s2685_s14 + $0x2d8] sm:$0xf0]  ;;  %v2408_v34 = vor.u32 %v2547_v25, %v2405_v26 }
  0x7d   : > { %1274 = vmatpush.bf16.msra.mxu0 %v2020_v49  ;;  %1331 = vmatpush.bf16.msra.mxu3 %v2404_v52  ;;  %v2433_v43 = vld [vmem:[%s2685_s14 + $0x54] sm:$0xf0]  ;;  %v2196_v45 = vor.u32 %v2497_v39, %v2195_v38  ;;  %v2067_v46 = vld [vmem:[%s2685_s14 + $0x148] sm:$0xf]  ;;  %v2447_v35 = vld [vmem:[%s2685_s14 + $0xcc] sm:$0xf] }
  0x7e   : > { %1263 = vmatmul.bf16.vlgmr.msrb.gmra.mxu3 %v2780_v2  ;;  %v2465_v47 = vld [vmem:[%s2685_s14 + $0x154] sm:$0xf0]  ;;  %v2323_v48 = vld [vmem:[%s2685_s14 + $0x348] sm:$0xf]  ;;  %v1940_v52 = vor.u32 %v2433_v43, %v1939_v42  ;;  %v2005_v36 = vld [vmem:[%s2685_s14 + $0xd8] sm:$0xf0] }
  0x7f   : > { %1294 = vmatpush.bf16.msra.mxu1 %v2132_v5  ;;  %v2529_v49 = vld [vmem:[%s2685_s14 + $0x354] sm:$0xf0]  ;;  %v2179_v50 = vld [vmem:[%s2685_s14 + $0x228] sm:$0xf]  ;;  %v2479_v38 = vld [vmem:[%s2685_s14 + $0x1cc] sm:$0xf] }
  0x80   : > { %1313 = vmatpush.bf16.msra.mxu2 %v2260_v54  ;;  %v2493_v51 = vld [vmem:[%s2685_s14 + $0x234] sm:$0xf0]  ;;  %v2068_v54 = vor.u32 %v2465_v47, %v2067_v46  ;;  %v1923_v55 = vld [vmem:[%s2685_s14 + $0x28] sm:$0xf]  ;;  %v2324_v58 = vor.u32 %v2529_v49, %v2323_v48  ;;  %v2133_v39 = vld [vmem:[%s2685_s14 + $0x1d8] sm:$0xf0] }
  0x81   : > { %1275 = vmatpush.bf16.msra.mxu0 %v2004_v4  ;;  %1332 = vmatpush.bf16.msra.mxu3 %v2388_v8  ;;  %v2429_v56 = vld [vmem:[%s2685_s14 + $0x34] sm:$0xf0]  ;;  %v2180_v61 = vor.u32 %v2493_v51, %v2179_v50  ;;  %v2051_v0 = vld [vmem:[%s2685_s14 + $0x128] sm:$0xf]  ;;  %v2515_v8 = vld [vmem:[%s2685_s14 + $0x2ec] sm:$0xf]  ;;  %v2136_v47 = vor.u32 %v2479_v38, %v2133_v39 }
  0x82   : > { %v2461_v3 = vld [vmem:[%s2685_s14 + $0x134] sm:$0xf0]  ;;  %v2307_v4 = vld [vmem:[%s2685_s14 + $0x328] sm:$0xf]  ;;  %v1924_v10 = vor.u32 %v2429_v56, %v1923_v55  ;;  %v2389_v42 = vld [vmem:[%s2685_s14 + $0x3d8] sm:$0xf0] }
  0x83   : > { %1295 = vmatpush.bf16.msra.mxu1 %v2116_v17  ;;  %v2525_v5 = vld [vmem:[%s2685_s14 + $0x334] sm:$0xf0]  ;;  %v2163_v6 = vld [vmem:[%s2685_s14 + $0x208] sm:$0xf]  ;;  %v2052_v11 = vor.u32 %v2461_v3, %v2051_v0  ;;  %v2507_v43 = vld [vmem:[%s2685_s14 + $0x2ac] sm:$0xf] }
  0x84   : > { %1314 = vmatpush.bf16.msra.mxu2 %v2244_v9  ;;  %v2489_v7 = vld [vmem:[%s2685_s14 + $0x214] sm:$0xf0]  ;;  %v2277_v9 = vld [vmem:[%s2685_s14 + $0x2f8] sm:$0xf0]  ;;  %v1907_v12 = vld [vmem:[%s2685_s14 + $0x8] sm:$0xf]  ;;  %v2308_v15 = vor.u32 %v2525_v5, %v2307_v4 }
  0x85   : > { %1276 = vmatpush.bf16.msra.mxu0 %v1988_v16  ;;  %1333 = vmatpush.bf16.msra.mxu3 %v2372_v20  ;;  %v2425_v13 = vld [vmem:[%s2685_s14 + $0x14] sm:$0xf0]  ;;  %v2035_v14 = vld [vmem:[%s2685_s14 + $0x108] sm:$0xf]  ;;  %v2164_v16 = vor.u32 %v2489_v7, %v2163_v6  ;;  %v2280_v20 = vor.u32 %v2515_v8, %v2277_v9  ;;  %v1989_v46 = vld [vmem:[%s2685_s14 + $0xb8] sm:$0xf0] }
  0x86   : > { %v2457_v17 = vld [vmem:[%s2685_s14 + $0x114] sm:$0xf0]  ;;  %v2291_v18 = vld [vmem:[%s2685_s14 + $0x308] sm:$0xf]  ;;  %v1908_v27 = vor.u32 %v2425_v13, %v1907_v12  ;;  %v2475_v49 = vld [vmem:[%s2685_s14 + $0x1ac] sm:$0xf] }
  0x87   : > { %1296 = vmatpush.bf16.msra.mxu1 %v2100_v29  ;;  %v2521_v19 = vld [vmem:[%s2685_s14 + $0x314] sm:$0xf0]  ;;  %v2511_v29 = vld [vmem:[%s2685_s14 + $0x2cc] sm:$0xf]  ;;  %v2117_v50 = vld [vmem:[%s2685_s14 + $0x1b8] sm:$0xf0] }
  0x88   : > { %1315 = vmatpush.bf16.msra.mxu2 %v2228_v21  ;;  %v2451_v21 = vld [vmem:[%s2685_s14 + $0xec] sm:$0xf]  ;;  %v2292_v31 = vor.u32 %v2521_v19, %v2291_v18  ;;  %v2264_v37 = vor.u32 %v2511_v29, %v2261_v30  ;;  %v2373_v55 = vld [vmem:[%s2685_s14 + $0x3b8] sm:$0xf0]  ;;  %v2120_v3 = vor.u32 %v2475_v49, %v2117_v50 }
  0x89   : > { %1277 = vmatpush.bf16.msra.mxu0 %v1972_v28  ;;  %1334 = vmatpush.bf16.msra.mxu3 %v2356_v32  ;;  %v2036_v28 = vor.u32 %v2457_v17, %v2035_v14  ;;  %v2024_v32 = vor.u32 %v2451_v21, %v2021_v22  ;;  %v2503_v56 = vld [vmem:[%s2685_s14 + $0x28c] sm:$0xf]  ;;  %v1973_v0 = vld [vmem:[%s2685_s14 + $0x98] sm:$0xf0] }
  0x8a   : > { %1230 = vmatmul.bf16.gmra.mxu1 %v2826_v59  ;;  %v2471_v5 = vld [vmem:[%s2685_s14 + $0x18c] sm:$0xf]  ;;  %v2101_v6 = vld [vmem:[%s2685_s14 + $0x198] sm:$0xf0] }
  0x8b   : > { %1297 = vmatpush.bf16.msra.mxu1 %v2084_v41  ;;  %1249 = vmatmul.bf16.gmra.mxu2 %v2828_v60  ;;  %v2543_v41 = vld [vmem:[%s2685_s14 + $0x3cc] sm:$0xf]  ;;  %v2213_v12 = vld [vmem:[%s2685_s14 + $0x278] sm:$0xf0] }
  0x8c   : > { %1316 = vmatpush.bf16.msra.mxu2 %v2212_v33  ;;  %1211 = vmatmul.bf16.gmra.mxu0 %v2821_v53  ;;  %v2152_v33 = vor.u32 %v2483_v23, %v2149_v24  ;;  %v2392_v48 = vor.u32 %v2543_v41, %v2389_v42  ;;  %v2535_v9 = vld [vmem:[%s2685_s14 + $0x38c] sm:$0xf]  ;;  %v1957_v14 = vld [vmem:[%s2685_s14 + $0x78] sm:$0xf0] }
  0x8d   : > { %1278 = vmatpush.bf16.msra.mxu0 %v1956_v40  ;;  %1335 = vmatpush.bf16.msra.mxu3 %v2340_v44  ;;  %v2008_v40 = vor.u32 %v2447_v35, %v2005_v36  ;;  %v2245_v44 = vld [vmem:[%s2685_s14 + $0x2b8] sm:$0xf0]  ;;  %v2435_v13 = vld [vmem:[%s2685_s14 + $0x6c] sm:$0xf] }
  0x8e   : > { %1268 = vmatmul.bf16.gmra.mxu3 %v2832_v1  ;;  %v2248_v51 = vor.u32 %v2507_v43, %v2245_v44  ;;  %v2467_v17 = vld [vmem:[%s2685_s14 + $0x16c] sm:$0xf]  ;;  %v2085_v18 = vld [vmem:[%s2685_s14 + $0x178] sm:$0xf0] }
  0x8f   : > { %1298 = vmatpush.bf16.msra.mxu1 %v2068_v54  ;;  %v2539_v54 = vld [vmem:[%s2685_s14 + $0x3ac] sm:$0xf]  ;;  %v2341_v22 = vld [vmem:[%s2685_s14 + $0x378] sm:$0xf0] }
  0x90   : > { %1317 = vmatpush.bf16.msra.mxu2 %v2196_v45  ;;  %v2443_v45 = vld [vmem:[%s2685_s14 + $0xac] sm:$0xf]  ;;  %v2376_v4 = vor.u32 %v2539_v54, %v2373_v55  ;;  %v2197_v24 = vld [vmem:[%s2685_s14 + $0x258] sm:$0xf0] }
  0x91   : > { %1279 = vmatpush.bf16.msra.mxu0 %v1940_v52  ;;  %1336 = vmatpush.bf16.msra.mxu3 %v2324_v58  ;;  %v1992_v52 = vor.u32 %v2443_v45, %v1989_v46  ;;  %v2229_v58 = vld [vmem:[%s2685_s14 + $0x298] sm:$0xf0]  ;;  %v2531_v21 = vld [vmem:[%s2685_s14 + $0x36c] sm:$0xf] }
  0x92   : > { %v2232_v7 = vor.u32 %v2503_v56, %v2229_v58  ;;  %v2495_v23 = vld [vmem:[%s2685_s14 + $0x24c] sm:$0xf]  ;;  %v1941_v26 = vld [vmem:[%s2685_s14 + $0x58] sm:$0xf0] }
  0x93   : > { %1299 = vmatpush.bf16.msra.mxu1 %v2052_v11  ;;  %v2499_v11 = vld [vmem:[%s2685_s14 + $0x26c] sm:$0xf]  ;;  %v2069_v30 = vld [vmem:[%s2685_s14 + $0x158] sm:$0xf0] }
  0x94   : > { %1318 = vmatpush.bf16.msra.mxu2 %v2180_v61  ;;  %v2439_v61 = vld [vmem:[%s2685_s14 + $0x8c] sm:$0xf]  ;;  %v2216_v19 = vor.u32 %v2499_v11, %v2213_v12  ;;  %v2181_v36 = vld [vmem:[%s2685_s14 + $0x238] sm:$0xf0] }
  0x95   : > { %1280 = vmatpush.bf16.msra.mxu0 %v1924_v10  ;;  %1337 = vmatpush.bf16.msra.mxu3 %v2308_v15  ;;  %v1976_v8 = vor.u32 %v2439_v61, %v1973_v0  ;;  %v2357_v10 = vld [vmem:[%s2685_s14 + $0x398] sm:$0xf0]  ;;  %v2104_v15 = vor.u32 %v2471_v5, %v2101_v6  ;;  %v2431_v25 = vld [vmem:[%s2685_s14 + $0x4c] sm:$0xf] }
  0x96   : > { %v2463_v29 = vld [vmem:[%s2685_s14 + $0x14c] sm:$0xf]  ;;  %v1925_v38 = vld [vmem:[%s2685_s14 + $0x38] sm:$0xf0] }
  0x97   : > { %1300 = vmatpush.bf16.msra.mxu1 %v2036_v28  ;;  %v2344_v28 = vor.u32 %v2531_v21, %v2341_v22  ;;  %v2491_v35 = vld [vmem:[%s2685_s14 + $0x22c] sm:$0xf]  ;;  %v2072_v39 = vor.u32 %v2463_v29, %v2069_v30  ;;  %v2053_v42 = vld [vmem:[%s2685_s14 + $0x138] sm:$0xf0]  ;;  %v298_v22 = vld [vmem:[#allocation2 + $0x40] sm:$0xff] }
  0x98   : > { %1319 = vmatpush.bf16.msra.mxu2 %v2164_v16  ;;  %v2360_v16 = vor.u32 %v2535_v9, %v2357_v10  ;;  %v2459_v41 = vld [vmem:[%s2685_s14 + $0x12c] sm:$0xf]  ;;  %v2184_v43 = vor.u32 %v2491_v35, %v2181_v36  ;;  %v2309_v46 = vld [vmem:[%s2685_s14 + $0x338] sm:$0xf0]  ;;  %v302_v30 = vld [vmem:[#allocation2 + $0x60] sm:$0xff] }
  0x99   : > { %1281 = vmatpush.bf16.msra.mxu0 %v1908_v27  ;;  %1338 = vmatpush.bf16.msra.mxu3 %v2292_v31  ;;  %v2088_v27 = vor.u32 %v2467_v17, %v2085_v18  ;;  %v2200_v31 = vor.u32 %v2495_v23, %v2197_v24  ;;  %v2523_v45 = vld [vmem:[%s2685_s14 + $0x32c] sm:$0xf]  ;;  %v1909_v50 = vld [vmem:[%s2685_s14 + $0x18] sm:$0xf0] }
  0x9a   : > { %1301 = vmatmul.bf16.vlgmr.msra.gmra.mxu1 %v2774_v62  ;;  %v2423_v49 = vld [vmem:[%s2685_s14 + $0xc] sm:$0xf]  ;;  %v2037_v58 = vld [vmem:[%s2685_s14 + $0x118] sm:$0xf0] }
  0x9b   : > { %1369 = vmatpush.bf16.msrb.mxu1 %v2152_v33  ;;  %1320 = vmatmul.bf16.vlgmr.msra.gmra.mxu2 %v2776_v63  ;;  %v2527_v33 = vld [vmem:[%s2685_s14 + $0x34c] sm:$0xf]  ;;  %v1912_v56 = vor.u32 %v2423_v49, %v1909_v50  ;;  %v2293_v0 = vld [vmem:[%s2685_s14 + $0x318] sm:$0xf0] }
  0x9c   : > { %1388 = vmatpush.bf16.msrb.mxu2 %v2280_v20  ;;  %1282 = vmatmul.bf16.vlgmr.msra.gmra.mxu0 %v2769_v57  ;;  %v1960_v20 = vor.u32 %v2435_v13, %v1957_v14  ;;  %v2455_v54 = vld [vmem:[%s2685_s14 + $0x10c] sm:$0xf] }
  0x9d   : > { %1350 = vmatpush.bf16.msrb.mxu0 %v2024_v32  ;;  %1407 = vmatpush.bf16.msrb.mxu3 %v2408_v34  ;;  %v1944_v32 = vor.u32 %v2431_v25, %v1941_v26  ;;  %v2325_v34 = vld [vmem:[%s2685_s14 + $0x358] sm:$0xf0]  ;;  %v2519_v61 = vld [vmem:[%s2685_s14 + $0x30c] sm:$0xf] }
  0x9e   : > { %1339 = vmatmul.bf16.vlgmr.msra.gmra.mxu3 %v2780_v2  ;;  %v295_v50 = vld [vmem:[#allocation2 + $0x68] sm:$0xff] }
  0x9f   : > { %1370 = vmatpush.bf16.msrb.mxu1 %v2136_v47  ;;  %v2487_v47 = vld [vmem:[%s2685_s14 + $0x20c] sm:$0xf] }
  0xa0   : > { %1389 = vmatpush.bf16.msrb.mxu2 %v2264_v37  ;;  %v2427_v37 = vld [vmem:[%s2685_s14 + $0x2c] sm:$0xf] }
  0xa1   : > { %1351 = vmatpush.bf16.msrb.mxu0 %v2008_v40  ;;  %1408 = vmatpush.bf16.msrb.mxu3 %v2392_v48  ;;  %v2328_v40 = vor.u32 %v2527_v33, %v2325_v34  ;;  %v1928_v44 = vor.u32 %v2427_v37, %v1925_v38  ;;  %v2165_v48 = vld [vmem:[%s2685_s14 + $0x218] sm:$0xf0] }
  0xa2   : > { %v2168_v55 = vor.u32 %v2487_v47, %v2165_v48 }
  0xa3   : > { %1371 = vmatpush.bf16.msrb.mxu1 %v2120_v3  ;;  %v2040_v3 = vor.u32 %v2455_v54, %v2037_v58 }
  0xa4   : > { %1390 = vmatpush.bf16.msrb.mxu2 %v2248_v51  ;;  %v2056_v51 = vor.u32 %v2459_v41, %v2053_v42  ;;  %v291_v41 = vld [vmem:[#allocation2] sm:$0xff] }
  0xa5   : > { %1352 = vmatpush.bf16.msrb.mxu0 %v1992_v52  ;;  %1409 = vmatpush.bf16.msrb.mxu3 %v2376_v4  ;;  %v2312_v52 = vor.u32 %v2523_v45, %v2309_v46  ;;  %v2296_v4 = vor.u32 %v2519_v61, %v2293_v0 }
  0xa7   : > { %1372 = vmatpush.bf16.msrb.mxu1 %v2104_v15 }
  0xa8   : > { %1391 = vmatpush.bf16.msrb.mxu2 %v2232_v7 }
  0xa9   : > { %1353 = vmatpush.bf16.msrb.mxu0 %v1976_v8  ;;  %1410 = vmatpush.bf16.msrb.mxu3 %v2360_v16 }
  0xaa   : > { %1306 = vmatmul.bf16.gmra.mxu1 %v2826_v59 }
  0xab   : > { %1373 = vmatpush.bf16.msrb.mxu1 %v2088_v27  ;;  %1325 = vmatmul.bf16.gmra.mxu2 %v2828_v60 }
  0xac   : > { %1392 = vmatpush.bf16.msrb.mxu2 %v2216_v19  ;;  %1287 = vmatmul.bf16.gmra.mxu0 %v2821_v53 }
  0xad   : > { %1354 = vmatpush.bf16.msrb.mxu0 %v1960_v20  ;;  %1411 = vmatpush.bf16.msrb.mxu3 %v2344_v28 }
  0xae   : > { %1344 = vmatmul.bf16.gmra.mxu3 %v2832_v1 }
  0xaf   : > { %1374 = vmatpush.bf16.msrb.mxu1 %v2072_v39 }
  0xb0   : > { %1393 = vmatpush.bf16.msrb.mxu2 %v2200_v31 }
  0xb1   : > { %1355 = vmatpush.bf16.msrb.mxu0 %v1944_v32  ;;  %1412 = vmatpush.bf16.msrb.mxu3 %v2328_v40 }
  0xb3   : > { %1375 = vmatpush.bf16.msrb.mxu1 %v2056_v51 }
  0xb4   : > { %1394 = vmatpush.bf16.msrb.mxu2 %v2184_v43 }
  0xb5   : > { %1356 = vmatpush.bf16.msrb.mxu0 %v1928_v44  ;;  %1413 = vmatpush.bf16.msrb.mxu3 %v2312_v52 }
  0xb7   : > { %1376 = vmatpush.bf16.msrb.mxu1 %v2040_v3  ;;  %v299_v3 = vld [vmem:[#allocation2 + $0x20] sm:$0xff] }
  0xb8   : > { %1395 = vmatpush.bf16.msrb.mxu2 %v2168_v55 }
  0xb9   : > { %1357 = vmatpush.bf16.msrb.mxu0 %v1912_v56  ;;  %1414 = vmatpush.bf16.msrb.mxu3 %v2296_v4 }
  0xba   : > { %1377 = vmatmul.bf16.vlgmr.msrb.gmra.mxu1 %v2774_v62  ;;  %v290_v62 = vld [vmem:[#allocation2 + $0x30] sm:$0xff] }
  0xbb   : > { %1396 = vmatmul.bf16.vlgmr.msrb.gmra.mxu2 %v2776_v63 }
  0xbc   : > { %1358 = vmatmul.bf16.vlgmr.msrb.gmra.mxu0 %v2769_v57 }
  0xbe   : > { %1415 = vmatmul.bf16.vlgmr.msrb.gmra.mxu3 %v2780_v2 }
  0xca   : > { %1382 = vmatmul.bf16.gmra.mxu1 %v2826_v59 }
  0xcb   : > { %1401 = vmatmul.bf16.gmra.mxu2 %v2828_v60  ;;  %v294_v60 = vld [vmem:[#allocation2 + $0x50] sm:$0xff] }
  0xcc   : > { %1363 = vmatmul.bf16.gmra.mxu0 %v2821_v53 }
  0xce   : > { %1420 = vmatmul.bf16.gmra.mxu3 %v2832_v1 }
  0xd7   : > { %v1131_v5 = vpop.f32.mrf.mxu0  ;;  %v1150_v6 = vpop.f32.mrf.mxu1 }
  0xd8   : > { %v1151_v7 = vadd.f32 %v1150_v6, %v1131_v5 }
  0xde   : > { %v1169_v8 = vpop.f32.mrf.mxu2 }
  0xdf   : > { %v1170_v9 = vadd.f32 %v1169_v8, %v1151_v7  ;;  %v1188_v57 = vpop.f32.mrf.mxu3  ;;  %v1133_v10 = vpop.f32.mrf.mxu0 }
  0xe0   : > { %v1152_v11 = vpop.f32.mrf.mxu1 }
  0xe1   : > { %v1189_v63 = vadd.f32 %v1188_v57, %v1170_v9  ;;  %v1153_v2 = vadd.f32 %v1152_v11, %v1133_v10 }
  0xe3   : > { %v1426_v12 = vadd.f32 %v1189_v63, %v290_v62  ;;  %v303_v62 = vld [vmem:[#allocation2 + $0x70] sm:$0xff] }
  0xe5   : > { %1442 = vst [vmem:[#allocation2 + $0x30] sm:$0xff] %v1426_v12 }
  0xe6   : > { %v1171_v53 = vpop.f32.mrf.mxu2 }
  0xe7   : > { %v1172_v13 = vadd.f32 %v1171_v53, %v1153_v2  ;;  %v1190_v59 = vpop.f32.mrf.mxu3  ;;  %v1136_v14 = vpop.f32.mrf.mxu0 }
  0xe8   : > { %v1155_v15 = vpop.f32.mrf.mxu1 }
  0xe9   : > { %v1191_v1 = vadd.f32 %v1190_v59, %v1172_v13  ;;  %v1156_v17 = vadd.f32 %v1155_v15, %v1136_v14 }
  0xeb   : > { %v1430_v16 = vadd.f32 %v1191_v1, %v294_v60  ;;  %v292_v60 = vld [vmem:[#allocation2 + $0x58] sm:$0xff] }
  0xed   : > { %1446 = vst [vmem:[#allocation2 + $0x50] sm:$0xff] %v1430_v16 }
  0xee   : > { %v1174_v18 = vpop.f32.mrf.mxu2 }
  0xef   : > { %v1175_v19 = vadd.f32 %v1174_v18, %v1156_v17  ;;  %v1193_v20 = vpop.f32.mrf.mxu3  ;;  %v1138_v21 = vpop.f32.mrf.mxu0 }
  0xf0   : > { %v1157_v23 = vpop.f32.mrf.mxu1 }
  0xf1   : > { %v1194_v24 = vadd.f32 %v1193_v20, %v1175_v19  ;;  %v1158_v26 = vadd.f32 %v1157_v23, %v1138_v21 }
  0xf3   : > { %v1434_v25 = vadd.f32 %v1194_v24, %v298_v22  ;;  %v296_v22 = vld [vmem:[#allocation2 + $0x8] sm:$0xff] }
  0xf5   : > { %1450 = vst [vmem:[#allocation2 + $0x40] sm:$0xff] %v1434_v25 }
  0xf6   : > { %v1176_v27 = vpop.f32.mrf.mxu2 }
  0xf7   : > { %v1177_v28 = vadd.f32 %v1176_v27, %v1158_v26  ;;  %v1195_v29 = vpop.f32.mrf.mxu3 }
  0xf8   : > { %v1226_v32 = vpop.f32.mrf.mxu1 }
  0xf9   : > { %v1207_v31 = vpop.f32.mrf.mxu0  ;;  %v1196_v33 = vadd.f32 %v1195_v29, %v1177_v28 }
  0xfa   : > { %v1227_v35 = vadd.f32 %v1226_v32, %v1207_v31  ;;  %v300_v31 = vld [vmem:[#allocation2 + $0x10] sm:$0xff] }
  0xfb   : > { %v1438_v34 = vadd.f32 %v1196_v33, %v302_v30 }
  0xfd   : > { %1454 = vst [vmem:[#allocation2 + $0x60] sm:$0xff] %v1438_v34 }
  0xfe   : > { %v1245_v36 = vpop.f32.mrf.mxu2 }
  0xff   : > { %v1246_v38 = vadd.f32 %v1245_v36, %v1227_v35 }
 0x100   : > { %v1228_v40 = vpop.f32.mrf.mxu1 }
 0x101   : > { %v1264_v37 = vpop.f32.mrf.mxu3  ;;  %v1209_v39 = vpop.f32.mrf.mxu0 }
 0x102   : > { %v1265_v42 = vadd.f32 %v1264_v37, %v1246_v38  ;;  %v1229_v44 = vadd.f32 %v1228_v40, %v1209_v39  ;;  %v304_v40 = vld [vmem:[#allocation2 + $0x78] sm:$0xff] }
 0x104   : > { %v1427_v43 = vadd.f32 %v1265_v42, %v291_v41 }
 0x106   : > { %1443 = vst [vmem:[#allocation2] sm:$0xff] %v1427_v43  ;;  %v1247_v45 = vpop.f32.mrf.mxu2 }
 0x107   : > { %v1248_v47 = vadd.f32 %v1247_v45, %v1229_v44 }
 0x108   : > { %v1231_v49 = vpop.f32.mrf.mxu1 }
 0x109   : > { %v1266_v46 = vpop.f32.mrf.mxu3  ;;  %v1212_v48 = vpop.f32.mrf.mxu0 }
 0x10a   : > { %v1267_v51 = vadd.f32 %v1266_v46, %v1248_v47  ;;  %v1232_v54 = vadd.f32 %v1231_v49, %v1212_v48  ;;  %v293_v49 = vld [vmem:[#allocation2 + $0x18] sm:$0xff] }
 0x10c   : > { %v1431_v52 = vadd.f32 %v1267_v51, %v295_v50 }
 0x10e   : > { %1447 = vst [vmem:[#allocation2 + $0x68] sm:$0xff] %v1431_v52  ;;  %v1250_v55 = vpop.f32.mrf.mxu2 }
 0x10f   : > { %v1251_v58 = vadd.f32 %v1250_v55, %v1232_v54 }
 0x110   : > { %v1233_v0 = vpop.f32.mrf.mxu1 }
 0x111   : > { %v1269_v56 = vpop.f32.mrf.mxu3  ;;  %v1214_v61 = vpop.f32.mrf.mxu0 }
 0x112   : > { %v1270_v4 = vadd.f32 %v1269_v56, %v1251_v58  ;;  %v1234_v6 = vadd.f32 %v1233_v0, %v1214_v61  ;;  %v297_v58 = vld [vmem:[#allocation2 + $0x48] sm:$0xff] }
 0x114   : > { %v1435_v5 = vadd.f32 %v1270_v4, %v299_v3 }
 0x116   : > { %1451 = vst [vmem:[#allocation2 + $0x20] sm:$0xff] %v1435_v5  ;;  %v1252_v7 = vpop.f32.mrf.mxu2 }
 0x117   : > { %v1253_v9 = vadd.f32 %v1252_v7, %v1234_v6 }
 0x118   : > { %v1302_v10 = vpop.f32.mrf.mxu1 }
 0x119   : > { %v1271_v8 = vpop.f32.mrf.mxu3  ;;  %v1283_v57 = vpop.f32.mrf.mxu0 }
 0x11a   : > { %v1272_v11 = vadd.f32 %v1271_v8, %v1253_v9  ;;  %v1303_v12 = vadd.f32 %v1302_v10, %v1283_v57  ;;  %v301_v9 = vld [vmem:[#allocation2 + $0x38] sm:$0xff] }
 0x11c   : > { %v1439_v63 = vadd.f32 %v1272_v11, %v303_v62 }
 0x11e   : > { %1455 = vst [vmem:[#allocation2 + $0x70] sm:$0xff] %v1439_v63  ;;  %v1321_v2 = vpop.f32.mrf.mxu2 }
 0x11f   : > { %v1322_v13 = vadd.f32 %v1321_v2, %v1303_v12 }
 0x120   : > { %v1304_v14 = vpop.f32.mrf.mxu1 }
 0x121   : > { %v1340_v53 = vpop.f32.mrf.mxu3  ;;  %v1285_v59 = vpop.f32.mrf.mxu0 }
 0x122   : > { %v1341_v15 = vadd.f32 %v1340_v53, %v1322_v13  ;;  %v1305_v16 = vadd.f32 %v1304_v14, %v1285_v59  ;;  %v305_v53 = vld [vmem:[#allocation2 + $0x28] sm:$0xff] }
 0x124   : > { %v1428_v1 = vadd.f32 %v1341_v15, %v292_v60 }
 0x126   : > { %1444 = vst [vmem:[#allocation2 + $0x58] sm:$0xff] %v1428_v1  ;;  %v1323_v17 = vpop.f32.mrf.mxu2 }
 0x127   : > { %v1324_v19 = vadd.f32 %v1323_v17, %v1305_v16 }
 0x128   : > { %v1307_v21 = vpop.f32.mrf.mxu1 }
 0x129   : > { %v1342_v18 = vpop.f32.mrf.mxu3  ;;  %v1288_v20 = vpop.f32.mrf.mxu0 }
 0x12a   : > { %v1343_v23 = vadd.f32 %v1342_v18, %v1324_v19  ;;  %v1308_v25 = vadd.f32 %v1307_v21, %v1288_v20 }
 0x12c   : > { %v1432_v24 = vadd.f32 %v1343_v23, %v296_v22 }
 0x12e   : > { %1448 = vst [vmem:[#allocation2 + $0x8] sm:$0xff] %v1432_v24  ;;  %v1326_v26 = vpop.f32.mrf.mxu2 }
 0x12f   : > { %v1327_v28 = vadd.f32 %v1326_v26, %v1308_v25 }
 0x130   : > { %v1309_v30 = vpop.f32.mrf.mxu1 }
 0x131   : > { %v1345_v27 = vpop.f32.mrf.mxu3  ;;  %v1290_v29 = vpop.f32.mrf.mxu0 }
 0x132   : > { %v1346_v32 = vadd.f32 %v1345_v27, %v1327_v28  ;;  %v1310_v34 = vadd.f32 %v1309_v30, %v1290_v29 }
 0x134   : > { %v1436_v33 = vadd.f32 %v1346_v32, %v300_v31 }
 0x136   : > { %1452 = vst [vmem:[#allocation2 + $0x10] sm:$0xff] %v1436_v33  ;;  %v1328_v35 = vpop.f32.mrf.mxu2 }
 0x137   : > { %v1329_v37 = vadd.f32 %v1328_v35, %v1310_v34 }
 0x138   : > { %v1378_v39 = vpop.f32.mrf.mxu1 }
 0x139   : > { %v1347_v36 = vpop.f32.mrf.mxu3  ;;  %v1359_v38 = vpop.f32.mrf.mxu0 }
 0x13a   : > { %v1348_v41 = vadd.f32 %v1347_v36, %v1329_v37  ;;  %v1379_v43 = vadd.f32 %v1378_v39, %v1359_v38 }
 0x13c   : > { %v1440_v42 = vadd.f32 %v1348_v41, %v304_v40 }
 0x13e   : > { %1456 = vst [vmem:[#allocation2 + $0x78] sm:$0xff] %v1440_v42  ;;  %v1397_v44 = vpop.f32.mrf.mxu2 }
 0x13f   : > { %v1398_v46 = vadd.f32 %v1397_v44, %v1379_v43 }
 0x140   : > { %v1380_v48 = vpop.f32.mrf.mxu1 }
 0x141   : > { %v1416_v45 = vpop.f32.mrf.mxu3  ;;  %v1361_v47 = vpop.f32.mrf.mxu0 }
 0x142   : > { %v1417_v50 = vadd.f32 %v1416_v45, %v1398_v46  ;;  %v1381_v52 = vadd.f32 %v1380_v48, %v1361_v47 }
 0x144   : > { %v1429_v51 = vadd.f32 %v1417_v50, %v293_v49 }
 0x146   : > { %1445 = vst [vmem:[#allocation2 + $0x18] sm:$0xff] %v1429_v51  ;;  %v1399_v54 = vpop.f32.mrf.mxu2 }
 0x147   : > { %v1400_v56 = vadd.f32 %v1399_v54, %v1381_v52 }
 0x148   : > { %v1383_v0 = vpop.f32.mrf.mxu1 }
 0x149   : > { %v1418_v55 = vpop.f32.mrf.mxu3  ;;  %v1364_v61 = vpop.f32.mrf.mxu0 }
 0x14a   : > { %v1419_v3 = vadd.f32 %v1418_v55, %v1400_v56  ;;  %v1384_v5 = vadd.f32 %v1383_v0, %v1364_v61 }
 0x14c   : > { %v1433_v4 = vadd.f32 %v1419_v3, %v297_v58 }
 0x14e   : > { %1449 = vst [vmem:[#allocation2 + $0x48] sm:$0xff] %v1433_v4  ;;  %v1402_v6 = vpop.f32.mrf.mxu2 }
 0x14f   : > { %v1403_v8 = vadd.f32 %v1402_v6, %v1384_v5 }
 0x150   : > { %v1385_v62 = vpop.f32.mrf.mxu1 }
 0x151   : > { %v1421_v7 = vpop.f32.mrf.mxu3  ;;  %v1366_v10 = vpop.f32.mrf.mxu0 }
 0x152   : > { %v1422_v57 = vadd.f32 %v1421_v7, %v1403_v8  ;;  %v1386_v63 = vadd.f32 %v1385_v62, %v1366_v10 }
 0x154   : > { %v1437_v11 = vadd.f32 %v1422_v57, %v301_v9 }
 0x156   : > { %1453 = vst [vmem:[#allocation2 + $0x38] sm:$0xff] %v1437_v11  ;;  %v1404_v12 = vpop.f32.mrf.mxu2 }
 0x157   : > { %v1405_v2 = vadd.f32 %v1404_v12, %v1386_v63 }
 0x159   : > { %v1423_v13 = vpop.f32.mrf.mxu3 }
 0x15a   : > { %v1424_v59 = vadd.f32 %v1423_v13, %v1405_v2  ;;  %1461 = sbr.rel (%p2409_p10) target bundleno = 439 (0x1b7), region = 71 }
 0x15c   : > { %v1441_v14 = vadd.f32 %v1424_v59, %v305_v53 }
 0x15e   : > { %1457 = vst [vmem:[#allocation2 + $0x28] sm:$0xff] %v1441_v14 }
 0x15f   : > { %v1462_v60 = vld [vmem:[#allocation2 + $0x30] sm:$0xff]  ;;  %v1463_v15 = vld [vmem:[#allocation2] sm:$0xff]  ;;  %v2611_v16 = vmov 32.0   ;;  %v1467_v17 = vld [vmem:[#allocation2 + $0x68] sm:$0xff] }
 0x160   : > { %v1466_v1 = vld [vmem:[#allocation2 + $0x50] sm:$0xff]  ;;  %2576 = vrcp.f32 %v2611_v16  ;;  %v1470_v18 = vld [vmem:[#allocation2 + $0x40] sm:$0xff]  ;;  %v1464_v47 = vld [vmem:[#allocation2 + $0x58] sm:$0xff] }
 0x161   : > { %v1478_v19 = vld [vmem:[%s3274_s2] sm:$0xf]  ;;  %v1475_v22 = vld [vmem:[#allocation2 + $0x70] sm:$0xff]  ;;  %v1465_v48 = vld [vmem:[#allocation2 + $0x18] sm:$0xff] }
 0x162   : > { %v1471_v20 = vld [vmem:[#allocation2 + $0x20] sm:$0xff]  ;;  %v1480_v23 = vperm.slane %v1478_v19, 0  ;;  %v1481_v24 = vperm.slane %v1478_v19, 1  ;;  %v1482_v25 = vperm.slane %v1478_v19, 2  ;;  %v1483_v42 = vperm.slane %v1478_v19, 3  ;;  %v1468_v49 = vld [vmem:[#allocation2 + $0x8] sm:$0xff] }
 0x163   : > { %v1474_v21 = vld [vmem:[#allocation2 + $0x60] sm:$0xff]  ;;  %v1469_v54 = vld [vmem:[#allocation2 + $0x48] sm:$0xff]  ;;  %v1472_v0 = vld [vmem:[#allocation2 + $0x10] sm:$0xff] }
 0x164   : > { %v3014_v26 = vadd.f32 %v1480_v23, %v1462_v60  ;;  %v3016_v27 = vadd.f32 %v1481_v24, %v1463_v15  ;;  %v3018_v28 = vadd.f32 %v1480_v23, %v1466_v1  ;;  %v3020_v29 = vadd.f32 %v1481_v24, %v1467_v17  ;;  %v1473_v4 = vld [vmem:[#allocation2 + $0x38] sm:$0xff] }
 0x165   : > { %v3022_v30 = vadd.f32 %v1480_v23, %v1470_v18  ;;  %v3024_v31 = vadd.f32 %v1481_v24, %v1471_v20  ;;  %v3026_v32 = vadd.f32 %v1480_v23, %v1474_v21  ;;  %v3028_v33 = vadd.f32 %v1481_v24, %v1475_v22  ;;  %v1476_v10 = vld [vmem:[#allocation2 + $0x78] sm:$0xff]  ;;  %v1477_v59 = vld [vmem:[#allocation2 + $0x28] sm:$0xff] }
 0x166   : > { %v3030_v34 = vpop.eup %2576  ;;  %v1504_v35 = vadd.f32 %v3018_v28, %v3014_v26  ;;  %v1513_v36 = vadd.f32 %v3020_v29, %v3016_v27  ;;  %v1551_v37 = vmul.f32 %v3014_v26, %v3014_v26  ;;  %v1552_v38 = vmul.f32 %v3016_v27, %v3016_v27 }
 0x167   : > { %v1541_v39 = vmul.f32 32.0, %v3030_v34  ;;  %v1555_v40 = vmul.f32 %v3018_v28, %v3018_v28  ;;  %v1556_v41 = vmul.f32 %v3020_v29, %v3020_v29  ;;  %v1559_v45 = vmul.f32 %v3022_v30, %v3022_v30 }
 0x168   : > { %v1505_v43 = vadd.f32 %v1504_v35, %v3022_v30  ;;  %v1514_v44 = vadd.f32 %v1513_v36, %v3024_v31  ;;  %v1560_v46 = vmul.f32 %v3024_v31, %v3024_v31  ;;  %v1563_v51 = vmul.f32 %v3026_v32, %v3026_v32 }
 0x169   : > { %v1542_v50 = vsub.f32 1.0, %v1541_v39  ;;  %v1567_v52 = vadd.f32 %v1555_v40, %v1551_v37  ;;  %v1564_v58 = vmul.f32 %v3028_v33, %v3028_v33  ;;  %v1576_v61 = vadd.f32 %v1556_v41, %v1552_v38 }
 0x16a   : > { %v1506_v55 = vadd.f32 %v1505_v43, %v3026_v32  ;;  %v1515_v56 = vadd.f32 %v1514_v44, %v3028_v33  ;;  %v3057_v5 = vadd.f32 %v1482_v25, %v1464_v47  ;;  %v3059_v6 = vadd.f32 %v1483_v42, %v1465_v48 }
 0x16b   : > { %v1568_v3 = vadd.f32 %v1567_v52, %v1559_v45  ;;  %v3061_v7 = vadd.f32 %v1482_v25, %v1468_v49  ;;  %v1577_v57 = vadd.f32 %v1576_v61, %v1560_v46  ;;  %v3063_v62 = vadd.f32 %v1483_v42, %v1469_v54 }
 0x16c   : > { %v1507_v8 = vrot.slane %v1506_v55, 4  ;;  %v1516_v9 = vrot.slane %v1515_v56, 4  ;;  %v1543_v11 = vmul.f32 %v3030_v34, %v1542_v50  ;;  %v3066_v12 = vadd.f32 %v1482_v25, %v1472_v0 }
 0x16d   : > { %v1569_v63 = vadd.f32 %v1568_v3, %v1563_v51  ;;  %v1578_v13 = vadd.f32 %v1577_v57, %v1564_v58  ;;  %v3068_v14 = vadd.f32 %v1483_v42, %v1473_v4  ;;  %vm1545_vm0 = vweird.f32 %v3030_v34 }
 0x16e   : > { %v1508_v2 = vadd.f32 %v1507_v8, %v1506_v55  ;;  %v1517_v53 = vadd.f32 %v1516_v9, %v1515_v56  ;;  %v3071_v15 = vadd.f32 %v1482_v25, %v1476_v10  ;;  %v1522_v1 = vadd.f32 %v3061_v7, %v3057_v5 }
 0x16f   : > { %v1570_v60 = vrot.slane %v1569_v63, 4  ;;  %v1579_v18 = vrot.slane %v1578_v13, 4  ;;  %v1531_v19 = vadd.f32 %v3063_v62, %v3059_v6  ;;  %v1544_v20 = vadd.f32 %v3030_v34, %v1543_v11 }
 0x170   : > { %v1509_v16 = vrot.slane %v1508_v2, 2  ;;  %v1518_v17 = vrot.slane %v1517_v53, 2  ;;  %v3078_v22 = vadd.f32 %v1483_v42, %v1477_v59  ;;  %v1523_v23 = vadd.f32 %v1522_v1, %v3066_v12 }
 0x171   : > { %v1571_v21 = vadd.f32 %v1570_v60, %v1569_v63  ;;  %v1580_v25 = vadd.f32 %v1579_v18, %v1578_v13  ;;  %v1532_v36 = vadd.f32 %v1531_v19, %v3068_v14  ;;  %v3086_v43 = vsel %vm1545_vm0, %v3030_v34, %v1544_v20 }
 0x172   : > { %v1510_v24 = vadd.f32 %v1509_v16, %v1508_v2  ;;  %v1519_v35 = vadd.f32 %v1518_v17, %v1517_v53  ;;  %v1524_v38 = vadd.f32 %v1523_v23, %v3071_v15  ;;  %v1553_v49 = vmul.f32 %v3057_v5, %v3057_v5 }
 0x173   : > { %v1572_v37 = vrot.slane %v1571_v21, 2  ;;  %v1581_v41 = vrot.slane %v1580_v25, 2  ;;  %v1533_v45 = vadd.f32 %v1532_v36, %v3078_v22  ;;  %v1554_v54 = vmul.f32 %v3059_v6, %v3059_v6 }
 0x174   : > { %v1511_v39 = vrot.slane %v1510_v24, 1  ;;  %v1520_v40 = vrot.slane %v1519_v35, 1  ;;  %v1525_v44 = vrot.slane %v1524_v38, 4  ;;  %v1557_v58 = vmul.f32 %v3061_v7, %v3061_v7 }
 0x175   : > { %v1573_v42 = vadd.f32 %v1572_v37, %v1571_v21  ;;  %v1582_v48 = vadd.f32 %v1581_v41, %v1580_v25  ;;  %v1534_v52 = vrot.slane %v1533_v45, 4  ;;  %v1558_v4 = vmul.f32 %v3063_v62, %v3063_v62 }
 0x176   : > { %v1512_v46 = vadd.f32 %v1511_v39, %v1510_v24  ;;  %v1521_v47 = vadd.f32 %v1520_v40, %v1519_v35  ;;  %v1526_v51 = vadd.f32 %v1525_v44, %v1524_v38  ;;  %v1561_v10 = vmul.f32 %v3066_v12, %v3066_v12  ;;  %v3120_v40 = vld [vmem:[%s3275_s3] sm:$0xf] }
 0x177   : > { %v1574_v50 = vrot.slane %v1573_v42, 1  ;;  %v1583_v56 = vrot.slane %v1582_v48, 1  ;;  %v1535_v3 = vadd.f32 %v1534_v52, %v1533_v45  ;;  %v1562_v53 = vmul.f32 %v3068_v14, %v3068_v14  ;;  %v3125_v44 = vld [vmem:[%s3276_s4] sm:$0xf] }
 0x178   : > { %v3094_v55 = vmul.f32 %v3086_v43, %v1512_v46  ;;  %v3097_v34 = vmul.f32 %v3086_v43, %v1521_v47  ;;  %v1527_v0 = vrot.slane %v1526_v51, 2  ;;  %v1565_v59 = vmul.f32 %v3071_v15, %v3071_v15 }
 0x179   : > { %v1575_v61 = vadd.f32 %v1574_v50, %v1573_v42  ;;  %v1584_v8 = vadd.f32 %v1583_v56, %v1582_v48  ;;  %v1536_v2 = vrot.slane %v1535_v3, 2  ;;  %v1585_v60 = vadd.f32 %v1557_v58, %v1553_v49 }
 0x17a   : > { %v1607_v9 = vmul.f32 %v3094_v55, %v3094_v55  ;;  %v1608_v57 = vmul.f32 %v3097_v34, %v3097_v34  ;;  %v1528_v63 = vadd.f32 %v1527_v0, %v1526_v51  ;;  %v1594_v16 = vadd.f32 %v1558_v4, %v1554_v54 }
 0x17b   : > { %v1603_v11 = vmul.f32 %v1575_v61, %v3086_v43  ;;  %v1604_v13 = vmul.f32 %v1584_v8, %v3086_v43  ;;  %v1537_v18 = vadd.f32 %v1536_v2, %v1535_v3  ;;  %v1566_v19 = vmul.f32 %v3078_v22, %v3078_v22 }
 0x17c   : > { %v1586_v20 = vadd.f32 %v1585_v60, %v1561_v10  ;;  %v1529_v23 = vrot.slane %v1528_v63, 1  ;;  %v1595_v24 = vadd.f32 %v1594_v16, %v1562_v53  ;;  %v3128_v49 = vperm.slane %v3120_v40, 0 }
 0x17d   : > { %v1611_v1 = vsub.f32 %v1603_v11, %v1607_v9  ;;  %v1612_v17 = vsub.f32 %v1604_v13, %v1608_v57  ;;  %v1538_v36 = vrot.slane %v1537_v18, 1  ;;  %v3134_v54 = vperm.slane %v3120_v40, 1 }
 0x17e   : > { %v1587_v25 = vadd.f32 %v1586_v20, %v1565_v59  ;;  %v1596_v38 = vadd.f32 %v1595_v24, %v1566_v19  ;;  %v1530_v39 = vadd.f32 %v1529_v23, %v1528_v63  ;;  %v1615_v61 = vsub.f32 %v3014_v26, %v3094_v55 }
 0x17f   : > { %v1631_v21 = vadd.f32 1e-05, %v1611_v1  ;;  %v1632_v35 = vadd.f32 1e-05, %v1612_v17  ;;  %v1539_v45 = vadd.f32 %v1538_v36, %v1537_v18  ;;  %v3139_v3 = vperm.slane %v3125_v44, 0 }
 0x180   : > { %v1588_v37 = vrot.slane %v1587_v25, 4  ;;  %v1597_v42 = vrot.slane %v1596_v38, 4  ;;  %v3131_v50 = vmul.f32 %v3086_v43, %v1530_v39  ;;  %v3142_v4 = vperm.slane %v3125_v44, 1 }
 0x181   : > { %2578 = vrsqrt.f32 %v1631_v21  ;;  %v3145_v9 = vmul.f32 %v3086_v43, %v1539_v45  ;;  %v1616_v11 = vsub.f32 %v3016_v27, %v3097_v34  ;;  %vm1641_vm1 = vweird.f32 %v1631_v21 }
 0x182   : > { %2580 = vrsqrt.f32 %v1632_v35  ;;  %v1589_v41 = vadd.f32 %v1588_v37, %v1587_v25  ;;  %v1598_v47 = vadd.f32 %v1597_v42, %v1596_v38  ;;  %v1609_v26 = vmul.f32 %v3131_v50, %v3131_v50 }
 0x183   : > { %vm1651_vm3 = vweird.f32 %v1632_v35  ;;  %v1617_v60 = vsub.f32 %v3057_v5, %v3131_v50  ;;  %v1610_v27 = vmul.f32 %v3145_v9, %v3145_v9  ;;  %v1618_v19 = vsub.f32 %v3059_v6, %v3145_v9 }
 0x184   : > { %v1590_v46 = vrot.slane %v1589_v41, 2  ;;  %v1599_v58 = vrot.slane %v1598_v47, 2  ;;  %v1619_v20 = vsub.f32 %v3018_v28, %v3094_v55  ;;  %v1623_v23 = vsub.f32 %v3022_v30, %v3094_v55 }
 0x185   : > { %v1620_v36 = vsub.f32 %v3020_v29, %v3097_v34  ;;  %v1621_v37 = vsub.f32 %v3061_v7, %v3131_v50  ;;  %v1622_v38 = vsub.f32 %v3063_v62, %v3145_v9  ;;  %v1624_v28 = vsub.f32 %v3024_v31, %v3097_v34 }
 0x186   : > { %v1591_v56 = vadd.f32 %v1590_v46, %v1589_v41  ;;  %v1600_v10 = vadd.f32 %v1599_v58, %v1598_v47 }
 0x187   : > { %v2579_v48 = vpop.eup %2578 }
 0x188   : > { %v2581_v51 = vpop.eup %2580  ;;  %v1636_v52 = vmul.f32 %v2579_v48, %v1631_v21  ;;  %v1592_v57 = vrot.slane %v1591_v56, 1  ;;  %vm1642_vm2 = vweird.f32 %v2579_v48  ;;  %v1601_v13 = vrot.slane %v1600_v10, 1 }
 0x189   : > { %v1646_v0 = vmul.f32 %v2581_v51, %v1632_v35  ;;  %vm1652_vm4 = vweird.f32 %v2581_v51  ;;  %vm1643_vm5 = vmor %vm1641_vm1, %vm1642_vm2 }
 0x18a   : > { %v1637_v8 = vmul.f32 %v2579_v48, %v1636_v52  ;;  %v1593_v53 = vadd.f32 %v1592_v57, %v1591_v56  ;;  %v1602_v16 = vadd.f32 %v1601_v13, %v1600_v10  ;;  %vm1653_vm6 = vmor %vm1651_vm3, %vm1652_vm4  ;;  %v1627_v56 = vsub.f32 %v3026_v32, %v3094_v55 }
 0x18b   : > { %v1647_v63 = vmul.f32 %v2581_v51, %v1646_v0 }
 0x18c   : > { %v1638_v2 = vmul.f32 0.5, %v1637_v8  ;;  %v1605_v17 = vmul.f32 %v1593_v53, %v3086_v43  ;;  %v1606_v35 = vmul.f32 %v1602_v16, %v3086_v43  ;;  %v3175_v43 = vperm.slane %v3120_v40, 2 }
 0x18d   : > { %v1648_v59 = vmul.f32 0.5, %v1647_v63 }
 0x18e   : > { %v1639_v1 = vsub.f32 1.5, %v1638_v2  ;;  %v1613_v25 = vsub.f32 %v1605_v17, %v1609_v26  ;;  %v1614_v30 = vsub.f32 %v1606_v35, %v1610_v27 }
 0x18f   : > { %v1649_v18 = vsub.f32 1.5, %v1648_v59 }
 0x190   : > { %v1640_v24 = vmul.f32 %v2579_v48, %v1639_v1  ;;  %v3172_v41 = vadd.f32 1e-05, %v1613_v25  ;;  %v3177_v52 = vadd.f32 1e-05, %v1614_v30 }
 0x191   : > { %v1650_v21 = vmul.f32 %v2581_v51, %v1649_v18 }
 0x192   : > { %v1644_v39 = vsel %vm1643_vm5, %v2579_v48, %v1640_v24  ;;  %2582 = vrsqrt.f32 %v3172_v41  ;;  %vm1661_vm7 = vweird.f32 %v3172_v41  ;;  %vm1671_vm9 = vweird.f32 %v3177_v52 }
 0x193   : > { %v1654_v42 = vsel %vm1653_vm6, %v2581_v51, %v1650_v21  ;;  %v1675_v45 = vmul.f32 %v1644_v39, %v1615_v61  ;;  %v1679_v29 = vmul.f32 %v1644_v39, %v1619_v20  ;;  %v1683_v46 = vmul.f32 %v1644_v39, %v1623_v23 }
 0x194   : > { %v1676_v47 = vmul.f32 %v1654_v42, %v1616_v11  ;;  %v1680_v48 = vmul.f32 %v1654_v42, %v1620_v36  ;;  %v1684_v0 = vmul.f32 %v1654_v42, %v1624_v28  ;;  %2584 = vrsqrt.f32 %v3177_v52 }
 0x195   : > { %v1701_v31 = vmul.f32 %v3128_v49, %v1675_v45  ;;  %v1705_v58 = vmul.f32 %v3128_v49, %v1679_v29  ;;  %v1709_v51 = vmul.f32 %v3128_v49, %v1683_v46  ;;  %v1628_v61 = vsub.f32 %v3028_v33, %v3097_v34 }
 0x196   : > { %v1702_v8 = vmul.f32 %v3134_v54, %v1676_v47  ;;  %v1706_v10 = vmul.f32 %v3134_v54, %v1680_v48  ;;  %v1710_v55 = vmul.f32 %v3134_v54, %v1684_v0  ;;  %v1687_v26 = vmul.f32 %v1644_v39, %v1627_v56 }
 0x197   : > { %v1727_v57 = vadd.f32 %v3139_v3, %v1701_v31  ;;  %v1731_v32 = vadd.f32 %v3139_v3, %v1705_v58  ;;  %v1735_v63 = vadd.f32 %v3139_v3, %v1709_v51  ;;  %v1688_v17 = vmul.f32 %v1654_v42, %v1628_v61 }
 0x198   : > { %v1728_v11 = vadd.f32 %v3142_v4, %v1702_v8  ;;  %v1732_v33 = vadd.f32 %v3142_v4, %v1706_v10  ;;  %v2583_v34 = vpop.eup %2582  ;;  %v1736_v59 = vadd.f32 %v3142_v4, %v1710_v55  ;;  %v1713_v45 = vmul.f32 %v3128_v49, %v1687_v26 }
 0x199   : > { %vm1743_vm8 = vcmp.ge.f32.partialorder %v1727_v57, 0.0  ;;  %v1759_v2 = vmul.f32 0.2, %v1727_v57  ;;  %vm1747_vm10 = vcmp.ge.f32.partialorder %v1731_v32, 0.0  ;;  %v1763_v13 = vmul.f32 0.2, %v1731_v32 }
 0x19a   : > { %vm1744_vm11 = vcmp.ge.f32.partialorder %v1728_v11, 0.0  ;;  %v1760_v53 = vmul.f32 0.2, %v1728_v11  ;;  %v1656_v16 = vmul.f32 %v2583_v34, %v3172_v41  ;;  %vm1748_vm12 = vcmp.ge.f32.partialorder %v1732_v33, 0.0  ;;  %v2585_v27 = vpop.eup %2584 }
 0x19b   : > { %v1775_v1 = vsel %vm1743_vm8, %v1727_v57, %v1759_v2  ;;  %vm1662_vm13 = vweird.f32 %v2583_v34  ;;  %v1764_v20 = vmul.f32 0.2, %v1732_v33  ;;  %v1779_v23 = vsel %vm1747_vm10, %v1731_v32, %v1763_v13 }
 0x19c   : > { %v1776_v18 = vsel %vm1744_vm11, %v1728_v11, %v1760_v53  ;;  %v1657_v35 = vmul.f32 %v2583_v34, %v1656_v16  ;;  %v1666_v25 = vmul.f32 %v2585_v27, %v3177_v52  ;;  %vm1751_vm14 = vcmp.ge.f32.partialorder %v1735_v63, 0.0  ;;  %vm1663_vm1 = vmor %vm1661_vm7, %vm1662_vm13 }
 0x19d   : > { %v1791_v24 = vpack.c.bf16 %v1776_v18, %v1775_v1  ;;  %v1780_v36 = vsel %vm1748_vm12, %v1732_v33, %v1764_v20  ;;  %vm1752_vm15 = vcmp.ge.f32.partialorder %v1736_v59, 0.0  ;;  %v1767_v21 = vmul.f32 0.2, %v1735_v63 }
 0x19e   : > { %v1768_v28 = vmul.f32 0.2, %v1736_v59  ;;  %v1658_v39 = vmul.f32 0.5, %v1657_v35  ;;  %v1667_v30 = vmul.f32 %v2585_v27, %v1666_v25  ;;  %v1793_v42 = vpack.c.bf16 %v1780_v36, %v1779_v23 }
 0x19f   : > { %1799 = vst [vmem:[%s3277_s5] sm:$0xff] %v1791_v24  ;;  %vm1672_vm0 = vweird.f32 %v2585_v27  ;;  %v1783_v29 = vsel %vm1751_vm14, %v1735_v63, %v1767_v21  ;;  %v1714_v47 = vmul.f32 %v3134_v54, %v1688_v17  ;;  %v1739_v58 = vadd.f32 %v3139_v3, %v1713_v45 }
 0x1a0   : > { %v1784_v46 = vsel %vm1752_vm15, %v1736_v59, %v1768_v28  ;;  %v1659_v56 = vsub.f32 1.5, %v1658_v39  ;;  %v1668_v31 = vmul.f32 0.5, %v1667_v30  ;;  %1801 = vst [vmem:[%s3277_s5 + $0x10] sm:$0xff] %v1793_v42  ;;  %v1696_v49 = vperm.slane %v3120_v40, 3  ;;  %vm1673_vm3 = vmor %vm1671_vm9, %vm1672_vm0 }
 0x1a1   : > { %v1795_v48 = vpack.c.bf16 %v1784_v46, %v1783_v29  ;;  %v1625_v0 = vsub.f32 %v3066_v12, %v3131_v50  ;;  %v1740_v54 = vadd.f32 %v3142_v4, %v1714_v47  ;;  %v1629_v8 = vsub.f32 %v3071_v15, %v3131_v50 }
 0x1a2   : > { %v1660_v51 = vmul.f32 %v2583_v34, %v1659_v56  ;;  %v1669_v61 = vsub.f32 1.5, %v1668_v31  ;;  %vm1755_vm2 = vcmp.ge.f32.partialorder %v1739_v58, 0.0  ;;  %v1771_v3 = vmul.f32 0.2, %v1739_v58 }
 0x1a3   : > { %1803 = vst [vmem:[%s3277_s5 + $0x20] sm:$0xff] %v1795_v48  ;;  %v1721_v40 = vperm.slane %v3125_v44, 2  ;;  %v1626_v12 = vsub.f32 %v3068_v14, %v3145_v9  ;;  %vm1756_vm4 = vcmp.ge.f32.partialorder %v1740_v54, 0.0  ;;  %v1772_v4 = vmul.f32 0.2, %v1740_v54 }
 0x1a4   : > { %v1664_v15 = vsel %vm1663_vm1, %v2583_v34, %v1660_v51  ;;  %v1670_v41 = vmul.f32 %v2585_v27, %v1669_v61  ;;  %v1787_v57 = vsel %vm1755_vm2, %v1739_v58, %v1771_v3  ;;  %v1630_v10 = vsub.f32 %v3078_v22, %v3145_v9 }
 0x1a5   : > { %v1677_v32 = vmul.f32 %v1664_v15, %v1617_v60  ;;  %v1681_v52 = vmul.f32 %v1664_v15, %v1621_v37  ;;  %v1685_v55 = vmul.f32 %v1664_v15, %v1625_v0  ;;  %v1788_v11 = vsel %vm1756_vm4, %v1740_v54, %v1772_v4 }
 0x1a6   : > { %v1674_v63 = vsel %vm1673_vm3, %v2585_v27, %v1670_v41  ;;  %v1722_v14 = vperm.slane %v3125_v44, 3  ;;  %v1797_v26 = vpack.c.bf16 %v1788_v11, %v1787_v57  ;;  %v1689_v2 = vmul.f32 %v1664_v15, %v1629_v8 }
 0x1a7   : > { %v1678_v33 = vmul.f32 %v1674_v63, %v1618_v19  ;;  %v1703_v22 = vmul.f32 %v3175_v43, %v1677_v32  ;;  %v1682_v5 = vmul.f32 %v1674_v63, %v1622_v38  ;;  %v1707_v7 = vmul.f32 %v3175_v43, %v1681_v52 }
 0x1a8   : > { %v1686_v50 = vmul.f32 %v1674_v63, %v1626_v12  ;;  %v1711_v60 = vmul.f32 %v3175_v43, %v1685_v55  ;;  %1805 = vst [vmem:[%s3277_s5 + $0x30] sm:$0xff] %v1797_v26  ;;  %v1690_v44 = vmul.f32 %v1674_v63, %v1630_v10  ;;  %v1715_v37 = vmul.f32 %v3175_v43, %v1689_v2 }
 0x1a9   : > { %v1704_v6 = vmul.f32 %v1696_v49, %v1678_v33  ;;  %v1729_v19 = vadd.f32 %v1721_v40, %v1703_v22  ;;  %v1708_v34 = vmul.f32 %v1696_v49, %v1682_v5  ;;  %v1733_v53 = vadd.f32 %v1721_v40, %v1707_v7 }
 0x1aa   : > { %v1712_v13 = vmul.f32 %v1696_v49, %v1686_v50  ;;  %v1737_v59 = vadd.f32 %v1721_v40, %v1711_v60  ;;  %v1716_v62 = vmul.f32 %v1696_v49, %v1690_v44  ;;  %v1741_v9 = vadd.f32 %v1721_v40, %v1715_v37 }
 0x1ab   : > { %v1730_v38 = vadd.f32 %v1722_v14, %v1704_v6  ;;  %vm1745_vm5 = vcmp.ge.f32.partialorder %v1729_v19, 0.0  ;;  %v1761_v1 = vmul.f32 0.2, %v1729_v19  ;;  %v1734_v16 = vadd.f32 %v1722_v14, %v1708_v34 }
 0x1ac   : > { %vm1749_vm6 = vcmp.ge.f32.partialorder %v1733_v53, 0.0  ;;  %v1765_v17 = vmul.f32 0.2, %v1733_v53  ;;  %v1738_v27 = vadd.f32 %v1722_v14, %v1712_v13  ;;  %vm1753_vm7 = vcmp.ge.f32.partialorder %v1737_v59, 0.0 }
 0x1ad   : > { %vm1746_vm8 = vcmp.ge.f32.partialorder %v1730_v38, 0.0  ;;  %v1762_v18 = vmul.f32 0.2, %v1730_v38  ;;  %v1777_v20 = vsel %vm1745_vm5, %v1729_v19, %v1761_v1  ;;  %vm1750_vm9 = vcmp.ge.f32.partialorder %v1734_v16, 0.0 }
 0x1ae   : > { %v1766_v43 = vmul.f32 0.2, %v1734_v16  ;;  %v1781_v23 = vsel %vm1749_vm6, %v1733_v53, %v1765_v17  ;;  %vm1754_vm10 = vcmp.ge.f32.partialorder %v1738_v27, 0.0  ;;  %v1769_v24 = vmul.f32 0.2, %v1737_v59 }
 0x1af   : > { %v1778_v35 = vsel %vm1746_vm8, %v1730_v38, %v1762_v18  ;;  %v1770_v25 = vmul.f32 0.2, %v1738_v27  ;;  %v1742_v36 = vadd.f32 %v1722_v14, %v1716_v62  ;;  %vm1757_vm11 = vcmp.ge.f32.partialorder %v1741_v9, 0.0 }
 0x1b0   : > { %v1792_v21 = vpack.c.bf16 %v1778_v35, %v1777_v20  ;;  %v1782_v28 = vsel %vm1750_vm9, %v1734_v16, %v1766_v43  ;;  %v1785_v39 = vsel %vm1753_vm7, %v1737_v59, %v1769_v24  ;;  %v1773_v30 = vmul.f32 0.2, %v1741_v9 }
 0x1b1   : > { %v1794_v42 = vpack.c.bf16 %v1782_v28, %v1781_v23  ;;  %v1786_v45 = vsel %vm1754_vm10, %v1738_v27, %v1770_v25  ;;  %vm1758_vm12 = vcmp.ge.f32.partialorder %v1742_v36, 0.0  ;;  %v1774_v29 = vmul.f32 0.2, %v1742_v36 }
 0x1b2   : > { %1800 = vst [vmem:[%s3277_s5 + $0x8] sm:$0xff] %v1792_v21  ;;  %v1796_v46 = vpack.c.bf16 %v1786_v45, %v1785_v39  ;;  %v1789_v47 = vsel %vm1757_vm11, %v1741_v9, %v1773_v30 }
 0x1b3   : > { %1802 = vst [vmem:[%s3277_s5 + $0x18] sm:$0xff] %v1794_v42  ;;  %v1790_v56 = vsel %vm1758_vm12, %v1742_v36, %v1774_v29 }
 0x1b4   : > { %1804 = vst [vmem:[%s3277_s5 + $0x28] sm:$0xff] %v1796_v46  ;;  %v1798_v31 = vpack.c.bf16 %v1790_v56, %v1789_v47 }
 0x1b6   : > { %1806 = vst [vmem:[%s3277_s5 + $0x38] sm:$0xff] %v1798_v31 }
 0x1b7 PF: > { %p12_p11 = scmp.ge.s32.totalorder %s2661_s22, 10   ;;  %s3278_s18 = smov %s2604_s19 }
 0x1b8   : > { %s3279_s19 = smov %s2670_s25  ;;  %s3280_s20 = smov %s2661_s22 }
 0x1b9   :  { %14 = sbr.rel (!%p12_p11) target bundleno = 2 (0x2), region = 105 }

// kernel: discriminator_forward.7
= control target key start
LH: loop header
LB: loop body
LE: loop exit
PB: predicated region body
PF: predicated region fallthrough
CT: control target
= control target key end

     0   :  { %s9357_s1 = inlined_call_operand.vmem [shape: bf16[8192,128], index: 1, kind: input, shape index: {}]   ;;  %s9358_s0 = inlined_call_operand.vmem [shape: bf16[2,8192], index: 0, kind: input, shape index: {}]   ;;  %s9359_s2 = inlined_call_operand.vmem [shape: f32[1,128], index: 2, kind: input, shape index: {}]   ;;  %s9360_s3 = inlined_call_operand.vmem [shape: f32[2,128], index: 3, kind: output, shape index: {}]  }
   0x1   :  { %v7177_v0 = vld [vmem:[%s9357_s1 + $0x38] sm:$0xff]  ;;  %v7176_v4 = vld [vmem:[%s9357_s1 + $0x30] sm:$0xff]  ;;  %v7175_v8 = vld [vmem:[%s9357_s1 + $0x28] sm:$0xff] }
   0x2   :  { %v7185_v1 = vld [vmem:[%s9357_s1 + $0x78] sm:$0xff]  ;;  %4266 = vmatpush.bf16.msra.mxu0 %v7177_v0  ;;  %v7184_v5 = vld [vmem:[%s9357_s1 + $0x70] sm:$0xff]  ;;  %v7183_v9 = vld [vmem:[%s9357_s1 + $0x68] sm:$0xff] }
   0x3   :  { %v7193_v2 = vld [vmem:[%s9357_s1 + $0xb8] sm:$0xff]  ;;  %4279 = vmatpush.bf16.msra.mxu1 %v7185_v1  ;;  %v7192_v6 = vld [vmem:[%s9357_s1 + $0xb0] sm:$0xff]  ;;  %v7191_v10 = vld [vmem:[%s9357_s1 + $0xa8] sm:$0xff] }
   0x4   :  { %v7201_v3 = vld [vmem:[%s9357_s1 + $0xf8] sm:$0xff]  ;;  %4292 = vmatpush.bf16.msra.mxu2 %v7193_v2  ;;  %v7200_v7 = vld [vmem:[%s9357_s1 + $0xf0] sm:$0xff]  ;;  %v7199_v11 = vld [vmem:[%s9357_s1 + $0xe8] sm:$0xff] }
   0x5   :  { %4305 = vmatpush.bf16.msra.mxu3 %v7201_v3  ;;  %v7174_v12 = vld [vmem:[%s9357_s1 + $0x20] sm:$0xff]  ;;  %v7173_v16 = vld [vmem:[%s9357_s1 + $0x18] sm:$0xff]  ;;  %v7172_v21 = vld [vmem:[%s9357_s1 + $0x10] sm:$0xff] }
   0x6   :  { %4267 = vmatpush.bf16.msra.mxu0 %v7176_v4  ;;  %v7182_v13 = vld [vmem:[%s9357_s1 + $0x60] sm:$0xff]  ;;  %v7181_v17 = vld [vmem:[%s9357_s1 + $0x58] sm:$0xff]  ;;  %v7180_v22 = vld [vmem:[%s9357_s1 + $0x50] sm:$0xff] }
   0x7   :  { %4280 = vmatpush.bf16.msra.mxu1 %v7184_v5  ;;  %v7190_v14 = vld [vmem:[%s9357_s1 + $0xa0] sm:$0xff]  ;;  %v7189_v18 = vld [vmem:[%s9357_s1 + $0x98] sm:$0xff]  ;;  %v7188_v23 = vld [vmem:[%s9357_s1 + $0x90] sm:$0xff] }
   0x8   :  { %4293 = vmatpush.bf16.msra.mxu2 %v7192_v6  ;;  %v7198_v15 = vld [vmem:[%s9357_s1 + $0xe0] sm:$0xff]  ;;  %v7197_v19 = vld [vmem:[%s9357_s1 + $0xd8] sm:$0xff]  ;;  %v7196_v24 = vld [vmem:[%s9357_s1 + $0xd0] sm:$0xff] }
   0x9   :  { %4306 = vmatpush.bf16.msra.mxu3 %v7200_v7  ;;  %v14_v20 = vld [vmem:[%s9358_s0] sm:$0xff]  ;;  %v7171_v25 = vld [vmem:[%s9357_s1 + $0x8] sm:$0xff]  ;;  %v7209_v33 = vld [vmem:[%s9357_s1 + $0x138] sm:$0xff] }
   0xa   :  { %4268 = vmatpush.bf16.msra.mxu0 %v7175_v8  ;;  %1051 = vst [vmem:[#allocation1] ss:$9 sm:$0xff] %v14_v20  ;;  %v7179_v26 = vld [vmem:[%s9357_s1 + $0x48] sm:$0xff]  ;;  %v7170_v29 = vld [vmem:[%s9357_s1] sm:$0xff]  ;;  %v7217_v34 = vld [vmem:[%s9357_s1 + $0x178] sm:$0xff] }
   0xb   :  { %4281 = vmatpush.bf16.msra.mxu1 %v7183_v9  ;;  %v7187_v27 = vld [vmem:[%s9357_s1 + $0x88] sm:$0xff]  ;;  %v7178_v30 = vld [vmem:[%s9357_s1 + $0x40] sm:$0xff]  ;;  %v7225_v35 = vld [vmem:[%s9357_s1 + $0x1b8] sm:$0xff] }
   0xc   :  { %4294 = vmatpush.bf16.msra.mxu2 %v7191_v10  ;;  %v7195_v28 = vld [vmem:[%s9357_s1 + $0xc8] sm:$0xff]  ;;  %v7186_v31 = vld [vmem:[%s9357_s1 + $0x80] sm:$0xff]  ;;  %v7233_v36 = vld [vmem:[%s9357_s1 + $0x1f8] sm:$0xff] }
   0xd   :  { %4307 = vmatpush.bf16.msra.mxu3 %v7199_v11  ;;  %v7194_v32 = vld [vmem:[%s9357_s1 + $0xc0] sm:$0xff]  ;;  %v7208_v37 = vld [vmem:[%s9357_s1 + $0x130] sm:$0xff]  ;;  %v7207_v45 = vld [vmem:[%s9357_s1 + $0x128] sm:$0xff] }
   0xe   :  { %4269 = vmatpush.bf16.msra.mxu0 %v7174_v12  ;;  %v7216_v40 = vld [vmem:[%s9357_s1 + $0x170] sm:$0xff]  ;;  %v7215_v46 = vld [vmem:[%s9357_s1 + $0x168] sm:$0xff]  ;;  %v7206_v49 = vld [vmem:[%s9357_s1 + $0x120] sm:$0xff] }
   0xf   :  { %4282 = vmatpush.bf16.msra.mxu1 %v7182_v13  ;;  %v7224_v43 = vld [vmem:[%s9357_s1 + $0x1b0] sm:$0xff]  ;;  %v7223_v47 = vld [vmem:[%s9357_s1 + $0x1a8] sm:$0xff]  ;;  %v7214_v50 = vld [vmem:[%s9357_s1 + $0x160] sm:$0xff] }
  0x10   :  { %4295 = vmatpush.bf16.msra.mxu2 %v7190_v14  ;;  %v7232_v44 = vld [vmem:[%s9357_s1 + $0x1f0] sm:$0xff]  ;;  %v7231_v48 = vld [vmem:[%s9357_s1 + $0x1e8] sm:$0xff]  ;;  %v7222_v56 = vld [vmem:[%s9357_s1 + $0x1a0] sm:$0xff] }
  0x11   :  { %4308 = vmatpush.bf16.msra.mxu3 %v7198_v15  ;;  %v1054_v38 = vld [vmem:[#allocation1 + $0x12] sm:$0xff]  ;;  %v1052_v39 = vld [vmem:[#allocation1] sm:$0xff]  ;;  %v1053_v42 = vld [vmem:[#allocation1 + $0x9] sm:$0xff] }
  0x12   :  { %4270 = vmatpush.bf16.msra.mxu0 %v7173_v16  ;;  %v1055_v41 = vld [vmem:[#allocation1 + $0x1b] sm:$0xff]  ;;  %v15_v52 = vld [vmem:[%s9358_s0 + $0x8] sm:$0xff]  ;;  %v7204_v62 = vld [vmem:[%s9357_s1 + $0x110] sm:$0xff] }
  0x13   :  { %4283 = vmatpush.bf16.msra.mxu1 %v7181_v17  ;;  %v1058_v51 = vld [vmem:[#allocation1 + $0x36] sm:$0xff]  ;;  %v1056_v53 = vld [vmem:[#allocation1 + $0x24] sm:$0xff]  ;;  %v1057_v55 = vld [vmem:[#allocation1 + $0x2d] sm:$0xff] }
  0x14   :  { %4296 = vmatpush.bf16.msra.mxu2 %v7189_v18  ;;  %v1059_v54 = vld [vmem:[#allocation1 + $0x3f] sm:$0xff]  ;;  %v7212_v63 = vld [vmem:[%s9357_s1 + $0x150] sm:$0xff]  ;;  %v7203_v2 = vld [vmem:[%s9357_s1 + $0x108] sm:$0xff] }
  0x15   :  { %4309 = vmatpush.bf16.msra.mxu3 %v7197_v19  ;;  %v7230_v57 = vld [vmem:[%s9357_s1 + $0x1e0] sm:$0xff]  ;;  %1061 = vst [vmem:[#allocation1] ss:$9 sm:$0xff] %v15_v52  ;;  %v7205_v58 = vld [vmem:[%s9357_s1 + $0x118] sm:$0xff]  ;;  %v7220_v0 = vld [vmem:[%s9357_s1 + $0x190] sm:$0xff] }
  0x16   :  { %4271 = vmatpush.bf16.msra.mxu0 %v7172_v21  ;;  %v7213_v59 = vld [vmem:[%s9357_s1 + $0x158] sm:$0xff]  ;;  %v7228_v1 = vld [vmem:[%s9357_s1 + $0x1d0] sm:$0xff]  ;;  %v7211_v3 = vld [vmem:[%s9357_s1 + $0x148] sm:$0xff] }
  0x17   :  { %4284 = vmatpush.bf16.msra.mxu1 %v7180_v22  ;;  %v7221_v60 = vld [vmem:[%s9357_s1 + $0x198] sm:$0xff]  ;;  %v7219_v4 = vld [vmem:[%s9357_s1 + $0x188] sm:$0xff]  ;;  %v7202_v6 = vld [vmem:[%s9357_s1 + $0x100] sm:$0xff] }
  0x18   :  { %4297 = vmatpush.bf16.msra.mxu2 %v7188_v23  ;;  %v7229_v61 = vld [vmem:[%s9357_s1 + $0x1d8] sm:$0xff]  ;;  %v7227_v5 = vld [vmem:[%s9357_s1 + $0x1c8] sm:$0xff]  ;;  %v7210_v7 = vld [vmem:[%s9357_s1 + $0x140] sm:$0xff] }
  0x19   :  { %4310 = vmatpush.bf16.msra.mxu3 %v7196_v24  ;;  %v7218_v8 = vld [vmem:[%s9357_s1 + $0x180] sm:$0xff]  ;;  %v7241_v10 = vld [vmem:[%s9357_s1 + $0x238] sm:$0xff]  ;;  %v7240_v14 = vld [vmem:[%s9357_s1 + $0x230] sm:$0xff] }
  0x1a   :  { %4272 = vmatpush.bf16.msra.mxu0 %v7171_v25  ;;  %v7226_v9 = vld [vmem:[%s9357_s1 + $0x1c0] sm:$0xff]  ;;  %v7249_v11 = vld [vmem:[%s9357_s1 + $0x278] sm:$0xff]  ;;  %v7248_v15 = vld [vmem:[%s9357_s1 + $0x270] sm:$0xff] }
  0x1b   :  { %4285 = vmatpush.bf16.msra.mxu1 %v7179_v26  ;;  %v7257_v12 = vld [vmem:[%s9357_s1 + $0x2b8] sm:$0xff]  ;;  %v7256_v16 = vld [vmem:[%s9357_s1 + $0x2b0] sm:$0xff]  ;;  %v7239_v18 = vld [vmem:[%s9357_s1 + $0x228] sm:$0xff] }
  0x1c   :  { %4298 = vmatpush.bf16.msra.mxu2 %v7187_v27  ;;  %v7265_v13 = vld [vmem:[%s9357_s1 + $0x2f8] sm:$0xff]  ;;  %v7264_v17 = vld [vmem:[%s9357_s1 + $0x2f0] sm:$0xff]  ;;  %v7247_v19 = vld [vmem:[%s9357_s1 + $0x268] sm:$0xff] }
  0x1d   :  { %4311 = vmatpush.bf16.msra.mxu3 %v7195_v28  ;;  %v7255_v20 = vld [vmem:[%s9357_s1 + $0x2a8] sm:$0xff]  ;;  %v7238_v22 = vld [vmem:[%s9357_s1 + $0x220] sm:$0xff]  ;;  %v7237_v26 = vld [vmem:[%s9357_s1 + $0x218] sm:$0xff] }
  0x1e   :  { %4273 = vmatpush.bf16.msra.mxu0 %v7170_v29  ;;  %v7263_v21 = vld [vmem:[%s9357_s1 + $0x2e8] sm:$0xff]  ;;  %v7246_v23 = vld [vmem:[%s9357_s1 + $0x260] sm:$0xff]  ;;  %v7245_v27 = vld [vmem:[%s9357_s1 + $0x258] sm:$0xff] }
  0x1f   :  { %4286 = vmatpush.bf16.msra.mxu1 %v7178_v30  ;;  %v7254_v24 = vld [vmem:[%s9357_s1 + $0x2a0] sm:$0xff]  ;;  %v7253_v28 = vld [vmem:[%s9357_s1 + $0x298] sm:$0xff]  ;;  %v7236_v30 = vld [vmem:[%s9357_s1 + $0x210] sm:$0xff] }
  0x20   :  { %4299 = vmatpush.bf16.msra.mxu2 %v7186_v31  ;;  %v7262_v25 = vld [vmem:[%s9357_s1 + $0x2e0] sm:$0xff]  ;;  %v7261_v29 = vld [vmem:[%s9357_s1 + $0x2d8] sm:$0xff]  ;;  %v7244_v31 = vld [vmem:[%s9357_s1 + $0x250] sm:$0xff] }
  0x21   :  { %4312 = vmatpush.bf16.msra.mxu3 %v7194_v32  ;;  %4274 = vmatmul.bf16.vlgmr.msra.gmra.mxu0 %v1052_v39  ;;  %v7252_v32 = vld [vmem:[%s9357_s1 + $0x290] sm:$0xff]  ;;  %v7242_v39 = vld [vmem:[%s9357_s1 + $0x240] sm:$0xff] }
  0x22   :  { %4318 = vmatpush.bf16.msrb.mxu0 %v7209_v33  ;;  %4287 = vmatmul.bf16.vlgmr.msra.gmra.mxu1 %v1053_v42  ;;  %v7260_v33 = vld [vmem:[%s9357_s1 + $0x2d0] sm:$0xff]  ;;  %v7273_v42 = vld [vmem:[%s9357_s1 + $0x338] sm:$0xff] }
  0x23   :  { %4331 = vmatpush.bf16.msrb.mxu1 %v7217_v34  ;;  %4300 = vmatmul.bf16.vlgmr.msra.gmra.mxu2 %v1054_v38  ;;  %v7235_v34 = vld [vmem:[%s9357_s1 + $0x208] sm:$0xff]  ;;  %v7234_v38 = vld [vmem:[%s9357_s1 + $0x200] sm:$0xff]  ;;  %v7280_v52 = vld [vmem:[%s9357_s1 + $0x370] sm:$0xff] }
  0x24   :  { %4344 = vmatpush.bf16.msrb.mxu2 %v7225_v35  ;;  %4313 = vmatmul.bf16.vlgmr.msra.gmra.mxu3 %v1055_v41  ;;  %v7243_v35 = vld [vmem:[%s9357_s1 + $0x248] sm:$0xff]  ;;  %v7258_v41 = vld [vmem:[%s9357_s1 + $0x2c0] sm:$0xff] }
  0x25   :  { %4357 = vmatpush.bf16.msrb.mxu3 %v7233_v36  ;;  %v7251_v36 = vld [vmem:[%s9357_s1 + $0x288] sm:$0xff] }
  0x26   :  { %4319 = vmatpush.bf16.msrb.mxu0 %v7208_v37  ;;  %v7259_v37 = vld [vmem:[%s9357_s1 + $0x2c8] sm:$0xff] }
  0x27   :  { %4332 = vmatpush.bf16.msrb.mxu1 %v7216_v40  ;;  %v7250_v40 = vld [vmem:[%s9357_s1 + $0x280] sm:$0xff] }
  0x28   :  { %4345 = vmatpush.bf16.msrb.mxu2 %v7224_v43  ;;  %v7281_v43 = vld [vmem:[%s9357_s1 + $0x378] sm:$0xff] }
  0x29   :  { %4358 = vmatpush.bf16.msrb.mxu3 %v7232_v44  ;;  %v16_v44 = vld [vmem:[%s9358_s0 + $0x10] sm:$0xff] }
  0x2a   :  { %4320 = vmatpush.bf16.msrb.mxu0 %v7207_v45  ;;  %v7289_v45 = vld [vmem:[%s9357_s1 + $0x3b8] sm:$0xff] }
  0x2b   :  { %4333 = vmatpush.bf16.msrb.mxu1 %v7215_v46  ;;  %v7297_v46 = vld [vmem:[%s9357_s1 + $0x3f8] sm:$0xff] }
  0x2c   :  { %4346 = vmatpush.bf16.msrb.mxu2 %v7223_v47  ;;  %v1062_v47 = vld [vmem:[#allocation1] sm:$0xff] }
  0x2d   :  { %4359 = vmatpush.bf16.msrb.mxu3 %v7231_v48  ;;  %v1064_v48 = vld [vmem:[#allocation1 + $0x12] sm:$0xff] }
  0x2e   :  { %4321 = vmatpush.bf16.msrb.mxu0 %v7206_v49  ;;  %v1063_v49 = vld [vmem:[#allocation1 + $0x9] sm:$0xff] }
  0x2f   :  { %4334 = vmatpush.bf16.msrb.mxu1 %v7214_v50  ;;  %v1065_v50 = vld [vmem:[#allocation1 + $0x1b] sm:$0xff] }
  0x30   :  { %4347 = vmatpush.bf16.msrb.mxu2 %v7222_v56  ;;  %v8030_v56 = vld [vmem:[#allocation1 + $0x36] sm:$0xff] }
  0x31   :  { %4360 = vmatpush.bf16.msrb.mxu3 %v7230_v57  ;;  %v8032_v57 = vld [vmem:[#allocation1 + $0x2d] sm:$0xff] }
  0x32   :  { %4322 = vmatpush.bf16.msrb.mxu0 %v7205_v58  ;;  %v8034_v58 = vld [vmem:[#allocation1 + $0x3f] sm:$0xff] }
  0x33   :  { %4335 = vmatpush.bf16.msrb.mxu1 %v7213_v59  ;;  %v7271_v59 = vld [vmem:[%s9357_s1 + $0x328] sm:$0xff] }
  0x34   :  { %4348 = vmatpush.bf16.msrb.mxu2 %v7221_v60  ;;  %v7279_v60 = vld [vmem:[%s9357_s1 + $0x368] sm:$0xff] }
  0x35   :  { %4361 = vmatpush.bf16.msrb.mxu3 %v7229_v61  ;;  %v7287_v61 = vld [vmem:[%s9357_s1 + $0x3a8] sm:$0xff] }
  0x36   :  { %4323 = vmatpush.bf16.msrb.mxu0 %v7204_v62  ;;  %v7295_v62 = vld [vmem:[%s9357_s1 + $0x3e8] sm:$0xff] }
  0x37   :  { %4336 = vmatpush.bf16.msrb.mxu1 %v7212_v63  ;;  %v7270_v63 = vld [vmem:[%s9357_s1 + $0x320] sm:$0xff] }
  0x38   :  { %4349 = vmatpush.bf16.msrb.mxu2 %v7220_v0  ;;  %v7278_v0 = vld [vmem:[%s9357_s1 + $0x360] sm:$0xff] }
  0x39   :  { %4362 = vmatpush.bf16.msrb.mxu3 %v7228_v1  ;;  %v7286_v1 = vld [vmem:[%s9357_s1 + $0x3a0] sm:$0xff] }
  0x3a   :  { %4324 = vmatpush.bf16.msrb.mxu0 %v7203_v2  ;;  %v7294_v2 = vld [vmem:[%s9357_s1 + $0x3e0] sm:$0xff] }
  0x3b   :  { %4337 = vmatpush.bf16.msrb.mxu1 %v7211_v3  ;;  %v7269_v3 = vld [vmem:[%s9357_s1 + $0x318] sm:$0xff] }
  0x3c   :  { %4350 = vmatpush.bf16.msrb.mxu2 %v7219_v4  ;;  %v7277_v4 = vld [vmem:[%s9357_s1 + $0x358] sm:$0xff] }
  0x3d   :  { %4363 = vmatpush.bf16.msrb.mxu3 %v7227_v5  ;;  %v7285_v5 = vld [vmem:[%s9357_s1 + $0x398] sm:$0xff] }
  0x3e   :  { %4325 = vmatpush.bf16.msrb.mxu0 %v7202_v6  ;;  %v7293_v6 = vld [vmem:[%s9357_s1 + $0x3d8] sm:$0xff] }
  0x3f   :  { %4338 = vmatpush.bf16.msrb.mxu1 %v7210_v7  ;;  %v7268_v7 = vld [vmem:[%s9357_s1 + $0x310] sm:$0xff] }
  0x40   :  { %4351 = vmatpush.bf16.msrb.mxu2 %v7218_v8  ;;  %v7276_v8 = vld [vmem:[%s9357_s1 + $0x350] sm:$0xff] }
  0x41   :  { %4364 = vmatpush.bf16.msrb.mxu3 %v7226_v9  ;;  %4326 = vmatmul.bf16.vlgmr.msrb.gmra.mxu0 %v1056_v53  ;;  %v7288_v53 = vld [vmem:[%s9357_s1 + $0x3b0] sm:$0xff] }
  0x42   :  { %4370 = vmatpush.bf16.msra.mxu0 %v7241_v10  ;;  %4339 = vmatmul.bf16.vlgmr.msrb.gmra.mxu1 %v1057_v55  ;;  %v8028_v55 = vld [vmem:[#allocation1 + $0x24] sm:$0xff]  ;;  %v7284_v9 = vld [vmem:[%s9357_s1 + $0x390] sm:$0xff] }
  0x43   :  { %4383 = vmatpush.bf16.msra.mxu1 %v7249_v11  ;;  %4352 = vmatmul.bf16.vlgmr.msrb.gmra.mxu2 %v1058_v51  ;;  %v7272_v51 = vld [vmem:[%s9357_s1 + $0x330] sm:$0xff]  ;;  %1071 = vst [vmem:[#allocation1] ss:$9 sm:$0xff] %v16_v44  ;;  %v7267_v11 = vld [vmem:[%s9357_s1 + $0x308] sm:$0xff] }
  0x44   :  { %4396 = vmatpush.bf16.msra.mxu2 %v7257_v12  ;;  %4365 = vmatmul.bf16.vlgmr.msrb.gmra.mxu3 %v1059_v54  ;;  %v7296_v54 = vld [vmem:[%s9357_s1 + $0x3f0] sm:$0xff]  ;;  %v7275_v12 = vld [vmem:[%s9357_s1 + $0x348] sm:$0xff] }
  0x45   :  { %4409 = vmatpush.bf16.msra.mxu3 %v7265_v13  ;;  %v7292_v10 = vld [vmem:[%s9357_s1 + $0x3d0] sm:$0xff]  ;;  %v7283_v13 = vld [vmem:[%s9357_s1 + $0x388] sm:$0xff] }
  0x46   :  { %4371 = vmatpush.bf16.msra.mxu0 %v7240_v14  ;;  %v7291_v14 = vld [vmem:[%s9357_s1 + $0x3c8] sm:$0xff] }
  0x47   :  { %4384 = vmatpush.bf16.msra.mxu1 %v7248_v15  ;;  %v7266_v15 = vld [vmem:[%s9357_s1 + $0x300] sm:$0xff]  ;;  %v7307_v44 = vld [vmem:[%s9357_s1 + $0x448] sm:$0xff] }
  0x48   :  { %4397 = vmatpush.bf16.msra.mxu2 %v7256_v16  ;;  %v7274_v16 = vld [vmem:[%s9357_s1 + $0x340] sm:$0xff] }
  0x49   :  { %4410 = vmatpush.bf16.msra.mxu3 %v7264_v17  ;;  %v7282_v17 = vld [vmem:[%s9357_s1 + $0x380] sm:$0xff] }
  0x4a   :  { %4372 = vmatpush.bf16.msra.mxu0 %v7239_v18  ;;  %v7290_v18 = vld [vmem:[%s9357_s1 + $0x3c0] sm:$0xff] }
  0x4b   :  { %4385 = vmatpush.bf16.msra.mxu1 %v7247_v19  ;;  %v7305_v19 = vld [vmem:[%s9357_s1 + $0x438] sm:$0xff] }
  0x4c   :  { %4398 = vmatpush.bf16.msra.mxu2 %v7255_v20  ;;  %v7313_v20 = vld [vmem:[%s9357_s1 + $0x478] sm:$0xff] }
  0x4d   :  { %4411 = vmatpush.bf16.msra.mxu3 %v7263_v21  ;;  %v7321_v21 = vld [vmem:[%s9357_s1 + $0x4b8] sm:$0xff] }
  0x4e   :  { %4373 = vmatpush.bf16.msra.mxu0 %v7238_v22  ;;  %v7329_v22 = vld [vmem:[%s9357_s1 + $0x4f8] sm:$0xff] }
  0x4f   :  { %4386 = vmatpush.bf16.msra.mxu1 %v7246_v23  ;;  %v7304_v23 = vld [vmem:[%s9357_s1 + $0x430] sm:$0xff] }
  0x50   :  { %4399 = vmatpush.bf16.msra.mxu2 %v7254_v24  ;;  %v7312_v24 = vld [vmem:[%s9357_s1 + $0x470] sm:$0xff] }
  0x51   :  { %4412 = vmatpush.bf16.msra.mxu3 %v7262_v25  ;;  %v7320_v25 = vld [vmem:[%s9357_s1 + $0x4b0] sm:$0xff] }
  0x52   :  { %4374 = vmatpush.bf16.msra.mxu0 %v7237_v26  ;;  %v7328_v26 = vld [vmem:[%s9357_s1 + $0x4f0] sm:$0xff] }
  0x53   :  { %4387 = vmatpush.bf16.msra.mxu1 %v7245_v27  ;;  %v7303_v27 = vld [vmem:[%s9357_s1 + $0x428] sm:$0xff] }
  0x54   :  { %4400 = vmatpush.bf16.msra.mxu2 %v7253_v28  ;;  %v7311_v28 = vld [vmem:[%s9357_s1 + $0x468] sm:$0xff] }
  0x55   :  { %4413 = vmatpush.bf16.msra.mxu3 %v7261_v29  ;;  %v7319_v29 = vld [vmem:[%s9357_s1 + $0x4a8] sm:$0xff] }
  0x56   :  { %4375 = vmatpush.bf16.msra.mxu0 %v7236_v30  ;;  %v7327_v30 = vld [vmem:[%s9357_s1 + $0x4e8] sm:$0xff] }
  0x57   :  { %4388 = vmatpush.bf16.msra.mxu1 %v7244_v31  ;;  %v7302_v31 = vld [vmem:[%s9357_s1 + $0x420] sm:$0xff] }
  0x58   :  { %4401 = vmatpush.bf16.msra.mxu2 %v7252_v32  ;;  %v7310_v32 = vld [vmem:[%s9357_s1 + $0x460] sm:$0xff] }
  0x59   :  { %4414 = vmatpush.bf16.msra.mxu3 %v7260_v33  ;;  %v7318_v33 = vld [vmem:[%s9357_s1 + $0x4a0] sm:$0xff] }
  0x5a   :  { %4376 = vmatpush.bf16.msra.mxu0 %v7235_v34  ;;  %v7326_v34 = vld [vmem:[%s9357_s1 + $0x4e0] sm:$0xff] }
  0x5b   :  { %4389 = vmatpush.bf16.msra.mxu1 %v7243_v35  ;;  %v7301_v35 = vld [vmem:[%s9357_s1 + $0x418] sm:$0xff] }
  0x5c   :  { %4402 = vmatpush.bf16.msra.mxu2 %v7251_v36  ;;  %v7309_v36 = vld [vmem:[%s9357_s1 + $0x458] sm:$0xff] }
  0x5d   :  { %4415 = vmatpush.bf16.msra.mxu3 %v7259_v37  ;;  %v7317_v37 = vld [vmem:[%s9357_s1 + $0x498] sm:$0xff] }
  0x5e   :  { %4377 = vmatpush.bf16.msra.mxu0 %v7234_v38  ;;  %v7325_v38 = vld [vmem:[%s9357_s1 + $0x4d8] sm:$0xff] }
  0x5f   :  { %4390 = vmatpush.bf16.msra.mxu1 %v7242_v39  ;;  %v7300_v39 = vld [vmem:[%s9357_s1 + $0x410] sm:$0xff] }
  0x60   :  { %4403 = vmatpush.bf16.msra.mxu2 %v7250_v40  ;;  %v7308_v40 = vld [vmem:[%s9357_s1 + $0x450] sm:$0xff] }
  0x61   :  { %4416 = vmatpush.bf16.msra.mxu3 %v7258_v41  ;;  %4378 = vmatmul.bf16.vlgmr.msra.gmra.mxu0 %v1062_v47  ;;  %v7316_v41 = vld [vmem:[%s9357_s1 + $0x490] sm:$0xff]  ;;  %v7298_v47 = vld [vmem:[%s9357_s1 + $0x400] sm:$0xff] }
  0x62   :  { %4422 = vmatpush.bf16.msrb.mxu0 %v7273_v42  ;;  %4391 = vmatmul.bf16.vlgmr.msra.gmra.mxu1 %v1063_v49  ;;  %v7324_v42 = vld [vmem:[%s9357_s1 + $0x4d0] sm:$0xff]  ;;  %v7314_v49 = vld [vmem:[%s9357_s1 + $0x480] sm:$0xff] }
  0x63   :  { %4435 = vmatpush.bf16.msrb.mxu1 %v7281_v43  ;;  %4404 = vmatmul.bf16.vlgmr.msra.gmra.mxu2 %v1064_v48  ;;  %v7299_v43 = vld [vmem:[%s9357_s1 + $0x408] sm:$0xff]  ;;  %v7306_v48 = vld [vmem:[%s9357_s1 + $0x440] sm:$0xff] }
  0x64   :  { %4448 = vmatpush.bf16.msrb.mxu2 %v7289_v45  ;;  %4417 = vmatmul.bf16.vlgmr.msra.gmra.mxu3 %v1065_v50  ;;  %v7315_v45 = vld [vmem:[%s9357_s1 + $0x488] sm:$0xff]  ;;  %v7322_v50 = vld [vmem:[%s9357_s1 + $0x4c0] sm:$0xff] }
  0x65   :  { %4461 = vmatpush.bf16.msrb.mxu3 %v7297_v46  ;;  %v7323_v46 = vld [vmem:[%s9357_s1 + $0x4c8] sm:$0xff] }
  0x66   :  { %4423 = vmatpush.bf16.msrb.mxu0 %v7272_v51  ;;  %v7337_v51 = vld [vmem:[%s9357_s1 + $0x538] sm:$0xff] }
  0x67   :  { %4436 = vmatpush.bf16.msrb.mxu1 %v7280_v52  ;;  %v7345_v52 = vld [vmem:[%s9357_s1 + $0x578] sm:$0xff] }
  0x68   :  { %4449 = vmatpush.bf16.msrb.mxu2 %v7288_v53  ;;  %v17_v53 = vld [vmem:[%s9358_s0 + $0x18] sm:$0xff] }
  0x69   :  { %4462 = vmatpush.bf16.msrb.mxu3 %v7296_v54  ;;  %v7353_v54 = vld [vmem:[%s9357_s1 + $0x5b8] sm:$0xff] }
  0x6a   :  { %4424 = vmatpush.bf16.msrb.mxu0 %v7271_v59  ;;  %v1075_v59 = vld [vmem:[#allocation1 + $0x1b] sm:$0xff] }
  0x6b   :  { %4437 = vmatpush.bf16.msrb.mxu1 %v7279_v60  ;;  %v7336_v60 = vld [vmem:[%s9357_s1 + $0x530] sm:$0xff] }
  0x6c   :  { %4450 = vmatpush.bf16.msrb.mxu2 %v7287_v61  ;;  %v7344_v61 = vld [vmem:[%s9357_s1 + $0x570] sm:$0xff] }
  0x6d   :  { %4463 = vmatpush.bf16.msrb.mxu3 %v7295_v62  ;;  %v7352_v62 = vld [vmem:[%s9357_s1 + $0x5b0] sm:$0xff] }
  0x6e   :  { %4425 = vmatpush.bf16.msrb.mxu0 %v7270_v63  ;;  %v7360_v63 = vld [vmem:[%s9357_s1 + $0x5f0] sm:$0xff] }
  0x6f   :  { %4438 = vmatpush.bf16.msrb.mxu1 %v7278_v0  ;;  %v8235_v0 = vld [vmem:[#allocation1 + $0x24] sm:$0xff] }
  0x70   :  { %4451 = vmatpush.bf16.msrb.mxu2 %v7286_v1  ;;  %v8237_v1 = vld [vmem:[#allocation1 + $0x36] sm:$0xff] }
  0x71   :  { %4464 = vmatpush.bf16.msrb.mxu3 %v7294_v2  ;;  %v8239_v2 = vld [vmem:[#allocation1 + $0x2d] sm:$0xff] }
  0x72   :  { %4426 = vmatpush.bf16.msrb.mxu0 %v7269_v3  ;;  %v8241_v3 = vld [vmem:[#allocation1 + $0x3f] sm:$0xff] }
  0x73   :  { %4439 = vmatpush.bf16.msrb.mxu1 %v7277_v4  ;;  %v7335_v4 = vld [vmem:[%s9357_s1 + $0x528] sm:$0xff] }
  0x74   :  { %4452 = vmatpush.bf16.msrb.mxu2 %v7285_v5  ;;  %v7343_v5 = vld [vmem:[%s9357_s1 + $0x568] sm:$0xff] }
  0x75   :  { %4465 = vmatpush.bf16.msrb.mxu3 %v7293_v6  ;;  %v7682_v6 = vld [vmem:[%s9359_s2] ss:$0 sm:$0xff] }
  0x76   :  { %4427 = vmatpush.bf16.msrb.mxu0 %v7268_v7  ;;  %v7351_v7 = vld [vmem:[%s9357_s1 + $0x5a8] sm:$0xff] }
  0x77   :  { %4440 = vmatpush.bf16.msrb.mxu1 %v7276_v8  ;;  %v7359_v8 = vld [vmem:[%s9357_s1 + $0x5e8] sm:$0xff] }
  0x78   :  { %4453 = vmatpush.bf16.msrb.mxu2 %v7284_v9 }
  0x79   :  { %4466 = vmatpush.bf16.msrb.mxu3 %v7292_v10  ;;  %v7334_v10 = vld [vmem:[%s9357_s1 + $0x520] sm:$0xff] }
  0x7a   :  { %4428 = vmatpush.bf16.msrb.mxu0 %v7267_v11  ;;  %v7342_v11 = vld [vmem:[%s9357_s1 + $0x560] sm:$0xff] }
  0x7b   :  { %4441 = vmatpush.bf16.msrb.mxu1 %v7275_v12 }
  0x7c   :  { %4454 = vmatpush.bf16.msrb.mxu2 %v7283_v13 }
  0x7d   :  { %4467 = vmatpush.bf16.msrb.mxu3 %v7291_v14  ;;  %v7350_v14 = vld [vmem:[%s9357_s1 + $0x5a0] sm:$0xff] }
  0x7e   :  { %4429 = vmatpush.bf16.msrb.mxu0 %v7266_v15  ;;  %v7358_v15 = vld [vmem:[%s9357_s1 + $0x5e0] sm:$0xff] }
  0x7f   :  { %4442 = vmatpush.bf16.msrb.mxu1 %v7274_v16 }
  0x80   :  { %4455 = vmatpush.bf16.msrb.mxu2 %v7282_v17  ;;  %v7333_v17 = vld [vmem:[%s9357_s1 + $0x518] sm:$0xff] }
  0x81   :  { %4468 = vmatpush.bf16.msrb.mxu3 %v7290_v18  ;;  %4430 = vmatmul.bf16.vlgmr.msrb.gmra.mxu0 %v8028_v55  ;;  %v7361_v55 = vld [vmem:[%s9357_s1 + $0x5f8] sm:$0xff] }
  0x82   :  { %4474 = vmatpush.bf16.msra.mxu0 %v7305_v19  ;;  %4443 = vmatmul.bf16.vlgmr.msrb.gmra.mxu1 %v8032_v57  ;;  %v1074_v57 = vld [vmem:[#allocation1 + $0x12] sm:$0xff] }
  0x83   :  { %4487 = vmatpush.bf16.msra.mxu1 %v7313_v20  ;;  %4456 = vmatmul.bf16.vlgmr.msrb.gmra.mxu2 %v8030_v56  ;;  %v1072_v56 = vld [vmem:[#allocation1] sm:$0xff]  ;;  %v7341_v18 = vld [vmem:[%s9357_s1 + $0x558] sm:$0xff] }
  0x84   :  { %4500 = vmatpush.bf16.msra.mxu2 %v7321_v21  ;;  %4469 = vmatmul.bf16.vlgmr.msrb.gmra.mxu3 %v8034_v58  ;;  %v1073_v58 = vld [vmem:[#allocation1 + $0x9] sm:$0xff]  ;;  %v7349_v19 = vld [vmem:[%s9357_s1 + $0x598] sm:$0xff] }
  0x85   :  { %4513 = vmatpush.bf16.msra.mxu3 %v7329_v22  ;;  %1081 = vst [vmem:[#allocation1] ss:$9 sm:$0xff] %v17_v53  ;;  %v7357_v20 = vld [vmem:[%s9357_s1 + $0x5d8] sm:$0xff] }
  0x86   :  { %4475 = vmatpush.bf16.msra.mxu0 %v7304_v23 }
  0x87   :  { %4488 = vmatpush.bf16.msra.mxu1 %v7312_v24 }
  0x88   :  { %4501 = vmatpush.bf16.msra.mxu2 %v7320_v25  ;;  %v7332_v25 = vld [vmem:[%s9357_s1 + $0x510] sm:$0xff] }
  0x89   :  { %4514 = vmatpush.bf16.msra.mxu3 %v7328_v26  ;;  %v7340_v26 = vld [vmem:[%s9357_s1 + $0x550] sm:$0xff] }
  0x8a   :  { %4476 = vmatpush.bf16.msra.mxu0 %v7303_v27 }
  0x8b   :  { %4489 = vmatpush.bf16.msra.mxu1 %v7311_v28 }
  0x8c   :  { %4502 = vmatpush.bf16.msra.mxu2 %v7319_v29  ;;  %v7348_v29 = vld [vmem:[%s9357_s1 + $0x590] sm:$0xff] }
  0x8d   :  { %4515 = vmatpush.bf16.msra.mxu3 %v7327_v30  ;;  %v7356_v30 = vld [vmem:[%s9357_s1 + $0x5d0] sm:$0xff] }
  0x8e   :  { %4477 = vmatpush.bf16.msra.mxu0 %v7302_v31  ;;  %v7331_v31 = vld [vmem:[%s9357_s1 + $0x508] sm:$0xff] }
  0x8f   :  { %4490 = vmatpush.bf16.msra.mxu1 %v7310_v32  ;;  %v7339_v32 = vld [vmem:[%s9357_s1 + $0x548] sm:$0xff] }
  0x90   :  { %4503 = vmatpush.bf16.msra.mxu2 %v7318_v33  ;;  %v7347_v33 = vld [vmem:[%s9357_s1 + $0x588] sm:$0xff] }
  0x91   :  { %4516 = vmatpush.bf16.msra.mxu3 %v7326_v34  ;;  %v7355_v34 = vld [vmem:[%s9357_s1 + $0x5c8] sm:$0xff] }
  0x92   :  { %4478 = vmatpush.bf16.msra.mxu0 %v7301_v35 }
  0x93   :  { %4491 = vmatpush.bf16.msra.mxu1 %v7309_v36 }
  0x94   :  { %4504 = vmatpush.bf16.msra.mxu2 %v7317_v37  ;;  %v7330_v37 = vld [vmem:[%s9357_s1 + $0x500] sm:$0xff] }
  0x95   :  { %4517 = vmatpush.bf16.msra.mxu3 %v7325_v38  ;;  %v7338_v38 = vld [vmem:[%s9357_s1 + $0x540] sm:$0xff] }
  0x96   :  { %4479 = vmatpush.bf16.msra.mxu0 %v7300_v39  ;;  %v7346_v39 = vld [vmem:[%s9357_s1 + $0x580] sm:$0xff] }
  0x97   :  { %4492 = vmatpush.bf16.msra.mxu1 %v7308_v40  ;;  %v7354_v40 = vld [vmem:[%s9357_s1 + $0x5c0] sm:$0xff] }
  0x98   :  { %4505 = vmatpush.bf16.msra.mxu2 %v7316_v41  ;;  %v7369_v41 = vld [vmem:[%s9357_s1 + $0x638] sm:$0xff] }
  0x99   :  { %4518 = vmatpush.bf16.msra.mxu3 %v7324_v42  ;;  %v7377_v42 = vld [vmem:[%s9357_s1 + $0x678] sm:$0xff] }
  0x9a   :  { %4480 = vmatpush.bf16.msra.mxu0 %v7299_v43  ;;  %v7385_v43 = vld [vmem:[%s9357_s1 + $0x6b8] sm:$0xff] }
  0x9b   :  { %4493 = vmatpush.bf16.msra.mxu1 %v7307_v44  ;;  %v7393_v44 = vld [vmem:[%s9357_s1 + $0x6f8] sm:$0xff] }
  0x9c   :  { %4506 = vmatpush.bf16.msra.mxu2 %v7315_v45  ;;  %v7368_v45 = vld [vmem:[%s9357_s1 + $0x630] sm:$0xff] }
  0x9d   :  { %4519 = vmatpush.bf16.msra.mxu3 %v7323_v46  ;;  %v7376_v46 = vld [vmem:[%s9357_s1 + $0x670] sm:$0xff] }
  0x9e   :  { %4481 = vmatpush.bf16.msra.mxu0 %v7298_v47  ;;  %v4275_v9 = vpop.f32.mrf.mxu0  ;;  %v7384_v47 = vld [vmem:[%s9357_s1 + $0x6b0] sm:$0xff] }
  0x9f   :  { %4494 = vmatpush.bf16.msra.mxu1 %v7306_v48  ;;  %v4276_v12 = vadd.f32 %v7682_v6, %v4275_v9  ;;  %v4288_v13 = vpop.f32.mrf.mxu1  ;;  %v7392_v48 = vld [vmem:[%s9357_s1 + $0x6f0] sm:$0xff] }
  0xa0   :  { %4507 = vmatpush.bf16.msra.mxu2 %v7314_v49  ;;  %v7367_v49 = vld [vmem:[%s9357_s1 + $0x628] sm:$0xff]  ;;  %v7372_v6 = vld [vmem:[%s9357_s1 + $0x650] sm:$0xff] }
  0xa1   :  { %4520 = vmatpush.bf16.msra.mxu3 %v7322_v50  ;;  %4482 = vmatmul.bf16.vlgmr.msra.gmra.mxu0 %v1072_v56  ;;  %v4289_v16 = vadd.f32 %v4288_v13, %v4276_v12  ;;  %v7375_v50 = vld [vmem:[%s9357_s1 + $0x668] sm:$0xff]  ;;  %v7380_v9 = vld [vmem:[%s9357_s1 + $0x690] sm:$0xff] }
  0xa2   :  { %4526 = vmatpush.bf16.msrb.mxu0 %v7337_v51  ;;  %4495 = vmatmul.bf16.vlgmr.msra.gmra.mxu1 %v1073_v58  ;;  %v7383_v51 = vld [vmem:[%s9357_s1 + $0x6a8] sm:$0xff]  ;;  %v7382_v58 = vld [vmem:[%s9357_s1 + $0x6a0] sm:$0xff] }
  0xa3   :  { %4539 = vmatpush.bf16.msrb.mxu1 %v7345_v52  ;;  %4508 = vmatmul.bf16.vlgmr.msra.gmra.mxu2 %v1074_v57  ;;  %v7391_v52 = vld [vmem:[%s9357_s1 + $0x6e8] sm:$0xff] }
  0xa4   :  { %4552 = vmatpush.bf16.msrb.mxu2 %v7353_v54  ;;  %4521 = vmatmul.bf16.vlgmr.msra.gmra.mxu3 %v1075_v59  ;;  %v7366_v54 = vld [vmem:[%s9357_s1 + $0x620] sm:$0xff]  ;;  %v7371_v12 = vld [vmem:[%s9357_s1 + $0x648] sm:$0xff] }
  0xa5   :  { %4565 = vmatpush.bf16.msrb.mxu3 %v7361_v55  ;;  %v7374_v55 = vld [vmem:[%s9357_s1 + $0x660] sm:$0xff]  ;;  %v7379_v13 = vld [vmem:[%s9357_s1 + $0x688] sm:$0xff] }
  0xa6   :  { %4527 = vmatpush.bf16.msrb.mxu0 %v7336_v60  ;;  %v4301_v21 = vpop.f32.mrf.mxu2  ;;  %v4277_v24 = vpop.f32.mrf.mxu0  ;;  %v7390_v59 = vld [vmem:[%s9357_s1 + $0x6e0] sm:$0xff] }
  0xa7   :  { %4540 = vmatpush.bf16.msrb.mxu1 %v7344_v61  ;;  %v4302_v22 = vadd.f32 %v4301_v21, %v4289_v16  ;;  %v4314_v23 = vpop.f32.mrf.mxu3  ;;  %v4290_v28 = vpop.f32.mrf.mxu1  ;;  %v7365_v61 = vld [vmem:[%s9357_s1 + $0x618] sm:$0xff] }
  0xa8   :  { %4553 = vmatpush.bf16.msrb.mxu2 %v7352_v62  ;;  %v7373_v62 = vld [vmem:[%s9357_s1 + $0x658] sm:$0xff]  ;;  %v1083_v28 = vld [vmem:[#allocation1 + $0x9] sm:$0xff] }
  0xa9   :  { %4566 = vmatpush.bf16.msrb.mxu3 %v7360_v63  ;;  %v4315_v27 = vadd.f32 %v4314_v23, %v4302_v22  ;;  %v7381_v63 = vld [vmem:[%s9357_s1 + $0x698] sm:$0xff]  ;;  %v18_v23 = vld [vmem:[%s9358_s0 + $0x20] sm:$0xff] }
  0xaa   :  { %4528 = vmatpush.bf16.msrb.mxu0 %v7335_v4  ;;  %v7401_v21 = vld [vmem:[%s9357_s1 + $0x738] sm:$0xff] }
  0xab   :  { %4541 = vmatpush.bf16.msrb.mxu1 %v7343_v5  ;;  %v7364_v5 = vld [vmem:[%s9357_s1 + $0x610] sm:$0xff]  ;;  %v7409_v22 = vld [vmem:[%s9357_s1 + $0x778] sm:$0xff] }
  0xac   :  { %4554 = vmatpush.bf16.msrb.mxu2 %v7351_v7  ;;  %v7417_v24 = vld [vmem:[%s9357_s1 + $0x7b8] sm:$0xff] }
  0xad   :  { %4567 = vmatpush.bf16.msrb.mxu3 %v7359_v8 }
  0xae   :  { %4529 = vmatpush.bf16.msrb.mxu0 %v7334_v10  ;;  %v4303_v35 = vpop.f32.mrf.mxu2  ;;  %v7388_v10 = vld [vmem:[%s9357_s1 + $0x6d0] sm:$0xff] }
  0xaf   :  { %4542 = vmatpush.bf16.msrb.mxu1 %v7342_v11  ;;  %v4316_v36 = vpop.f32.mrf.mxu3  ;;  %v7363_v11 = vld [vmem:[%s9357_s1 + $0x608] sm:$0xff]  ;;  %v8449_v35 = vld [vmem:[#allocation1 + $0x36] sm:$0xff] }
  0xb0   :  { %4555 = vmatpush.bf16.msrb.mxu2 %v7350_v14  ;;  %v7387_v14 = vld [vmem:[%s9357_s1 + $0x6c8] sm:$0xff] }
  0xb1   :  { %4568 = vmatpush.bf16.msrb.mxu3 %v7358_v15  ;;  %v8451_v36 = vld [vmem:[#allocation1 + $0x2d] sm:$0xff] }
  0xb2   :  { %4530 = vmatpush.bf16.msrb.mxu0 %v7333_v17  ;;  %v7362_v17 = vld [vmem:[%s9357_s1 + $0x600] sm:$0xff] }
  0xb3   :  { %4543 = vmatpush.bf16.msrb.mxu1 %v7341_v18  ;;  %v7370_v18 = vld [vmem:[%s9357_s1 + $0x640] sm:$0xff] }
  0xb4   :  { %4556 = vmatpush.bf16.msrb.mxu2 %v7349_v19  ;;  %v7378_v19 = vld [vmem:[%s9357_s1 + $0x680] sm:$0xff] }
  0xb5   :  { %4569 = vmatpush.bf16.msrb.mxu3 %v7357_v20  ;;  %v7386_v20 = vld [vmem:[%s9357_s1 + $0x6c0] sm:$0xff] }
  0xb6   :  { %4531 = vmatpush.bf16.msrb.mxu0 %v7332_v25  ;;  %v7425_v25 = vld [vmem:[%s9357_s1 + $0x7f8] sm:$0xff] }
  0xb7   :  { %4544 = vmatpush.bf16.msrb.mxu1 %v7340_v26  ;;  %v1082_v26 = vld [vmem:[#allocation1] sm:$0xff] }
  0xb8   :  { %4557 = vmatpush.bf16.msrb.mxu2 %v7348_v29  ;;  %v1085_v29 = vld [vmem:[#allocation1 + $0x1b] sm:$0xff] }
  0xb9   :  { %4570 = vmatpush.bf16.msrb.mxu3 %v7356_v30  ;;  %v7400_v30 = vld [vmem:[%s9357_s1 + $0x730] sm:$0xff] }
  0xba   :  { %4532 = vmatpush.bf16.msrb.mxu0 %v7331_v31  ;;  %v7408_v31 = vld [vmem:[%s9357_s1 + $0x770] sm:$0xff] }
  0xbb   :  { %4545 = vmatpush.bf16.msrb.mxu1 %v7339_v32  ;;  %v7416_v32 = vld [vmem:[%s9357_s1 + $0x7b0] sm:$0xff] }
  0xbc   :  { %4558 = vmatpush.bf16.msrb.mxu2 %v7347_v33  ;;  %v7424_v33 = vld [vmem:[%s9357_s1 + $0x7f0] sm:$0xff] }
  0xbd   :  { %4571 = vmatpush.bf16.msrb.mxu3 %v7355_v34  ;;  %v8447_v34 = vld [vmem:[#allocation1 + $0x24] sm:$0xff] }
  0xbe   :  { %4533 = vmatpush.bf16.msrb.mxu0 %v7330_v37  ;;  %v4327_v53 = vpop.f32.mrf.mxu0  ;;  %v8453_v37 = vld [vmem:[#allocation1 + $0x3f] sm:$0xff] }
  0xbf   :  { %4546 = vmatpush.bf16.msrb.mxu1 %v7338_v38  ;;  %v4328_v56 = vadd.f32 %v4327_v53, %v4315_v27  ;;  %v4340_v57 = vpop.f32.mrf.mxu1  ;;  %v1084_v27 = vld [vmem:[#allocation1 + $0x12] sm:$0xff]  ;;  %v7399_v38 = vld [vmem:[%s9357_s1 + $0x728] sm:$0xff] }
  0xc0   :  { %4559 = vmatpush.bf16.msrb.mxu2 %v7346_v39  ;;  %1091 = vst [vmem:[#allocation1] ss:$9 sm:$0xff] %v18_v23  ;;  %v7407_v39 = vld [vmem:[%s9357_s1 + $0x768] sm:$0xff]  ;;  %v7421_v53 = vld [vmem:[%s9357_s1 + $0x7d8] sm:$0xff] }
  0xc1   :  { %4572 = vmatpush.bf16.msrb.mxu3 %v7354_v40  ;;  %4534 = vmatmul.bf16.vlgmr.msrb.gmra.mxu0 %v8235_v0  ;;  %v4341_v60 = vadd.f32 %v4340_v57, %v4328_v56  ;;  %v7389_v0 = vld [vmem:[%s9357_s1 + $0x6d8] sm:$0xff]  ;;  %v7415_v40 = vld [vmem:[%s9357_s1 + $0x7a8] sm:$0xff] }
  0xc2   :  { %4578 = vmatpush.bf16.msra.mxu0 %v7369_v41  ;;  %4547 = vmatmul.bf16.vlgmr.msrb.gmra.mxu1 %v8239_v2  ;;  %v7423_v41 = vld [vmem:[%s9357_s1 + $0x7e8] sm:$0xff] }
  0xc3   :  { %4591 = vmatpush.bf16.msra.mxu1 %v7377_v42  ;;  %4560 = vmatmul.bf16.vlgmr.msrb.gmra.mxu2 %v8237_v1 }
  0xc4   :  { %4604 = vmatpush.bf16.msra.mxu2 %v7385_v43  ;;  %4573 = vmatmul.bf16.vlgmr.msrb.gmra.mxu3 %v8241_v3 }
  0xc5   :  { %4617 = vmatpush.bf16.msra.mxu3 %v7393_v44  ;;  %v7398_v44 = vld [vmem:[%s9357_s1 + $0x720] sm:$0xff] }
  0xc6   :  { %4579 = vmatpush.bf16.msra.mxu0 %v7368_v45  ;;  %v4353_v1 = vpop.f32.mrf.mxu2  ;;  %v4329_v4 = vpop.f32.mrf.mxu0  ;;  %v7406_v45 = vld [vmem:[%s9357_s1 + $0x760] sm:$0xff] }
  0xc7   :  { %4592 = vmatpush.bf16.msra.mxu1 %v7376_v46  ;;  %v4354_v2 = vadd.f32 %v4353_v1, %v4341_v60  ;;  %v4366_v3 = vpop.f32.mrf.mxu3  ;;  %v4342_v8 = vpop.f32.mrf.mxu1  ;;  %v7404_v60 = vld [vmem:[%s9357_s1 + $0x750] sm:$0xff]  ;;  %v7403_v1 = vld [vmem:[%s9357_s1 + $0x748] sm:$0xff] }
  0xc8   :  { %4605 = vmatpush.bf16.msra.mxu2 %v7384_v47  ;;  %v7414_v47 = vld [vmem:[%s9357_s1 + $0x7a0] sm:$0xff] }
  0xc9   :  { %4618 = vmatpush.bf16.msra.mxu3 %v7392_v48  ;;  %v8388_v7 = vadd.f32 %v4366_v3, %v4354_v2  ;;  %v7422_v48 = vld [vmem:[%s9357_s1 + $0x7e0] sm:$0xff]  ;;  %v7411_v2 = vld [vmem:[%s9357_s1 + $0x788] sm:$0xff] }
  0xca   :  { %4580 = vmatpush.bf16.msra.mxu0 %v7367_v49  ;;  %v7419_v3 = vld [vmem:[%s9357_s1 + $0x7c8] sm:$0xff]  ;;  %v7410_v8 = vld [vmem:[%s9357_s1 + $0x780] sm:$0xff] }
  0xcb   :  { %4593 = vmatpush.bf16.msra.mxu1 %v7375_v50  ;;  %v7397_v50 = vld [vmem:[%s9357_s1 + $0x718] sm:$0xff] }
  0xcc   :  { %4606 = vmatpush.bf16.msra.mxu2 %v7383_v51  ;;  %v7405_v51 = vld [vmem:[%s9357_s1 + $0x758] sm:$0xff] }
  0xcd   :  { %4619 = vmatpush.bf16.msra.mxu3 %v7391_v52  ;;  %v7413_v52 = vld [vmem:[%s9357_s1 + $0x798] sm:$0xff] }
  0xce   :  { %4581 = vmatpush.bf16.msra.mxu0 %v7366_v54  ;;  %v4355_v15 = vpop.f32.mrf.mxu2 }
  0xcf   :  { %4594 = vmatpush.bf16.msra.mxu1 %v7374_v55  ;;  %v4368_v16 = vpop.f32.mrf.mxu3  ;;  %v7440_v15 = vld [vmem:[%s9357_s1 + $0x870] sm:$0xff] }
  0xd0   :  { %4607 = vmatpush.bf16.msra.mxu2 %v7382_v58  ;;  %v7448_v16 = vld [vmem:[%s9357_s1 + $0x8b0] sm:$0xff] }
  0xd1   :  { %4620 = vmatpush.bf16.msra.mxu3 %v7390_v59  ;;  %v7396_v59 = vld [vmem:[%s9357_s1 + $0x710] sm:$0xff] }
  0xd2   :  { %4582 = vmatpush.bf16.msra.mxu0 %v7365_v61 }
  0xd3   :  { %4595 = vmatpush.bf16.msra.mxu1 %v7373_v62  ;;  %v7412_v62 = vld [vmem:[%s9357_s1 + $0x790] sm:$0xff] }
  0xd4   :  { %4608 = vmatpush.bf16.msra.mxu2 %v7381_v63  ;;  %v7420_v63 = vld [vmem:[%s9357_s1 + $0x7d0] sm:$0xff] }
  0xd5   :  { %4621 = vmatpush.bf16.msra.mxu3 %v7389_v0  ;;  %v7395_v0 = vld [vmem:[%s9357_s1 + $0x708] sm:$0xff] }
  0xd6   :  { %4583 = vmatpush.bf16.msra.mxu0 %v7364_v5 }
  0xd7   :  { %4596 = vmatpush.bf16.msra.mxu1 %v7372_v6  ;;  %v7394_v6 = vld [vmem:[%s9357_s1 + $0x700] sm:$0xff] }
  0xd8   :  { %4609 = vmatpush.bf16.msra.mxu2 %v7380_v9  ;;  %v7418_v9 = vld [vmem:[%s9357_s1 + $0x7c0] sm:$0xff] }
  0xd9   :  { %4622 = vmatpush.bf16.msra.mxu3 %v7388_v10  ;;  %v7433_v10 = vld [vmem:[%s9357_s1 + $0x838] sm:$0xff] }
  0xda   :  { %4584 = vmatpush.bf16.msra.mxu0 %v7363_v11  ;;  %v7441_v11 = vld [vmem:[%s9357_s1 + $0x878] sm:$0xff] }
  0xdb   :  { %4597 = vmatpush.bf16.msra.mxu1 %v7371_v12  ;;  %v7449_v12 = vld [vmem:[%s9357_s1 + $0x8b8] sm:$0xff] }
  0xdc   :  { %4610 = vmatpush.bf16.msra.mxu2 %v7379_v13  ;;  %v7457_v13 = vld [vmem:[%s9357_s1 + $0x8f8] sm:$0xff] }
  0xdd   :  { %4623 = vmatpush.bf16.msra.mxu3 %v7387_v14  ;;  %v7432_v14 = vld [vmem:[%s9357_s1 + $0x830] sm:$0xff] }
  0xde   :  { %4585 = vmatpush.bf16.msra.mxu0 %v7362_v17  ;;  %v4379_v42 = vpop.f32.mrf.mxu0  ;;  %v7456_v17 = vld [vmem:[%s9357_s1 + $0x8f0] sm:$0xff] }
  0xdf   :  { %4598 = vmatpush.bf16.msra.mxu1 %v7370_v18  ;;  %v4380_v43 = vadd.f32 %v4379_v42, %v8388_v7  ;;  %v4392_v46 = vpop.f32.mrf.mxu1  ;;  %v7402_v7 = vld [vmem:[%s9357_s1 + $0x740] sm:$0xff]  ;;  %v7431_v18 = vld [vmem:[%s9357_s1 + $0x828] sm:$0xff]  ;;  %v7444_v42 = vld [vmem:[%s9357_s1 + $0x890] sm:$0xff] }
  0xe0   :  { %4611 = vmatpush.bf16.msra.mxu2 %v7378_v19  ;;  %v7439_v19 = vld [vmem:[%s9357_s1 + $0x868] sm:$0xff] }
  0xe1   :  { %4624 = vmatpush.bf16.msra.mxu3 %v7386_v20  ;;  %4586 = vmatmul.bf16.vlgmr.msra.gmra.mxu0 %v1082_v26  ;;  %v4393_v49 = vadd.f32 %v4392_v46, %v4380_v43  ;;  %v7447_v20 = vld [vmem:[%s9357_s1 + $0x8a8] sm:$0xff]  ;;  %v7452_v43 = vld [vmem:[%s9357_s1 + $0x8d0] sm:$0xff] }
  0xe2   :  { %4630 = vmatpush.bf16.msrb.mxu0 %v7401_v21  ;;  %4599 = vmatmul.bf16.vlgmr.msra.gmra.mxu1 %v1083_v28  ;;  %v7455_v21 = vld [vmem:[%s9357_s1 + $0x8e8] sm:$0xff]  ;;  %v7454_v28 = vld [vmem:[%s9357_s1 + $0x8e0] sm:$0xff] }
  0xe3   :  { %4643 = vmatpush.bf16.msrb.mxu1 %v7409_v22  ;;  %4612 = vmatmul.bf16.vlgmr.msra.gmra.mxu2 %v1084_v27  ;;  %v7446_v27 = vld [vmem:[%s9357_s1 + $0x8a0] sm:$0xff]  ;;  %v7443_v46 = vld [vmem:[%s9357_s1 + $0x888] sm:$0xff] }
  0xe4   :  { %4656 = vmatpush.bf16.msrb.mxu2 %v7417_v24  ;;  %4625 = vmatmul.bf16.vlgmr.msra.gmra.mxu3 %v1085_v29  ;;  %v7430_v24 = vld [vmem:[%s9357_s1 + $0x820] sm:$0xff] }
  0xe5   :  { %4669 = vmatpush.bf16.msrb.mxu3 %v7425_v25  ;;  %v7438_v25 = vld [vmem:[%s9357_s1 + $0x860] sm:$0xff] }
  0xe6   :  { %4631 = vmatpush.bf16.msrb.mxu0 %v7400_v30  ;;  %v4405_v54 = vpop.f32.mrf.mxu2  ;;  %v4381_v57 = vpop.f32.mrf.mxu0  ;;  %v7429_v30 = vld [vmem:[%s9357_s1 + $0x818] sm:$0xff] }
  0xe7   :  { %4644 = vmatpush.bf16.msrb.mxu1 %v7408_v31  ;;  %v4406_v55 = vadd.f32 %v4405_v54, %v4393_v49  ;;  %v4418_v56 = vpop.f32.mrf.mxu3  ;;  %v4394_v61 = vpop.f32.mrf.mxu1  ;;  %v7437_v31 = vld [vmem:[%s9357_s1 + $0x858] sm:$0xff] }
  0xe8   :  { %4657 = vmatpush.bf16.msrb.mxu2 %v7416_v32  ;;  %v7445_v32 = vld [vmem:[%s9357_s1 + $0x898] sm:$0xff]  ;;  %v1093_v61 = vld [vmem:[#allocation1 + $0x9] sm:$0xff] }
  0xe9   :  { %4670 = vmatpush.bf16.msrb.mxu3 %v7424_v33  ;;  %v4419_v58 = vadd.f32 %v4418_v56, %v4406_v55  ;;  %v7453_v33 = vld [vmem:[%s9357_s1 + $0x8d8] sm:$0xff]  ;;  %v19_v56 = vld [vmem:[%s9358_s0 + $0x28] sm:$0xff] }
  0xea   :  { %4632 = vmatpush.bf16.msrb.mxu0 %v7399_v38  ;;  %v7465_v54 = vld [vmem:[%s9357_s1 + $0x938] sm:$0xff] }
  0xeb   :  { %4645 = vmatpush.bf16.msrb.mxu1 %v7407_v39  ;;  %v7428_v39 = vld [vmem:[%s9357_s1 + $0x810] sm:$0xff]  ;;  %v7473_v55 = vld [vmem:[%s9357_s1 + $0x978] sm:$0xff] }
  0xec   :  { %4658 = vmatpush.bf16.msrb.mxu2 %v7415_v40  ;;  %v7436_v40 = vld [vmem:[%s9357_s1 + $0x850] sm:$0xff]  ;;  %v7481_v57 = vld [vmem:[%s9357_s1 + $0x9b8] sm:$0xff] }
  0xed   :  { %4671 = vmatpush.bf16.msrb.mxu3 %v7423_v41 }
  0xee   :  { %4633 = vmatpush.bf16.msrb.mxu0 %v7398_v44  ;;  %v4407_v4 = vpop.f32.mrf.mxu2  ;;  %v7427_v44 = vld [vmem:[%s9357_s1 + $0x808] sm:$0xff] }
  0xef   :  { %4646 = vmatpush.bf16.msrb.mxu1 %v7406_v45  ;;  %v4420_v5 = vpop.f32.mrf.mxu3  ;;  %v7435_v45 = vld [vmem:[%s9357_s1 + $0x848] sm:$0xff]  ;;  %v8659_v4 = vld [vmem:[#allocation1 + $0x36] sm:$0xff] }
  0xf0   :  { %4659 = vmatpush.bf16.msrb.mxu2 %v7414_v47  ;;  %v7451_v47 = vld [vmem:[%s9357_s1 + $0x8c8] sm:$0xff] }
  0xf1   :  { %4672 = vmatpush.bf16.msrb.mxu3 %v7422_v48  ;;  %v8661_v5 = vld [vmem:[#allocation1 + $0x2d] sm:$0xff] }
  0xf2   :  { %4634 = vmatpush.bf16.msrb.mxu0 %v7397_v50  ;;  %v7426_v50 = vld [vmem:[%s9357_s1 + $0x800] sm:$0xff] }
  0xf3   :  { %4647 = vmatpush.bf16.msrb.mxu1 %v7405_v51  ;;  %v7434_v51 = vld [vmem:[%s9357_s1 + $0x840] sm:$0xff] }
  0xf4   :  { %4660 = vmatpush.bf16.msrb.mxu2 %v7413_v52  ;;  %v7442_v52 = vld [vmem:[%s9357_s1 + $0x880] sm:$0xff] }
  0xf5   :  { %4673 = vmatpush.bf16.msrb.mxu3 %v7421_v53  ;;  %v7450_v53 = vld [vmem:[%s9357_s1 + $0x8c0] sm:$0xff] }
  0xf6   :  { %4635 = vmatpush.bf16.msrb.mxu0 %v7396_v59  ;;  %v1092_v59 = vld [vmem:[#allocation1] sm:$0xff] }
  0xf7   :  { %4648 = vmatpush.bf16.msrb.mxu1 %v7404_v60  ;;  %v1094_v60 = vld [vmem:[#allocation1 + $0x12] sm:$0xff] }
  0xf8   :  { %4661 = vmatpush.bf16.msrb.mxu2 %v7412_v62  ;;  %v1095_v62 = vld [vmem:[#allocation1 + $0x1b] sm:$0xff] }
  0xf9   :  { %4674 = vmatpush.bf16.msrb.mxu3 %v7420_v63  ;;  %v7464_v63 = vld [vmem:[%s9357_s1 + $0x930] sm:$0xff] }
  0xfa   :  { %4636 = vmatpush.bf16.msrb.mxu0 %v7395_v0  ;;  %v7472_v0 = vld [vmem:[%s9357_s1 + $0x970] sm:$0xff] }
  0xfb   :  { %4649 = vmatpush.bf16.msrb.mxu1 %v7403_v1  ;;  %v7480_v1 = vld [vmem:[%s9357_s1 + $0x9b0] sm:$0xff] }
  0xfc   :  { %4662 = vmatpush.bf16.msrb.mxu2 %v7411_v2  ;;  %v7488_v2 = vld [vmem:[%s9357_s1 + $0x9f0] sm:$0xff] }
  0xfd   :  { %4675 = vmatpush.bf16.msrb.mxu3 %v7419_v3  ;;  %v8657_v3 = vld [vmem:[#allocation1 + $0x24] sm:$0xff] }
  0xfe   :  { %4637 = vmatpush.bf16.msrb.mxu0 %v7394_v6  ;;  %v4431_v22 = vpop.f32.mrf.mxu0  ;;  %v8663_v6 = vld [vmem:[#allocation1 + $0x3f] sm:$0xff] }
  0xff   :  { %4650 = vmatpush.bf16.msrb.mxu1 %v7402_v7  ;;  %v4432_v23 = vadd.f32 %v4431_v22, %v4419_v58  ;;  %v4444_v26 = vpop.f32.mrf.mxu1  ;;  %v7489_v58 = vld [vmem:[%s9357_s1 + $0x9f8] sm:$0xff]  ;;  %1101 = vst [vmem:[#allocation1] ss:$9 sm:$0xff] %v19_v56  ;;  %v7463_v7 = vld [vmem:[%s9357_s1 + $0x928] sm:$0xff] }
 0x100   :  { %4663 = vmatpush.bf16.msrb.mxu2 %v7410_v8  ;;  %v7471_v8 = vld [vmem:[%s9357_s1 + $0x968] sm:$0xff]  ;;  %v7485_v22 = vld [vmem:[%s9357_s1 + $0x9d8] sm:$0xff] }
 0x101   :  { %4676 = vmatpush.bf16.msrb.mxu3 %v7418_v9  ;;  %4638 = vmatmul.bf16.vlgmr.msrb.gmra.mxu0 %v8447_v34  ;;  %v4445_v29 = vadd.f32 %v4444_v26, %v4432_v23  ;;  %v7479_v9 = vld [vmem:[%s9357_s1 + $0x9a8] sm:$0xff] }
 0x102   :  { %4682 = vmatpush.bf16.msra.mxu0 %v7433_v10  ;;  %4651 = vmatmul.bf16.vlgmr.msrb.gmra.mxu1 %v8451_v36  ;;  %v7487_v10 = vld [vmem:[%s9357_s1 + $0x9e8] sm:$0xff] }
 0x103   :  { %4695 = vmatpush.bf16.msra.mxu1 %v7441_v11  ;;  %4664 = vmatmul.bf16.vlgmr.msrb.gmra.mxu2 %v8449_v35 }
 0x104   :  { %4708 = vmatpush.bf16.msra.mxu2 %v7449_v12  ;;  %4677 = vmatmul.bf16.vlgmr.msrb.gmra.mxu3 %v8453_v37 }
 0x105   :  { %4721 = vmatpush.bf16.msra.mxu3 %v7457_v13  ;;  %v7462_v13 = vld [vmem:[%s9357_s1 + $0x920] sm:$0xff] }
 0x106   :  { %4683 = vmatpush.bf16.msra.mxu0 %v7432_v14  ;;  %v4457_v34 = vpop.f32.mrf.mxu2  ;;  %v4433_v37 = vpop.f32.mrf.mxu0  ;;  %v7470_v14 = vld [vmem:[%s9357_s1 + $0x960] sm:$0xff] }
 0x107   :  { %4696 = vmatpush.bf16.msra.mxu1 %v7440_v15  ;;  %v4458_v35 = vadd.f32 %v4457_v34, %v4445_v29  ;;  %v4470_v36 = vpop.f32.mrf.mxu3  ;;  %v4446_v41 = vpop.f32.mrf.mxu1  ;;  %v7468_v29 = vld [vmem:[%s9357_s1 + $0x950] sm:$0xff]  ;;  %v7467_v34 = vld [vmem:[%s9357_s1 + $0x948] sm:$0xff] }
 0x108   :  { %4709 = vmatpush.bf16.msra.mxu2 %v7448_v16  ;;  %v7478_v16 = vld [vmem:[%s9357_s1 + $0x9a0] sm:$0xff] }
 0x109   :  { %4722 = vmatpush.bf16.msra.mxu3 %v7456_v17  ;;  %v8592_v38 = vadd.f32 %v4470_v36, %v4458_v35  ;;  %v7486_v17 = vld [vmem:[%s9357_s1 + $0x9e0] sm:$0xff]  ;;  %v7475_v35 = vld [vmem:[%s9357_s1 + $0x988] sm:$0xff] }
 0x10a   :  { %4684 = vmatpush.bf16.msra.mxu0 %v7431_v18  ;;  %v7483_v36 = vld [vmem:[%s9357_s1 + $0x9c8] sm:$0xff]  ;;  %v7474_v41 = vld [vmem:[%s9357_s1 + $0x980] sm:$0xff] }
 0x10b   :  { %4697 = vmatpush.bf16.msra.mxu1 %v7439_v19  ;;  %v7461_v19 = vld [vmem:[%s9357_s1 + $0x918] sm:$0xff] }
 0x10c   :  { %4710 = vmatpush.bf16.msra.mxu2 %v7447_v20  ;;  %v7469_v20 = vld [vmem:[%s9357_s1 + $0x958] sm:$0xff] }
 0x10d   :  { %4723 = vmatpush.bf16.msra.mxu3 %v7455_v21  ;;  %v7477_v21 = vld [vmem:[%s9357_s1 + $0x998] sm:$0xff] }
 0x10e   :  { %4685 = vmatpush.bf16.msra.mxu0 %v7430_v24  ;;  %v4459_v48 = vpop.f32.mrf.mxu2 }
 0x10f   :  { %4698 = vmatpush.bf16.msra.mxu1 %v7438_v25  ;;  %v4472_v49 = vpop.f32.mrf.mxu3  ;;  %v7504_v48 = vld [vmem:[%s9357_s1 + $0xa70] sm:$0xff] }
 0x110   :  { %4711 = vmatpush.bf16.msra.mxu2 %v7446_v27  ;;  %v7512_v49 = vld [vmem:[%s9357_s1 + $0xab0] sm:$0xff] }
 0x111   :  { %4724 = vmatpush.bf16.msra.mxu3 %v7454_v28  ;;  %v7460_v28 = vld [vmem:[%s9357_s1 + $0x910] sm:$0xff] }
 0x112   :  { %4686 = vmatpush.bf16.msra.mxu0 %v7429_v30 }
 0x113   :  { %4699 = vmatpush.bf16.msra.mxu1 %v7437_v31  ;;  %v7476_v31 = vld [vmem:[%s9357_s1 + $0x990] sm:$0xff] }
 0x114   :  { %4712 = vmatpush.bf16.msra.mxu2 %v7445_v32  ;;  %v7484_v32 = vld [vmem:[%s9357_s1 + $0x9d0] sm:$0xff] }
 0x115   :  { %4725 = vmatpush.bf16.msra.mxu3 %v7453_v33  ;;  %v7459_v33 = vld [vmem:[%s9357_s1 + $0x908] sm:$0xff] }
 0x116   :  { %4687 = vmatpush.bf16.msra.mxu0 %v7428_v39  ;;  %v7458_v39 = vld [vmem:[%s9357_s1 + $0x900] sm:$0xff] }
 0x117   :  { %4700 = vmatpush.bf16.msra.mxu1 %v7436_v40  ;;  %v7466_v40 = vld [vmem:[%s9357_s1 + $0x940] sm:$0xff] }
 0x118   :  { %4713 = vmatpush.bf16.msra.mxu2 %v7444_v42  ;;  %v7482_v42 = vld [vmem:[%s9357_s1 + $0x9c0] sm:$0xff] }
 0x119   :  { %4726 = vmatpush.bf16.msra.mxu3 %v7452_v43  ;;  %v7497_v43 = vld [vmem:[%s9357_s1 + $0xa38] sm:$0xff] }
 0x11a   :  { %4688 = vmatpush.bf16.msra.mxu0 %v7427_v44  ;;  %v7505_v44 = vld [vmem:[%s9357_s1 + $0xa78] sm:$0xff] }
 0x11b   :  { %4701 = vmatpush.bf16.msra.mxu1 %v7435_v45  ;;  %v7513_v45 = vld [vmem:[%s9357_s1 + $0xab8] sm:$0xff] }
 0x11c   :  { %4714 = vmatpush.bf16.msra.mxu2 %v7443_v46  ;;  %v7521_v46 = vld [vmem:[%s9357_s1 + $0xaf8] sm:$0xff] }
 0x11d   :  { %4727 = vmatpush.bf16.msra.mxu3 %v7451_v47  ;;  %v7496_v47 = vld [vmem:[%s9357_s1 + $0xa30] sm:$0xff] }
 0x11e   :  { %4689 = vmatpush.bf16.msra.mxu0 %v7426_v50  ;;  %v4483_v11 = vpop.f32.mrf.mxu0  ;;  %v7520_v50 = vld [vmem:[%s9357_s1 + $0xaf0] sm:$0xff] }
 0x11f   :  { %4702 = vmatpush.bf16.msra.mxu1 %v7434_v51  ;;  %v4484_v12 = vadd.f32 %v4483_v11, %v8592_v38  ;;  %v4496_v15 = vpop.f32.mrf.mxu1  ;;  %v7495_v51 = vld [vmem:[%s9357_s1 + $0xa28] sm:$0xff]  ;;  %v7508_v11 = vld [vmem:[%s9357_s1 + $0xa90] sm:$0xff] }
 0x120   :  { %4715 = vmatpush.bf16.msra.mxu2 %v7442_v52  ;;  %v7503_v52 = vld [vmem:[%s9357_s1 + $0xa68] sm:$0xff] }
 0x121   :  { %4728 = vmatpush.bf16.msra.mxu3 %v7450_v53  ;;  %4690 = vmatmul.bf16.vlgmr.msra.gmra.mxu0 %v1092_v59  ;;  %v4497_v18 = vadd.f32 %v4496_v15, %v4484_v12  ;;  %v7511_v53 = vld [vmem:[%s9357_s1 + $0xaa8] sm:$0xff]  ;;  %v7516_v12 = vld [vmem:[%s9357_s1 + $0xad0] sm:$0xff] }
 0x122   :  { %4734 = vmatpush.bf16.msrb.mxu0 %v7465_v54  ;;  %4703 = vmatmul.bf16.vlgmr.msra.gmra.mxu1 %v1093_v61  ;;  %v7519_v54 = vld [vmem:[%s9357_s1 + $0xae8] sm:$0xff]  ;;  %v7518_v61 = vld [vmem:[%s9357_s1 + $0xae0] sm:$0xff] }
 0x123   :  { %4747 = vmatpush.bf16.msrb.mxu1 %v7473_v55  ;;  %4716 = vmatmul.bf16.vlgmr.msra.gmra.mxu2 %v1094_v60  ;;  %v7510_v60 = vld [vmem:[%s9357_s1 + $0xaa0] sm:$0xff]  ;;  %v7507_v15 = vld [vmem:[%s9357_s1 + $0xa88] sm:$0xff] }
 0x124   :  { %4760 = vmatpush.bf16.msrb.mxu2 %v7481_v57  ;;  %4729 = vmatmul.bf16.vlgmr.msra.gmra.mxu3 %v1095_v62  ;;  %v7494_v57 = vld [vmem:[%s9357_s1 + $0xa20] sm:$0xff] }
 0x125   :  { %4773 = vmatpush.bf16.msrb.mxu3 %v7489_v58  ;;  %v7502_v58 = vld [vmem:[%s9357_s1 + $0xa60] sm:$0xff] }
 0x126   :  { %4735 = vmatpush.bf16.msrb.mxu0 %v7464_v63  ;;  %v4509_v23 = vpop.f32.mrf.mxu2  ;;  %v4485_v26 = vpop.f32.mrf.mxu0  ;;  %v7493_v63 = vld [vmem:[%s9357_s1 + $0xa18] sm:$0xff] }
 0x127   :  { %4748 = vmatpush.bf16.msrb.mxu1 %v7472_v0  ;;  %v4510_v24 = vadd.f32 %v4509_v23, %v4497_v18  ;;  %v4522_v25 = vpop.f32.mrf.mxu3  ;;  %v4498_v30 = vpop.f32.mrf.mxu1  ;;  %v7501_v0 = vld [vmem:[%s9357_s1 + $0xa58] sm:$0xff] }
 0x128   :  { %4761 = vmatpush.bf16.msrb.mxu2 %v7480_v1  ;;  %v7509_v1 = vld [vmem:[%s9357_s1 + $0xa98] sm:$0xff]  ;;  %v1103_v30 = vld [vmem:[#allocation1 + $0x9] sm:$0xff] }
 0x129   :  { %4774 = vmatpush.bf16.msrb.mxu3 %v7488_v2  ;;  %v4523_v27 = vadd.f32 %v4522_v25, %v4510_v24  ;;  %v7517_v2 = vld [vmem:[%s9357_s1 + $0xad8] sm:$0xff]  ;;  %v20_v25 = vld [vmem:[%s9358_s0 + $0x30] sm:$0xff] }
 0x12a   :  { %4736 = vmatpush.bf16.msrb.mxu0 %v7463_v7  ;;  %v7529_v23 = vld [vmem:[%s9357_s1 + $0xb38] sm:$0xff] }
 0x12b   :  { %4749 = vmatpush.bf16.msrb.mxu1 %v7471_v8  ;;  %v7492_v8 = vld [vmem:[%s9357_s1 + $0xa10] sm:$0xff]  ;;  %v7537_v24 = vld [vmem:[%s9357_s1 + $0xb78] sm:$0xff] }
 0x12c   :  { %4762 = vmatpush.bf16.msrb.mxu2 %v7479_v9  ;;  %v7500_v9 = vld [vmem:[%s9357_s1 + $0xa50] sm:$0xff]  ;;  %v7545_v26 = vld [vmem:[%s9357_s1 + $0xbb8] sm:$0xff] }
 0x12d   :  { %4775 = vmatpush.bf16.msrb.mxu3 %v7487_v10 }
 0x12e   :  { %4737 = vmatpush.bf16.msrb.mxu0 %v7462_v13  ;;  %v4511_v37 = vpop.f32.mrf.mxu2  ;;  %v7491_v13 = vld [vmem:[%s9357_s1 + $0xa08] sm:$0xff] }
 0x12f   :  { %4750 = vmatpush.bf16.msrb.mxu1 %v7470_v14  ;;  %v4524_v38 = vpop.f32.mrf.mxu3  ;;  %v7499_v14 = vld [vmem:[%s9357_s1 + $0xa48] sm:$0xff]  ;;  %v8869_v37 = vld [vmem:[#allocation1 + $0x36] sm:$0xff] }
 0x130   :  { %4763 = vmatpush.bf16.msrb.mxu2 %v7478_v16  ;;  %v7515_v16 = vld [vmem:[%s9357_s1 + $0xac8] sm:$0xff] }
 0x131   :  { %4776 = vmatpush.bf16.msrb.mxu3 %v7486_v17  ;;  %v8871_v38 = vld [vmem:[#allocation1 + $0x2d] sm:$0xff] }
 0x132   :  { %4738 = vmatpush.bf16.msrb.mxu0 %v7461_v19  ;;  %v7490_v19 = vld [vmem:[%s9357_s1 + $0xa00] sm:$0xff] }
 0x133   :  { %4751 = vmatpush.bf16.msrb.mxu1 %v7469_v20  ;;  %v7498_v20 = vld [vmem:[%s9357_s1 + $0xa40] sm:$0xff] }
 0x134   :  { %4764 = vmatpush.bf16.msrb.mxu2 %v7477_v21  ;;  %v7506_v21 = vld [vmem:[%s9357_s1 + $0xa80] sm:$0xff] }
 0x135   :  { %4777 = vmatpush.bf16.msrb.mxu3 %v7485_v22  ;;  %v7514_v22 = vld [vmem:[%s9357_s1 + $0xac0] sm:$0xff] }
 0x136   :  { %4739 = vmatpush.bf16.msrb.mxu0 %v7460_v28  ;;  %v1102_v28 = vld [vmem:[#allocation1] sm:$0xff] }
 0x137   :  { %4752 = vmatpush.bf16.msrb.mxu1 %v7468_v29  ;;  %v1104_v29 = vld [vmem:[#allocation1 + $0x12] sm:$0xff] }
 0x138   :  { %4765 = vmatpush.bf16.msrb.mxu2 %v7476_v31  ;;  %v1105_v31 = vld [vmem:[#allocation1 + $0x1b] sm:$0xff] }
 0x139   :  { %4778 = vmatpush.bf16.msrb.mxu3 %v7484_v32  ;;  %v7528_v32 = vld [vmem:[%s9357_s1 + $0xb30] sm:$0xff] }
 0x13a   :  { %4740 = vmatpush.bf16.msrb.mxu0 %v7459_v33  ;;  %v7536_v33 = vld [vmem:[%s9357_s1 + $0xb70] sm:$0xff] }
 0x13b   :  { %4753 = vmatpush.bf16.msrb.mxu1 %v7467_v34  ;;  %v7544_v34 = vld [vmem:[%s9357_s1 + $0xbb0] sm:$0xff] }
 0x13c   :  { %4766 = vmatpush.bf16.msrb.mxu2 %v7475_v35  ;;  %v7552_v35 = vld [vmem:[%s9357_s1 + $0xbf0] sm:$0xff] }
 0x13d   :  { %4779 = vmatpush.bf16.msrb.mxu3 %v7483_v36  ;;  %v8867_v36 = vld [vmem:[#allocation1 + $0x24] sm:$0xff] }
 0x13e   :  { %4741 = vmatpush.bf16.msrb.mxu0 %v7458_v39  ;;  %v4535_v55 = vpop.f32.mrf.mxu0  ;;  %v8873_v39 = vld [vmem:[#allocation1 + $0x3f] sm:$0xff] }
 0x13f   :  { %4754 = vmatpush.bf16.msrb.mxu1 %v7466_v40  ;;  %v4536_v56 = vadd.f32 %v4535_v55, %v4523_v27  ;;  %v4548_v59 = vpop.f32.mrf.mxu1  ;;  %v7553_v27 = vld [vmem:[%s9357_s1 + $0xbf8] sm:$0xff]  ;;  %1111 = vst [vmem:[#allocation1] ss:$9 sm:$0xff] %v20_v25  ;;  %v7527_v40 = vld [vmem:[%s9357_s1 + $0xb28] sm:$0xff] }
 0x140   :  { %4767 = vmatpush.bf16.msrb.mxu2 %v7474_v41  ;;  %v7535_v41 = vld [vmem:[%s9357_s1 + $0xb68] sm:$0xff]  ;;  %v7549_v55 = vld [vmem:[%s9357_s1 + $0xbd8] sm:$0xff] }
 0x141   :  { %4780 = vmatpush.bf16.msrb.mxu3 %v7482_v42  ;;  %4742 = vmatmul.bf16.vlgmr.msrb.gmra.mxu0 %v8657_v3  ;;  %v4549_v62 = vadd.f32 %v4548_v59, %v4536_v56  ;;  %v7543_v42 = vld [vmem:[%s9357_s1 + $0xba8] sm:$0xff] }
 0x142   :  { %4786 = vmatpush.bf16.msra.mxu0 %v7497_v43  ;;  %4755 = vmatmul.bf16.vlgmr.msrb.gmra.mxu1 %v8661_v5  ;;  %v7551_v43 = vld [vmem:[%s9357_s1 + $0xbe8] sm:$0xff] }
 0x143   :  { %4799 = vmatpush.bf16.msra.mxu1 %v7505_v44  ;;  %4768 = vmatmul.bf16.vlgmr.msrb.gmra.mxu2 %v8659_v4 }
 0x144   :  { %4812 = vmatpush.bf16.msra.mxu2 %v7513_v45  ;;  %4781 = vmatmul.bf16.vlgmr.msrb.gmra.mxu3 %v8663_v6 }
 0x145   :  { %4825 = vmatpush.bf16.msra.mxu3 %v7521_v46  ;;  %v7526_v46 = vld [vmem:[%s9357_s1 + $0xb20] sm:$0xff] }
 0x146   :  { %4787 = vmatpush.bf16.msra.mxu0 %v7496_v47  ;;  %v4561_v3 = vpop.f32.mrf.mxu2  ;;  %v4537_v6 = vpop.f32.mrf.mxu0  ;;  %v7534_v47 = vld [vmem:[%s9357_s1 + $0xb60] sm:$0xff] }
 0x147   :  { %4800 = vmatpush.bf16.msra.mxu1 %v7504_v48  ;;  %v4562_v4 = vadd.f32 %v4561_v3, %v4549_v62  ;;  %v4574_v5 = vpop.f32.mrf.mxu3  ;;  %v4550_v10 = vpop.f32.mrf.mxu1  ;;  %v7532_v62 = vld [vmem:[%s9357_s1 + $0xb50] sm:$0xff]  ;;  %v7531_v3 = vld [vmem:[%s9357_s1 + $0xb48] sm:$0xff] }
 0x148   :  { %4813 = vmatpush.bf16.msra.mxu2 %v7512_v49  ;;  %v7542_v49 = vld [vmem:[%s9357_s1 + $0xba0] sm:$0xff] }
 0x149   :  { %4826 = vmatpush.bf16.msra.mxu3 %v7520_v50  ;;  %v8802_v7 = vadd.f32 %v4574_v5, %v4562_v4  ;;  %v7550_v50 = vld [vmem:[%s9357_s1 + $0xbe0] sm:$0xff]  ;;  %v7539_v4 = vld [vmem:[%s9357_s1 + $0xb88] sm:$0xff] }
 0x14a   :  { %4788 = vmatpush.bf16.msra.mxu0 %v7495_v51  ;;  %v7547_v5 = vld [vmem:[%s9357_s1 + $0xbc8] sm:$0xff]  ;;  %v7538_v10 = vld [vmem:[%s9357_s1 + $0xb80] sm:$0xff] }
 0x14b   :  { %4801 = vmatpush.bf16.msra.mxu1 %v7503_v52  ;;  %v7525_v52 = vld [vmem:[%s9357_s1 + $0xb18] sm:$0xff] }
 0x14c   :  { %4814 = vmatpush.bf16.msra.mxu2 %v7511_v53  ;;  %v7533_v53 = vld [vmem:[%s9357_s1 + $0xb58] sm:$0xff] }
 0x14d   :  { %4827 = vmatpush.bf16.msra.mxu3 %v7519_v54  ;;  %v7541_v54 = vld [vmem:[%s9357_s1 + $0xb98] sm:$0xff] }
 0x14e   :  { %4789 = vmatpush.bf16.msra.mxu0 %v7494_v57  ;;  %v4563_v17 = vpop.f32.mrf.mxu2 }
 0x14f   :  { %4802 = vmatpush.bf16.msra.mxu1 %v7502_v58  ;;  %v4576_v18 = vpop.f32.mrf.mxu3  ;;  %v7568_v17 = vld [vmem:[%s9357_s1 + $0xc70] sm:$0xff] }
 0x150   :  { %4815 = vmatpush.bf16.msra.mxu2 %v7510_v60  ;;  %v7576_v18 = vld [vmem:[%s9357_s1 + $0xcb0] sm:$0xff] }
 0x151   :  { %4828 = vmatpush.bf16.msra.mxu3 %v7518_v61  ;;  %v7524_v61 = vld [vmem:[%s9357_s1 + $0xb10] sm:$0xff] }
 0x152   :  { %4790 = vmatpush.bf16.msra.mxu0 %v7493_v63 }
 0x153   :  { %4803 = vmatpush.bf16.msra.mxu1 %v7501_v0  ;;  %v7540_v0 = vld [vmem:[%s9357_s1 + $0xb90] sm:$0xff] }
 0x154   :  { %4816 = vmatpush.bf16.msra.mxu2 %v7509_v1  ;;  %v7548_v1 = vld [vmem:[%s9357_s1 + $0xbd0] sm:$0xff] }
 0x155   :  { %4829 = vmatpush.bf16.msra.mxu3 %v7517_v2  ;;  %v7523_v2 = vld [vmem:[%s9357_s1 + $0xb08] sm:$0xff] }
 0x156   :  { %4791 = vmatpush.bf16.msra.mxu0 %v7492_v8  ;;  %v7522_v8 = vld [vmem:[%s9357_s1 + $0xb00] sm:$0xff] }
 0x157   :  { %4804 = vmatpush.bf16.msra.mxu1 %v7500_v9  ;;  %v7530_v9 = vld [vmem:[%s9357_s1 + $0xb40] sm:$0xff] }
 0x158   :  { %4817 = vmatpush.bf16.msra.mxu2 %v7508_v11  ;;  %v7546_v11 = vld [vmem:[%s9357_s1 + $0xbc0] sm:$0xff] }
 0x159   :  { %4830 = vmatpush.bf16.msra.mxu3 %v7516_v12  ;;  %v7561_v12 = vld [vmem:[%s9357_s1 + $0xc38] sm:$0xff] }
 0x15a   :  { %4792 = vmatpush.bf16.msra.mxu0 %v7491_v13  ;;  %v7569_v13 = vld [vmem:[%s9357_s1 + $0xc78] sm:$0xff] }
 0x15b   :  { %4805 = vmatpush.bf16.msra.mxu1 %v7499_v14  ;;  %v7577_v14 = vld [vmem:[%s9357_s1 + $0xcb8] sm:$0xff] }
 0x15c   :  { %4818 = vmatpush.bf16.msra.mxu2 %v7507_v15  ;;  %v7585_v15 = vld [vmem:[%s9357_s1 + $0xcf8] sm:$0xff] }
 0x15d   :  { %4831 = vmatpush.bf16.msra.mxu3 %v7515_v16  ;;  %v7560_v16 = vld [vmem:[%s9357_s1 + $0xc30] sm:$0xff] }
 0x15e   :  { %4793 = vmatpush.bf16.msra.mxu0 %v7490_v19  ;;  %v4587_v44 = vpop.f32.mrf.mxu0  ;;  %v7584_v19 = vld [vmem:[%s9357_s1 + $0xcf0] sm:$0xff] }
 0x15f   :  { %4806 = vmatpush.bf16.msra.mxu1 %v7498_v20  ;;  %v4588_v45 = vadd.f32 %v4587_v44, %v8802_v7  ;;  %v4600_v48 = vpop.f32.mrf.mxu1  ;;  %v7559_v20 = vld [vmem:[%s9357_s1 + $0xc28] sm:$0xff]  ;;  %v7572_v44 = vld [vmem:[%s9357_s1 + $0xc90] sm:$0xff] }
 0x160   :  { %4819 = vmatpush.bf16.msra.mxu2 %v7506_v21  ;;  %v7567_v21 = vld [vmem:[%s9357_s1 + $0xc68] sm:$0xff] }
 0x161   :  { %4832 = vmatpush.bf16.msra.mxu3 %v7514_v22  ;;  %4794 = vmatmul.bf16.vlgmr.msra.gmra.mxu0 %v1102_v28  ;;  %v4601_v51 = vadd.f32 %v4600_v48, %v4588_v45  ;;  %v7575_v22 = vld [vmem:[%s9357_s1 + $0xca8] sm:$0xff]  ;;  %v7580_v45 = vld [vmem:[%s9357_s1 + $0xcd0] sm:$0xff] }
 0x162   :  { %4838 = vmatpush.bf16.msrb.mxu0 %v7529_v23  ;;  %4807 = vmatmul.bf16.vlgmr.msra.gmra.mxu1 %v1103_v30  ;;  %v7583_v23 = vld [vmem:[%s9357_s1 + $0xce8] sm:$0xff]  ;;  %v7582_v30 = vld [vmem:[%s9357_s1 + $0xce0] sm:$0xff] }
 0x163   :  { %4851 = vmatpush.bf16.msrb.mxu1 %v7537_v24  ;;  %4820 = vmatmul.bf16.vlgmr.msra.gmra.mxu2 %v1104_v29  ;;  %v7574_v29 = vld [vmem:[%s9357_s1 + $0xca0] sm:$0xff]  ;;  %v7571_v48 = vld [vmem:[%s9357_s1 + $0xc88] sm:$0xff] }
 0x164   :  { %4864 = vmatpush.bf16.msrb.mxu2 %v7545_v26  ;;  %4833 = vmatmul.bf16.vlgmr.msra.gmra.mxu3 %v1105_v31  ;;  %v7558_v26 = vld [vmem:[%s9357_s1 + $0xc20] sm:$0xff] }
 0x165   :  { %4877 = vmatpush.bf16.msrb.mxu3 %v7553_v27  ;;  %v7566_v27 = vld [vmem:[%s9357_s1 + $0xc60] sm:$0xff] }
 0x166   :  { %4839 = vmatpush.bf16.msrb.mxu0 %v7528_v32  ;;  %v4613_v56 = vpop.f32.mrf.mxu2  ;;  %v4589_v59 = vpop.f32.mrf.mxu0  ;;  %v7557_v32 = vld [vmem:[%s9357_s1 + $0xc18] sm:$0xff] }
 0x167   :  { %4852 = vmatpush.bf16.msrb.mxu1 %v7536_v33  ;;  %v4614_v57 = vadd.f32 %v4613_v56, %v4601_v51  ;;  %v4626_v58 = vpop.f32.mrf.mxu3  ;;  %v4602_v63 = vpop.f32.mrf.mxu1  ;;  %v7565_v33 = vld [vmem:[%s9357_s1 + $0xc58] sm:$0xff] }
 0x168   :  { %4865 = vmatpush.bf16.msrb.mxu2 %v7544_v34  ;;  %v7573_v34 = vld [vmem:[%s9357_s1 + $0xc98] sm:$0xff]  ;;  %v1113_v63 = vld [vmem:[#allocation1 + $0x9] sm:$0xff] }
 0x169   :  { %4878 = vmatpush.bf16.msrb.mxu3 %v7552_v35  ;;  %v4627_v60 = vadd.f32 %v4626_v58, %v4614_v57  ;;  %v7581_v35 = vld [vmem:[%s9357_s1 + $0xcd8] sm:$0xff] }
 0x16a   :  { %4840 = vmatpush.bf16.msrb.mxu0 %v7527_v40  ;;  %v7593_v56 = vld [vmem:[%s9357_s1 + $0xd38] sm:$0xff] }
 0x16b   :  { %4853 = vmatpush.bf16.msrb.mxu1 %v7535_v41  ;;  %v7556_v41 = vld [vmem:[%s9357_s1 + $0xc10] sm:$0xff]  ;;  %v7601_v57 = vld [vmem:[%s9357_s1 + $0xd78] sm:$0xff] }
 0x16c   :  { %4866 = vmatpush.bf16.msrb.mxu2 %v7543_v42  ;;  %v7564_v42 = vld [vmem:[%s9357_s1 + $0xc50] sm:$0xff]  ;;  %v21_v58 = vld [vmem:[%s9358_s0 + $0x38] sm:$0xff] }
 0x16d   :  { %4879 = vmatpush.bf16.msrb.mxu3 %v7551_v43  ;;  %v7609_v59 = vld [vmem:[%s9357_s1 + $0xdb8] sm:$0xff] }
 0x16e   :  { %4841 = vmatpush.bf16.msrb.mxu0 %v7526_v46  ;;  %v4615_v6 = vpop.f32.mrf.mxu2  ;;  %v7555_v46 = vld [vmem:[%s9357_s1 + $0xc08] sm:$0xff] }
 0x16f   :  { %4854 = vmatpush.bf16.msrb.mxu1 %v7534_v47  ;;  %v4628_v7 = vpop.f32.mrf.mxu3  ;;  %v7563_v47 = vld [vmem:[%s9357_s1 + $0xc48] sm:$0xff]  ;;  %v9079_v6 = vld [vmem:[#allocation1 + $0x36] sm:$0xff] }
 0x170   :  { %4867 = vmatpush.bf16.msrb.mxu2 %v7542_v49  ;;  %v7579_v49 = vld [vmem:[%s9357_s1 + $0xcc8] sm:$0xff] }
 0x171   :  { %4880 = vmatpush.bf16.msrb.mxu3 %v7550_v50  ;;  %v9081_v7 = vld [vmem:[#allocation1 + $0x2d] sm:$0xff] }
 0x172   :  { %4842 = vmatpush.bf16.msrb.mxu0 %v7525_v52  ;;  %v7554_v52 = vld [vmem:[%s9357_s1 + $0xc00] sm:$0xff] }
 0x173   :  { %4855 = vmatpush.bf16.msrb.mxu1 %v7533_v53  ;;  %v7562_v53 = vld [vmem:[%s9357_s1 + $0xc40] sm:$0xff] }
 0x174   :  { %4868 = vmatpush.bf16.msrb.mxu2 %v7541_v54  ;;  %v7570_v54 = vld [vmem:[%s9357_s1 + $0xc80] sm:$0xff] }
 0x175   :  { %4881 = vmatpush.bf16.msrb.mxu3 %v7549_v55  ;;  %v7578_v55 = vld [vmem:[%s9357_s1 + $0xcc0] sm:$0xff] }
 0x176   :  { %4843 = vmatpush.bf16.msrb.mxu0 %v7524_v61  ;;  %v1112_v61 = vld [vmem:[#allocation1] sm:$0xff] }
 0x177   :  { %4856 = vmatpush.bf16.msrb.mxu1 %v7532_v62  ;;  %v1114_v62 = vld [vmem:[#allocation1 + $0x12] sm:$0xff] }
 0x178   :  { %4869 = vmatpush.bf16.msrb.mxu2 %v7540_v0  ;;  %v1115_v0 = vld [vmem:[#allocation1 + $0x1b] sm:$0xff] }
 0x179   :  { %4882 = vmatpush.bf16.msrb.mxu3 %v7548_v1  ;;  %v7592_v1 = vld [vmem:[%s9357_s1 + $0xd30] sm:$0xff] }
 0x17a   :  { %4844 = vmatpush.bf16.msrb.mxu0 %v7523_v2  ;;  %v7600_v2 = vld [vmem:[%s9357_s1 + $0xd70] sm:$0xff] }
 0x17b   :  { %4857 = vmatpush.bf16.msrb.mxu1 %v7531_v3  ;;  %v7608_v3 = vld [vmem:[%s9357_s1 + $0xdb0] sm:$0xff] }
 0x17c   :  { %4870 = vmatpush.bf16.msrb.mxu2 %v7539_v4  ;;  %v7616_v4 = vld [vmem:[%s9357_s1 + $0xdf0] sm:$0xff] }
 0x17d   :  { %4883 = vmatpush.bf16.msrb.mxu3 %v7547_v5  ;;  %v9077_v5 = vld [vmem:[#allocation1 + $0x24] sm:$0xff] }
 0x17e   :  { %4845 = vmatpush.bf16.msrb.mxu0 %v7522_v8  ;;  %v4639_v24 = vpop.f32.mrf.mxu0  ;;  %v9083_v8 = vld [vmem:[#allocation1 + $0x3f] sm:$0xff] }
 0x17f   :  { %4858 = vmatpush.bf16.msrb.mxu1 %v7530_v9  ;;  %v4640_v25 = vadd.f32 %v4639_v24, %v4627_v60  ;;  %v4652_v28 = vpop.f32.mrf.mxu1  ;;  %v7617_v60 = vld [vmem:[%s9357_s1 + $0xdf8] sm:$0xff]  ;;  %1121 = vst [vmem:[#allocation1] ss:$9 sm:$0xff] %v21_v58  ;;  %v7591_v9 = vld [vmem:[%s9357_s1 + $0xd28] sm:$0xff] }
 0x180   :  { %4871 = vmatpush.bf16.msrb.mxu2 %v7538_v10  ;;  %v7599_v10 = vld [vmem:[%s9357_s1 + $0xd68] sm:$0xff]  ;;  %v7613_v24 = vld [vmem:[%s9357_s1 + $0xdd8] sm:$0xff] }
 0x181   :  { %4884 = vmatpush.bf16.msrb.mxu3 %v7546_v11  ;;  %4846 = vmatmul.bf16.vlgmr.msrb.gmra.mxu0 %v8867_v36  ;;  %v4653_v31 = vadd.f32 %v4652_v28, %v4640_v25  ;;  %v7607_v11 = vld [vmem:[%s9357_s1 + $0xda8] sm:$0xff] }
 0x182   :  { %4890 = vmatpush.bf16.msra.mxu0 %v7561_v12  ;;  %4859 = vmatmul.bf16.vlgmr.msrb.gmra.mxu1 %v8871_v38  ;;  %v7615_v12 = vld [vmem:[%s9357_s1 + $0xde8] sm:$0xff] }
 0x183   :  { %4903 = vmatpush.bf16.msra.mxu1 %v7569_v13  ;;  %4872 = vmatmul.bf16.vlgmr.msrb.gmra.mxu2 %v8869_v37 }
 0x184   :  { %4916 = vmatpush.bf16.msra.mxu2 %v7577_v14  ;;  %4885 = vmatmul.bf16.vlgmr.msrb.gmra.mxu3 %v8873_v39 }
 0x185   :  { %4929 = vmatpush.bf16.msra.mxu3 %v7585_v15  ;;  %v7590_v15 = vld [vmem:[%s9357_s1 + $0xd20] sm:$0xff] }
 0x186   :  { %4891 = vmatpush.bf16.msra.mxu0 %v7560_v16  ;;  %v4665_v36 = vpop.f32.mrf.mxu2  ;;  %v4641_v39 = vpop.f32.mrf.mxu0  ;;  %v7598_v16 = vld [vmem:[%s9357_s1 + $0xd60] sm:$0xff] }
 0x187   :  { %4904 = vmatpush.bf16.msra.mxu1 %v7568_v17  ;;  %v4666_v37 = vadd.f32 %v4665_v36, %v4653_v31  ;;  %v4678_v38 = vpop.f32.mrf.mxu3  ;;  %v4654_v43 = vpop.f32.mrf.mxu1  ;;  %v7596_v31 = vld [vmem:[%s9357_s1 + $0xd50] sm:$0xff]  ;;  %v7595_v36 = vld [vmem:[%s9357_s1 + $0xd48] sm:$0xff] }
 0x188   :  { %4917 = vmatpush.bf16.msra.mxu2 %v7576_v18  ;;  %v7606_v18 = vld [vmem:[%s9357_s1 + $0xda0] sm:$0xff] }
 0x189   :  { %4930 = vmatpush.bf16.msra.mxu3 %v7584_v19  ;;  %v9012_v40 = vadd.f32 %v4678_v38, %v4666_v37  ;;  %v7614_v19 = vld [vmem:[%s9357_s1 + $0xde0] sm:$0xff]  ;;  %v7603_v37 = vld [vmem:[%s9357_s1 + $0xd88] sm:$0xff] }
 0x18a   :  { %4892 = vmatpush.bf16.msra.mxu0 %v7559_v20  ;;  %v7611_v38 = vld [vmem:[%s9357_s1 + $0xdc8] sm:$0xff]  ;;  %v7602_v43 = vld [vmem:[%s9357_s1 + $0xd80] sm:$0xff] }
 0x18b   :  { %4905 = vmatpush.bf16.msra.mxu1 %v7567_v21  ;;  %v7589_v21 = vld [vmem:[%s9357_s1 + $0xd18] sm:$0xff] }
 0x18c   :  { %4918 = vmatpush.bf16.msra.mxu2 %v7575_v22  ;;  %v7597_v22 = vld [vmem:[%s9357_s1 + $0xd58] sm:$0xff] }
 0x18d   :  { %4931 = vmatpush.bf16.msra.mxu3 %v7583_v23  ;;  %v7605_v23 = vld [vmem:[%s9357_s1 + $0xd98] sm:$0xff] }
 0x18e   :  { %4893 = vmatpush.bf16.msra.mxu0 %v7558_v26  ;;  %v4667_v50 = vpop.f32.mrf.mxu2 }
 0x18f   :  { %4906 = vmatpush.bf16.msra.mxu1 %v7566_v27  ;;  %v4680_v51 = vpop.f32.mrf.mxu3  ;;  %v7632_v50 = vld [vmem:[%s9357_s1 + $0xe70] sm:$0xff] }
 0x190   :  { %4919 = vmatpush.bf16.msra.mxu2 %v7574_v29  ;;  %v7640_v51 = vld [vmem:[%s9357_s1 + $0xeb0] sm:$0xff] }
 0x191   :  { %4932 = vmatpush.bf16.msra.mxu3 %v7582_v30  ;;  %v7588_v30 = vld [vmem:[%s9357_s1 + $0xd10] sm:$0xff] }
 0x192   :  { %4894 = vmatpush.bf16.msra.mxu0 %v7557_v32 }
 0x193   :  { %4907 = vmatpush.bf16.msra.mxu1 %v7565_v33  ;;  %v7604_v33 = vld [vmem:[%s9357_s1 + $0xd90] sm:$0xff] }
 0x194   :  { %4920 = vmatpush.bf16.msra.mxu2 %v7573_v34  ;;  %v7612_v34 = vld [vmem:[%s9357_s1 + $0xdd0] sm:$0xff] }
 0x195   :  { %4933 = vmatpush.bf16.msra.mxu3 %v7581_v35  ;;  %v7587_v35 = vld [vmem:[%s9357_s1 + $0xd08] sm:$0xff] }
 0x196   :  { %4895 = vmatpush.bf16.msra.mxu0 %v7556_v41  ;;  %v7586_v41 = vld [vmem:[%s9357_s1 + $0xd00] sm:$0xff] }
 0x197   :  { %4908 = vmatpush.bf16.msra.mxu1 %v7564_v42  ;;  %v7594_v42 = vld [vmem:[%s9357_s1 + $0xd40] sm:$0xff] }
 0x198   :  { %4921 = vmatpush.bf16.msra.mxu2 %v7572_v44  ;;  %v7610_v44 = vld [vmem:[%s9357_s1 + $0xdc0] sm:$0xff] }
 0x199   :  { %4934 = vmatpush.bf16.msra.mxu3 %v7580_v45  ;;  %v7625_v45 = vld [vmem:[%s9357_s1 + $0xe38] sm:$0xff] }
 0x19a   :  { %4896 = vmatpush.bf16.msra.mxu0 %v7555_v46  ;;  %v7633_v46 = vld [vmem:[%s9357_s1 + $0xe78] sm:$0xff] }
 0x19b   :  { %4909 = vmatpush.bf16.msra.mxu1 %v7563_v47  ;;  %v7641_v47 = vld [vmem:[%s9357_s1 + $0xeb8] sm:$0xff] }
 0x19c   :  { %4922 = vmatpush.bf16.msra.mxu2 %v7571_v48  ;;  %v7649_v48 = vld [vmem:[%s9357_s1 + $0xef8] sm:$0xff] }
 0x19d   :  { %4935 = vmatpush.bf16.msra.mxu3 %v7579_v49  ;;  %v7624_v49 = vld [vmem:[%s9357_s1 + $0xe30] sm:$0xff] }
 0x19e   :  { %4897 = vmatpush.bf16.msra.mxu0 %v7554_v52  ;;  %v4691_v13 = vpop.f32.mrf.mxu0  ;;  %v7648_v52 = vld [vmem:[%s9357_s1 + $0xef0] sm:$0xff] }
 0x19f   :  { %4910 = vmatpush.bf16.msra.mxu1 %v7562_v53  ;;  %v4692_v14 = vadd.f32 %v4691_v13, %v9012_v40  ;;  %v4704_v17 = vpop.f32.mrf.mxu1  ;;  %v7623_v53 = vld [vmem:[%s9357_s1 + $0xe28] sm:$0xff]  ;;  %v7636_v13 = vld [vmem:[%s9357_s1 + $0xe90] sm:$0xff] }
 0x1a0   :  { %4923 = vmatpush.bf16.msra.mxu2 %v7570_v54  ;;  %v7631_v54 = vld [vmem:[%s9357_s1 + $0xe68] sm:$0xff] }
 0x1a1   :  { %4936 = vmatpush.bf16.msra.mxu3 %v7578_v55  ;;  %4898 = vmatmul.bf16.vlgmr.msra.gmra.mxu0 %v1112_v61  ;;  %v4705_v20 = vadd.f32 %v4704_v17, %v4692_v14  ;;  %v7639_v55 = vld [vmem:[%s9357_s1 + $0xea8] sm:$0xff]  ;;  %v7644_v14 = vld [vmem:[%s9357_s1 + $0xed0] sm:$0xff] }
 0x1a2   :  { %4942 = vmatpush.bf16.msrb.mxu0 %v7593_v56  ;;  %4911 = vmatmul.bf16.vlgmr.msra.gmra.mxu1 %v1113_v63  ;;  %v7647_v56 = vld [vmem:[%s9357_s1 + $0xee8] sm:$0xff]  ;;  %v7646_v63 = vld [vmem:[%s9357_s1 + $0xee0] sm:$0xff] }
 0x1a3   :  { %4955 = vmatpush.bf16.msrb.mxu1 %v7601_v57  ;;  %4924 = vmatmul.bf16.vlgmr.msra.gmra.mxu2 %v1114_v62  ;;  %v7638_v62 = vld [vmem:[%s9357_s1 + $0xea0] sm:$0xff]  ;;  %v7635_v17 = vld [vmem:[%s9357_s1 + $0xe88] sm:$0xff] }
 0x1a4   :  { %4968 = vmatpush.bf16.msrb.mxu2 %v7609_v59  ;;  %4937 = vmatmul.bf16.vlgmr.msra.gmra.mxu3 %v1115_v0  ;;  %v7622_v59 = vld [vmem:[%s9357_s1 + $0xe20] sm:$0xff] }
 0x1a5   :  { %4981 = vmatpush.bf16.msrb.mxu3 %v7617_v60  ;;  %v7630_v60 = vld [vmem:[%s9357_s1 + $0xe60] sm:$0xff] }
 0x1a6   :  { %4943 = vmatpush.bf16.msrb.mxu0 %v7592_v1  ;;  %v4717_v25 = vpop.f32.mrf.mxu2  ;;  %v4693_v28 = vpop.f32.mrf.mxu0  ;;  %v7621_v1 = vld [vmem:[%s9357_s1 + $0xe18] sm:$0xff] }
 0x1a7   :  { %4956 = vmatpush.bf16.msrb.mxu1 %v7600_v2  ;;  %v4718_v26 = vadd.f32 %v4717_v25, %v4705_v20  ;;  %v4730_v27 = vpop.f32.mrf.mxu3  ;;  %v4706_v32 = vpop.f32.mrf.mxu1  ;;  %v7629_v2 = vld [vmem:[%s9357_s1 + $0xe58] sm:$0xff] }
 0x1a8   :  { %4969 = vmatpush.bf16.msrb.mxu2 %v7608_v3  ;;  %v7637_v3 = vld [vmem:[%s9357_s1 + $0xe98] sm:$0xff] }
 0x1a9   :  { %4982 = vmatpush.bf16.msrb.mxu3 %v7616_v4  ;;  %v4731_v29 = vadd.f32 %v4730_v27, %v4718_v26  ;;  %v7645_v4 = vld [vmem:[%s9357_s1 + $0xed8] sm:$0xff] }
 0x1aa   :  { %4944 = vmatpush.bf16.msrb.mxu0 %v7591_v9  ;;  %v7657_v25 = vld [vmem:[%s9357_s1 + $0xf38] sm:$0xff] }
 0x1ab   :  { %4957 = vmatpush.bf16.msrb.mxu1 %v7599_v10  ;;  %v7620_v10 = vld [vmem:[%s9357_s1 + $0xe10] sm:$0xff]  ;;  %v7665_v26 = vld [vmem:[%s9357_s1 + $0xf78] sm:$0xff] }
 0x1ac   :  { %4970 = vmatpush.bf16.msrb.mxu2 %v7607_v11  ;;  %v7628_v11 = vld [vmem:[%s9357_s1 + $0xe50] sm:$0xff]  ;;  %v7673_v27 = vld [vmem:[%s9357_s1 + $0xfb8] sm:$0xff] }
 0x1ad   :  { %4983 = vmatpush.bf16.msrb.mxu3 %v7615_v12  ;;  %v7681_v28 = vld [vmem:[%s9357_s1 + $0xff8] sm:$0xff] }
 0x1ae   :  { %4945 = vmatpush.bf16.msrb.mxu0 %v7590_v15  ;;  %v4719_v39 = vpop.f32.mrf.mxu2  ;;  %v7619_v15 = vld [vmem:[%s9357_s1 + $0xe08] sm:$0xff]  ;;  %v1125_v32 = vld [vmem:[#allocation1 + $0x1b] sm:$0xff] }
 0x1af   :  { %4958 = vmatpush.bf16.msrb.mxu1 %v7598_v16  ;;  %v4732_v40 = vpop.f32.mrf.mxu3  ;;  %v7627_v16 = vld [vmem:[%s9357_s1 + $0xe48] sm:$0xff] }
 0x1b0   :  { %4971 = vmatpush.bf16.msrb.mxu2 %v7606_v18  ;;  %v7643_v18 = vld [vmem:[%s9357_s1 + $0xec8] sm:$0xff] }
 0x1b1   :  { %4984 = vmatpush.bf16.msrb.mxu3 %v7614_v19  ;;  %v7671_v39 = vld [vmem:[%s9357_s1 + $0xfa8] sm:$0xff] }
 0x1b2   :  { %4946 = vmatpush.bf16.msrb.mxu0 %v7589_v21  ;;  %v7618_v21 = vld [vmem:[%s9357_s1 + $0xe00] sm:$0xff]  ;;  %v7679_v40 = vld [vmem:[%s9357_s1 + $0xfe8] sm:$0xff] }
 0x1b3   :  { %4959 = vmatpush.bf16.msrb.mxu1 %v7597_v22  ;;  %v7626_v22 = vld [vmem:[%s9357_s1 + $0xe40] sm:$0xff] }
 0x1b4   :  { %4972 = vmatpush.bf16.msrb.mxu2 %v7605_v23  ;;  %v7634_v23 = vld [vmem:[%s9357_s1 + $0xe80] sm:$0xff] }
 0x1b5   :  { %4985 = vmatpush.bf16.msrb.mxu3 %v7613_v24  ;;  %v7642_v24 = vld [vmem:[%s9357_s1 + $0xec0] sm:$0xff] }
 0x1b6   :  { %4947 = vmatpush.bf16.msrb.mxu0 %v7588_v30  ;;  %v1124_v30 = vld [vmem:[#allocation1 + $0x12] sm:$0xff] }
 0x1b7   :  { %4960 = vmatpush.bf16.msrb.mxu1 %v7596_v31  ;;  %v1123_v31 = vld [vmem:[#allocation1 + $0x9] sm:$0xff] }
 0x1b8   :  { %4973 = vmatpush.bf16.msrb.mxu2 %v7604_v33  ;;  %v7656_v33 = vld [vmem:[%s9357_s1 + $0xf30] sm:$0xff] }
 0x1b9   :  { %4986 = vmatpush.bf16.msrb.mxu3 %v7612_v34  ;;  %v7664_v34 = vld [vmem:[%s9357_s1 + $0xf70] sm:$0xff] }
 0x1ba   :  { %4948 = vmatpush.bf16.msrb.mxu0 %v7587_v35  ;;  %v7672_v35 = vld [vmem:[%s9357_s1 + $0xfb0] sm:$0xff] }
 0x1bb   :  { %4961 = vmatpush.bf16.msrb.mxu1 %v7595_v36  ;;  %v7680_v36 = vld [vmem:[%s9357_s1 + $0xff0] sm:$0xff] }
 0x1bc   :  { %4974 = vmatpush.bf16.msrb.mxu2 %v7603_v37  ;;  %v7655_v37 = vld [vmem:[%s9357_s1 + $0xf28] sm:$0xff] }
 0x1bd   :  { %4987 = vmatpush.bf16.msrb.mxu3 %v7611_v38  ;;  %v7663_v38 = vld [vmem:[%s9357_s1 + $0xf68] sm:$0xff] }
 0x1be   :  { %4949 = vmatpush.bf16.msrb.mxu0 %v7586_v41  ;;  %v4743_v57 = vpop.f32.mrf.mxu0 }
 0x1bf   :  { %4962 = vmatpush.bf16.msrb.mxu1 %v7594_v42  ;;  %v4744_v58 = vadd.f32 %v4743_v57, %v4731_v29  ;;  %v4756_v61 = vpop.f32.mrf.mxu1  ;;  %v1122_v29 = vld [vmem:[#allocation1] sm:$0xff] }
 0x1c0   :  { %4975 = vmatpush.bf16.msrb.mxu2 %v7602_v43  ;;  %v7654_v43 = vld [vmem:[%s9357_s1 + $0xf20] sm:$0xff] }
 0x1c1   :  { %4988 = vmatpush.bf16.msrb.mxu3 %v7610_v44  ;;  %4950 = vmatmul.bf16.vlgmr.msrb.gmra.mxu0 %v9077_v5  ;;  %v4757_v0 = vadd.f32 %v4756_v61, %v4744_v58  ;;  %v7662_v44 = vld [vmem:[%s9357_s1 + $0xf60] sm:$0xff]  ;;  %v7652_v58 = vld [vmem:[%s9357_s1 + $0xf10] sm:$0xff] }
 0x1c2   :  { %4994 = vmatpush.bf16.msra.mxu0 %v7625_v45  ;;  %4963 = vmatmul.bf16.vlgmr.msrb.gmra.mxu1 %v9081_v7  ;;  %v7668_v61 = vld [vmem:[%s9357_s1 + $0xf90] sm:$0xff] }
 0x1c3   :  { %5007 = vmatpush.bf16.msra.mxu1 %v7633_v46  ;;  %4976 = vmatmul.bf16.vlgmr.msrb.gmra.mxu2 %v9079_v6  ;;  %v7670_v46 = vld [vmem:[%s9357_s1 + $0xfa0] sm:$0xff] }
 0x1c4   :  { %5020 = vmatpush.bf16.msra.mxu2 %v7641_v47  ;;  %4989 = vmatmul.bf16.vlgmr.msrb.gmra.mxu3 %v9083_v8  ;;  %v7678_v47 = vld [vmem:[%s9357_s1 + $0xfe0] sm:$0xff] }
 0x1c5   :  { %5033 = vmatpush.bf16.msra.mxu3 %v7649_v48 }
 0x1c6   :  { %4995 = vmatpush.bf16.msra.mxu0 %v7624_v49  ;;  %v4769_v5 = vpop.f32.mrf.mxu2  ;;  %v4745_v8 = vpop.f32.mrf.mxu0  ;;  %v7653_v49 = vld [vmem:[%s9357_s1 + $0xf18] sm:$0xff] }
 0x1c7   :  { %5008 = vmatpush.bf16.msra.mxu1 %v7632_v50  ;;  %v4770_v6 = vadd.f32 %v4769_v5, %v4757_v0  ;;  %v4782_v7 = vpop.f32.mrf.mxu3  ;;  %v4758_v12 = vpop.f32.mrf.mxu1  ;;  %v7661_v50 = vld [vmem:[%s9357_s1 + $0xf58] sm:$0xff]  ;;  %v7659_v0 = vld [vmem:[%s9357_s1 + $0xf48] sm:$0xff]  ;;  %v7650_v5 = vld [vmem:[%s9357_s1 + $0xf00] sm:$0xff] }
 0x1c8   :  { %5021 = vmatpush.bf16.msra.mxu2 %v7640_v51  ;;  %v7669_v51 = vld [vmem:[%s9357_s1 + $0xf98] sm:$0xff]  ;;  %v7674_v8 = vld [vmem:[%s9357_s1 + $0xfc0] sm:$0xff] }
 0x1c9   :  { %5034 = vmatpush.bf16.msra.mxu3 %v7648_v52  ;;  %v4783_v9 = vadd.f32 %v4782_v7, %v4770_v6  ;;  %v7677_v52 = vld [vmem:[%s9357_s1 + $0xfd8] sm:$0xff]  ;;  %v7658_v6 = vld [vmem:[%s9357_s1 + $0xf40] sm:$0xff] }
 0x1ca   :  { %4996 = vmatpush.bf16.msra.mxu0 %v7623_v53  ;;  %v7666_v7 = vld [vmem:[%s9357_s1 + $0xf80] sm:$0xff] }
 0x1cb   :  { %5009 = vmatpush.bf16.msra.mxu1 %v7631_v54  ;;  %v1129_v12 = vld [vmem:[#allocation1 + $0x3f] sm:$0xff] }
 0x1cc   :  { %5022 = vmatpush.bf16.msra.mxu2 %v7639_v55 }
 0x1cd   :  { %5035 = vmatpush.bf16.msra.mxu3 %v7647_v56 }
 0x1ce   :  { %4997 = vmatpush.bf16.msra.mxu0 %v7622_v59  ;;  %v4771_v19 = vpop.f32.mrf.mxu2  ;;  %v7660_v59 = vld [vmem:[%s9357_s1 + $0xf50] sm:$0xff] }
 0x1cf   :  { %5010 = vmatpush.bf16.msra.mxu1 %v7630_v60  ;;  %v4784_v20 = vpop.f32.mrf.mxu3 }
 0x1d0   :  { %5023 = vmatpush.bf16.msra.mxu2 %v7638_v62  ;;  %v7676_v62 = vld [vmem:[%s9357_s1 + $0xfd0] sm:$0xff] }
 0x1d1   :  { %5036 = vmatpush.bf16.msra.mxu3 %v7646_v63  ;;  %v7651_v63 = vld [vmem:[%s9357_s1 + $0xf08] sm:$0xff] }
 0x1d2   :  { %4998 = vmatpush.bf16.msra.mxu0 %v7621_v1  ;;  %v7667_v1 = vld [vmem:[%s9357_s1 + $0xf88] sm:$0xff] }
 0x1d3   :  { %5011 = vmatpush.bf16.msra.mxu1 %v7629_v2  ;;  %v7675_v2 = vld [vmem:[%s9357_s1 + $0xfc8] sm:$0xff] }
 0x1d4   :  { %5024 = vmatpush.bf16.msra.mxu2 %v7637_v3 }
 0x1d5   :  { %5037 = vmatpush.bf16.msra.mxu3 %v7645_v4 }
 0x1d6   :  { %4999 = vmatpush.bf16.msra.mxu0 %v7620_v10  ;;  %v1127_v10 = vld [vmem:[#allocation1 + $0x2d] sm:$0xff] }
 0x1d7   :  { %5012 = vmatpush.bf16.msra.mxu1 %v7628_v11  ;;  %v1128_v11 = vld [vmem:[#allocation1 + $0x36] sm:$0xff] }
 0x1d8   :  { %5025 = vmatpush.bf16.msra.mxu2 %v7636_v13 }
 0x1d9   :  { %5038 = vmatpush.bf16.msra.mxu3 %v7644_v14 }
 0x1da   :  { %5000 = vmatpush.bf16.msra.mxu0 %v7619_v15 }
 0x1db   :  { %5013 = vmatpush.bf16.msra.mxu1 %v7627_v16 }
 0x1dc   :  { %5026 = vmatpush.bf16.msra.mxu2 %v7635_v17 }
 0x1dd   :  { %5039 = vmatpush.bf16.msra.mxu3 %v7643_v18 }
 0x1de   :  { %5001 = vmatpush.bf16.msra.mxu0 %v7618_v21  ;;  %v4795_v41 = vpop.f32.mrf.mxu0 }
 0x1df   :  { %5014 = vmatpush.bf16.msra.mxu1 %v7626_v22  ;;  %v4796_v42 = vadd.f32 %v4795_v41, %v4783_v9  ;;  %v4808_v45 = vpop.f32.mrf.mxu1  ;;  %v1126_v9 = vld [vmem:[#allocation1 + $0x24] sm:$0xff] }
 0x1e0   :  { %5027 = vmatpush.bf16.msra.mxu2 %v7634_v23 }
 0x1e1   :  { %5040 = vmatpush.bf16.msra.mxu3 %v7642_v24  ;;  %5002 = vmatmul.bf16.vlgmr.msra.gmra.mxu0 %v1122_v29  ;;  %v4809_v48 = vadd.f32 %v4808_v45, %v4796_v42 }
 0x1e2   :  { %5046 = vmatpush.bf16.msrb.mxu0 %v7657_v25  ;;  %5015 = vmatmul.bf16.vlgmr.msra.gmra.mxu1 %v1123_v31 }
 0x1e3   :  { %5059 = vmatpush.bf16.msrb.mxu1 %v7665_v26  ;;  %5028 = vmatmul.bf16.vlgmr.msra.gmra.mxu2 %v1124_v30 }
 0x1e4   :  { %5072 = vmatpush.bf16.msrb.mxu2 %v7673_v27  ;;  %5041 = vmatmul.bf16.vlgmr.msra.gmra.mxu3 %v1125_v32 }
 0x1e5   :  { %5085 = vmatpush.bf16.msrb.mxu3 %v7681_v28 }
 0x1e6   :  { %5047 = vmatpush.bf16.msrb.mxu0 %v7656_v33  ;;  %v4821_v53 = vpop.f32.mrf.mxu2  ;;  %v4797_v56 = vpop.f32.mrf.mxu0 }
 0x1e7   :  { %5060 = vmatpush.bf16.msrb.mxu1 %v7664_v34  ;;  %v4822_v54 = vadd.f32 %v4821_v53, %v4809_v48  ;;  %v4834_v55 = vpop.f32.mrf.mxu3  ;;  %v4810_v60 = vpop.f32.mrf.mxu1 }
 0x1e8   :  { %5073 = vmatpush.bf16.msrb.mxu2 %v7672_v35 }
 0x1e9   :  { %5086 = vmatpush.bf16.msrb.mxu3 %v7680_v36  ;;  %v4835_v57 = vadd.f32 %v4834_v55, %v4822_v54 }
 0x1ea   :  { %5048 = vmatpush.bf16.msrb.mxu0 %v7655_v37 }
 0x1eb   :  { %5061 = vmatpush.bf16.msrb.mxu1 %v7663_v38 }
 0x1ec   :  { %5074 = vmatpush.bf16.msrb.mxu2 %v7671_v39 }
 0x1ed   :  { %5087 = vmatpush.bf16.msrb.mxu3 %v7679_v40 }
 0x1ee   :  { %5049 = vmatpush.bf16.msrb.mxu0 %v7654_v43  ;;  %v4823_v3 = vpop.f32.mrf.mxu2 }
 0x1ef   :  { %5062 = vmatpush.bf16.msrb.mxu1 %v7662_v44  ;;  %v4836_v4 = vpop.f32.mrf.mxu3 }
 0x1f0   :  { %5075 = vmatpush.bf16.msrb.mxu2 %v7670_v46 }
 0x1f1   :  { %5088 = vmatpush.bf16.msrb.mxu3 %v7678_v47 }
 0x1f2   :  { %5050 = vmatpush.bf16.msrb.mxu0 %v7653_v49 }
 0x1f3   :  { %5063 = vmatpush.bf16.msrb.mxu1 %v7661_v50 }
 0x1f4   :  { %5076 = vmatpush.bf16.msrb.mxu2 %v7669_v51 }
 0x1f5   :  { %5089 = vmatpush.bf16.msrb.mxu3 %v7677_v52 }
 0x1f6   :  { %5051 = vmatpush.bf16.msrb.mxu0 %v7652_v58 }
 0x1f7   :  { %5064 = vmatpush.bf16.msrb.mxu1 %v7660_v59 }
 0x1f8   :  { %5077 = vmatpush.bf16.msrb.mxu2 %v7668_v61 }
 0x1f9   :  { %5090 = vmatpush.bf16.msrb.mxu3 %v7676_v62 }
 0x1fa   :  { %5052 = vmatpush.bf16.msrb.mxu0 %v7651_v63 }
 0x1fb   :  { %5065 = vmatpush.bf16.msrb.mxu1 %v7659_v0 }
 0x1fc   :  { %5078 = vmatpush.bf16.msrb.mxu2 %v7667_v1 }
 0x1fd   :  { %5091 = vmatpush.bf16.msrb.mxu3 %v7675_v2 }
 0x1fe   :  { %5053 = vmatpush.bf16.msrb.mxu0 %v7650_v5  ;;  %v4847_v13 = vpop.f32.mrf.mxu0 }
 0x1ff   :  { %5066 = vmatpush.bf16.msrb.mxu1 %v7658_v6  ;;  %v4848_v14 = vadd.f32 %v4847_v13, %v4835_v57  ;;  %v4860_v15 = vpop.f32.mrf.mxu1 }
 0x200   :  { %5079 = vmatpush.bf16.msrb.mxu2 %v7666_v7 }
 0x201   :  { %5092 = vmatpush.bf16.msrb.mxu3 %v7674_v8  ;;  %5054 = vmatmul.bf16.vlgmr.msrb.gmra.mxu0 %v1126_v9  ;;  %v4861_v16 = vadd.f32 %v4860_v15, %v4848_v14 }
 0x202   :  { %5067 = vmatmul.bf16.vlgmr.msrb.gmra.mxu1 %v1127_v10 }
 0x203   :  { %5080 = vmatmul.bf16.vlgmr.msrb.gmra.mxu2 %v1128_v11 }
 0x204   :  { %5093 = vmatmul.bf16.vlgmr.msrb.gmra.mxu3 %v1129_v12 }
 0x206   :  { %v4873_v17 = vpop.f32.mrf.mxu2  ;;  %v4849_v20 = vpop.f32.mrf.mxu0 }
 0x207   :  { %v4874_v18 = vadd.f32 %v4873_v17, %v4861_v16  ;;  %v4886_v19 = vpop.f32.mrf.mxu3  ;;  %v4862_v22 = vpop.f32.mrf.mxu1 }
 0x209   :  { %v4887_v21 = vadd.f32 %v4886_v19, %v4874_v18 }
 0x20e   :  { %v4875_v23 = vpop.f32.mrf.mxu2 }
 0x20f   :  { %v4888_v24 = vpop.f32.mrf.mxu3 }
 0x21e   :  { %v4899_v25 = vpop.f32.mrf.mxu0 }
 0x21f   :  { %v4900_v26 = vadd.f32 %v4899_v25, %v4887_v21  ;;  %v4912_v27 = vpop.f32.mrf.mxu1 }
 0x221   :  { %v4913_v28 = vadd.f32 %v4912_v27, %v4900_v26 }
 0x226   :  { %v4925_v29 = vpop.f32.mrf.mxu2  ;;  %v4901_v32 = vpop.f32.mrf.mxu0 }
 0x227   :  { %v4926_v30 = vadd.f32 %v4925_v29, %v4913_v28  ;;  %v4938_v31 = vpop.f32.mrf.mxu3  ;;  %v4914_v34 = vpop.f32.mrf.mxu1 }
 0x229   :  { %v4939_v33 = vadd.f32 %v4938_v31, %v4926_v30 }
 0x22e   :  { %v4927_v35 = vpop.f32.mrf.mxu2 }
 0x22f   :  { %v4940_v36 = vpop.f32.mrf.mxu3 }
 0x23e   :  { %v4951_v37 = vpop.f32.mrf.mxu0 }
 0x23f   :  { %v4964_v38 = vpop.f32.mrf.mxu1  ;;  %v4952_v48 = vadd.f32 %v4951_v37, %v4939_v33 }
 0x241   :  { %v4965_v52 = vadd.f32 %v4964_v38, %v4952_v48 }
 0x246   :  { %v4977_v39 = vpop.f32.mrf.mxu2  ;;  %v4953_v41 = vpop.f32.mrf.mxu0 }
 0x247   :  { %v4990_v40 = vpop.f32.mrf.mxu3  ;;  %v4966_v42 = vpop.f32.mrf.mxu1  ;;  %v4978_v53 = vadd.f32 %v4977_v39, %v4965_v52 }
 0x249   :  { %v4991_v56 = vadd.f32 %v4990_v40, %v4978_v53 }
 0x24e   :  { %v4979_v43 = vpop.f32.mrf.mxu2 }
 0x24f   :  { %v4992_v44 = vpop.f32.mrf.mxu3 }
 0x25e   :  { %v5003_v45 = vpop.f32.mrf.mxu0 }
 0x25f   :  { %v5016_v46 = vpop.f32.mrf.mxu1  ;;  %v5004_v57 = vadd.f32 %v5003_v45, %v4991_v56 }
 0x261   :  { %v5017_v58 = vadd.f32 %v5016_v46, %v5004_v57 }
 0x266   :  { %v5029_v47 = vpop.f32.mrf.mxu2  ;;  %v5005_v50 = vpop.f32.mrf.mxu0 }
 0x267   :  { %v5042_v49 = vpop.f32.mrf.mxu3  ;;  %v5018_v51 = vpop.f32.mrf.mxu1  ;;  %v5030_v59 = vadd.f32 %v5029_v47, %v5017_v58 }
 0x269   :  { %v5043_v60 = vadd.f32 %v5042_v49, %v5030_v59 }
 0x26e   :  { %v5031_v54 = vpop.f32.mrf.mxu2 }
 0x26f   :  { %v5044_v55 = vpop.f32.mrf.mxu3 }
 0x27e   :  { %v5055_v61 = vpop.f32.mrf.mxu0 }
 0x27f   :  { %v5068_v62 = vpop.f32.mrf.mxu1  ;;  %v5056_v63 = vadd.f32 %v5055_v61, %v5043_v60 }
 0x281   :  { %v5069_v0 = vadd.f32 %v5068_v62, %v5056_v63 }
 0x286   :  { %v5081_v1 = vpop.f32.mrf.mxu2  ;;  %v5057_v4 = vpop.f32.mrf.mxu0 }
 0x287   :  { %v5094_v2 = vpop.f32.mrf.mxu3  ;;  %v5082_v3 = vadd.f32 %v5081_v1, %v5069_v0  ;;  %v5070_v5 = vpop.f32.mrf.mxu1 }
 0x289   :  { %v5095_v6 = vadd.f32 %v5094_v2, %v5082_v3 }
 0x28b   :  { %v5098_v7 = vsub.f32 0.0, %v5095_v6 }
 0x28d   :  { %v5099_v8 = vmul.f32 1.442695, %v5098_v7 }
 0x28e   :  { %v5083_v9 = vpop.f32.mrf.mxu2 }
 0x28f   :  { %v5096_v10 = vpop.f32.mrf.mxu3  ;;  %7683 = vpow2.f32 %v5099_v8 }
 0x295   :  { %v7684_v11 = vpop.eup %7683 }
 0x296   :  { %v5101_v12 = vadd.f32 1.0, %v7684_v11 }
 0x298   :  { %7685 = vrcp.f32 %v5101_v12  ;;  %v5113_v16 = vand.u32 2147483648, %v5101_v12  ;;  %v5111_v18 = vand.u32 2147483647, %v5101_v12  ;;  %vm5107_vm1 = vweird.f32 %v5101_v12 }
 0x29a   :  { %v5114_v20 = vor.u32 1.1754944e-38, %v5113_v16  ;;  %vm5112_vm3 = vcmp.eq.f32.partialorder %v5111_v18, 8.507059e+37 }
 0x29e   :  { %v7686_v13 = vpop.eup %7685 }
 0x29f   :  { %v5103_v14 = vmul.f32 %v7686_v13, %v5101_v12  ;;  %vm5108_vm0 = vweird.f32 %v7686_v13 }
 0x2a0   :  { %vm5109_vm2 = vmor %vm5107_vm1, %vm5108_vm0 }
 0x2a1   :  { %v5104_v15 = vsub.f32 1.0, %v5103_v14 }
 0x2a3   :  { %v5105_v17 = vmul.f32 %v7686_v13, %v5104_v15 }
 0x2a5   :  { %v5106_v19 = vadd.f32 %v7686_v13, %v5105_v17 }
 0x2a7   :  { %v5110_v21 = vsel %vm5109_vm2, %v7686_v13, %v5106_v19 }
 0x2a8   :  { %v5115_v22 = vsel %vm5112_vm3, %v5114_v20, %v5110_v21 }
 0x2a9   :  { %5117 = vst [vmem:[%s9360_s3] sm:$0x3] %v5115_v22 }

</bundles_post_ra>
